<compile_context>
chip_gen: v6e
topology: v6e:2x2x1
jax: 0.10.0
libtpu: 0.0.40
codegen_flags: <defaults>
</compile_context>

<pallas_src>
import jax
import jax.numpy as jnp
from jax import lax
from jax.experimental import pallas as pl
from jax.experimental.pallas import tpu as pltpu

HIDDEN = 64
OUT_SIZE = 10
SIG_IN = 6
MET_IN = 4
_EPS = 1e-5


# ----------------------------------------------------------------------------
# The single fused kernel.
# Packed gate layout (columns of all gate matrices / biases), G = 8*H = 512:
#   [ i_sig i_met | f_sig f_met | o_sig o_met | g_sig g_met ]
# Stacked hidden state layout, SH = 2*H = 128:  [ h_sig | h_met ]
# ----------------------------------------------------------------------------
def _fused_kernel(sig_ref, met_ref,
                  sgam_ref, sbeta_ref, mgam_ref, mbeta_ref,
                  wxs_ref, wxm_ref, b0_ref,
                  whh0_ref, w1a_ref, w1b_ref, b1_ref,
                  fcw_ref, fcb_ref, fow_ref, fob_ref,
                  ogam_ref, obeta_ref, out_ref):
    B, T, Cs = sig_ref.shape
    Cm = met_ref.shape[2]
    G = b0_ref.shape[1]          # 8 * HIDDEN = 512
    SH = G // 4                  # 2 * HIDDEN = 128  ([sig | met] stacked)

    # ---- input BatchNorm1d (training mode: batch stats over (B, T)/channel) --
    xs = sig_ref[...].reshape(B * T, Cs)      # row = b*T + t (batch-major)
    xm = met_ref[...].reshape(B * T, Cm)

    def bn(x, gamma, beta):
        mean = jnp.mean(x, axis=0, keepdims=True)
        var = jnp.mean((x - mean) ** 2, axis=0, keepdims=True)
        return (x - mean) * lax.rsqrt(var + _EPS) * gamma + beta

    xs_n = bn(xs, sgam_ref[...], sbeta_ref[...])
    xm_n = bn(xm, mgam_ref[...], mbeta_ref[...])

    # ---- hoisted layer-0 input projection for BOTH streams, ALL timesteps ----
    # (biases b_ih+b_hh folded in; done once, outside the recurrence)
    gx = (jnp.dot(xs_n, wxs_ref[...], preferred_element_type=jnp.float32)
          + jnp.dot(xm_n, wxm_ref[...], preferred_element_type=jnp.float32)
          + b0_ref[...])                      # (B*T, G)
    gx = gx.reshape(B, T, G)                  # pure leading-dim split (no-op)

    whh0 = whh0_ref[...]                      # (SH, G)  layer-0 recurrent
    w1a = w1a_ref[...]                        # (SH, G)  layer-1 input (h1)
    w1b = w1b_ref[...]                        # (SH, G)  layer-1 recurrent (h2)
    b1 = b1_ref[...]                          # (1,  G)

    def gates_to_state(gates, c):
        # sigmoid on one 128-aligned (B, 3*SH) slab: [i | f | o], tanh on [g]
        s = jax.nn.sigmoid(gates[:, :3 * SH])
        i = s[:, 0 * SH:1 * SH]
        f = s[:, 1 * SH:2 * SH]
        o = s[:, 2 * SH:3 * SH]
        g = jnp.tanh(gates[:, 3 * SH:4 * SH])
        c_new = f * c + i * g
        h_new = o * jnp.tanh(c_new)
        return h_new, c_new

    zeros = jnp.zeros((B, SH), jnp.float32)
    h1, c1, h2, c2 = zeros, zeros, zeros, zeros

    # Fully unrolled time loop: 3 small matmuls per step for both streams &
    # both layers (layer-1 uses two K=128 matmuls so no per-step concat).
    for t in range(T):
        g0 = gx[:, t, :] + jnp.dot(h1, whh0, preferred_element_type=jnp.float32)
        h1, c1 = gates_to_state(g0, c1)
        g1 = (jnp.dot(h1, w1a, preferred_element_type=jnp.float32)
              + jnp.dot(h2, w1b, preferred_element_type=jnp.float32)
              + b1)
        h2, c2 = gates_to_state(g1, c2)

    # ---- head ---------------------------------------------------------------
    # h2 is already [h_sig_last | h_met_last] == torch.cat((sig, met), dim=1)
    out = jnp.dot(h2, fcw_ref[...], preferred_element_type=jnp.float32) \
        + fcb_ref[...]
    # torch.softmax(attention_pool(out), dim=1) is over a size-1 dim -> exactly
    # 1.0, so pooled_out == out (the attention Linear is provably dead compute).
    logits = jnp.dot(out, fow_ref[...], preferred_element_type=jnp.float32) \
        + fob_ref[...]
    # output BatchNorm1d (training mode: batch stats, biased variance)
    mean = jnp.mean(logits, axis=0, keepdims=True)
    var = jnp.mean((logits - mean) ** 2, axis=0, keepdims=True)
    normed = (logits - mean) * lax.rsqrt(var + _EPS) * ogam_ref[...] \
        + obeta_ref[...]
    out_ref[...] = jax.nn.sigmoid(normed)


# ----------------------------------------------------------------------------
# Wrapper: one pallas_call, everything resident in VMEM (< 2 MiB total).
# TODO(synk): if B*T grows, switch x/gx to chunked BlockSpecs over T (carry
#             h/c in VMEM scratch) sized for v7x's 64 MiB VMEM.
# ----------------------------------------------------------------------------
def dual_input_lstm_forward(signal, metmast, p):
    B = signal.shape[0]
    vmem = pl.BlockSpec(memory_space=pltpu.MemorySpace.VMEM)
    return pl.pallas_call(
        _fused_kernel,
        out_shape=jax.ShapeDtypeStruct((B, OUT_SIZE), jnp.float32),
        in_specs=[vmem] * 19,
        out_specs=vmem,
    )(signal, metmast,
      p["sig_bn_gamma"], p["sig_bn_beta"], p["met_bn_gamma"], p["met_bn_beta"],
      p["wx_sig"], p["wx_met"], p["b0"],
      p["whh0"], p["w1_h1"], p["w1_h2"], p["b1"],
      p["fc_w"], p["fc_b"], p["fco_w"], p["fco_b"],
      p["out_bn_gamma"], p["out_bn_beta"])


# ----------------------------------------------------------------------------
# Parameter init in PyTorch layout + one-time packing into the fused layout.
# ----------------------------------------------------------------------------
def _uniform(key, shape, scale):
    return jax.random.uniform(key, shape, jnp.float32, -scale, scale)


def _init_lstm_torch(key, input_size, hidden):
    ks = jax.random.split(key, 8)
    sc = float(hidden) ** -0.5
    return {
        "w_ih_l0": _uniform(ks[0], (4 * hidden, input_size), sc),
        "w_hh_l0": _uniform(ks[1], (4 * hidden, hidden), sc),
        "b_ih_l0": _uniform(ks[2], (4 * hidden,), sc),
        "b_hh_l0": _uniform(ks[3], (4 * hidden,), sc),
        "w_ih_l1": _uniform(ks[4], (4 * hidden, hidden), sc),
        "w_hh_l1": _uniform(ks[5], (4 * hidden, hidden), sc),
        "b_ih_l1": _uniform(ks[6], (4 * hidden,), sc),
        "b_hh_l1": _uniform(ks[7], (4 * hidden,), sc),
    }


def init_params(key, sig_in=SIG_IN, met_in=MET_IN, hidden=HIDDEN,
                out_size=OUT_SIZE):
    k_sig, k_met, k_fc, k_fco = jax.random.split(key, 4)
    sc_fc = float(2 * hidden) ** -0.5
    sc_h = float(hidden) ** -0.5
    kf = jax.random.split(k_fc, 2)
    ko = jax.random.split(k_fco, 2)
    return {
        "sig_bn_gamma": jnp.ones((sig_in,), jnp.float32),
        "sig_bn_beta": jnp.zeros((sig_in,), jnp.float32),
        "met_bn_gamma": jnp.ones((met_in,), jnp.float32),
        "met_bn_beta": jnp.zeros((met_in,), jnp.float32),
        "sig_lstm": _init_lstm_torch(k_sig, sig_in, hidden),
        "met_lstm": _init_lstm_torch(k_met, met_in, hidden),
        "head": {
            # attention_pool weights exist in the module but feed only a
            # softmax over a size-1 dim (== 1.0); they never affect the output.
            "fc_w": _uniform(kf[0], (hidden, 2 * hidden), sc_fc),
            "fc_b": _uniform(kf[1], (hidden,), sc_fc),
            "fco_w": _uniform(ko[0], (out_size, hidden), sc_h),
            "fco_b": _uniform(ko[1], (out_size,), sc_h),
            "bn_gamma": jnp.ones((out_size,), jnp.float32),
            "bn_beta": jnp.zeros((out_size,), jnp.float32),
        },
    }


def pack_params(tp, sig_in=SIG_IN, met_in=MET_IN, hidden=HIDDEN):
    """Pack PyTorch-layout params into the fused/stacked kernel layout."""
    H = hidden
    SH = 2 * H                      # stacked hidden [sig | met]
    G = 4 * SH                      # stacked gates [i | f | o | g]
    s, m = tp["sig_lstm"], tp["met_lstm"]
    PACK = (0, 1, 3, 2)             # torch gate order (i,f,g,o) -> (i,f,o,g)

    def gate_blocks_t(w):           # torch (4H, X) -> 4 x (X, H), packed order
        wt = w.T
        blocks = [wt[:, k * H:(k + 1) * H] for k in range(4)]
        return [blocks[k] for k in PACK]

    def gate_vec(b):                # (4H,) -> 4 x (H,), packed order
        blocks = [b[k * H:(k + 1) * H] for k in range(4)]
        return [blocks[k] for k in PACK]

    def place_cols(dst, blocks, row_off, half):
        for k, blk in enumerate(blocks):
            r = blk.shape[0]
            dst = dst.at[row_off:row_off + r,
                         k * SH + half * H: k * SH + (half + 1) * H].set(blk)
        return dst

    wx_sig = place_cols(jnp.zeros((sig_in, G), jnp.float32),
                        gate_blocks_t(s["w_ih_l0"]), 0, 0)
    wx_met = place_cols(jnp.zeros((met_in, G), jnp.float32),
                        gate_blocks_t(m["w_ih_l0"]), 0, 1)

    whh0 = jnp.zeros((SH, G), jnp.float32)
    whh0 = place_cols(whh0, gate_blocks_t(s["w_hh_l0"]), 0, 0)
    whh0 = place_cols(whh0, gate_blocks_t(m["w_hh_l0"]), H, 1)

    # Layer-1 weight split: w1_h1 multiplies the layer-0 output (stacked h1),
    # w1_h2 multiplies layer-1's own recurrent state (stacked h2).
    w1_h1 = jnp.zeros((SH, G), jnp.float32)
    w1_h1 = place_cols(w1_h1, gate_blocks_t(s["w_ih_l1"]), 0, 0)
    w1_h1 = place_cols(w1_h1, gate_blocks_t(m["w_ih_l1"]), H, 1)

    w1_h2 = jnp.zeros((SH, G), jnp.float32)
    w1_h2 = place_cols(w1_h2, gate_blocks_t(s["w_hh_l1"]), 0, 0)
    w1_h2 = place_cols(w1_h2, gate_blocks_t(m["w_hh_l1"]), H, 1)

    def pack_bias(bs, bm):
        out = jnp.zeros((1, G), jnp.float32)
        for k, (vs, vm) in enumerate(zip(gate_vec(bs), gate_vec(bm))):
            out = out.at[0, k * SH: k * SH + H].set(vs)
            out = out.at[0, k * SH + H: (k + 1) * SH].set(vm)
        return out

    b0 = pack_bias(s["b_ih_l0"] + s["b_hh_l0"], m["b_ih_l0"] + m["b_hh_l0"])
    b1 = pack_bias(s["b_ih_l1"] + s["b_hh_l1"], m["b_ih_l1"] + m["b_hh_l1"])

    head = tp["head"]
    return {
        "sig_bn_gamma": tp["sig_bn_gamma"].reshape(1, -1),
        "sig_bn_beta": tp["sig_bn_beta"].reshape(1, -1),
        "met_bn_gamma": tp["met_bn_gamma"].reshape(1, -1),
        "met_bn_beta": tp["met_bn_beta"].reshape(1, -1),
        "wx_sig": wx_sig, "wx_met": wx_met, "b0": b0,
        "whh0": whh0, "w1_h1": w1_h1, "w1_h2": w1_h2, "b1": b1,
        "fc_w": head["fc_w"].T,                 # (2H, H)
        "fc_b": head["fc_b"].reshape(1, -1),    # (1, H)
        "fco_w": head["fco_w"].T,               # (H, O)
        "fco_b": head["fco_b"].reshape(1, -1),  # (1, O)
        "out_bn_gamma": head["bn_gamma"].reshape(1, -1),
        "out_bn_beta": head["bn_beta"].reshape(1, -1),
    }


# ----------------------------------------------------------------------------
# Pure-JAX reference (torch layout) for a correctness check.
# ----------------------------------------------------------------------------
def _reference(signal, metmast, tp, hidden=HIDDEN):
    def bn(x, gamma, beta):
        mean = jnp.mean(x, axis=0, keepdims=True)
        var = jnp.mean((x - mean) ** 2, axis=0, keepdims=True)
        return (x - mean) / jnp.sqrt(var + _EPS) * gamma + beta

    B, T, Cs = signal.shape
    Cm = metmast.shape[2]
    xs = bn(signal.reshape(B * T, Cs),
            tp["sig_bn_gamma"], tp["sig_bn_beta"]).reshape(B, T, Cs)
    xm = bn(metmast.reshape(B * T, Cm),
            tp["met_bn_gamma"], tp["met_bn_beta"]).reshape(B, T, Cm)

    def cell(x_t, h, c, w_ih, w_hh, b_ih, b_hh):
        g = x_t @ w_ih.T + h @ w_hh.T + b_ih + b_hh
        i, f, gg, o = jnp.split(g, 4, axis=1)
        i, f, o = jax.nn.sigmoid(i), jax.nn.sigmoid(f), jax.nn.sigmoid(o)
        gg = jnp.tanh(gg)
        c = f * c + i * gg
        return o * jnp.tanh(c), c

    def lstm2(x, p):
        Bx, Tx, _ = x.shape
        h1 = c1 = h2 = c2 = jnp.zeros((Bx, hidden), jnp.float32)
        for t in range(Tx):
            h1, c1 = cell(x[:, t, :], h1, c1, p["w_ih_l0"], p["w_hh_l0"],
                          p["b_ih_l0"], p["b_hh_l0"])
            h2, c2 = cell(h1, h2, c2, p["w_ih_l1"], p["w_hh_l1"],
                          p["b_ih_l1"], p["b_hh_l1"])
        return h2

    hs = lstm2(xs, tp["sig_lstm"])
    hm = lstm2(xm, tp["met_lstm"])
    out = jnp.concatenate([hs, hm], axis=1)
    head = tp["head"]
    out = out @ head["fc_w"].T + head["fc_b"]
    # softmax over a size-1 dim is exactly 1.0 -> pooled_out == out
    logits = out @ head["fco_w"].T + head["fco_b"]
    mean = jnp.mean(logits, axis=0, keepdims=True)
    var = jnp.mean((logits - mean) ** 2, axis=0, keepdims=True)
    normed = (logits - mean) / jnp.sqrt(var + _EPS) * head["bn_gamma"] \
        + head["bn_beta"]
    return jax.nn.sigmoid(normed)


if __name__ == "__main__":
    key = jax.random.PRNGKey(0)
    k_p, k_s, k_m = jax.random.split(key, 3)

    B, T = 2, 8
    signal = jax.random.normal(k_s, (B, T, SIG_IN), jnp.float32)   # (B, T, 6)
    metmast = jax.random.normal(k_m, (B, T, MET_IN), jnp.float32)  # (B, T, 4)

    torch_params = init_params(k_p)
    packed = pack_params(torch_params)

    fwd = jax.jit(dual_input_lstm_forward)
    out = fwd(signal, metmast, packed)
    out = jax.block_until_ready(out)

    assert out.shape == (B, OUT_SIZE)
    assert bool(jnp.all(jnp.isfinite(out)))

    ref = jax.block_until_ready(_reference(signal, metmast, torch_params))
    max_err = float(jnp.max(jnp.abs(out - ref)))
    assert max_err < 1e-2, f"max abs error vs reference: {max_err}"

    print("KERNEL_OK")
</pallas_src>

<mosaic_0001>
module attributes {stable_mosaic.version = 11 : i64} {
  func.func @_fused_kernel(%arg0: memref<2x8x6xf32, #tpu.memory_space<vmem>>, %arg1: memref<2x8x4xf32, #tpu.memory_space<vmem>>, %arg2: memref<1x6xf32, #tpu.memory_space<vmem>>, %arg3: memref<1x6xf32, #tpu.memory_space<vmem>>, %arg4: memref<1x4xf32, #tpu.memory_space<vmem>>, %arg5: memref<1x4xf32, #tpu.memory_space<vmem>>, %arg6: memref<6x512xf32, #tpu.memory_space<vmem>>, %arg7: memref<4x512xf32, #tpu.memory_space<vmem>>, %arg8: memref<1x512xf32, #tpu.memory_space<vmem>>, %arg9: memref<128x512xf32, #tpu.memory_space<vmem>>, %arg10: memref<128x512xf32, #tpu.memory_space<vmem>>, %arg11: memref<128x512xf32, #tpu.memory_space<vmem>>, %arg12: memref<1x512xf32, #tpu.memory_space<vmem>>, %arg13: memref<128x64xf32, #tpu.memory_space<vmem>>, %arg14: memref<1x64xf32, #tpu.memory_space<vmem>>, %arg15: memref<64x10xf32, #tpu.memory_space<vmem>>, %arg16: memref<1x10xf32, #tpu.memory_space<vmem>>, %arg17: memref<1x10xf32, #tpu.memory_space<vmem>>, %arg18: memref<1x10xf32, #tpu.memory_space<vmem>>, %arg19: memref<2x10xf32, #tpu.memory_space<vmem>>) attributes {dimension_semantics = [], scalar_prefetch = 0 : i64, scratch_operands = 0 : i64, tpu.core_type = #tpu.core_type<tc>} {
    %c0 = arith.constant 0 : index
    %c0_0 = arith.constant 0 : index
    %c0_1 = arith.constant 0 : index
    %0 = vector.load %arg0[%c0, %c0_0, %c0_1] : memref<2x8x6xf32, #tpu.memory_space<vmem>>, vector<2x8x6xf32>
    %1 = vector.shape_cast %0 : vector<2x8x6xf32> to vector<16x6xf32>
    %c0_2 = arith.constant 0 : index
    %c0_3 = arith.constant 0 : index
    %c0_4 = arith.constant 0 : index
    %2 = vector.load %arg1[%c0_2, %c0_3, %c0_4] : memref<2x8x4xf32, #tpu.memory_space<vmem>>, vector<2x8x4xf32>
    %3 = vector.shape_cast %2 : vector<2x8x4xf32> to vector<16x4xf32>
    %c0_5 = arith.constant 0 : index
    %c0_6 = arith.constant 0 : index
    %4 = vector.load %arg2[%c0_5, %c0_6] : memref<1x6xf32, #tpu.memory_space<vmem>>, vector<1x6xf32>
    %c0_7 = arith.constant 0 : index
    %c0_8 = arith.constant 0 : index
    %5 = vector.load %arg3[%c0_7, %c0_8] : memref<1x6xf32, #tpu.memory_space<vmem>>, vector<1x6xf32>
    %cst = arith.constant dense<0.000000e+00> : vector<6xf32>
    %6 = vector.multi_reduction <add>, %1, %cst [0] : vector<16x6xf32> to vector<6xf32>
    %7 = vector.shape_cast %6 : vector<6xf32> to vector<1x6xf32>
    %cst_9 = arith.constant 1.600000e+01 : f32
    %8 = vector.broadcast %cst_9 : f32 to vector<1x6xf32>
    %9 = arith.divf %7, %8 : vector<1x6xf32>
    %10 = vector.broadcast %9 : vector<1x6xf32> to vector<16x6xf32>
    %11 = arith.subf %1, %10 : vector<16x6xf32>
    %12 = arith.mulf %11, %11 : vector<16x6xf32>
    %cst_10 = arith.constant dense<0.000000e+00> : vector<6xf32>
    %13 = vector.multi_reduction <add>, %12, %cst_10 [0] : vector<16x6xf32> to vector<6xf32>
    %14 = vector.shape_cast %13 : vector<6xf32> to vector<1x6xf32>
    %cst_11 = arith.constant 1.600000e+01 : f32
    %15 = vector.broadcast %cst_11 : f32 to vector<1x6xf32>
    %16 = arith.divf %14, %15 : vector<1x6xf32>
    %17 = vector.broadcast %9 : vector<1x6xf32> to vector<16x6xf32>
    %18 = arith.subf %1, %17 : vector<16x6xf32>
    %cst_12 = arith.constant 9.99999974E-6 : f32
    %19 = vector.broadcast %cst_12 : f32 to vector<1x6xf32>
    %20 = arith.addf %16, %19 : vector<1x6xf32>
    %21 = math.rsqrt %20 : vector<1x6xf32>
    %22 = vector.broadcast %21 : vector<1x6xf32> to vector<16x6xf32>
    %23 = arith.mulf %18, %22 : vector<16x6xf32>
    %24 = vector.broadcast %4 : vector<1x6xf32> to vector<16x6xf32>
    %25 = arith.mulf %23, %24 : vector<16x6xf32>
    %26 = vector.broadcast %5 : vector<1x6xf32> to vector<16x6xf32>
    %27 = arith.addf %25, %26 : vector<16x6xf32>
    %c0_13 = arith.constant 0 : index
    %c0_14 = arith.constant 0 : index
    %28 = vector.load %arg4[%c0_13, %c0_14] : memref<1x4xf32, #tpu.memory_space<vmem>>, vector<1x4xf32>
    %c0_15 = arith.constant 0 : index
    %c0_16 = arith.constant 0 : index
    %29 = vector.load %arg5[%c0_15, %c0_16] : memref<1x4xf32, #tpu.memory_space<vmem>>, vector<1x4xf32>
    %cst_17 = arith.constant dense<0.000000e+00> : vector<4xf32>
    %30 = vector.multi_reduction <add>, %3, %cst_17 [0] : vector<16x4xf32> to vector<4xf32>
    %31 = vector.shape_cast %30 : vector<4xf32> to vector<1x4xf32>
    %cst_18 = arith.constant 1.600000e+01 : f32
    %32 = vector.broadcast %cst_18 : f32 to vector<1x4xf32>
    %33 = arith.divf %31, %32 : vector<1x4xf32>
    %34 = vector.broadcast %33 : vector<1x4xf32> to vector<16x4xf32>
    %35 = arith.subf %3, %34 : vector<16x4xf32>
    %36 = arith.mulf %35, %35 : vector<16x4xf32>
    %cst_19 = arith.constant dense<0.000000e+00> : vector<4xf32>
    %37 = vector.multi_reduction <add>, %36, %cst_19 [0] : vector<16x4xf32> to vector<4xf32>
    %38 = vector.shape_cast %37 : vector<4xf32> to vector<1x4xf32>
    %cst_20 = arith.constant 1.600000e+01 : f32
    %39 = vector.broadcast %cst_20 : f32 to vector<1x4xf32>
    %40 = arith.divf %38, %39 : vector<1x4xf32>
    %41 = vector.broadcast %33 : vector<1x4xf32> to vector<16x4xf32>
    %42 = arith.subf %3, %41 : vector<16x4xf32>
    %cst_21 = arith.constant 9.99999974E-6 : f32
    %43 = vector.broadcast %cst_21 : f32 to vector<1x4xf32>
    %44 = arith.addf %40, %43 : vector<1x4xf32>
    %45 = math.rsqrt %44 : vector<1x4xf32>
    %46 = vector.broadcast %45 : vector<1x4xf32> to vector<16x4xf32>
    %47 = arith.mulf %42, %46 : vector<16x4xf32>
    %48 = vector.broadcast %28 : vector<1x4xf32> to vector<16x4xf32>
    %49 = arith.mulf %47, %48 : vector<16x4xf32>
    %50 = vector.broadcast %29 : vector<1x4xf32> to vector<16x4xf32>
    %51 = arith.addf %49, %50 : vector<16x4xf32>
    %c0_22 = arith.constant 0 : index
    %c0_23 = arith.constant 0 : index
    %52 = vector.load %arg6[%c0_22, %c0_23] : memref<6x512xf32, #tpu.memory_space<vmem>>, vector<6x512xf32>
    %cst_24 = arith.constant dense<0.000000e+00> : vector<16x512xf32>
    %53 = tpu.matmul %27, %52, %cst_24 {dimension_numbers = #tpu.dot_dimension_numbers<[1], [0], [0], [1], [0, 0, 1, 1], [], []>} : vector<16x6xf32>, vector<6x512xf32>, vector<16x512xf32> -> vector<16x512xf32>
    %c0_25 = arith.constant 0 : index
    %c0_26 = arith.constant 0 : index
    %54 = vector.load %arg7[%c0_25, %c0_26] : memref<4x512xf32, #tpu.memory_space<vmem>>, vector<4x512xf32>
    %cst_27 = arith.constant dense<0.000000e+00> : vector<16x512xf32>
    %55 = tpu.matmul %51, %54, %cst_27 {dimension_numbers = #tpu.dot_dimension_numbers<[1], [0], [0], [1], [0, 0, 1, 1], [], []>} : vector<16x4xf32>, vector<4x512xf32>, vector<16x512xf32> -> vector<16x512xf32>
    %56 = arith.addf %53, %55 : vector<16x512xf32>
    %c0_28 = arith.constant 0 : index
    %c0_29 = arith.constant 0 : index
    %57 = vector.load %arg8[%c0_28, %c0_29] : memref<1x512xf32, #tpu.memory_space<vmem>>, vector<1x512xf32>
    %58 = vector.broadcast %57 : vector<1x512xf32> to vector<16x512xf32>
    %59 = arith.addf %56, %58 : vector<16x512xf32>
    %60 = vector.shape_cast %59 : vector<16x512xf32> to vector<2x8x512xf32>
    %c0_30 = arith.constant 0 : index
    %c0_31 = arith.constant 0 : index
    %61 = vector.load %arg9[%c0_30, %c0_31] : memref<128x512xf32, #tpu.memory_space<vmem>>, vector<128x512xf32>
    %c0_32 = arith.constant 0 : index
    %c0_33 = arith.constant 0 : index
    %62 = vector.load %arg10[%c0_32, %c0_33] : memref<128x512xf32, #tpu.memory_space<vmem>>, vector<128x512xf32>
    %c0_34 = arith.constant 0 : index
    %c0_35 = arith.constant 0 : index
    %63 = vector.load %arg11[%c0_34, %c0_35] : memref<128x512xf32, #tpu.memory_space<vmem>>, vector<128x512xf32>
    %c0_36 = arith.constant 0 : index
    %c0_37 = arith.constant 0 : index
    %64 = vector.load %arg12[%c0_36, %c0_37] : memref<1x512xf32, #tpu.memory_space<vmem>>, vector<1x512xf32>
    %cst_38 = arith.constant 0.000000e+00 : f32
    %65 = vector.broadcast %cst_38 : f32 to vector<2x128xf32>
    %66 = vector.extract_strided_slice %60 {offsets = [0, 0, 0], sizes = [2, 1, 512], strides = [1, 1, 1]} : vector<2x8x512xf32> to vector<2x1x512xf32>
    %67 = vector.shape_cast %66 : vector<2x1x512xf32> to vector<2x512xf32>
    %cst_39 = arith.constant dense<0.000000e+00> : vector<2x512xf32>
    %68 = tpu.matmul %65, %61, %cst_39 {dimension_numbers = #tpu.dot_dimension_numbers<[1], [0], [0], [1], [0, 0, 1, 1], [], []>} : vector<2x128xf32>, vector<128x512xf32>, vector<2x512xf32> -> vector<2x512xf32>
    %69 = arith.addf %67, %68 : vector<2x512xf32>
    %70 = vector.extract_strided_slice %69 {offsets = [0, 0], sizes = [2, 384], strides = [1, 1]} : vector<2x512xf32> to vector<2x384xf32>
    %71 = arith.negf %70 : vector<2x384xf32>
    %72 = math.exp %71 : vector<2x384xf32>
    %cst_40 = arith.constant 1.000000e+00 : f32
    %73 = vector.broadcast %cst_40 : f32 to vector<2x384xf32>
    %74 = arith.addf %73, %72 : vector<2x384xf32>
    %75 = arith.divf %73, %74 : vector<2x384xf32>
    %76 = vector.extract_strided_slice %75 {offsets = [0, 0], sizes = [2, 128], strides = [1, 1]} : vector<2x384xf32> to vector<2x128xf32>
    %77 = vector.extract_strided_slice %75 {offsets = [0, 128], sizes = [2, 128], strides = [1, 1]} : vector<2x384xf32> to vector<2x128xf32>
    %78 = vector.extract_strided_slice %75 {offsets = [0, 256], sizes = [2, 128], strides = [1, 1]} : vector<2x384xf32> to vector<2x128xf32>
    %79 = vector.extract_strided_slice %69 {offsets = [0, 384], sizes = [2, 128], strides = [1, 1]} : vector<2x512xf32> to vector<2x128xf32>
    %80 = math.tanh %79 : vector<2x128xf32>
    %81 = arith.mulf %77, %65 : vector<2x128xf32>
    %82 = arith.mulf %76, %80 : vector<2x128xf32>
    %83 = arith.addf %81, %82 : vector<2x128xf32>
    %84 = math.tanh %83 : vector<2x128xf32>
    %85 = arith.mulf %78, %84 : vector<2x128xf32>
    %cst_41 = arith.constant dense<0.000000e+00> : vector<2x512xf32>
    %86 = tpu.matmul %85, %62, %cst_41 {dimension_numbers = #tpu.dot_dimension_numbers<[1], [0], [0], [1], [0, 0, 1, 1], [], []>} : vector<2x128xf32>, vector<128x512xf32>, vector<2x512xf32> -> vector<2x512xf32>
    %cst_42 = arith.constant dense<0.000000e+00> : vector<2x512xf32>
    %87 = tpu.matmul %65, %63, %cst_42 {dimension_numbers = #tpu.dot_dimension_numbers<[1], [0], [0], [1], [0, 0, 1, 1], [], []>} : vector<2x128xf32>, vector<128x512xf32>, vector<2x512xf32> -> vector<2x512xf32>
    %88 = arith.addf %86, %87 : vector<2x512xf32>
    %89 = vector.broadcast %64 : vector<1x512xf32> to vector<2x512xf32>
    %90 = arith.addf %88, %89 : vector<2x512xf32>
    %91 = vector.extract_strided_slice %90 {offsets = [0, 0], sizes = [2, 384], strides = [1, 1]} : vector<2x512xf32> to vector<2x384xf32>
    %92 = arith.negf %91 : vector<2x384xf32>
    %93 = math.exp %92 : vector<2x384xf32>
    %cst_43 = arith.constant 1.000000e+00 : f32
    %94 = vector.broadcast %cst_43 : f32 to vector<2x384xf32>
    %95 = arith.addf %94, %93 : vector<2x384xf32>
    %96 = arith.divf %94, %95 : vector<2x384xf32>
    %97 = vector.extract_strided_slice %96 {offsets = [0, 0], sizes = [2, 128], strides = [1, 1]} : vector<2x384xf32> to vector<2x128xf32>
    %98 = vector.extract_strided_slice %96 {offsets = [0, 128], sizes = [2, 128], strides = [1, 1]} : vector<2x384xf32> to vector<2x128xf32>
    %99 = vector.extract_strided_slice %96 {offsets = [0, 256], sizes = [2, 128], strides = [1, 1]} : vector<2x384xf32> to vector<2x128xf32>
    %100 = vector.extract_strided_slice %90 {offsets = [0, 384], sizes = [2, 128], strides = [1, 1]} : vector<2x512xf32> to vector<2x128xf32>
    %101 = math.tanh %100 : vector<2x128xf32>
    %102 = arith.mulf %98, %65 : vector<2x128xf32>
    %103 = arith.mulf %97, %101 : vector<2x128xf32>
    %104 = arith.addf %102, %103 : vector<2x128xf32>
    %105 = math.tanh %104 : vector<2x128xf32>
    %106 = arith.mulf %99, %105 : vector<2x128xf32>
    %107 = vector.extract_strided_slice %60 {offsets = [0, 1, 0], sizes = [2, 1, 512], strides = [1, 1, 1]} : vector<2x8x512xf32> to vector<2x1x512xf32>
    %108 = vector.shape_cast %107 : vector<2x1x512xf32> to vector<2x512xf32>
    %cst_44 = arith.constant dense<0.000000e+00> : vector<2x512xf32>
    %109 = tpu.matmul %85, %61, %cst_44 {dimension_numbers = #tpu.dot_dimension_numbers<[1], [0], [0], [1], [0, 0, 1, 1], [], []>} : vector<2x128xf32>, vector<128x512xf32>, vector<2x512xf32> -> vector<2x512xf32>
    %110 = arith.addf %108, %109 : vector<2x512xf32>
    %111 = vector.extract_strided_slice %110 {offsets = [0, 0], sizes = [2, 384], strides = [1, 1]} : vector<2x512xf32> to vector<2x384xf32>
    %112 = arith.negf %111 : vector<2x384xf32>
    %113 = math.exp %112 : vector<2x384xf32>
    %cst_45 = arith.constant 1.000000e+00 : f32
    %114 = vector.broadcast %cst_45 : f32 to vector<2x384xf32>
    %115 = arith.addf %114, %113 : vector<2x384xf32>
    %116 = arith.divf %114, %115 : vector<2x384xf32>
    %117 = vector.extract_strided_slice %116 {offsets = [0, 0], sizes = [2, 128], strides = [1, 1]} : vector<2x384xf32> to vector<2x128xf32>
    %118 = vector.extract_strided_slice %116 {offsets = [0, 128], sizes = [2, 128], strides = [1, 1]} : vector<2x384xf32> to vector<2x128xf32>
    %119 = vector.extract_strided_slice %116 {offsets = [0, 256], sizes = [2, 128], strides = [1, 1]} : vector<2x384xf32> to vector<2x128xf32>
    %120 = vector.extract_strided_slice %110 {offsets = [0, 384], sizes = [2, 128], strides = [1, 1]} : vector<2x512xf32> to vector<2x128xf32>
    %121 = math.tanh %120 : vector<2x128xf32>
    %122 = arith.mulf %118, %83 : vector<2x128xf32>
    %123 = arith.mulf %117, %121 : vector<2x128xf32>
    %124 = arith.addf %122, %123 : vector<2x128xf32>
    %125 = math.tanh %124 : vector<2x128xf32>
    %126 = arith.mulf %119, %125 : vector<2x128xf32>
    %cst_46 = arith.constant dense<0.000000e+00> : vector<2x512xf32>
    %127 = tpu.matmul %126, %62, %cst_46 {dimension_numbers = #tpu.dot_dimension_numbers<[1], [0], [0], [1], [0, 0, 1, 1], [], []>} : vector<2x128xf32>, vector<128x512xf32>, vector<2x512xf32> -> vector<2x512xf32>
    %cst_47 = arith.constant dense<0.000000e+00> : vector<2x512xf32>
    %128 = tpu.matmul %106, %63, %cst_47 {dimension_numbers = #tpu.dot_dimension_numbers<[1], [0], [0], [1], [0, 0, 1, 1], [], []>} : vector<2x128xf32>, vector<128x512xf32>, vector<2x512xf32> -> vector<2x512xf32>
    %129 = arith.addf %127, %128 : vector<2x512xf32>
    %130 = vector.broadcast %64 : vector<1x512xf32> to vector<2x512xf32>
    %131 = arith.addf %129, %130 : vector<2x512xf32>
    %132 = vector.extract_strided_slice %131 {offsets = [0, 0], sizes = [2, 384], strides = [1, 1]} : vector<2x512xf32> to vector<2x384xf32>
    %133 = arith.negf %132 : vector<2x384xf32>
    %134 = math.exp %133 : vector<2x384xf32>
    %cst_48 = arith.constant 1.000000e+00 : f32
    %135 = vector.broadcast %cst_48 : f32 to vector<2x384xf32>
    %136 = arith.addf %135, %134 : vector<2x384xf32>
    %137 = arith.divf %135, %136 : vector<2x384xf32>
    %138 = vector.extract_strided_slice %137 {offsets = [0, 0], sizes = [2, 128], strides = [1, 1]} : vector<2x384xf32> to vector<2x128xf32>
    %139 = vector.extract_strided_slice %137 {offsets = [0, 128], sizes = [2, 128], strides = [1, 1]} : vector<2x384xf32> to vector<2x128xf32>
    %140 = vector.extract_strided_slice %137 {offsets = [0, 256], sizes = [2, 128], strides = [1, 1]} : vector<2x384xf32> to vector<2x128xf32>
    %141 = vector.extract_strided_slice %131 {offsets = [0, 384], sizes = [2, 128], strides = [1, 1]} : vector<2x512xf32> to vector<2x128xf32>
    %142 = math.tanh %141 : vector<2x128xf32>
    %143 = arith.mulf %139, %104 : vector<2x128xf32>
    %144 = arith.mulf %138, %142 : vector<2x128xf32>
    %145 = arith.addf %143, %144 : vector<2x128xf32>
    %146 = math.tanh %145 : vector<2x128xf32>
    %147 = arith.mulf %140, %146 : vector<2x128xf32>
    %148 = vector.extract_strided_slice %60 {offsets = [0, 2, 0], sizes = [2, 1, 512], strides = [1, 1, 1]} : vector<2x8x512xf32> to vector<2x1x512xf32>
    %149 = vector.shape_cast %148 : vector<2x1x512xf32> to vector<2x512xf32>
    %cst_49 = arith.constant dense<0.000000e+00> : vector<2x512xf32>
    %150 = tpu.matmul %126, %61, %cst_49 {dimension_numbers = #tpu.dot_dimension_numbers<[1], [0], [0], [1], [0, 0, 1, 1], [], []>} : vector<2x128xf32>, vector<128x512xf32>, vector<2x512xf32> -> vector<2x512xf32>
    %151 = arith.addf %149, %150 : vector<2x512xf32>
    %152 = vector.extract_strided_slice %151 {offsets = [0, 0], sizes = [2, 384], strides = [1, 1]} : vector<2x512xf32> to vector<2x384xf32>
    %153 = arith.negf %152 : vector<2x384xf32>
    %154 = math.exp %153 : vector<2x384xf32>
    %cst_50 = arith.constant 1.000000e+00 : f32
    %155 = vector.broadcast %cst_50 : f32 to vector<2x384xf32>
    %156 = arith.addf %155, %154 : vector<2x384xf32>
    %157 = arith.divf %155, %156 : vector<2x384xf32>
    %158 = vector.extract_strided_slice %157 {offsets = [0, 0], sizes = [2, 128], strides = [1, 1]} : vector<2x384xf32> to vector<2x128xf32>
    %159 = vector.extract_strided_slice %157 {offsets = [0, 128], sizes = [2, 128], strides = [1, 1]} : vector<2x384xf32> to vector<2x128xf32>
    %160 = vector.extract_strided_slice %157 {offsets = [0, 256], sizes = [2, 128], strides = [1, 1]} : vector<2x384xf32> to vector<2x128xf32>
    %161 = vector.extract_strided_slice %151 {offsets = [0, 384], sizes = [2, 128], strides = [1, 1]} : vector<2x512xf32> to vector<2x128xf32>
    %162 = math.tanh %161 : vector<2x128xf32>
    %163 = arith.mulf %159, %124 : vector<2x128xf32>
    %164 = arith.mulf %158, %162 : vector<2x128xf32>
    %165 = arith.addf %163, %164 : vector<2x128xf32>
    %166 = math.tanh %165 : vector<2x128xf32>
    %167 = arith.mulf %160, %166 : vector<2x128xf32>
    %cst_51 = arith.constant dense<0.000000e+00> : vector<2x512xf32>
    %168 = tpu.matmul %167, %62, %cst_51 {dimension_numbers = #tpu.dot_dimension_numbers<[1], [0], [0], [1], [0, 0, 1, 1], [], []>} : vector<2x128xf32>, vector<128x512xf32>, vector<2x512xf32> -> vector<2x512xf32>
    %cst_52 = arith.constant dense<0.000000e+00> : vector<2x512xf32>
    %169 = tpu.matmul %147, %63, %cst_52 {dimension_numbers = #tpu.dot_dimension_numbers<[1], [0], [0], [1], [0, 0, 1, 1], [], []>} : vector<2x128xf32>, vector<128x512xf32>, vector<2x512xf32> -> vector<2x512xf32>
    %170 = arith.addf %168, %169 : vector<2x512xf32>
    %171 = vector.broadcast %64 : vector<1x512xf32> to vector<2x512xf32>
    %172 = arith.addf %170, %171 : vector<2x512xf32>
    %173 = vector.extract_strided_slice %172 {offsets = [0, 0], sizes = [2, 384], strides = [1, 1]} : vector<2x512xf32> to vector<2x384xf32>
    %174 = arith.negf %173 : vector<2x384xf32>
    %175 = math.exp %174 : vector<2x384xf32>
    %cst_53 = arith.constant 1.000000e+00 : f32
    %176 = vector.broadcast %cst_53 : f32 to vector<2x384xf32>
    %177 = arith.addf %176, %175 : vector<2x384xf32>
    %178 = arith.divf %176, %177 : vector<2x384xf32>
    %179 = vector.extract_strided_slice %178 {offsets = [0, 0], sizes = [2, 128], strides = [1, 1]} : vector<2x384xf32> to vector<2x128xf32>
    %180 = vector.extract_strided_slice %178 {offsets = [0, 128], sizes = [2, 128], strides = [1, 1]} : vector<2x384xf32> to vector<2x128xf32>
    %181 = vector.extract_strided_slice %178 {offsets = [0, 256], sizes = [2, 128], strides = [1, 1]} : vector<2x384xf32> to vector<2x128xf32>
    %182 = vector.extract_strided_slice %172 {offsets = [0, 384], sizes = [2, 128], strides = [1, 1]} : vector<2x512xf32> to vector<2x128xf32>
    %183 = math.tanh %182 : vector<2x128xf32>
    %184 = arith.mulf %180, %145 : vector<2x128xf32>
    %185 = arith.mulf %179, %183 : vector<2x128xf32>
    %186 = arith.addf %184, %185 : vector<2x128xf32>
    %187 = math.tanh %186 : vector<2x128xf32>
    %188 = arith.mulf %181, %187 : vector<2x128xf32>
    %189 = vector.extract_strided_slice %60 {offsets = [0, 3, 0], sizes = [2, 1, 512], strides = [1, 1, 1]} : vector<2x8x512xf32> to vector<2x1x512xf32>
    %190 = vector.shape_cast %189 : vector<2x1x512xf32> to vector<2x512xf32>
    %cst_54 = arith.constant dense<0.000000e+00> : vector<2x512xf32>
    %191 = tpu.matmul %167, %61, %cst_54 {dimension_numbers = #tpu.dot_dimension_numbers<[1], [0], [0], [1], [0, 0, 1, 1], [], []>} : vector<2x128xf32>, vector<128x512xf32>, vector<2x512xf32> -> vector<2x512xf32>
    %192 = arith.addf %190, %191 : vector<2x512xf32>
    %193 = vector.extract_strided_slice %192 {offsets = [0, 0], sizes = [2, 384], strides = [1, 1]} : vector<2x512xf32> to vector<2x384xf32>
    %194 = arith.negf %193 : vector<2x384xf32>
    %195 = math.exp %194 : vector<2x384xf32>
    %cst_55 = arith.constant 1.000000e+00 : f32
    %196 = vector.broadcast %cst_55 : f32 to vector<2x384xf32>
    %197 = arith.addf %196, %195 : vector<2x384xf32>
    %198 = arith.divf %196, %197 : vector<2x384xf32>
    %199 = vector.extract_strided_slice %198 {offsets = [0, 0], sizes = [2, 128], strides = [1, 1]} : vector<2x384xf32> to vector<2x128xf32>
    %200 = vector.extract_strided_slice %198 {offsets = [0, 128], sizes = [2, 128], strides = [1, 1]} : vector<2x384xf32> to vector<2x128xf32>
    %201 = vector.extract_strided_slice %198 {offsets = [0, 256], sizes = [2, 128], strides = [1, 1]} : vector<2x384xf32> to vector<2x128xf32>
    %202 = vector.extract_strided_slice %192 {offsets = [0, 384], sizes = [2, 128], strides = [1, 1]} : vector<2x512xf32> to vector<2x128xf32>
    %203 = math.tanh %202 : vector<2x128xf32>
    %204 = arith.mulf %200, %165 : vector<2x128xf32>
    %205 = arith.mulf %199, %203 : vector<2x128xf32>
    %206 = arith.addf %204, %205 : vector<2x128xf32>
    %207 = math.tanh %206 : vector<2x128xf32>
    %208 = arith.mulf %201, %207 : vector<2x128xf32>
    %cst_56 = arith.constant dense<0.000000e+00> : vector<2x512xf32>
    %209 = tpu.matmul %208, %62, %cst_56 {dimension_numbers = #tpu.dot_dimension_numbers<[1], [0], [0], [1], [0, 0, 1, 1], [], []>} : vector<2x128xf32>, vector<128x512xf32>, vector<2x512xf32> -> vector<2x512xf32>
    %cst_57 = arith.constant dense<0.000000e+00> : vector<2x512xf32>
    %210 = tpu.matmul %188, %63, %cst_57 {dimension_numbers = #tpu.dot_dimension_numbers<[1], [0], [0], [1], [0, 0, 1, 1], [], []>} : vector<2x128xf32>, vector<128x512xf32>, vector<2x512xf32> -> vector<2x512xf32>
    %211 = arith.addf %209, %210 : vector<2x512xf32>
    %212 = vector.broadcast %64 : vector<1x512xf32> to vector<2x512xf32>
    %213 = arith.addf %211, %212 : vector<2x512xf32>
    %214 = vector.extract_strided_slice %213 {offsets = [0, 0], sizes = [2, 384], strides = [1, 1]} : vector<2x512xf32> to vector<2x384xf32>
    %215 = arith.negf %214 : vector<2x384xf32>
    %216 = math.exp %215 : vector<2x384xf32>
    %cst_58 = arith.constant 1.000000e+00 : f32
    %217 = vector.broadcast %cst_58 : f32 to vector<2x384xf32>
    %218 = arith.addf %217, %216 : vector<2x384xf32>
    %219 = arith.divf %217, %218 : vector<2x384xf32>
    %220 = vector.extract_strided_slice %219 {offsets = [0, 0], sizes = [2, 128], strides = [1, 1]} : vector<2x384xf32> to vector<2x128xf32>
    %221 = vector.extract_strided_slice %219 {offsets = [0, 128], sizes = [2, 128], strides = [1, 1]} : vector<2x384xf32> to vector<2x128xf32>
    %222 = vector.extract_strided_slice %219 {offsets = [0, 256], sizes = [2, 128], strides = [1, 1]} : vector<2x384xf32> to vector<2x128xf32>
    %223 = vector.extract_strided_slice %213 {offsets = [0, 384], sizes = [2, 128], strides = [1, 1]} : vector<2x512xf32> to vector<2x128xf32>
    %224 = math.tanh %223 : vector<2x128xf32>
    %225 = arith.mulf %221, %186 : vector<2x128xf32>
    %226 = arith.mulf %220, %224 : vector<2x128xf32>
    %227 = arith.addf %225, %226 : vector<2x128xf32>
    %228 = math.tanh %227 : vector<2x128xf32>
    %229 = arith.mulf %222, %228 : vector<2x128xf32>
    %230 = vector.extract_strided_slice %60 {offsets = [0, 4, 0], sizes = [2, 1, 512], strides = [1, 1, 1]} : vector<2x8x512xf32> to vector<2x1x512xf32>
    %231 = vector.shape_cast %230 : vector<2x1x512xf32> to vector<2x512xf32>
    %cst_59 = arith.constant dense<0.000000e+00> : vector<2x512xf32>
    %232 = tpu.matmul %208, %61, %cst_59 {dimension_numbers = #tpu.dot_dimension_numbers<[1], [0], [0], [1], [0, 0, 1, 1], [], []>} : vector<2x128xf32>, vector<128x512xf32>, vector<2x512xf32> -> vector<2x512xf32>
    %233 = arith.addf %231, %232 : vector<2x512xf32>
    %234 = vector.extract_strided_slice %233 {offsets = [0, 0], sizes = [2, 384], strides = [1, 1]} : vector<2x512xf32> to vector<2x384xf32>
    %235 = arith.negf %234 : vector<2x384xf32>
    %236 = math.exp %235 : vector<2x384xf32>
    %cst_60 = arith.constant 1.000000e+00 : f32
    %237 = vector.broadcast %cst_60 : f32 to vector<2x384xf32>
    %238 = arith.addf %237, %236 : vector<2x384xf32>
    %239 = arith.divf %237, %238 : vector<2x384xf32>
    %240 = vector.extract_strided_slice %239 {offsets = [0, 0], sizes = [2, 128], strides = [1, 1]} : vector<2x384xf32> to vector<2x128xf32>
    %241 = vector.extract_strided_slice %239 {offsets = [0, 128], sizes = [2, 128], strides = [1, 1]} : vector<2x384xf32> to vector<2x128xf32>
    %242 = vector.extract_strided_slice %239 {offsets = [0, 256], sizes = [2, 128], strides = [1, 1]} : vector<2x384xf32> to vector<2x128xf32>
    %243 = vector.extract_strided_slice %233 {offsets = [0, 384], sizes = [2, 128], strides = [1, 1]} : vector<2x512xf32> to vector<2x128xf32>
    %244 = math.tanh %243 : vector<2x128xf32>
    %245 = arith.mulf %241, %206 : vector<2x128xf32>
    %246 = arith.mulf %240, %244 : vector<2x128xf32>
    %247 = arith.addf %245, %246 : vector<2x128xf32>
    %248 = math.tanh %247 : vector<2x128xf32>
    %249 = arith.mulf %242, %248 : vector<2x128xf32>
    %cst_61 = arith.constant dense<0.000000e+00> : vector<2x512xf32>
    %250 = tpu.matmul %249, %62, %cst_61 {dimension_numbers = #tpu.dot_dimension_numbers<[1], [0], [0], [1], [0, 0, 1, 1], [], []>} : vector<2x128xf32>, vector<128x512xf32>, vector<2x512xf32> -> vector<2x512xf32>
    %cst_62 = arith.constant dense<0.000000e+00> : vector<2x512xf32>
    %251 = tpu.matmul %229, %63, %cst_62 {dimension_numbers = #tpu.dot_dimension_numbers<[1], [0], [0], [1], [0, 0, 1, 1], [], []>} : vector<2x128xf32>, vector<128x512xf32>, vector<2x512xf32> -> vector<2x512xf32>
    %252 = arith.addf %250, %251 : vector<2x512xf32>
    %253 = vector.broadcast %64 : vector<1x512xf32> to vector<2x512xf32>
    %254 = arith.addf %252, %253 : vector<2x512xf32>
    %255 = vector.extract_strided_slice %254 {offsets = [0, 0], sizes = [2, 384], strides = [1, 1]} : vector<2x512xf32> to vector<2x384xf32>
    %256 = arith.negf %255 : vector<2x384xf32>
    %257 = math.exp %256 : vector<2x384xf32>
    %cst_63 = arith.constant 1.000000e+00 : f32
    %258 = vector.broadcast %cst_63 : f32 to vector<2x384xf32>
    %259 = arith.addf %258, %257 : vector<2x384xf32>
    %260 = arith.divf %258, %259 : vector<2x384xf32>
    %261 = vector.extract_strided_slice %260 {offsets = [0, 0], sizes = [2, 128], strides = [1, 1]} : vector<2x384xf32> to vector<2x128xf32>
    %262 = vector.extract_strided_slice %260 {offsets = [0, 128], sizes = [2, 128], strides = [1, 1]} : vector<2x384xf32> to vector<2x128xf32>
    %263 = vector.extract_strided_slice %260 {offsets = [0, 256], sizes = [2, 128], strides = [1, 1]} : vector<2x384xf32> to vector<2x128xf32>
    %264 = vector.extract_strided_slice %254 {offsets = [0, 384], sizes = [2, 128], strides = [1, 1]} : vector<2x512xf32> to vector<2x128xf32>
    %265 = math.tanh %264 : vector<2x128xf32>
    %266 = arith.mulf %262, %227 : vector<2x128xf32>
    %267 = arith.mulf %261, %265 : vector<2x128xf32>
    %268 = arith.addf %266, %267 : vector<2x128xf32>
    %269 = math.tanh %268 : vector<2x128xf32>
    %270 = arith.mulf %263, %269 : vector<2x128xf32>
    %271 = vector.extract_strided_slice %60 {offsets = [0, 5, 0], sizes = [2, 1, 512], strides = [1, 1, 1]} : vector<2x8x512xf32> to vector<2x1x512xf32>
    %272 = vector.shape_cast %271 : vector<2x1x512xf32> to vector<2x512xf32>
    %cst_64 = arith.constant dense<0.000000e+00> : vector<2x512xf32>
    %273 = tpu.matmul %249, %61, %cst_64 {dimension_numbers = #tpu.dot_dimension_numbers<[1], [0], [0], [1], [0, 0, 1, 1], [], []>} : vector<2x128xf32>, vector<128x512xf32>, vector<2x512xf32> -> vector<2x512xf32>
    %274 = arith.addf %272, %273 : vector<2x512xf32>
    %275 = vector.extract_strided_slice %274 {offsets = [0, 0], sizes = [2, 384], strides = [1, 1]} : vector<2x512xf32> to vector<2x384xf32>
    %276 = arith.negf %275 : vector<2x384xf32>
    %277 = math.exp %276 : vector<2x384xf32>
    %cst_65 = arith.constant 1.000000e+00 : f32
    %278 = vector.broadcast %cst_65 : f32 to vector<2x384xf32>
    %279 = arith.addf %278, %277 : vector<2x384xf32>
    %280 = arith.divf %278, %279 : vector<2x384xf32>
    %281 = vector.extract_strided_slice %280 {offsets = [0, 0], sizes = [2, 128], strides = [1, 1]} : vector<2x384xf32> to vector<2x128xf32>
    %282 = vector.extract_strided_slice %280 {offsets = [0, 128], sizes = [2, 128], strides = [1, 1]} : vector<2x384xf32> to vector<2x128xf32>
    %283 = vector.extract_strided_slice %280 {offsets = [0, 256], sizes = [2, 128], strides = [1, 1]} : vector<2x384xf32> to vector<2x128xf32>
    %284 = vector.extract_strided_slice %274 {offsets = [0, 384], sizes = [2, 128], strides = [1, 1]} : vector<2x512xf32> to vector<2x128xf32>
    %285 = math.tanh %284 : vector<2x128xf32>
    %286 = arith.mulf %282, %247 : vector<2x128xf32>
    %287 = arith.mulf %281, %285 : vector<2x128xf32>
    %288 = arith.addf %286, %287 : vector<2x128xf32>
    %289 = math.tanh %288 : vector<2x128xf32>
    %290 = arith.mulf %283, %289 : vector<2x128xf32>
    %cst_66 = arith.constant dense<0.000000e+00> : vector<2x512xf32>
    %291 = tpu.matmul %290, %62, %cst_66 {dimension_numbers = #tpu.dot_dimension_numbers<[1], [0], [0], [1], [0, 0, 1, 1], [], []>} : vector<2x128xf32>, vector<128x512xf32>, vector<2x512xf32> -> vector<2x512xf32>
    %cst_67 = arith.constant dense<0.000000e+00> : vector<2x512xf32>
    %292 = tpu.matmul %270, %63, %cst_67 {dimension_numbers = #tpu.dot_dimension_numbers<[1], [0], [0], [1], [0, 0, 1, 1], [], []>} : vector<2x128xf32>, vector<128x512xf32>, vector<2x512xf32> -> vector<2x512xf32>
    %293 = arith.addf %291, %292 : vector<2x512xf32>
    %294 = vector.broadcast %64 : vector<1x512xf32> to vector<2x512xf32>
    %295 = arith.addf %293, %294 : vector<2x512xf32>
    %296 = vector.extract_strided_slice %295 {offsets = [0, 0], sizes = [2, 384], strides = [1, 1]} : vector<2x512xf32> to vector<2x384xf32>
    %297 = arith.negf %296 : vector<2x384xf32>
    %298 = math.exp %297 : vector<2x384xf32>
    %cst_68 = arith.constant 1.000000e+00 : f32
    %299 = vector.broadcast %cst_68 : f32 to vector<2x384xf32>
    %300 = arith.addf %299, %298 : vector<2x384xf32>
    %301 = arith.divf %299, %300 : vector<2x384xf32>
    %302 = vector.extract_strided_slice %301 {offsets = [0, 0], sizes = [2, 128], strides = [1, 1]} : vector<2x384xf32> to vector<2x128xf32>
    %303 = vector.extract_strided_slice %301 {offsets = [0, 128], sizes = [2, 128], strides = [1, 1]} : vector<2x384xf32> to vector<2x128xf32>
    %304 = vector.extract_strided_slice %301 {offsets = [0, 256], sizes = [2, 128], strides = [1, 1]} : vector<2x384xf32> to vector<2x128xf32>
    %305 = vector.extract_strided_slice %295 {offsets = [0, 384], sizes = [2, 128], strides = [1, 1]} : vector<2x512xf32> to vector<2x128xf32>
    %306 = math.tanh %305 : vector<2x128xf32>
    %307 = arith.mulf %303, %268 : vector<2x128xf32>
    %308 = arith.mulf %302, %306 : vector<2x128xf32>
    %309 = arith.addf %307, %308 : vector<2x128xf32>
    %310 = math.tanh %309 : vector<2x128xf32>
    %311 = arith.mulf %304, %310 : vector<2x128xf32>
    %312 = vector.extract_strided_slice %60 {offsets = [0, 6, 0], sizes = [2, 1, 512], strides = [1, 1, 1]} : vector<2x8x512xf32> to vector<2x1x512xf32>
    %313 = vector.shape_cast %312 : vector<2x1x512xf32> to vector<2x512xf32>
    %cst_69 = arith.constant dense<0.000000e+00> : vector<2x512xf32>
    %314 = tpu.matmul %290, %61, %cst_69 {dimension_numbers = #tpu.dot_dimension_numbers<[1], [0], [0], [1], [0, 0, 1, 1], [], []>} : vector<2x128xf32>, vector<128x512xf32>, vector<2x512xf32> -> vector<2x512xf32>
    %315 = arith.addf %313, %314 : vector<2x512xf32>
    %316 = vector.extract_strided_slice %315 {offsets = [0, 0], sizes = [2, 384], strides = [1, 1]} : vector<2x512xf32> to vector<2x384xf32>
    %317 = arith.negf %316 : vector<2x384xf32>
    %318 = math.exp %317 : vector<2x384xf32>
    %cst_70 = arith.constant 1.000000e+00 : f32
    %319 = vector.broadcast %cst_70 : f32 to vector<2x384xf32>
    %320 = arith.addf %319, %318 : vector<2x384xf32>
    %321 = arith.divf %319, %320 : vector<2x384xf32>
    %322 = vector.extract_strided_slice %321 {offsets = [0, 0], sizes = [2, 128], strides = [1, 1]} : vector<2x384xf32> to vector<2x128xf32>
    %323 = vector.extract_strided_slice %321 {offsets = [0, 128], sizes = [2, 128], strides = [1, 1]} : vector<2x384xf32> to vector<2x128xf32>
    %324 = vector.extract_strided_slice %321 {offsets = [0, 256], sizes = [2, 128], strides = [1, 1]} : vector<2x384xf32> to vector<2x128xf32>
    %325 = vector.extract_strided_slice %315 {offsets = [0, 384], sizes = [2, 128], strides = [1, 1]} : vector<2x512xf32> to vector<2x128xf32>
    %326 = math.tanh %325 : vector<2x128xf32>
    %327 = arith.mulf %323, %288 : vector<2x128xf32>
    %328 = arith.mulf %322, %326 : vector<2x128xf32>
    %329 = arith.addf %327, %328 : vector<2x128xf32>
    %330 = math.tanh %329 : vector<2x128xf32>
    %331 = arith.mulf %324, %330 : vector<2x128xf32>
    %cst_71 = arith.constant dense<0.000000e+00> : vector<2x512xf32>
    %332 = tpu.matmul %331, %62, %cst_71 {dimension_numbers = #tpu.dot_dimension_numbers<[1], [0], [0], [1], [0, 0, 1, 1], [], []>} : vector<2x128xf32>, vector<128x512xf32>, vector<2x512xf32> -> vector<2x512xf32>
    %cst_72 = arith.constant dense<0.000000e+00> : vector<2x512xf32>
    %333 = tpu.matmul %311, %63, %cst_72 {dimension_numbers = #tpu.dot_dimension_numbers<[1], [0], [0], [1], [0, 0, 1, 1], [], []>} : vector<2x128xf32>, vector<128x512xf32>, vector<2x512xf32> -> vector<2x512xf32>
    %334 = arith.addf %332, %333 : vector<2x512xf32>
    %335 = vector.broadcast %64 : vector<1x512xf32> to vector<2x512xf32>
    %336 = arith.addf %334, %335 : vector<2x512xf32>
    %337 = vector.extract_strided_slice %336 {offsets = [0, 0], sizes = [2, 384], strides = [1, 1]} : vector<2x512xf32> to vector<2x384xf32>
    %338 = arith.negf %337 : vector<2x384xf32>
    %339 = math.exp %338 : vector<2x384xf32>
    %cst_73 = arith.constant 1.000000e+00 : f32
    %340 = vector.broadcast %cst_73 : f32 to vector<2x384xf32>
    %341 = arith.addf %340, %339 : vector<2x384xf32>
    %342 = arith.divf %340, %341 : vector<2x384xf32>
    %343 = vector.extract_strided_slice %342 {offsets = [0, 0], sizes = [2, 128], strides = [1, 1]} : vector<2x384xf32> to vector<2x128xf32>
    %344 = vector.extract_strided_slice %342 {offsets = [0, 128], sizes = [2, 128], strides = [1, 1]} : vector<2x384xf32> to vector<2x128xf32>
    %345 = vector.extract_strided_slice %342 {offsets = [0, 256], sizes = [2, 128], strides = [1, 1]} : vector<2x384xf32> to vector<2x128xf32>
    %346 = vector.extract_strided_slice %336 {offsets = [0, 384], sizes = [2, 128], strides = [1, 1]} : vector<2x512xf32> to vector<2x128xf32>
    %347 = math.tanh %346 : vector<2x128xf32>
    %348 = arith.mulf %344, %309 : vector<2x128xf32>
    %349 = arith.mulf %343, %347 : vector<2x128xf32>
    %350 = arith.addf %348, %349 : vector<2x128xf32>
    %351 = math.tanh %350 : vector<2x128xf32>
    %352 = arith.mulf %345, %351 : vector<2x128xf32>
    %353 = vector.extract_strided_slice %60 {offsets = [0, 7, 0], sizes = [2, 1, 512], strides = [1, 1, 1]} : vector<2x8x512xf32> to vector<2x1x512xf32>
    %354 = vector.shape_cast %353 : vector<2x1x512xf32> to vector<2x512xf32>
    %cst_74 = arith.constant dense<0.000000e+00> : vector<2x512xf32>
    %355 = tpu.matmul %331, %61, %cst_74 {dimension_numbers = #tpu.dot_dimension_numbers<[1], [0], [0], [1], [0, 0, 1, 1], [], []>} : vector<2x128xf32>, vector<128x512xf32>, vector<2x512xf32> -> vector<2x512xf32>
    %356 = arith.addf %354, %355 : vector<2x512xf32>
    %357 = vector.extract_strided_slice %356 {offsets = [0, 0], sizes = [2, 384], strides = [1, 1]} : vector<2x512xf32> to vector<2x384xf32>
    %358 = arith.negf %357 : vector<2x384xf32>
    %359 = math.exp %358 : vector<2x384xf32>
    %cst_75 = arith.constant 1.000000e+00 : f32
    %360 = vector.broadcast %cst_75 : f32 to vector<2x384xf32>
    %361 = arith.addf %360, %359 : vector<2x384xf32>
    %362 = arith.divf %360, %361 : vector<2x384xf32>
    %363 = vector.extract_strided_slice %362 {offsets = [0, 0], sizes = [2, 128], strides = [1, 1]} : vector<2x384xf32> to vector<2x128xf32>
    %364 = vector.extract_strided_slice %362 {offsets = [0, 128], sizes = [2, 128], strides = [1, 1]} : vector<2x384xf32> to vector<2x128xf32>
    %365 = vector.extract_strided_slice %362 {offsets = [0, 256], sizes = [2, 128], strides = [1, 1]} : vector<2x384xf32> to vector<2x128xf32>
    %366 = vector.extract_strided_slice %356 {offsets = [0, 384], sizes = [2, 128], strides = [1, 1]} : vector<2x512xf32> to vector<2x128xf32>
    %367 = math.tanh %366 : vector<2x128xf32>
    %368 = arith.mulf %364, %329 : vector<2x128xf32>
    %369 = arith.mulf %363, %367 : vector<2x128xf32>
    %370 = arith.addf %368, %369 : vector<2x128xf32>
    %371 = math.tanh %370 : vector<2x128xf32>
    %372 = arith.mulf %365, %371 : vector<2x128xf32>
    %cst_76 = arith.constant dense<0.000000e+00> : vector<2x512xf32>
    %373 = tpu.matmul %372, %62, %cst_76 {dimension_numbers = #tpu.dot_dimension_numbers<[1], [0], [0], [1], [0, 0, 1, 1], [], []>} : vector<2x128xf32>, vector<128x512xf32>, vector<2x512xf32> -> vector<2x512xf32>
    %cst_77 = arith.constant dense<0.000000e+00> : vector<2x512xf32>
    %374 = tpu.matmul %352, %63, %cst_77 {dimension_numbers = #tpu.dot_dimension_numbers<[1], [0], [0], [1], [0, 0, 1, 1], [], []>} : vector<2x128xf32>, vector<128x512xf32>, vector<2x512xf32> -> vector<2x512xf32>
    %375 = arith.addf %373, %374 : vector<2x512xf32>
    %376 = vector.broadcast %64 : vector<1x512xf32> to vector<2x512xf32>
    %377 = arith.addf %375, %376 : vector<2x512xf32>
    %378 = vector.extract_strided_slice %377 {offsets = [0, 0], sizes = [2, 384], strides = [1, 1]} : vector<2x512xf32> to vector<2x384xf32>
    %379 = arith.negf %378 : vector<2x384xf32>
    %380 = math.exp %379 : vector<2x384xf32>
    %cst_78 = arith.constant 1.000000e+00 : f32
    %381 = vector.broadcast %cst_78 : f32 to vector<2x384xf32>
    %382 = arith.addf %381, %380 : vector<2x384xf32>
    %383 = arith.divf %381, %382 : vector<2x384xf32>
    %384 = vector.extract_strided_slice %383 {offsets = [0, 0], sizes = [2, 128], strides = [1, 1]} : vector<2x384xf32> to vector<2x128xf32>
    %385 = vector.extract_strided_slice %383 {offsets = [0, 128], sizes = [2, 128], strides = [1, 1]} : vector<2x384xf32> to vector<2x128xf32>
    %386 = vector.extract_strided_slice %383 {offsets = [0, 256], sizes = [2, 128], strides = [1, 1]} : vector<2x384xf32> to vector<2x128xf32>
    %387 = vector.extract_strided_slice %377 {offsets = [0, 384], sizes = [2, 128], strides = [1, 1]} : vector<2x512xf32> to vector<2x128xf32>
    %388 = math.tanh %387 : vector<2x128xf32>
    %389 = arith.mulf %385, %350 : vector<2x128xf32>
    %390 = arith.mulf %384, %388 : vector<2x128xf32>
    %391 = arith.addf %389, %390 : vector<2x128xf32>
    %392 = math.tanh %391 : vector<2x128xf32>
    %393 = arith.mulf %386, %392 : vector<2x128xf32>
    %c0_79 = arith.constant 0 : index
    %c0_80 = arith.constant 0 : index
    %394 = vector.load %arg13[%c0_79, %c0_80] : memref<128x64xf32, #tpu.memory_space<vmem>>, vector<128x64xf32>
    %cst_81 = arith.constant dense<0.000000e+00> : vector<2x64xf32>
    %395 = tpu.matmul %393, %394, %cst_81 {dimension_numbers = #tpu.dot_dimension_numbers<[1], [0], [0], [1], [0, 0, 1, 1], [], []>} : vector<2x128xf32>, vector<128x64xf32>, vector<2x64xf32> -> vector<2x64xf32>
    %c0_82 = arith.constant 0 : index
    %c0_83 = arith.constant 0 : index
    %396 = vector.load %arg14[%c0_82, %c0_83] : memref<1x64xf32, #tpu.memory_space<vmem>>, vector<1x64xf32>
    %397 = vector.broadcast %396 : vector<1x64xf32> to vector<2x64xf32>
    %398 = arith.addf %395, %397 : vector<2x64xf32>
    %c0_84 = arith.constant 0 : index
    %c0_85 = arith.constant 0 : index
    %399 = vector.load %arg15[%c0_84, %c0_85] : memref<64x10xf32, #tpu.memory_space<vmem>>, vector<64x10xf32>
    %cst_86 = arith.constant dense<0.000000e+00> : vector<2x10xf32>
    %400 = tpu.matmul %398, %399, %cst_86 {dimension_numbers = #tpu.dot_dimension_numbers<[1], [0], [0], [1], [0, 0, 1, 1], [], []>} : vector<2x64xf32>, vector<64x10xf32>, vector<2x10xf32> -> vector<2x10xf32>
    %c0_87 = arith.constant 0 : index
    %c0_88 = arith.constant 0 : index
    %401 = vector.load %arg16[%c0_87, %c0_88] : memref<1x10xf32, #tpu.memory_space<vmem>>, vector<1x10xf32>
    %402 = vector.broadcast %401 : vector<1x10xf32> to vector<2x10xf32>
    %403 = arith.addf %400, %402 : vector<2x10xf32>
    %cst_89 = arith.constant dense<0.000000e+00> : vector<10xf32>
    %404 = vector.multi_reduction <add>, %403, %cst_89 [0] : vector<2x10xf32> to vector<10xf32>
    %405 = vector.shape_cast %404 : vector<10xf32> to vector<1x10xf32>
    %cst_90 = arith.constant 2.000000e+00 : f32
    %406 = vector.broadcast %cst_90 : f32 to vector<1x10xf32>
    %407 = arith.divf %405, %406 : vector<1x10xf32>
    %408 = vector.broadcast %407 : vector<1x10xf32> to vector<2x10xf32>
    %409 = arith.subf %403, %408 : vector<2x10xf32>
    %410 = arith.mulf %409, %409 : vector<2x10xf32>
    %cst_91 = arith.constant dense<0.000000e+00> : vector<10xf32>
    %411 = vector.multi_reduction <add>, %410, %cst_91 [0] : vector<2x10xf32> to vector<10xf32>
    %412 = vector.shape_cast %411 : vector<10xf32> to vector<1x10xf32>
    %cst_92 = arith.constant 2.000000e+00 : f32
    %413 = vector.broadcast %cst_92 : f32 to vector<1x10xf32>
    %414 = arith.divf %412, %413 : vector<1x10xf32>
    %415 = vector.broadcast %407 : vector<1x10xf32> to vector<2x10xf32>
    %416 = arith.subf %403, %415 : vector<2x10xf32>
    %cst_93 = arith.constant 9.99999974E-6 : f32
    %417 = vector.broadcast %cst_93 : f32 to vector<1x10xf32>
    %418 = arith.addf %414, %417 : vector<1x10xf32>
    %419 = math.rsqrt %418 : vector<1x10xf32>
    %420 = vector.broadcast %419 : vector<1x10xf32> to vector<2x10xf32>
    %421 = arith.mulf %416, %420 : vector<2x10xf32>
    %c0_94 = arith.constant 0 : index
    %c0_95 = arith.constant 0 : index
    %422 = vector.load %arg17[%c0_94, %c0_95] : memref<1x10xf32, #tpu.memory_space<vmem>>, vector<1x10xf32>
    %423 = vector.broadcast %422 : vector<1x10xf32> to vector<2x10xf32>
    %424 = arith.mulf %421, %423 : vector<2x10xf32>
    %c0_96 = arith.constant 0 : index
    %c0_97 = arith.constant 0 : index
    %425 = vector.load %arg18[%c0_96, %c0_97] : memref<1x10xf32, #tpu.memory_space<vmem>>, vector<1x10xf32>
    %426 = vector.broadcast %425 : vector<1x10xf32> to vector<2x10xf32>
    %427 = arith.addf %424, %426 : vector<2x10xf32>
    %428 = arith.negf %427 : vector<2x10xf32>
    %429 = math.exp %428 : vector<2x10xf32>
    %cst_98 = arith.constant 1.000000e+00 : f32
    %430 = vector.broadcast %cst_98 : f32 to vector<2x10xf32>
    %431 = arith.addf %430, %429 : vector<2x10xf32>
    %432 = arith.divf %430, %431 : vector<2x10xf32>
    %c0_99 = arith.constant 0 : index
    %c0_100 = arith.constant 0 : index
    %433 = vector.load %arg19[%c0_99, %c0_100] : memref<2x10xf32, #tpu.memory_space<vmem>>, vector<2x10xf32>
    tpu.vector_store %arg19[%c0_99, %c0_100], %432 {strides = array<i32>} : memref<2x10xf32, #tpu.memory_space<vmem>>, vector<2x10xf32>,
    return
  }
}

</mosaic_0001>

<bundles_post_ra>
// kernel: dual_input_lstm_forward.1
= control target key start
LH: loop header
LB: loop body
LE: loop exit
PB: predicated region body
PF: predicated region fallthrough
CT: control target
= control target key end

     0   :  { %s10285_s0 = inlined_call_operand.vmem [shape: f32[2,8,6], index: 0, kind: input, shape index: {}]   ;;  %s10286_s1 = inlined_call_operand.vmem [shape: f32[2,8,4], index: 1, kind: input, shape index: {}]   ;;  %s10287_s2 = inlined_call_operand.vmem [shape: f32[1,6], index: 2, kind: input, shape index: {}]   ;;  %s10288_s3 = inlined_call_operand.vmem [shape: f32[1,6], index: 3, kind: input, shape index: {}]   ;;  %s10289_s4 = inlined_call_operand.vmem [shape: f32[1,4], index: 4, kind: input, shape index: {}]   ;;  %s10290_s5 = inlined_call_operand.vmem [shape: f32[1,4], index: 5, kind: input, shape index: {}]   ;;  %s10291_s6 = inlined_call_operand.vmem [shape: f32[6,512], index: 6, kind: input, shape index: {}]   ;;  %s10292_s7 = inlined_call_operand.vmem [shape: f32[4,512], index: 7, kind: input, shape index: {}]   ;;  %s10293_s8 = inlined_call_operand.vmem [shape: f32[1,512], index: 8, kind: input, shape index: {}]   ;;  %s10294_s9 = inlined_call_operand.hbm [shape: f32[128,512], index: 9, kind: input, shape index: {}]   ;;  %s10295_s10 = inlined_call_operand.hbm [shape: f32[128,512], index: 10, kind: input, shape index: {}]   ;;  %s10296_s11 = inlined_call_operand.hbm [shape: f32[128,512], index: 11, kind: input, shape index: {}]   ;;  %s10297_s12 = inlined_call_operand.vmem [shape: f32[1,512], index: 12, kind: input, shape index: {}]   ;;  %s10298_s13 = inlined_call_operand.vmem [shape: f32[128,64], index: 13, kind: input, shape index: {}]   ;;  %s10299_s14 = inlined_call_operand.vmem [shape: f32[1,64], index: 14, kind: input, shape index: {}]   ;;  %s10300_s15 = inlined_call_operand.vmem [shape: f32[64,10], index: 15, kind: input, shape index: {}]   ;;  %s10301_s16 = inlined_call_operand.vmem [shape: f32[1,10], index: 16, kind: input, shape index: {}]   ;;  %s10302_s17 = inlined_call_operand.vmem [shape: f32[1,10], index: 17, kind: input, shape index: {}]   ;;  %s10303_s18 = inlined_call_operand.vmem [shape: f32[1,10], index: 18, kind: input, shape index: {}]   ;;  %s10304_s19 = inlined_call_operand.hbm [shape: f32[2,10], index: 19, kind: output, shape index: {}]  }
   0x1   :  { %10876 = sst [smem:[#allocation153_spill]] %s10285_s0 }
   0x2   :  { %10877 = sst [smem:[#allocation154_spill]] %s10286_s1 }
   0x3   :  { %10878 = sst [smem:[#allocation155_spill]] %s10287_s2 }
   0x4   :  { %10879 = sst [smem:[#allocation156_spill]] %s10288_s3 }
   0x5   :  { %24 = vsyncpa [#allocation3], 0 }
   0x6   :  { %25 = vsyncpa [#allocation6], 0 }
   0x7   :  { %26 = vsyncpa [#allocation4], 0  ;;  %s6623_s0 = smov [#allocation5]   ;;  %s6624_s20 = smov [#allocation2]  }
   0x8   :  { %s62_s30 = sshll.u32 %s6623_s0, 4  ;;  %s50_s21 = sshll.u32 %s6624_s20, 4  ;;  %s63_s30 = int_to_ptr.vmem [resolvable:$true] %s62_s30  ;;  %s51_s21 = int_to_ptr.vmem [resolvable:$true] %s50_s21 }
   0x9   :  { %s6545_s1 = scalar_lea.vmem %s63_s30, 8192  ;;  %p6550_p1 = scmp.lt.s32.totalorder %s63_s30, %s63_s30 }
   0xa   :  { %p6546_p0 = scmp.ne.s32.totalorder %s63_s30, %s6545_s1  ;;  %p6551_p2 = scmp.lt.s32.totalorder %s6545_s1, %s6545_s1 }
   0xc   :  { %p6552_p3 = por %p6551_p2, %p6550_p1 }
   0xe   :  { %p6553_p4 = pnand %p6552_p3, %p6546_p0 }
  0x10   :  { %6556 = shalt.err (!%p6553_p4)
}
  0x11   :  { %s6625_s22 = smov 512   ;;  %s6626_s2 = smov 32  }
  0x12   :  { %68 = dma.hbm_to_vmem [thread:$0]  %s10295_s10, 8192, %s63_s30, [#allocation6], %s6625_s22, %s6625_s22, %s6626_s2  }
  0x13   :  { %s6565_s25 = scalar_lea.vmem %s51_s21, 8192  ;;  %p6570_p6 = scmp.lt.s32.totalorder %s51_s21, %s51_s21 }
  0x14   :  { %p6566_p5 = scmp.ne.s32.totalorder %s51_s21, %s6565_s25  ;;  %p6571_p7 = scmp.lt.s32.totalorder %s6565_s25, %s6565_s25 }
  0x16   :  { %p6572_p8 = por %p6571_p7, %p6570_p6 }
  0x18   :  { %p6573_p9 = pnand %p6572_p8, %p6566_p5 }
  0x1a   :  { %6576 = shalt.err (!%p6573_p9)
}
  0x1b   :  { %56 = dma.hbm_to_vmem [thread:$0]  %s10294_s9, 8192, %s51_s21, [#allocation3], %s6625_s22, %s6625_s22, %s6626_s2  }
  0x1c   :  { %s6627_s27 = smov [#allocation7]  }
  0x1d   :  { %s74_s28 = sshll.u32 %s6627_s27, 4  ;;  %s75_s28 = int_to_ptr.vmem [resolvable:$true] %s74_s28 }
  0x1e   :  { %s6585_s29 = scalar_lea.vmem %s75_s28, 8192  ;;  %p6590_p11 = scmp.lt.s32.totalorder %s75_s28, %s75_s28 }
  0x1f   :  { %p6586_p10 = scmp.ne.s32.totalorder %s75_s28, %s6585_s29  ;;  %p6591_p12 = scmp.lt.s32.totalorder %s6585_s29, %s6585_s29 }
  0x21   :  { %p6592_p13 = por %p6591_p12, %p6590_p11 }
  0x23   :  { %p6593_p0 = pnand %p6592_p13, %p6586_p10 }
  0x25   :  { %6596 = shalt.err (!%p6593_p0)
}
  0x26   :  { %80 = dma.hbm_to_vmem [thread:$0]  %s10296_s11, 8192, %s75_s28, [#allocation6], %s6625_s22, %s6625_s22, %s6626_s2  }
  0x27   :  { %6617 = dma.done.wait [#allocation3], 8192  }
  0x28   :  { %6618 = vsyncadd [#allocation3], 4294959104 }
  0x29   :  { %6619 = dma.done.wait [#allocation6], 16384  }
  0x2a   :  { %6620 = vsyncadd [#allocation6], 4294950912  ;;  %v10307_v0 = vmov 0.0   ;;  %vm388_vm0 = vcmask 1045504   ;;  %vm158_vm1 = vcmask 31744   ;;  %v207_v2 = vld [vmem:[%s10292_s7] sm:$0xff] }
  0x2b   :  { %292 = vmatprep.mubr.f32.mxu1 %v10307_v0  ;;  %465 = vmatprep.mubr.f32.mxu0 %v10307_v0  ;;  %v204_v1 = vld [vmem:[%s10291_s6 + $0x8] sm:$0x3f]  ;;  %vm219_vm2 = vcmask 1043456   ;;  %v203_v3 = vld [vmem:[%s10291_s6] sm:$0x3f]  ;;  %v211_v4 = vcombine.high %v207_v2, %v207_v2  ;;  %s10880_s23 = sld [smem:[#allocation154_spill]] }
  0x2c   :  { %5376 = vmatprep.subr.msk.mxu0 %vm388_vm0, %v204_v1  ;;  %v6752_v5 = vld [vmem:[#allocation2 + $0x1e8] sm:$0xff]  ;;  %vm110_vm3 = vcmask 48128   ;;  %s10881_s27 = sld [smem:[#allocation153_spill]]  ;;  %v5366_v63 = vld [vmem:[%s10289_s4] ss:$0 sm:$0xff]  ;;  %vm1137_vm4 = vcmask 1041409  }
  0x2d   :  { %5377 = vmatpush1.msk.msra.mxu0 %vm388_vm0, %v203_v3  ;;  %5368 = vmatprep.subr.msk.mxu1 %vm219_vm2, %v211_v4  ;;  %v6777_v15 = vld [vmem:[%s10292_s7 + $0x8] sm:$0xff]  ;;  %v5367_v4 = vld [vmem:[%s10290_s5] ss:$0 sm:$0xff]  ;;  %s10882_s1 = sld [smem:[#allocation155_spill]]  ;;  %vm6629_vm5 = vmmov 0   ;;  %vm5228_vm6 = vcmask 523264  }
  0x2e   :  { %778 = vmatprep.subr.mxu0 %v6752_v5  ;;  %5369 = vmatpush1.msk.msra.mxu1 %vm219_vm2, %v207_v2  ;;  %v212_v18 = vcombine.high %v6777_v15, %v6777_v15  ;;  %vm5302_vm7 = vcmask 74752   ;;  %s6630_s10 = smov [#allocation8]  }
  0x2f   :  { %s5354_s0 = sshll.u32 %s6630_s10, 4  ;;  %s5355_s0 = int_to_ptr.vmem [resolvable:$true] %s5354_s0 }
  0x30   :  { %5372 = vmatprep.subr.msk.mxu1 %vm219_vm2, %v212_v18  ;;  %v645_v18 = vld [vmem:[#allocation2 + $0x1e0] sm:$0xff]  ;;  %s6597_s7 = scalar_lea.vmem %s5355_s0, 32  ;;  %p6602_p2 = scmp.lt.s32.totalorder %s5355_s0, %s5355_s0 }
  0x31   :  { %v106_v6 = vld [vmem:[%s10880_s23] sm:$0xff]  ;;  %v107_v7 = vld [vmem:[%s10880_s23 + $0x8] sm:$0xff]  ;;  %s10883_s23 = sld [smem:[#allocation156_spill]]  ;;  %p6598_p1 = scmp.ne.s32.totalorder %s5355_s0, %s6597_s7 }
  0x32   :  { %v159_v8 = vsel %vm158_vm1, %v106_v6, 0.0  ;;  %v160_v9 = vsel %vm158_vm1, %v107_v7, 0.0  ;;  %v104_v11 = vld [vmem:[%s10881_s27] sm:$0xff]  ;;  %v105_v12 = vld [vmem:[%s10881_s27 + $0x8] sm:$0xff]  ;;  %p6603_p3 = scmp.lt.s32.totalorder %s6597_s7, %s6597_s7 }
  0x33   :  { %v161_v10 = vadd.f32 %v160_v9, %v159_v8  ;;  %v111_v13 = vsel %vm110_vm3, %v104_v11, 0.0  ;;  %v112_v14 = vsel %vm110_vm3, %v105_v12, 0.0 }
  0x34   :  { %v113_v17 = vadd.f32 %v112_v14, %v111_v13  ;;  %p6604_p4 = por %p6603_p3, %p6602_p2 }
  0x35   :  { %v162_v16 = vrot.slane %v161_v10, 4 }
  0x36   :  { %v114_v20 = vrot.slane %v113_v17, 4  ;;  %p6605_p5 = pnand %p6604_p4, %p6598_p1 }
  0x37   :  { %v163_v19 = vadd.f32 %v162_v16, %v161_v10  ;;  %v206_v16 = vld [vmem:[%s10291_s6 + $0x18] sm:$0x3f] }
  0x38   :  { %v115_v22 = vadd.f32 %v114_v20, %v113_v17  ;;  %v642_v20 = vld [vmem:[#allocation2 + $0x1c8] sm:$0xff] }
  0x39   :  { %v164_v21 = vrot.slane %v163_v19, 2 }
  0x3a   :  { %v116_v24 = vrot.slane %v115_v22, 2 }
  0x3b   :  { %v165_v23 = vadd.f32 %v164_v21, %v163_v19  ;;  %v641_v21 = vld [vmem:[#allocation2 + $0x1c0] sm:$0xff] }
  0x3c   :  { %v117_v26 = vadd.f32 %v116_v24, %v115_v22  ;;  %v637_v24 = vld [vmem:[#allocation2 + $0x1a0] sm:$0xff] }
  0x3d   :  { %v166_v25 = vrot.slane %v165_v23, 1 }
  0x3e   :  { %v118_v28 = vrot.slane %v117_v26, 1 }
  0x3f   :  { %v167_v27 = vadd.f32 %v166_v25, %v165_v23  ;;  %v638_v23 = vld [vmem:[#allocation2 + $0x1a8] sm:$0xff] }
  0x40   :  { %v119_v30 = vadd.f32 %v118_v28, %v117_v26  ;;  %v634_v25 = vld [vmem:[#allocation2 + $0x188] sm:$0xff]  ;;  %v205_v26 = vld [vmem:[%s10291_s6 + $0x10] sm:$0x3f]  ;;  %v629_v28 = vld [vmem:[#allocation2 + $0x160] sm:$0xff] }
  0x41   :  { %v168_v29 = vmul.f32 0.0625, %v167_v27  ;;  %v630_v27 = vld [vmem:[#allocation2 + $0x168] sm:$0xff] }
  0x42   :  { %v121_v33 = vmul.f32 0.0625, %v119_v30  ;;  %v626_v30 = vld [vmem:[#allocation2 + $0x148] sm:$0xff] }
  0x43   :  { %v169_v31 = vsub.f32 %v106_v6, %v168_v29  ;;  %v170_v32 = vsub.f32 %v107_v7, %v168_v29  ;;  %v5364_v6 = vld [vmem:[%s10882_s1] ss:$0 sm:$0xff]  ;;  %v6819_v29 = vld [vmem:[#allocation2 + $0x1f8] sm:$0xff] }
  0x44   :  { %v122_v36 = vsub.f32 %v104_v11, %v121_v33  ;;  %v123_v37 = vsub.f32 %v105_v12, %v121_v33  ;;  %v5365_v11 = vld [vmem:[%s10883_s23] ss:$0 sm:$0xff] }
  0x45   :  { %v171_v34 = vmul.f32 %v169_v31, %v169_v31  ;;  %v172_v35 = vmul.f32 %v170_v32, %v170_v32  ;;  %v621_v33 = vld [vmem:[#allocation2 + $0x120] sm:$0xff] }
  0x46   :  { %v124_v40 = vmul.f32 %v122_v36, %v122_v36  ;;  %v125_v41 = vmul.f32 %v123_v37, %v123_v37 }
  0x47   :  { %v173_v38 = vsel %vm158_vm1, %v171_v34, 0.0  ;;  %v174_v39 = vsel %vm158_vm1, %v172_v35, 0.0  ;;  %v618_v34 = vld [vmem:[#allocation2 + $0x108] sm:$0xff]  ;;  %v617_v35 = vld [vmem:[#allocation2 + $0x100] sm:$0xff] }
  0x48   :  { %v175_v42 = vadd.f32 %v174_v39, %v173_v38  ;;  %v126_v43 = vsel %vm110_vm3, %v124_v40, 0.0  ;;  %v127_v44 = vsel %vm110_vm3, %v125_v41, 0.0  ;;  %v6830_v38 = vld [vmem:[#allocation2 + $0x1d8] sm:$0xff]  ;;  %v6833_v39 = vld [vmem:[#allocation2 + $0xe0] sm:$0xff]  ;;  %v6835_v40 = vld [vmem:[#allocation2 + $0x1d0] sm:$0xff] }
  0x49   :  { %v128_v46 = vadd.f32 %v127_v44, %v126_v43  ;;  %v6838_v41 = vld [vmem:[#allocation2 + $0xc8] sm:$0xff]  ;;  %v6844_v43 = vld [vmem:[#allocation2 + $0x1b8] sm:$0xff] }
  0x4a   :  { %v176_v45 = vrot.slane %v175_v42, 4  ;;  %v6848_v44 = vld [vmem:[#allocation2 + $0xa8] sm:$0xff] }
  0x4b   :  { %v129_v48 = vrot.slane %v128_v46, 4 }
  0x4c   :  { %v177_v47 = vadd.f32 %v176_v45, %v175_v42  ;;  %v6842_v42 = vld [vmem:[#allocation2 + $0xc0] sm:$0xff] }
  0x4d   :  { %v130_v50 = vadd.f32 %v129_v48, %v128_v46  ;;  %v6852_v45 = vld [vmem:[#allocation2 + $0xa0] sm:$0xff]  ;;  %v6854_v46 = vld [vmem:[#allocation2 + $0x1b0] sm:$0xff]  ;;  %v6860_v48 = vld [vmem:[#allocation2 + $0x198] sm:$0xff] }
  0x4e   :  { %v178_v49 = vrot.slane %v177_v47, 2 }
  0x4f   :  { %v131_v52 = vrot.slane %v130_v50, 2 }
  0x50   :  { %v179_v51 = vadd.f32 %v178_v49, %v177_v47  ;;  %v6858_v47 = vld [vmem:[#allocation2 + $0x88] sm:$0xff]  ;;  %v6865_v49 = vld [vmem:[#allocation2 + $0x80] sm:$0xff] }
  0x51   :  { %v132_v54 = vadd.f32 %v131_v52, %v130_v50  ;;  %v6867_v50 = vld [vmem:[#allocation2 + $0x190] sm:$0xff]  ;;  %v6873_v52 = vld [vmem:[#allocation2 + $0x178] sm:$0xff] }
  0x52   :  { %v180_v53 = vrot.slane %v179_v51, 1 }
  0x53   :  { %v133_v56 = vrot.slane %v132_v54, 1 }
  0x54   :  { %v181_v55 = vadd.f32 %v180_v53, %v179_v51  ;;  %v6871_v51 = vld [vmem:[#allocation2 + $0x68] sm:$0xff]  ;;  %v6877_v53 = vld [vmem:[#allocation2 + $0x60] sm:$0xff] }
  0x55   :  { %v134_v58 = vadd.f32 %v133_v56, %v132_v54  ;;  %v6879_v54 = vld [vmem:[#allocation2 + $0x170] sm:$0xff]  ;;  %v6885_v56 = vld [vmem:[#allocation2 + $0x158] sm:$0xff] }
  0x56   :  { %v182_v57 = vmul.f32 0.0625, %v181_v55  ;;  %v6883_v55 = vld [vmem:[#allocation2 + $0x48] sm:$0xff] }
  0x57   :  { %v135_v60 = vmul.f32 0.0625, %v134_v58  ;;  %v6891_v58 = vld [vmem:[#allocation2 + $0x150] sm:$0xff] }
  0x58   :  { %v183_v59 = vadd.f32 1e-05, %v182_v57  ;;  %v6889_v57 = vld [vmem:[#allocation2 + $0x40] sm:$0xff] }
  0x59   :  { %v136_v61 = vadd.f32 1e-05, %v135_v60  ;;  %10884 = vst [vmem:[#allocation12_spill] sm:$0xff] %v6889_v57  ;;  %v6897_v60 = vld [vmem:[#allocation2 + $0x138] sm:$0xff] }
  0x5a   :  { %5552 = vrsqrt.f32 %v183_v59  ;;  %v6895_v59 = vld [vmem:[#allocation2 + $0x28] sm:$0xff] }
  0x5b   :  { %5554 = vrsqrt.f32 %v136_v61  ;;  %10885 = vst [vmem:[#allocation13_spill] sm:$0xff] %v6895_v59  ;;  %v6901_v61 = vld [vmem:[#allocation2 + $0x20] sm:$0xff] }
  0x5c   :  { %10886 = vst [vmem:[#allocation14_spill] sm:$0xff] %v6901_v61 }
  0x67   :  { %v5553_v62 = vpop.eup %5552 }
  0x68   :  { %v185_v1 = vmul.f32 %v5553_v62, %v169_v31  ;;  %v186_v2 = vmul.f32 %v5553_v62, %v170_v32  ;;  %v5555_v3 = vpop.eup %5554  ;;  %v625_v31 = vld [vmem:[#allocation2 + $0x140] sm:$0xff]  ;;  %v622_v32 = vld [vmem:[#allocation2 + $0x128] sm:$0xff]  ;;  %v6903_v62 = vld [vmem:[#allocation2 + $0x130] sm:$0xff] }
  0x69   :  { %v138_v8 = vmul.f32 %v5555_v3, %v122_v36  ;;  %v139_v10 = vmul.f32 %v5555_v3, %v123_v37  ;;  %v6826_v36 = vld [vmem:[#allocation2 + $0x1f0] sm:$0xff]  ;;  %v6828_v37 = vld [vmem:[#allocation2 + $0xe8] sm:$0xff] }
  0x6a   :  { %v193_v7 = vmul.f32 %v5366_v63, %v185_v1  ;;  %v194_v9 = vmul.f32 %v5366_v63, %v186_v2  ;;  %v6907_v63 = vld [vmem:[#allocation2 + $0x8] sm:$0xff]  ;;  %v6909_v1 = vld [vmem:[#allocation2 + $0x118] sm:$0xff]  ;;  %v6913_v2 = vld [vmem:[#allocation2] sm:$0xff] }
  0x6b   :  { %v146_v13 = vmul.f32 %v5364_v6, %v138_v8  ;;  %v147_v14 = vmul.f32 %v5364_v6, %v139_v10  ;;  %10887 = vst [vmem:[#allocation15_spill] sm:$0xff] %v6907_v63  ;;  %10888 = vst [vmem:[#allocation16_spill] sm:$0xff] %v6913_v2  ;;  %v6915_v3 = vld [vmem:[#allocation2 + $0x110] sm:$0xff] }
  0x6c   :  { %v201_v12 = vadd.f32 %v5367_v4, %v193_v7  ;;  %v202_v19 = vadd.f32 %v5367_v4, %v194_v9  ;;  %v6919_v4 = vld [vmem:[#allocation2 + $0xf8] sm:$0xff]  ;;  %v6923_v6 = vld [vmem:[#allocation2 + $0xf0] sm:$0xff] }
  0x6d   :  { %v154_v17 = vadd.f32 %v5365_v11, %v146_v13  ;;  %v6806_v22 = vadd.f32 %v5365_v11, %v147_v14  ;;  %v6927_v7 = vld [vmem:[#allocation2 + $0xd8] sm:$0xff]  ;;  %v6931_v8 = vld [vmem:[#allocation2 + $0xd0] sm:$0xff] }
  0x6e   :  { %5370 = vmatmul.mubr.msk.f32.vlgmr.msra.gmra.mxu1 %vm158_vm1, %v201_v12  ;;  %v6934_v9 = vld [vmem:[#allocation2 + $0xb8] sm:$0xff]  ;;  %v6938_v10 = vld [vmem:[#allocation2 + $0xb0] sm:$0xff] }
  0x6f   :  { %5373 = vmatpush1.msk.msra.mxu1 %vm219_vm2, %v6777_v15  ;;  %298 = vmatprep.mubr.f32.mxu1 %v10307_v0  ;;  %v633_v15 = vld [vmem:[#allocation2 + $0x180] sm:$0xff]  ;;  %v6942_v11 = vld [vmem:[#allocation2 + $0x98] sm:$0xff]  ;;  %v6951_v14 = vld [vmem:[#allocation2 + $0x70] sm:$0xff] }
  0x70   :  { %5378 = vmatmul.mubr.msk.f32.vlgmr.msra.gmra.mxu0 %vm110_vm3, %v154_v17  ;;  %5380 = vmatprep.subr.msk.mxu1 %vm388_vm0, %v206_v16  ;;  %v6948_v13 = vld [vmem:[#allocation2 + $0x78] sm:$0xff] }
  0x71   :  { %779 = vmatpush1.msra.mxu0 %v645_v18  ;;  %471 = vmatprep.mubr.f32.mxu0 %v10307_v0  ;;  %v6954_v16 = vld [vmem:[#allocation2 + $0x58] sm:$0xff] }
  0x72   :  { %780 = vmatprep.subr.mxu0 %v642_v20  ;;  %5371 = vmatmul.mubr.msk.f32.gmra.mxu1 %vm158_vm1, %v202_v19  ;;  %v6960_v18 = vld [vmem:[#allocation2 + $0x38] sm:$0xff] }
  0x73   :  { %781 = vmatpush1.msra.mxu0 %v641_v21  ;;  %369 = vmatprep.mubr.f32.mxu1 %v10307_v0  ;;  %10890 = vst [vmem:[#allocation18_spill] sm:$0xff] %v6960_v18  ;;  %v6966_v20 = vld [vmem:[#allocation2 + $0x18] sm:$0xff]  ;;  %v6969_v21 = vld [vmem:[#allocation2 + $0x10] sm:$0xff] }
  0x74   :  { %782 = vmatprep.subr.mxu0 %v638_v23  ;;  %5379 = vmatmul.mubr.msk.f32.gmra.mxu0 %vm110_vm3, %v6806_v22  ;;  %10892 = vst [vmem:[#allocation20_spill] sm:$0xff] %v6966_v20  ;;  %10893 = vst [vmem:[#allocation21_spill] sm:$0xff] %v6969_v21  ;;  %v6978_v23 = vld [vmem:[#allocation7 + $0x1e0] sm:$0xff] }
  0x75   :  { %783 = vmatpush1.msra.mxu0 %v637_v24  ;;  %842 = vmatprep.mubr.f32.mxu0 %v10307_v0  ;;  %10895 = vst [vmem:[#allocation23_spill] sm:$0xff] %v6978_v23  ;;  %v6980_v24 = vld [vmem:[#allocation7 + $0x1f8] sm:$0xff] }
  0x76   :  { %784 = vmatprep.subr.mxu0 %v634_v25  ;;  %5374 = vmatmul.mubr.msk.f32.vlgmr.msra.gmra.mxu1 %vm158_vm1, %v201_v12  ;;  %v6945_v12 = vld [vmem:[#allocation2 + $0x90] sm:$0xff]  ;;  %10896 = vst [vmem:[#allocation24_spill] sm:$0xff] %v6980_v24  ;;  %v6984_v25 = vld [vmem:[#allocation7 + $0x1c8] sm:$0xff] }
  0x77   :  { %785 = vmatpush1.msra.mxu0 %v633_v15  ;;  %5381 = vmatpush1.msk.msra.mxu1 %vm388_vm0, %v205_v26  ;;  %10897 = vst [vmem:[#allocation25_spill] sm:$0xff] %v6984_v25  ;;  %v6986_v15 = vld [vmem:[#allocation7 + $0x1f0] sm:$0xff]  ;;  %v6988_v26 = vld [vmem:[#allocation7 + $0x1c0] sm:$0xff] }
  0x78   :  { %786 = vmatprep.subr.mxu0 %v630_v27  ;;  %375 = vmatprep.mubr.f32.mxu1 %v10307_v0  ;;  %10898 = vst [vmem:[#allocation26_spill] sm:$0xff] %v6986_v15  ;;  %10899 = vst [vmem:[#allocation27_spill] sm:$0xff] %v6988_v26  ;;  %v6992_v27 = vld [vmem:[#allocation7 + $0x1d8] sm:$0xff] }
  0x79   :  { %787 = vmatpush1.msra.mxu0 %v629_v28  ;;  %849 = vmatprep.subr.mxu1 %v6819_v29  ;;  %10900 = vst [vmem:[#allocation28_spill] sm:$0xff] %v6992_v27  ;;  %v6997_v28 = vld [vmem:[#allocation7 + $0x1a8] sm:$0xff] }
  0x7a   :  { %788 = vmatprep.subr.mxu0 %v626_v30  ;;  %5375 = vmatmul.mubr.msk.f32.gmra.mxu1 %vm158_vm1, %v202_v19  ;;  %v6963_v19 = vld [vmem:[#allocation2 + $0x30] sm:$0xff]  ;;  %10901 = vst [vmem:[#allocation29_spill] sm:$0xff] %v6997_v28 }
  0x7b   :  { %789 = vmatpush1.msra.mxu0 %v625_v31  ;;  %542 = vmatprep.mubr.f32.mxu1 %v10307_v0  ;;  %10891 = vst [vmem:[#allocation19_spill] sm:$0xff] %v6963_v19  ;;  %v6999_v30 = vld [vmem:[#allocation7 + $0x1d0] sm:$0xff]  ;;  %v7003_v31 = vld [vmem:[#allocation7 + $0x1a0] sm:$0xff] }
  0x7c   :  { %790 = vmatprep.subr.mxu0 %v622_v32  ;;  %10902 = vst [vmem:[#allocation30_spill] sm:$0xff] %v6999_v30  ;;  %10903 = vst [vmem:[#allocation31_spill] sm:$0xff] %v7003_v31  ;;  %v7005_v32 = vld [vmem:[#allocation7 + $0x1b8] sm:$0xff] }
  0x7d   :  { %791 = vmatpush1.msra.mxu0 %v621_v33  ;;  %10904 = vst [vmem:[#allocation32_spill] sm:$0xff] %v7005_v32  ;;  %v7009_v33 = vld [vmem:[#allocation7 + $0x188] sm:$0xff] }
  0x7e   :  { %792 = vmatprep.subr.mxu0 %v618_v34  ;;  %5382 = vmatmul.mubr.msk.f32.vlgmr.msra.gmra.mxu1 %vm110_vm3, %v154_v17  ;;  %v6957_v17 = vld [vmem:[#allocation2 + $0x50] sm:$0xff]  ;;  %10905 = vst [vmem:[#allocation33_spill] sm:$0xff] %v7009_v33 }
  0x7f   :  { %793 = vmatpush1.msra.mxu0 %v617_v35  ;;  %850 = vmatpush1.msra.mxu1 %v6826_v36  ;;  %10889 = vst [vmem:[#allocation17_spill] sm:$0xff] %v6957_v17  ;;  %v7011_v34 = vld [vmem:[#allocation7 + $0x1b0] sm:$0xff]  ;;  %v7015_v35 = vld [vmem:[#allocation7 + $0x180] sm:$0xff] }
  0x80   :  { %794 = vmatprep.subr.mxu0 %v6828_v37  ;;  %851 = vmatprep.subr.mxu1 %v6830_v38  ;;  %10906 = vst [vmem:[#allocation34_spill] sm:$0xff] %v7011_v34  ;;  %10907 = vst [vmem:[#allocation35_spill] sm:$0xff] %v7015_v35 }
  0x81   :  { %795 = vmatpush1.msra.mxu0 %v6833_v39  ;;  %852 = vmatpush1.msra.mxu1 %v6835_v40 }
  0x82   :  { %796 = vmatprep.subr.mxu0 %v6838_v41  ;;  %548 = vmatprep.mubr.f32.mxu1 %v10307_v0 }
  0x83   :  { %797 = vmatpush1.msra.mxu0 %v6842_v42  ;;  %853 = vmatprep.subr.mxu1 %v6844_v43 }
  0x84   :  { %798 = vmatprep.subr.mxu0 %v6848_v44  ;;  %5383 = vmatmul.mubr.msk.f32.gmra.mxu1 %vm110_vm3, %v6806_v22  ;;  %v6976_v22 = vld [vmem:[#allocation7 + $0x1e8] sm:$0xff] }
  0x85   :  { %799 = vmatpush1.msra.mxu0 %v6852_v45  ;;  %854 = vmatpush1.msra.mxu1 %v6854_v46  ;;  %10894 = vst [vmem:[#allocation22_spill] sm:$0xff] %v6976_v22 }
  0x86   :  { %800 = vmatprep.subr.mxu0 %v6858_v47  ;;  %855 = vmatprep.subr.mxu1 %v6860_v48 }
  0x87   :  { %801 = vmatpush1.msra.mxu0 %v6865_v49  ;;  %856 = vmatpush1.msra.mxu1 %v6867_v50 }
  0x88   :  { %802 = vmatprep.subr.mxu0 %v6871_v51  ;;  %857 = vmatprep.subr.mxu1 %v6873_v52 }
  0x89   :  { %803 = vmatpush1.msra.mxu0 %v6877_v53  ;;  %858 = vmatpush1.msra.mxu1 %v6879_v54 }
  0x8a   :  { %804 = vmatprep.subr.mxu0 %v6883_v55  ;;  %859 = vmatprep.subr.mxu1 %v6885_v56 }
  0x8b   :  { %805 = vmatpush1.msra.mxu0 %v6889_v57  ;;  %860 = vmatpush1.msra.mxu1 %v6891_v58 }
  0x8c   :  { %806 = vmatprep.subr.mxu0 %v6895_v59  ;;  %861 = vmatprep.subr.mxu1 %v6897_v60 }
  0x8d   :  { %807 = vmatpush1.msra.mxu0 %v6901_v61  ;;  %862 = vmatpush1.msra.mxu1 %v6903_v62 }
  0x8e   :  { %808 = vmatprep.subr.mxu0 %v6907_v63  ;;  %863 = vmatprep.subr.mxu1 %v6909_v1 }
  0x8f   :  { %809 = vmatpush1.msra.mxu0 %v6913_v2  ;;  %864 = vmatpush1.msra.mxu1 %v6915_v3 }
  0x90   :  { %843 = vmatmul.mubr.f32.vlgmr.msra.gmra.mxu0 %v10307_v0  ;;  %865 = vmatprep.subr.mxu1 %v6919_v4 }
  0x91   :  { %866 = vmatpush1.msra.mxu1 %v6923_v6  ;;  %913 = vmatprep.mubr.f32.mxu1 %v10307_v0 }
  0x92   :  { %867 = vmatprep.subr.mxu1 %v6927_v7  ;;  %1056 = vmatprep.mubr.f32.mxu0 %v10307_v0 }
  0x93   :  { %868 = vmatpush1.msra.mxu1 %v6931_v8  ;;  %992 = vmatprep.subr.mxu0 %v6976_v22 }
  0x94   :  { %869 = vmatprep.subr.mxu1 %v6934_v9  ;;  %993 = vmatpush1.msra.mxu0 %v6978_v23 }
  0x95   :  { %870 = vmatpush1.msra.mxu1 %v6938_v10  ;;  %994 = vmatprep.subr.mxu0 %v6984_v25  ;;  %v7261_v25 = vld [vmem:[#allocation5 + $0xe8] sm:$0xff] }
  0x96   :  { %871 = vmatprep.subr.mxu1 %v6942_v11  ;;  %995 = vmatpush1.msra.mxu0 %v6988_v26  ;;  %v7195_v26 = vld [vmem:[#allocation5 + $0x1b8] sm:$0xff]  ;;  %10991 = vst [vmem:[#allocation118_spill] sm:$0xff] %v7261_v25 }
  0x97   :  { %872 = vmatpush1.msra.mxu1 %v6945_v12  ;;  %996 = vmatprep.subr.mxu0 %v6997_v28  ;;  %v7021_v28 = vld [vmem:[#allocation7 + $0x168] sm:$0xff]  ;;  %10968 = vst [vmem:[#allocation95_spill] sm:$0xff] %v7195_v26 }
  0x98   :  { %873 = vmatprep.subr.mxu1 %v6948_v13  ;;  %997 = vmatpush1.msra.mxu0 %v7003_v31  ;;  %10909 = vst [vmem:[#allocation37_spill] sm:$0xff] %v7021_v28  ;;  %v7023_v31 = vld [vmem:[#allocation7 + $0x190] sm:$0xff] }
  0x99   :  { %874 = vmatpush1.msra.mxu1 %v6951_v14  ;;  %998 = vmatprep.subr.mxu0 %v7009_v33  ;;  %10910 = vst [vmem:[#allocation38_spill] sm:$0xff] %v7023_v31  ;;  %v7029_v33 = vld [vmem:[#allocation7 + $0x178] sm:$0xff] }
  0x9a   :  { %875 = vmatprep.subr.mxu1 %v6954_v16  ;;  %999 = vmatpush1.msra.mxu0 %v7015_v35  ;;  %10912 = vst [vmem:[#allocation40_spill] sm:$0xff] %v7029_v33  ;;  %v7035_v35 = vld [vmem:[#allocation7 + $0x170] sm:$0xff] }
  0x9b   :  { %876 = vmatpush1.msra.mxu1 %v6957_v17  ;;  %1000 = vmatprep.subr.mxu0 %v7021_v28  ;;  %10914 = vst [vmem:[#allocation42_spill] sm:$0xff] %v7035_v35  ;;  %v7041_v28 = vld [vmem:[#allocation7 + $0x158] sm:$0xff] }
  0x9c   :  { %877 = vmatprep.subr.mxu1 %v6960_v18  ;;  %10916 = vst [vmem:[#allocation44_spill] sm:$0xff] %v7041_v28 }
  0x9d   :  { %878 = vmatpush1.msra.mxu1 %v6963_v19 }
  0x9e   :  { %879 = vmatprep.subr.mxu1 %v6966_v20 }
  0x9f   :  { %880 = vmatpush1.msra.mxu1 %v6969_v21 }
  0xa0   :  { %914 = vmatmul.mubr.f32.vlgmr.msra.gmra.mxu1 %v10307_v0  ;;  %1063 = vmatprep.subr.mxu1 %v6980_v24 }
  0xa1   :  { %1127 = vmatprep.mubr.f32.mxu1 %v10307_v0  ;;  %1064 = vmatpush1.msra.mxu1 %v6986_v15  ;;  %v7017_v0 = vld [vmem:[#allocation7 + $0x198] sm:$0xff] }
  0xa2   :  { %1065 = vmatprep.subr.mxu1 %v6992_v27  ;;  %10908 = vst [vmem:[#allocation36_spill] sm:$0xff] %v7017_v0  ;;  %v7253_v27 = vld [vmem:[#allocation5 + $0x118] sm:$0xff] }
  0xa3   :  { %1066 = vmatpush1.msra.mxu1 %v6999_v30  ;;  %v7171_v30 = vld [vmem:[#allocation5 + $0x1f8] sm:$0xff]  ;;  %10988 = vst [vmem:[#allocation115_spill] sm:$0xff] %v7253_v27 }
  0xa4   :  { %1067 = vmatprep.subr.mxu1 %v7005_v32  ;;  %v7027_v32 = vld [vmem:[#allocation7 + $0x160] sm:$0xff]  ;;  %10960 = vst [vmem:[#allocation87_spill] sm:$0xff] %v7171_v30  ;;  %v7277_v15 = vld [vmem:[#allocation5 + $0xd8] sm:$0xff] }
  0xa5   :  { %1068 = vmatpush1.msra.mxu1 %v7011_v34  ;;  %10911 = vst [vmem:[#allocation39_spill] sm:$0xff] %v7027_v32  ;;  %1001 = vmatpush1.msra.mxu0 %v7027_v32  ;;  %v7033_v34 = vld [vmem:[#allocation7 + $0x148] sm:$0xff]  ;;  %v7047_v32 = vld [vmem:[#allocation7 + $0x150] sm:$0xff]  ;;  %10996 = vst [vmem:[#allocation123_spill] sm:$0xff] %v7277_v15 }
  0xa6   :  { %1069 = vmatprep.subr.mxu1 %v7017_v0  ;;  %10913 = vst [vmem:[#allocation41_spill] sm:$0xff] %v7033_v34  ;;  %1002 = vmatprep.subr.mxu0 %v7033_v34  ;;  %v7039_v0 = vld [vmem:[#allocation7 + $0x140] sm:$0xff]  ;;  %10918 = vst [vmem:[#allocation46_spill] sm:$0xff] %v7047_v32  ;;  %v7053_v34 = vld [vmem:[#allocation7 + $0x138] sm:$0xff] }
  0xa7   :  { %1070 = vmatpush1.msra.mxu1 %v7023_v31  ;;  %10915 = vst [vmem:[#allocation43_spill] sm:$0xff] %v7039_v0  ;;  %1003 = vmatpush1.msra.mxu0 %v7039_v0  ;;  %v7045_v31 = vld [vmem:[#allocation7 + $0x128] sm:$0xff]  ;;  %10920 = vst [vmem:[#allocation48_spill] sm:$0xff] %v7053_v34  ;;  %v7059_v0 = vld [vmem:[#allocation7 + $0x130] sm:$0xff] }
  0xa8   :  { %1071 = vmatprep.subr.mxu1 %v7029_v33  ;;  %10917 = vst [vmem:[#allocation45_spill] sm:$0xff] %v7045_v31  ;;  %1004 = vmatprep.subr.mxu0 %v7045_v31  ;;  %v7051_v33 = vld [vmem:[#allocation7 + $0x120] sm:$0xff]  ;;  %10922 = vst [vmem:[#allocation50_spill] sm:$0xff] %v7059_v0  ;;  %v7065_v31 = vld [vmem:[#allocation7 + $0x118] sm:$0xff] }
  0xa9   :  { %1072 = vmatpush1.msra.mxu1 %v7035_v35  ;;  %10919 = vst [vmem:[#allocation47_spill] sm:$0xff] %v7051_v33  ;;  %1005 = vmatpush1.msra.mxu0 %v7051_v33  ;;  %v7057_v35 = vld [vmem:[#allocation7 + $0x108] sm:$0xff]  ;;  %10924 = vst [vmem:[#allocation52_spill] sm:$0xff] %v7065_v31  ;;  %v7071_v33 = vld [vmem:[#allocation7 + $0x110] sm:$0xff] }
  0xaa   :  { %1073 = vmatprep.subr.mxu1 %v7041_v28  ;;  %10921 = vst [vmem:[#allocation49_spill] sm:$0xff] %v7057_v35  ;;  %1006 = vmatprep.subr.mxu0 %v7057_v35  ;;  %v7063_v28 = vld [vmem:[#allocation7 + $0x100] sm:$0xff]  ;;  %10926 = vst [vmem:[#allocation54_spill] sm:$0xff] %v7071_v33  ;;  %v7077_v35 = vld [vmem:[#allocation7 + $0xf8] sm:$0xff] }
  0xab   :  { %1074 = vmatpush1.msra.mxu1 %v7047_v32  ;;  %10923 = vst [vmem:[#allocation51_spill] sm:$0xff] %v7063_v28  ;;  %1007 = vmatpush1.msra.mxu0 %v7063_v28  ;;  %v7069_v32 = vld [vmem:[#allocation7 + $0xe8] sm:$0xff]  ;;  %10928 = vst [vmem:[#allocation56_spill] sm:$0xff] %v7077_v35  ;;  %v7083_v28 = vld [vmem:[#allocation7 + $0xf0] sm:$0xff] }
  0xac   :  { %1075 = vmatprep.subr.mxu1 %v7053_v34  ;;  %10925 = vst [vmem:[#allocation53_spill] sm:$0xff] %v7069_v32  ;;  %1008 = vmatprep.subr.mxu0 %v7069_v32  ;;  %v7075_v34 = vld [vmem:[#allocation7 + $0xe0] sm:$0xff]  ;;  %10930 = vst [vmem:[#allocation58_spill] sm:$0xff] %v7083_v28  ;;  %v7089_v32 = vld [vmem:[#allocation7 + $0xd8] sm:$0xff] }
  0xad   :  { %1076 = vmatpush1.msra.mxu1 %v7059_v0  ;;  %10927 = vst [vmem:[#allocation55_spill] sm:$0xff] %v7075_v34  ;;  %1009 = vmatpush1.msra.mxu0 %v7075_v34  ;;  %v7081_v0 = vld [vmem:[#allocation7 + $0xc8] sm:$0xff]  ;;  %10932 = vst [vmem:[#allocation60_spill] sm:$0xff] %v7089_v32  ;;  %v7095_v34 = vld [vmem:[#allocation7 + $0xd0] sm:$0xff] }
  0xae   :  { %1077 = vmatprep.subr.mxu1 %v7065_v31  ;;  %10929 = vst [vmem:[#allocation57_spill] sm:$0xff] %v7081_v0  ;;  %1010 = vmatprep.subr.mxu0 %v7081_v0  ;;  %v7087_v31 = vld [vmem:[#allocation7 + $0xc0] sm:$0xff]  ;;  %10934 = vst [vmem:[#allocation62_spill] sm:$0xff] %v7095_v34  ;;  %v7101_v0 = vld [vmem:[#allocation7 + $0xb8] sm:$0xff] }
  0xaf   :  { %1078 = vmatpush1.msra.mxu1 %v7071_v33  ;;  %10931 = vst [vmem:[#allocation59_spill] sm:$0xff] %v7087_v31  ;;  %1011 = vmatpush1.msra.mxu0 %v7087_v31  ;;  %v7093_v33 = vld [vmem:[#allocation7 + $0xa8] sm:$0xff]  ;;  %10936 = vst [vmem:[#allocation64_spill] sm:$0xff] %v7101_v0  ;;  %v7107_v31 = vld [vmem:[#allocation7 + $0xb0] sm:$0xff] }
  0xb0   :  { %1079 = vmatprep.subr.mxu1 %v7077_v35  ;;  %10933 = vst [vmem:[#allocation61_spill] sm:$0xff] %v7093_v33  ;;  %1012 = vmatprep.subr.mxu0 %v7093_v33  ;;  %v7099_v35 = vld [vmem:[#allocation7 + $0xa0] sm:$0xff]  ;;  %10938 = vst [vmem:[#allocation66_spill] sm:$0xff] %v7107_v31  ;;  %v7113_v33 = vld [vmem:[#allocation7 + $0x98] sm:$0xff] }
  0xb1   :  { %1080 = vmatpush1.msra.mxu1 %v7083_v28  ;;  %10935 = vst [vmem:[#allocation63_spill] sm:$0xff] %v7099_v35  ;;  %1013 = vmatpush1.msra.mxu0 %v7099_v35  ;;  %v7105_v28 = vld [vmem:[#allocation7 + $0x88] sm:$0xff]  ;;  %10940 = vst [vmem:[#allocation68_spill] sm:$0xff] %v7113_v33  ;;  %v7119_v35 = vld [vmem:[#allocation7 + $0x90] sm:$0xff] }
  0xb2   :  { %1081 = vmatprep.subr.mxu1 %v7089_v32  ;;  %10937 = vst [vmem:[#allocation65_spill] sm:$0xff] %v7105_v28  ;;  %1014 = vmatprep.subr.mxu0 %v7105_v28  ;;  %v7111_v32 = vld [vmem:[#allocation7 + $0x80] sm:$0xff]  ;;  %10942 = vst [vmem:[#allocation70_spill] sm:$0xff] %v7119_v35  ;;  %v7125_v28 = vld [vmem:[#allocation7 + $0x78] sm:$0xff] }
  0xb3   :  { %1082 = vmatpush1.msra.mxu1 %v7095_v34  ;;  %10939 = vst [vmem:[#allocation67_spill] sm:$0xff] %v7111_v32  ;;  %1015 = vmatpush1.msra.mxu0 %v7111_v32  ;;  %v7117_v34 = vld [vmem:[#allocation7 + $0x68] sm:$0xff]  ;;  %10944 = vst [vmem:[#allocation72_spill] sm:$0xff] %v7125_v28  ;;  %v7131_v32 = vld [vmem:[#allocation7 + $0x70] sm:$0xff] }
  0xb4   :  { %1083 = vmatprep.subr.mxu1 %v7101_v0  ;;  %10941 = vst [vmem:[#allocation69_spill] sm:$0xff] %v7117_v34  ;;  %1016 = vmatprep.subr.mxu0 %v7117_v34  ;;  %v7123_v0 = vld [vmem:[#allocation7 + $0x60] sm:$0xff]  ;;  %10946 = vst [vmem:[#allocation74_spill] sm:$0xff] %v7131_v32  ;;  %v7137_v34 = vld [vmem:[#allocation7 + $0x58] sm:$0xff] }
  0xb5   :  { %1084 = vmatpush1.msra.mxu1 %v7107_v31  ;;  %10943 = vst [vmem:[#allocation71_spill] sm:$0xff] %v7123_v0  ;;  %1017 = vmatpush1.msra.mxu0 %v7123_v0  ;;  %v7129_v31 = vld [vmem:[#allocation7 + $0x48] sm:$0xff]  ;;  %10948 = vst [vmem:[#allocation76_spill] sm:$0xff] %v7137_v34  ;;  %v7143_v0 = vld [vmem:[#allocation7 + $0x50] sm:$0xff] }
  0xb6   :  { %1085 = vmatprep.subr.mxu1 %v7113_v33  ;;  %10945 = vst [vmem:[#allocation73_spill] sm:$0xff] %v7129_v31  ;;  %1018 = vmatprep.subr.mxu0 %v7129_v31  ;;  %v7135_v33 = vld [vmem:[#allocation7 + $0x40] sm:$0xff]  ;;  %10950 = vst [vmem:[#allocation78_spill] sm:$0xff] %v7143_v0  ;;  %v7149_v31 = vld [vmem:[#allocation7 + $0x38] sm:$0xff] }
  0xb7   :  { %1086 = vmatpush1.msra.mxu1 %v7119_v35  ;;  %10947 = vst [vmem:[#allocation75_spill] sm:$0xff] %v7135_v33  ;;  %1019 = vmatpush1.msra.mxu0 %v7135_v33  ;;  %v7141_v35 = vld [vmem:[#allocation7 + $0x28] sm:$0xff]  ;;  %10952 = vst [vmem:[#allocation80_spill] sm:$0xff] %v7149_v31  ;;  %v7155_v33 = vld [vmem:[#allocation7 + $0x30] sm:$0xff] }
  0xb8   :  { %1087 = vmatprep.subr.mxu1 %v7125_v28  ;;  %10949 = vst [vmem:[#allocation77_spill] sm:$0xff] %v7141_v35  ;;  %1020 = vmatprep.subr.mxu0 %v7141_v35  ;;  %v7147_v28 = vld [vmem:[#allocation7 + $0x20] sm:$0xff]  ;;  %10954 = vst [vmem:[#allocation82_spill] sm:$0xff] %v7155_v33  ;;  %v7161_v35 = vld [vmem:[#allocation7 + $0x18] sm:$0xff] }
  0xb9   :  { %1088 = vmatpush1.msra.mxu1 %v7131_v32  ;;  %10951 = vst [vmem:[#allocation79_spill] sm:$0xff] %v7147_v28  ;;  %1021 = vmatpush1.msra.mxu0 %v7147_v28  ;;  %v7153_v32 = vld [vmem:[#allocation7 + $0x8] sm:$0xff]  ;;  %10956 = vst [vmem:[#allocation84_spill] sm:$0xff] %v7161_v35  ;;  %v10958_v28 = vmov 0.0  }
  0xba   :  { %1089 = vmatprep.subr.mxu1 %v7137_v34  ;;  %10953 = vst [vmem:[#allocation81_spill] sm:$0xff] %v7153_v32  ;;  %1022 = vmatprep.subr.mxu0 %v7153_v32  ;;  %v7159_v34 = vld [vmem:[#allocation7] sm:$0xff] }
  0xbb   :  { %1090 = vmatpush1.msra.mxu1 %v7143_v0  ;;  %10955 = vst [vmem:[#allocation83_spill] sm:$0xff] %v7159_v34  ;;  %1023 = vmatpush1.msra.mxu0 %v7159_v34  ;;  %v7165_v0 = vld [vmem:[#allocation7 + $0x10] sm:$0xff]  ;;  %v7175_v32 = vld [vmem:[#allocation5 + $0x1e0] sm:$0xff]  ;;  %v7181_v34 = vld [vmem:[#allocation5 + $0x1c8] sm:$0xff] }
  0xbc   :  { %1091 = vmatprep.subr.mxu1 %v7149_v31  ;;  %10957 = vst [vmem:[#allocation85_spill] sm:$0xff] %v7165_v0  ;;  %1057 = vmatmul.mubr.f32.vlgmr.msra.gmra.mxu0 %v10958_v28  ;;  %v7169_v31 = vld [vmem:[#allocation5 + $0x1e8] sm:$0xff]  ;;  %10961 = vst [vmem:[#allocation88_spill] sm:$0xff] %v7175_v32 }
  0xbd   :  { %1092 = vmatpush1.msra.mxu1 %v7155_v33  ;;  %10959 = vst [vmem:[#allocation86_spill] sm:$0xff] %v7169_v31  ;;  %1140 = vmatprep.subr.mxu0 %v7169_v31  ;;  %v7177_v33 = vld [vmem:[#allocation5 + $0x1f0] sm:$0xff]  ;;  %10963 = vst [vmem:[#allocation90_spill] sm:$0xff] %v7181_v34 }
  0xbe   :  { %1093 = vmatprep.subr.mxu1 %v7161_v35  ;;  %10962 = vst [vmem:[#allocation89_spill] sm:$0xff] %v7177_v33  ;;  %1141 = vmatpush1.msra.mxu0 %v7175_v32  ;;  %v7183_v35 = vld [vmem:[#allocation5 + $0x1d8] sm:$0xff]  ;;  %v7189_v31 = vld [vmem:[#allocation5 + $0x1d0] sm:$0xff]  ;;  %v7199_v32 = vld [vmem:[#allocation5 + $0x1a0] sm:$0xff] }
  0xbf   :  { %1094 = vmatpush1.msra.mxu1 %v7165_v0  ;;  %10964 = vst [vmem:[#allocation91_spill] sm:$0xff] %v7183_v35  ;;  %1142 = vmatprep.subr.mxu0 %v7181_v34  ;;  %v7187_v0 = vld [vmem:[#allocation5 + $0x1c0] sm:$0xff]  ;;  %10966 = vst [vmem:[#allocation93_spill] sm:$0xff] %v7189_v31  ;;  %v7205_v34 = vld [vmem:[#allocation5 + $0x188] sm:$0xff] }
  0xc0   :  { %1211 = vmatprep.subr.mxu1 %v7171_v30  ;;  %1128 = vmatmul.mubr.f32.vlgmr.msra.gmra.mxu1 %v10958_v28  ;;  %10965 = vst [vmem:[#allocation92_spill] sm:$0xff] %v7187_v0  ;;  %v7193_v30 = vld [vmem:[#allocation5 + $0x1a8] sm:$0xff]  ;;  %10969 = vst [vmem:[#allocation96_spill] sm:$0xff] %v7199_v32 }
  0xc1   :  { %1212 = vmatpush1.msra.mxu1 %v7177_v33  ;;  %1143 = vmatpush1.msra.mxu0 %v7187_v0  ;;  %10967 = vst [vmem:[#allocation94_spill] sm:$0xff] %v7193_v30  ;;  %v7201_v33 = vld [vmem:[#allocation5 + $0x1b0] sm:$0xff]  ;;  %10971 = vst [vmem:[#allocation98_spill] sm:$0xff] %v7205_v34  ;;  %v7211_v0 = vld [vmem:[#allocation5 + $0x180] sm:$0xff] }
  0xc2   :  { %1213 = vmatprep.subr.mxu1 %v7183_v35  ;;  %1144 = vmatprep.subr.mxu0 %v7193_v30  ;;  %10970 = vst [vmem:[#allocation97_spill] sm:$0xff] %v7201_v33  ;;  %v7207_v35 = vld [vmem:[#allocation5 + $0x198] sm:$0xff]  ;;  %10973 = vst [vmem:[#allocation100_spill] sm:$0xff] %v7211_v0  ;;  %v7217_v30 = vld [vmem:[#allocation5 + $0x168] sm:$0xff] }
  0xc3   :  { %1214 = vmatpush1.msra.mxu1 %v7189_v31  ;;  %1145 = vmatpush1.msra.mxu0 %v7199_v32  ;;  %10972 = vst [vmem:[#allocation99_spill] sm:$0xff] %v7207_v35  ;;  %v7213_v31 = vld [vmem:[#allocation5 + $0x190] sm:$0xff]  ;;  %10975 = vst [vmem:[#allocation102_spill] sm:$0xff] %v7217_v30  ;;  %v7223_v32 = vld [vmem:[#allocation5 + $0x160] sm:$0xff] }
  0xc4   :  { %1215 = vmatprep.subr.mxu1 %v7195_v26  ;;  %1146 = vmatprep.subr.mxu0 %v7205_v34  ;;  %10974 = vst [vmem:[#allocation101_spill] sm:$0xff] %v7213_v31  ;;  %v7219_v26 = vld [vmem:[#allocation5 + $0x178] sm:$0xff]  ;;  %10977 = vst [vmem:[#allocation104_spill] sm:$0xff] %v7223_v32  ;;  %v7229_v34 = vld [vmem:[#allocation5 + $0x148] sm:$0xff] }
  0xc5   :  { %1216 = vmatpush1.msra.mxu1 %v7201_v33  ;;  %1147 = vmatpush1.msra.mxu0 %v7211_v0  ;;  %10976 = vst [vmem:[#allocation103_spill] sm:$0xff] %v7219_v26  ;;  %v7225_v33 = vld [vmem:[#allocation5 + $0x170] sm:$0xff]  ;;  %10979 = vst [vmem:[#allocation106_spill] sm:$0xff] %v7229_v34  ;;  %v7235_v0 = vld [vmem:[#allocation5 + $0x140] sm:$0xff] }
  0xc6   :  { %1217 = vmatprep.subr.mxu1 %v7207_v35  ;;  %1148 = vmatprep.subr.mxu0 %v7217_v30  ;;  %10978 = vst [vmem:[#allocation105_spill] sm:$0xff] %v7225_v33  ;;  %v7231_v35 = vld [vmem:[#allocation5 + $0x158] sm:$0xff]  ;;  %10981 = vst [vmem:[#allocation108_spill] sm:$0xff] %v7235_v0  ;;  %v7241_v30 = vld [vmem:[#allocation5 + $0x128] sm:$0xff] }
  0xc7   :  { %1218 = vmatpush1.msra.mxu1 %v7213_v31  ;;  %1149 = vmatpush1.msra.mxu0 %v7223_v32  ;;  %10980 = vst [vmem:[#allocation107_spill] sm:$0xff] %v7231_v35  ;;  %v7237_v31 = vld [vmem:[#allocation5 + $0x150] sm:$0xff]  ;;  %10983 = vst [vmem:[#allocation110_spill] sm:$0xff] %v7241_v30  ;;  %v7245_v32 = vld [vmem:[#allocation5 + $0x120] sm:$0xff] }
  0xc8   :  { %1219 = vmatprep.subr.mxu1 %v7219_v26  ;;  %1150 = vmatprep.subr.mxu0 %v7229_v34  ;;  %10982 = vst [vmem:[#allocation109_spill] sm:$0xff] %v7237_v31  ;;  %v7243_v26 = vld [vmem:[#allocation5 + $0x138] sm:$0xff]  ;;  %10985 = vst [vmem:[#allocation112_spill] sm:$0xff] %v7245_v32  ;;  %v7251_v34 = vld [vmem:[#allocation5 + $0x108] sm:$0xff] }
  0xc9   :  { %1220 = vmatpush1.msra.mxu1 %v7225_v33  ;;  %1151 = vmatpush1.msra.mxu0 %v7235_v0  ;;  %10984 = vst [vmem:[#allocation111_spill] sm:$0xff] %v7243_v26  ;;  %v7249_v33 = vld [vmem:[#allocation5 + $0x130] sm:$0xff]  ;;  %10987 = vst [vmem:[#allocation114_spill] sm:$0xff] %v7251_v34  ;;  %v7257_v0 = vld [vmem:[#allocation5 + $0x100] sm:$0xff] }
  0xca   :  { %1221 = vmatprep.subr.mxu1 %v7231_v35  ;;  %1152 = vmatprep.subr.mxu0 %v7241_v30  ;;  %10986 = vst [vmem:[#allocation113_spill] sm:$0xff] %v7249_v33  ;;  %10989 = vst [vmem:[#allocation116_spill] sm:$0xff] %v7257_v0  ;;  %v7259_v35 = vld [vmem:[#allocation5 + $0x110] sm:$0xff]  ;;  %v7265_v30 = vld [vmem:[#allocation5 + $0xf8] sm:$0xff] }
  0xcb   :  { %1222 = vmatpush1.msra.mxu1 %v7237_v31  ;;  %1153 = vmatpush1.msra.mxu0 %v7245_v32  ;;  %10990 = vst [vmem:[#allocation117_spill] sm:$0xff] %v7259_v35  ;;  %10992 = vst [vmem:[#allocation119_spill] sm:$0xff] %v7265_v30  ;;  %v7267_v31 = vld [vmem:[#allocation5 + $0xe0] sm:$0xff]  ;;  %v7273_v32 = vld [vmem:[#allocation5 + $0xc8] sm:$0xff] }
  0xcc   :  { %1223 = vmatprep.subr.mxu1 %v7243_v26  ;;  %1154 = vmatprep.subr.mxu0 %v7251_v34  ;;  %10993 = vst [vmem:[#allocation120_spill] sm:$0xff] %v7267_v31  ;;  %v7271_v26 = vld [vmem:[#allocation5 + $0xf0] sm:$0xff]  ;;  %10995 = vst [vmem:[#allocation122_spill] sm:$0xff] %v7273_v32 }
  0xcd   :  { %1224 = vmatpush1.msra.mxu1 %v7249_v33  ;;  %1155 = vmatpush1.msra.mxu0 %v7257_v0  ;;  %10994 = vst [vmem:[#allocation121_spill] sm:$0xff] %v7271_v26  ;;  %v7279_v33 = vld [vmem:[#allocation5 + $0xc0] sm:$0xff]  ;;  %v7283_v34 = vld [vmem:[#allocation5 + $0xd0] sm:$0xff]  ;;  %v7289_v0 = vld [vmem:[#allocation5 + $0xb8] sm:$0xff] }
  0xce   :  { %1225 = vmatprep.subr.mxu1 %v7253_v27  ;;  %1156 = vmatprep.subr.mxu0 %v7261_v25  ;;  %10997 = vst [vmem:[#allocation124_spill] sm:$0xff] %v7279_v33  ;;  %10998 = vst [vmem:[#allocation125_spill] sm:$0xff] %v7283_v34  ;;  %v7285_v27 = vld [vmem:[#allocation5 + $0xa8] sm:$0xff]  ;;  %v7295_v25 = vld [vmem:[#allocation5 + $0xb0] sm:$0xff] }
  0xcf   :  { %1226 = vmatpush1.msra.mxu1 %v7259_v35  ;;  %1157 = vmatpush1.msra.mxu0 %v7267_v31  ;;  %10999 = vst [vmem:[#allocation126_spill] sm:$0xff] %v7285_v27  ;;  %11000 = vst [vmem:[#allocation127_spill] sm:$0xff] %v7289_v0  ;;  %v7291_v35 = vld [vmem:[#allocation5 + $0xa0] sm:$0xff]  ;;  %v7301_v31 = vld [vmem:[#allocation5 + $0x98] sm:$0xff] }
  0xd0   :  { %1227 = vmatprep.subr.mxu1 %v7265_v30  ;;  %1158 = vmatprep.subr.mxu0 %v7273_v32  ;;  %11001 = vst [vmem:[#allocation128_spill] sm:$0xff] %v7291_v35  ;;  %11002 = vst [vmem:[#allocation129_spill] sm:$0xff] %v7295_v25  ;;  %v7297_v30 = vld [vmem:[#allocation5 + $0x88] sm:$0xff]  ;;  %v7307_v32 = vld [vmem:[#allocation5 + $0x90] sm:$0xff] }
  0xd1   :  { %1228 = vmatpush1.msra.mxu1 %v7271_v26  ;;  %1159 = vmatpush1.msra.mxu0 %v7279_v33  ;;  %11003 = vst [vmem:[#allocation130_spill] sm:$0xff] %v7297_v30  ;;  %11004 = vst [vmem:[#allocation131_spill] sm:$0xff] %v7301_v31  ;;  %v7303_v26 = vld [vmem:[#allocation5 + $0x80] sm:$0xff]  ;;  %v7313_v33 = vld [vmem:[#allocation5 + $0x78] sm:$0xff] }
  0xd2   :  { %1229 = vmatprep.subr.mxu1 %v7277_v15  ;;  %1160 = vmatprep.subr.mxu0 %v7285_v27  ;;  %11005 = vst [vmem:[#allocation132_spill] sm:$0xff] %v7303_v26  ;;  %11006 = vst [vmem:[#allocation133_spill] sm:$0xff] %v7307_v32  ;;  %v7309_v15 = vld [vmem:[#allocation5 + $0x68] sm:$0xff]  ;;  %v7319_v27 = vld [vmem:[#allocation5 + $0x70] sm:$0xff] }
  0xd3   :  { %1230 = vmatpush1.msra.mxu1 %v7283_v34  ;;  %1161 = vmatpush1.msra.mxu0 %v7291_v35  ;;  %11007 = vst [vmem:[#allocation134_spill] sm:$0xff] %v7309_v15  ;;  %11008 = vst [vmem:[#allocation135_spill] sm:$0xff] %v7313_v33  ;;  %v7315_v34 = vld [vmem:[#allocation5 + $0x60] sm:$0xff]  ;;  %v7325_v35 = vld [vmem:[#allocation5 + $0x58] sm:$0xff] }
  0xd4   :  { %1231 = vmatprep.subr.mxu1 %v7289_v0  ;;  %1162 = vmatprep.subr.mxu0 %v7297_v30  ;;  %11009 = vst [vmem:[#allocation136_spill] sm:$0xff] %v7315_v34  ;;  %11010 = vst [vmem:[#allocation137_spill] sm:$0xff] %v7319_v27  ;;  %v7321_v0 = vld [vmem:[#allocation5 + $0x48] sm:$0xff]  ;;  %v7331_v30 = vld [vmem:[#allocation5 + $0x50] sm:$0xff] }
  0xd5   :  { %1232 = vmatpush1.msra.mxu1 %v7295_v25  ;;  %1163 = vmatpush1.msra.mxu0 %v7303_v26  ;;  %11011 = vst [vmem:[#allocation138_spill] sm:$0xff] %v7321_v0  ;;  %11012 = vst [vmem:[#allocation139_spill] sm:$0xff] %v7325_v35  ;;  %v7327_v25 = vld [vmem:[#allocation5 + $0x40] sm:$0xff]  ;;  %v7337_v26 = vld [vmem:[#allocation5 + $0x38] sm:$0xff] }
  0xd6   :  { %1233 = vmatprep.subr.mxu1 %v7301_v31  ;;  %1164 = vmatprep.subr.mxu0 %v7309_v15  ;;  %11013 = vst [vmem:[#allocation140_spill] sm:$0xff] %v7327_v25  ;;  %11014 = vst [vmem:[#allocation141_spill] sm:$0xff] %v7331_v30  ;;  %v7333_v31 = vld [vmem:[#allocation5 + $0x28] sm:$0xff]  ;;  %v7343_v15 = vld [vmem:[#allocation5 + $0x30] sm:$0xff] }
  0xd7   :  { %1234 = vmatpush1.msra.mxu1 %v7307_v32  ;;  %1165 = vmatpush1.msra.mxu0 %v7315_v34  ;;  %11015 = vst [vmem:[#allocation142_spill] sm:$0xff] %v7333_v31  ;;  %11016 = vst [vmem:[#allocation143_spill] sm:$0xff] %v7337_v26  ;;  %v7339_v32 = vld [vmem:[#allocation5 + $0x20] sm:$0xff]  ;;  %v7349_v34 = vld [vmem:[#allocation5 + $0x18] sm:$0xff] }
  0xd8   :  { %1235 = vmatprep.subr.mxu1 %v7313_v33  ;;  %1166 = vmatprep.subr.mxu0 %v7321_v0  ;;  %11017 = vst [vmem:[#allocation144_spill] sm:$0xff] %v7339_v32  ;;  %11018 = vst [vmem:[#allocation145_spill] sm:$0xff] %v7343_v15  ;;  %v7345_v33 = vld [vmem:[#allocation5 + $0x8] sm:$0xff]  ;;  %v7355_v0 = vld [vmem:[#allocation5 + $0x10] sm:$0xff] }
  0xd9   :  { %1236 = vmatpush1.msra.mxu1 %v7319_v27  ;;  %1167 = vmatpush1.msra.mxu0 %v7327_v25  ;;  %11019 = vst [vmem:[#allocation146_spill] sm:$0xff] %v7345_v33  ;;  %11020 = vst [vmem:[#allocation147_spill] sm:$0xff] %v7349_v34  ;;  %v7351_v27 = vld [vmem:[#allocation5] sm:$0xff] }
  0xda   :  { %1237 = vmatprep.subr.mxu1 %v7325_v35  ;;  %1168 = vmatprep.subr.mxu0 %v7333_v31  ;;  %11021 = vst [vmem:[#allocation148_spill] sm:$0xff] %v7351_v27  ;;  %11022 = vst [vmem:[#allocation149_spill] sm:$0xff] %v7355_v0 }
  0xdb   :  { %1238 = vmatpush1.msra.mxu1 %v7331_v30  ;;  %1169 = vmatpush1.msra.mxu0 %v7339_v32 }
  0xdc   :  { %1239 = vmatprep.subr.mxu1 %v7337_v26  ;;  %1170 = vmatprep.subr.mxu0 %v7345_v33  ;;  %v557_v33 = vlaneseq }
  0xdd   :  { %1240 = vmatpush1.msra.mxu1 %v7343_v15  ;;  %1171 = vmatpush1.msra.mxu0 %v7351_v27 }
  0xde   :  { %1241 = vmatprep.subr.mxu1 %v7349_v34  ;;  %1204 = vmatprep.mubr.f32.mxu0 %v10958_v28  ;;  %v7366_v34 = vshrl.u32 %v557_v33, 7 }
  0xdf   :  { %1242 = vmatpush1.msra.mxu1 %v7355_v0  ;;  %1275 = vmatprep.mubr.f32.mxu1 %v10958_v28 }
  0xe0   :  { %1331 = vmatprep.subr.mxu0 %v6752_v5  ;;  %1402 = vmatprep.subr.mxu1 %v6819_v29  ;;  %v10448_v0 = vsub.s32 0, %v7366_v34  ;;  %v555_v5 = vld [vmem:[%s10293_s8] sm:$0xf]  ;;  %v10449_v29 = vsub.s32 1, %v7366_v34 }
  0xe2   :  { %v560_v21 = vrot.slane %v555_v5, %v10448_v0  ;;  %v564_v33 = vrot.slane %v555_v5, %v10449_v29 }
 0x12e   :  { %v294_v32 = vpop.f32.mrf.mxu1 }
 0x130   :  { %v296_v26 = vpop.f32.mrf.mxu1  ;;  %v467_v30 = vpop.f32.mrf.mxu0 }
 0x131   :  { %v468_v22 = vadd.f32 %v467_v30, %v294_v32 }
 0x132   :  { %v300_v31 = vpop.f32.mrf.mxu1  ;;  %v469_v27 = vpop.f32.mrf.mxu0 }
 0x133   :  { %v470_v2 = vadd.f32 %v469_v27, %v296_v26  ;;  %v7377_v61 = vadd.f32 %v560_v21, %v468_v22 }
 0x134   :  { %v302_v15 = vpop.f32.mrf.mxu1  ;;  %v473_v23 = vpop.f32.mrf.mxu0 }
 0x135   :  { %v474_v20 = vadd.f32 %v473_v23, %v300_v31  ;;  %11023 = vst [vmem:[#allocation150_spill] sm:$0xff] %v7377_v61  ;;  %v7379_v59 = vadd.f32 %v564_v33, %v470_v2 }
 0x136   :  { %v371_v25 = vpop.f32.mrf.mxu1  ;;  %v475_v28 = vpop.f32.mrf.mxu0 }
 0x137   :  { %v476_v63 = vadd.f32 %v475_v28, %v302_v15  ;;  %11024 = vst [vmem:[#allocation151_spill] sm:$0xff] %v7379_v59  ;;  %v7381_v17 = vadd.f32 %v560_v21, %v474_v20  ;;  %v10450_v21 = vsub.s32 2, %v7366_v34 }
 0x138   :  { %v373_v35 = vpop.f32.mrf.mxu1 }
 0x139   :  { %v7384_v32 = vadd.f32 %v564_v33, %v476_v63  ;;  %v571_v33 = vsub.s32 3, %v7366_v34 }
 0x13a   :  { %v377_v24 = vpop.f32.mrf.mxu1 }
 0x13b   :  { %11025 = vst [vmem:[#allocation152_spill] sm:$0xff] %v7384_v32 }
 0x13c   :  { %v379_v19 = vpop.f32.mrf.mxu1 }
 0x13e   :  { %v544_v0 = vpop.f32.mrf.mxu1 }
 0x13f   :  { %v545_v31 = vadd.f32 %v544_v0, %v371_v25 }
 0x140   :  { %v546_v20 = vpop.f32.mrf.mxu1 }
 0x144   :  { %v550_v63 = vpop.f32.mrf.mxu1 }
 0x150   :  { %v844_v18 = vpop.f32.mrf.mxu0 }
 0x151   :  { %v924_v57 = vrot.slane %v844_v18, 1  ;;  %v936_v30 = vadd.f32 %v844_v18, %v7377_v61 }
 0x152   :  { %v846_v26 = vpop.f32.mrf.mxu0 }
 0x153   :  { %v940_v27 = vadd.f32 %v924_v57, %v7381_v17  ;;  %v5384_v29 = vmul.f32 -1.442695, %v936_v30  ;;  %v925_v23 = vrot.slane %v846_v26, 1  ;;  %v937_v15 = vadd.f32 %v846_v26, %v7379_v59 }
 0x154   :  { %v568_v57 = vrot.slane %v555_v5, %v10450_v21  ;;  %v551_v30 = vadd.f32 %v550_v63, %v377_v24 }
 0x155   :  { %5556 = vpow2.f32 %v5384_v29  ;;  %v5387_v22 = vmul.f32 -1.442695, %v940_v27  ;;  %v941_v2 = vadd.f32 %v925_v23, %v7384_v32  ;;  %v5385_v28 = vmul.f32 -1.442695, %v937_v15  ;;  %v552_v29 = vpop.f32.mrf.mxu1 }
 0x156   :  { %v7393_v26 = vadd.f32 %v568_v57, %v545_v31  ;;  %v572_v27 = vrot.slane %v555_v5, %v571_v33  ;;  %v547_v15 = vadd.f32 %v546_v20, %v373_v35  ;;  %v553_v25 = vadd.f32 %v552_v29, %v379_v19 }
 0x157   :  { %5558 = vpow2.f32 %v5387_v22  ;;  %v5388_v18 = vmul.f32 -1.442695, %v941_v2  ;;  %v7397_v22 = vadd.f32 %v568_v57, %v551_v30 }
 0x158   :  { %5560 = vpow2.f32 %v5385_v28  ;;  %v7401_v61 = vadd.f32 %v572_v27, %v547_v15  ;;  %v7403_v20 = vadd.f32 %v572_v27, %v553_v25 }
 0x159   :  { %5562 = vpow2.f32 %v5388_v18 }
 0x160   :  { %v915_v23 = vpop.f32.mrf.mxu1 }
 0x161   :  { %v926_v2 = vrot.slane %v915_v23, 1  ;;  %v938_v28 = vadd.f32 %v915_v23, %v7393_v26 }
 0x162   :  { %v5557_v0 = vpop.eup %5556  ;;  %v917_v18 = vpop.f32.mrf.mxu1 }
 0x163   :  { %v962_v21 = vadd.f32 1.0, %v5557_v0  ;;  %v942_v59 = vadd.f32 %v926_v2, %v7397_v22  ;;  %v5386_v24 = vmul.f32 -1.442695, %v938_v28  ;;  %v927_v31 = vrot.slane %v917_v18, 1 }
 0x164   :  { %v5559_v63 = vpop.eup %5558  ;;  %v939_v29 = vadd.f32 %v917_v18, %v7401_v61 }
 0x165   :  { %v5561_v32 = vpop.eup %5560  ;;  %v965_v5 = vadd.f32 1.0, %v5559_v63  ;;  %5564 = vrcp.f32 %v962_v21  ;;  %v5389_v30 = vmul.f32 -1.442695, %v942_v59  ;;  %v943_v23 = vadd.f32 %v927_v31, %v7403_v20 }
 0x166   :  { %v5563_v35 = vpop.eup %5562  ;;  %v963_v57 = vadd.f32 1.0, %v5561_v32  ;;  %5566 = vpow2.f32 %v5386_v24 }
 0x167   :  { %5568 = vrcp.f32 %v965_v5  ;;  %v966_v19 = vadd.f32 1.0, %v5563_v35 }
 0x168   :  { %5570 = vrcp.f32 %v963_v57 }
 0x169   :  { %5572 = vrcp.f32 %v966_v19 }
 0x16a   :  { %5574 = vpow2.f32 %v5389_v30 }
 0x16b   :  { %5576 = vtanh.f32 %v939_v29 }
 0x16c   :  { %5578 = vtanh.f32 %v943_v23 }
 0x172   :  { %v5565_v15 = vpop.eup %5564 }
 0x173   :  { %v5567_v2 = vpop.eup %5566 }
 0x174   :  { %v5569_v21 = vpop.eup %5568  ;;  %v964_v31 = vadd.f32 1.0, %v5567_v2  ;;  %v7418_v2 = vld [vmem:[#allocation2 + $0x1e0] sm:$0xff] }
 0x175   :  { %v5571_v28 = vpop.eup %5570 }
 0x176   :  { %v5573_v27 = vpop.eup %5572  ;;  %v982_v32 = vmul.f32 0.0, %v5571_v28 }
 0x177   :  { %v5575_v0 = vpop.eup %5574  ;;  %v983_v59 = vmul.f32 0.0, %v5573_v27 }
 0x178   :  { %v5577_v25 = vpop.eup %5576  ;;  %v967_v24 = vadd.f32 1.0, %v5575_v0  ;;  %v7422_v0 = vld [vmem:[#allocation2 + $0x1c8] sm:$0xff] }
 0x179   :  { %v5579_v63 = vpop.eup %5578  ;;  %v984_v5 = vmul.f32 %v5577_v25, %v5565_v15  ;;  %v7430_v25 = vld [vmem:[#allocation2 + $0x1a8] sm:$0xff] }
 0x17a   :  { %v985_v18 = vmul.f32 %v5579_v63, %v5569_v21  ;;  %5580 = vrcp.f32 %v967_v24  ;;  %v11053_v24 = vld [vmem:[#allocation37_spill] sm:$0xff]  ;;  %v11054_v63 = vld [vmem:[#allocation40_spill] sm:$0xff] }
 0x17b   :  { %v7407_v35 = vadd.f32 %v984_v5, %v982_v32  ;;  %v7426_v32 = vld [vmem:[#allocation2 + $0x1c0] sm:$0xff] }
 0x17c   :  { %v7409_v57 = vadd.f32 %v985_v18, %v983_v59  ;;  %v7434_v59 = vld [vmem:[#allocation2 + $0x1a0] sm:$0xff]  ;;  %v11056_v18 = vld [vmem:[#allocation42_spill] sm:$0xff] }
 0x17d   :  { %5582 = vtanh.f32 %v7407_v35  ;;  %v11055_v5 = vld [vmem:[#allocation39_spill] sm:$0xff] }
 0x17e   :  { %5584 = vtanh.f32 %v7409_v57 }
 0x17f   :  { %5586 = vrcp.f32 %v964_v31  ;;  %v11057_v31 = vld [vmem:[#allocation41_spill] sm:$0xff] }
 0x187   :  { %v5581_v30 = vpop.eup %5580 }
 0x18a   :  { %v5583_v19 = vpop.eup %5582 }
 0x18b   :  { %v5585_v29 = vpop.eup %5584 }
 0x18c   :  { %v991_v23 = vmul.f32 %v5585_v29, %v5581_v30  ;;  %v5587_v28 = vpop.eup %5586  ;;  %v11058_v30 = vld [vmem:[#allocation44_spill] sm:$0xff]  ;;  %v11060_v29 = vld [vmem:[#allocation46_spill] sm:$0xff] }
 0x18d   :  { %v990_v27 = vmul.f32 %v5587_v28, %v5583_v19  ;;  %v11059_v19 = vld [vmem:[#allocation43_spill] sm:$0xff]  ;;  %v11062_v28 = vld [vmem:[#allocation48_spill] sm:$0xff] }
 0x18e   :  { %v1136_v15 = vrot.slane %v991_v23, 7  ;;  %v11061_v23 = vld [vmem:[#allocation45_spill] sm:$0xff] }
 0x190   :  { %v7414_v21 = vsel %vm1137_vm4, %v1136_v15, %v990_v27  ;;  %v11063_v27 = vld [vmem:[#allocation47_spill] sm:$0xff]  ;;  %v11064_v15 = vld [vmem:[#allocation50_spill] sm:$0xff] }
 0x191   :  { %1205 = vmatmul.mubr.f32.vlgmr.msra.gmra.mxu0 %v7414_v21  ;;  %1276 = vmatmul.mubr.f32.vlgmr.msra.gmra.mxu1 %v7414_v21 }
 0x192   :  { %1332 = vmatpush1.msra.mxu0 %v7418_v2  ;;  %1403 = vmatpush1.msra.mxu1 %v6826_v36  ;;  %v7438_v36 = vld [vmem:[#allocation2 + $0x188] sm:$0xff] }
 0x193   :  { %1333 = vmatprep.subr.mxu0 %v7422_v0  ;;  %1404 = vmatprep.subr.mxu1 %v6830_v38  ;;  %v7442_v38 = vld [vmem:[#allocation2 + $0x180] sm:$0xff] }
 0x194   :  { %1334 = vmatpush1.msra.mxu0 %v7426_v32  ;;  %1405 = vmatpush1.msra.mxu1 %v6835_v40  ;;  %v7446_v40 = vld [vmem:[#allocation2 + $0x168] sm:$0xff] }
 0x195   :  { %1335 = vmatprep.subr.mxu0 %v7430_v25  ;;  %1406 = vmatprep.subr.mxu1 %v6844_v43  ;;  %v7450_v43 = vld [vmem:[#allocation2 + $0x160] sm:$0xff] }
 0x196   :  { %1336 = vmatpush1.msra.mxu0 %v7434_v59  ;;  %1407 = vmatpush1.msra.mxu1 %v6854_v46  ;;  %v7454_v46 = vld [vmem:[#allocation2 + $0x148] sm:$0xff] }
 0x197   :  { %1337 = vmatprep.subr.mxu0 %v7438_v36  ;;  %1408 = vmatprep.subr.mxu1 %v6860_v48  ;;  %v7458_v48 = vld [vmem:[#allocation2 + $0x140] sm:$0xff] }
 0x198   :  { %1338 = vmatpush1.msra.mxu0 %v7442_v38  ;;  %1409 = vmatpush1.msra.mxu1 %v6867_v50  ;;  %v7462_v50 = vld [vmem:[#allocation2 + $0x128] sm:$0xff] }
 0x199   :  { %1339 = vmatprep.subr.mxu0 %v7446_v40  ;;  %1410 = vmatprep.subr.mxu1 %v6873_v52  ;;  %v7466_v52 = vld [vmem:[#allocation2 + $0x120] sm:$0xff] }
 0x19a   :  { %1340 = vmatpush1.msra.mxu0 %v7450_v43  ;;  %1411 = vmatpush1.msra.mxu1 %v6879_v54  ;;  %v7470_v54 = vld [vmem:[#allocation2 + $0x108] sm:$0xff] }
 0x19b   :  { %1341 = vmatprep.subr.mxu0 %v7454_v46  ;;  %1412 = vmatprep.subr.mxu1 %v6885_v56  ;;  %v7474_v56 = vld [vmem:[#allocation2 + $0x100] sm:$0xff] }
 0x19c   :  { %1342 = vmatpush1.msra.mxu0 %v7458_v48  ;;  %1413 = vmatpush1.msra.mxu1 %v6891_v58  ;;  %v11037_v58 = vld [vmem:[#allocation22_spill] sm:$0xff] }
 0x19d   :  { %1343 = vmatprep.subr.mxu0 %v7462_v50  ;;  %1414 = vmatprep.subr.mxu1 %v6897_v60  ;;  %v11038_v60 = vld [vmem:[#allocation24_spill] sm:$0xff] }
 0x19e   :  { %1344 = vmatpush1.msra.mxu0 %v7466_v52  ;;  %1415 = vmatpush1.msra.mxu1 %v6903_v62  ;;  %v11039_v62 = vld [vmem:[#allocation23_spill] sm:$0xff] }
 0x19f   :  { %1345 = vmatprep.subr.mxu0 %v7470_v54  ;;  %1416 = vmatprep.subr.mxu1 %v6909_v1  ;;  %v11040_v1 = vld [vmem:[#allocation26_spill] sm:$0xff] }
 0x1a0   :  { %1346 = vmatpush1.msra.mxu0 %v7474_v56  ;;  %1417 = vmatpush1.msra.mxu1 %v6915_v3  ;;  %v11041_v3 = vld [vmem:[#allocation25_spill] sm:$0xff] }
 0x1a1   :  { %1347 = vmatprep.subr.mxu0 %v6828_v37  ;;  %1418 = vmatprep.subr.mxu1 %v6919_v4  ;;  %v11026_v37 = vld [vmem:[#allocation12_spill] sm:$0xff] }
 0x1a2   :  { %1348 = vmatpush1.msra.mxu0 %v6833_v39  ;;  %1419 = vmatpush1.msra.mxu1 %v6923_v6  ;;  %v11027_v39 = vld [vmem:[#allocation17_spill] sm:$0xff]  ;;  %v11042_v4 = vld [vmem:[#allocation28_spill] sm:$0xff]  ;;  %v11043_v6 = vld [vmem:[#allocation27_spill] sm:$0xff] }
 0x1a3   :  { %1349 = vmatprep.subr.mxu0 %v6838_v41  ;;  %1420 = vmatprep.subr.mxu1 %v6927_v7  ;;  %v11028_v41 = vld [vmem:[#allocation13_spill] sm:$0xff]  ;;  %v11044_v7 = vld [vmem:[#allocation30_spill] sm:$0xff] }
 0x1a4   :  { %1350 = vmatpush1.msra.mxu0 %v6842_v42  ;;  %1421 = vmatpush1.msra.mxu1 %v6931_v8  ;;  %v11029_v42 = vld [vmem:[#allocation18_spill] sm:$0xff]  ;;  %v11045_v8 = vld [vmem:[#allocation29_spill] sm:$0xff] }
 0x1a5   :  { %1351 = vmatprep.subr.mxu0 %v6848_v44  ;;  %1422 = vmatprep.subr.mxu1 %v6934_v9  ;;  %v11030_v44 = vld [vmem:[#allocation14_spill] sm:$0xff]  ;;  %v11046_v9 = vld [vmem:[#allocation32_spill] sm:$0xff] }
 0x1a6   :  { %1352 = vmatpush1.msra.mxu0 %v6852_v45  ;;  %1423 = vmatpush1.msra.mxu1 %v6938_v10  ;;  %v11031_v45 = vld [vmem:[#allocation19_spill] sm:$0xff] }
 0x1a7   :  { %1353 = vmatprep.subr.mxu0 %v6858_v47  ;;  %1424 = vmatprep.subr.mxu1 %v6942_v11  ;;  %v11032_v47 = vld [vmem:[#allocation15_spill] sm:$0xff]  ;;  %v11048_v11 = vld [vmem:[#allocation34_spill] sm:$0xff] }
 0x1a8   :  { %1354 = vmatpush1.msra.mxu0 %v6865_v49  ;;  %1425 = vmatpush1.msra.mxu1 %v6945_v12  ;;  %v11033_v49 = vld [vmem:[#allocation20_spill] sm:$0xff]  ;;  %v11047_v10 = vld [vmem:[#allocation31_spill] sm:$0xff]  ;;  %v11049_v12 = vld [vmem:[#allocation33_spill] sm:$0xff] }
 0x1a9   :  { %1355 = vmatprep.subr.mxu0 %v6871_v51  ;;  %1426 = vmatprep.subr.mxu1 %v6948_v13  ;;  %v11034_v51 = vld [vmem:[#allocation16_spill] sm:$0xff] }
 0x1aa   :  { %1356 = vmatpush1.msra.mxu0 %v6877_v53  ;;  %1427 = vmatpush1.msra.mxu1 %v6951_v14  ;;  %v11035_v53 = vmov 0.0   ;;  %v11050_v13 = vld [vmem:[#allocation36_spill] sm:$0xff]  ;;  %v11051_v14 = vld [vmem:[#allocation35_spill] sm:$0xff] }
 0x1ab   :  { %1357 = vmatprep.subr.mxu0 %v6883_v55  ;;  %1428 = vmatprep.subr.mxu1 %v6954_v16  ;;  %v11036_v55 = vld [vmem:[#allocation21_spill] sm:$0xff]  ;;  %v11052_v16 = vld [vmem:[#allocation38_spill] sm:$0xff] }
 0x1ac   :  { %1358 = vmatpush1.msra.mxu0 %v11026_v37  ;;  %1429 = vmatpush1.msra.mxu1 %v11027_v39  ;;  %v11066_v37 = vld [vmem:[#allocation52_spill] sm:$0xff]  ;;  %v11067_v39 = vld [vmem:[#allocation51_spill] sm:$0xff] }
 0x1ad   :  { %1359 = vmatprep.subr.mxu0 %v11028_v41  ;;  %1430 = vmatprep.subr.mxu1 %v11029_v42  ;;  %v11068_v41 = vld [vmem:[#allocation54_spill] sm:$0xff]  ;;  %v11069_v42 = vld [vmem:[#allocation53_spill] sm:$0xff] }
 0x1ae   :  { %1360 = vmatpush1.msra.mxu0 %v11030_v44  ;;  %1431 = vmatpush1.msra.mxu1 %v11031_v45  ;;  %v11070_v44 = vld [vmem:[#allocation56_spill] sm:$0xff]  ;;  %v11071_v45 = vld [vmem:[#allocation55_spill] sm:$0xff] }
 0x1af   :  { %1361 = vmatprep.subr.mxu0 %v11032_v47  ;;  %1432 = vmatprep.subr.mxu1 %v11033_v49  ;;  %v11072_v47 = vld [vmem:[#allocation58_spill] sm:$0xff]  ;;  %v11073_v49 = vld [vmem:[#allocation57_spill] sm:$0xff] }
 0x1b0   :  { %1362 = vmatpush1.msra.mxu0 %v11034_v51  ;;  %1395 = vmatprep.mubr.f32.mxu0 %v11035_v53  ;;  %v11074_v51 = vld [vmem:[#allocation60_spill] sm:$0xff] }
 0x1b1   :  { %1433 = vmatpush1.msra.mxu1 %v11036_v55  ;;  %1466 = vmatprep.mubr.f32.mxu1 %v11035_v53  ;;  %v11075_v55 = vld [vmem:[#allocation59_spill] sm:$0xff] }
 0x1b2   :  { %1396 = vmatmul.mubr.f32.vlgmr.msra.gmra.mxu0 %v7414_v21  ;;  %1467 = vmatmul.mubr.f32.vlgmr.msra.gmra.mxu1 %v7414_v21  ;;  %v11065_v21 = vld [vmem:[#allocation49_spill] sm:$0xff] }
 0x1b3   :  { %1551 = vmatprep.subr.mxu0 %v11037_v58  ;;  %1622 = vmatprep.subr.mxu1 %v11038_v60  ;;  %v11076_v58 = vld [vmem:[#allocation62_spill] sm:$0xff]  ;;  %v11077_v60 = vld [vmem:[#allocation61_spill] sm:$0xff] }
 0x1b4   :  { %1552 = vmatpush1.msra.mxu0 %v11039_v62  ;;  %1623 = vmatpush1.msra.mxu1 %v11040_v1  ;;  %v11078_v62 = vld [vmem:[#allocation64_spill] sm:$0xff]  ;;  %v11079_v1 = vld [vmem:[#allocation63_spill] sm:$0xff] }
 0x1b5   :  { %1553 = vmatprep.subr.mxu0 %v11041_v3  ;;  %1624 = vmatprep.subr.mxu1 %v11042_v4  ;;  %v11080_v3 = vld [vmem:[#allocation66_spill] sm:$0xff]  ;;  %v11081_v4 = vld [vmem:[#allocation65_spill] sm:$0xff] }
 0x1b6   :  { %1554 = vmatpush1.msra.mxu0 %v11043_v6  ;;  %1625 = vmatpush1.msra.mxu1 %v11044_v7  ;;  %v11082_v6 = vld [vmem:[#allocation68_spill] sm:$0xff]  ;;  %v11083_v7 = vld [vmem:[#allocation67_spill] sm:$0xff] }
 0x1b7   :  { %1555 = vmatprep.subr.mxu0 %v11045_v8  ;;  %1626 = vmatprep.subr.mxu1 %v11046_v9  ;;  %v11084_v8 = vld [vmem:[#allocation70_spill] sm:$0xff]  ;;  %v11085_v9 = vld [vmem:[#allocation69_spill] sm:$0xff] }
 0x1b8   :  { %1556 = vmatpush1.msra.mxu0 %v11047_v10  ;;  %1627 = vmatpush1.msra.mxu1 %v11048_v11  ;;  %v11086_v10 = vld [vmem:[#allocation72_spill] sm:$0xff]  ;;  %v11087_v11 = vld [vmem:[#allocation71_spill] sm:$0xff] }
 0x1b9   :  { %1557 = vmatprep.subr.mxu0 %v11049_v12  ;;  %1628 = vmatprep.subr.mxu1 %v11050_v13  ;;  %v11088_v12 = vld [vmem:[#allocation74_spill] sm:$0xff]  ;;  %v11089_v13 = vld [vmem:[#allocation73_spill] sm:$0xff] }
 0x1ba   :  { %1558 = vmatpush1.msra.mxu0 %v11051_v14  ;;  %1629 = vmatpush1.msra.mxu1 %v11052_v16  ;;  %v11090_v14 = vld [vmem:[#allocation76_spill] sm:$0xff]  ;;  %v11091_v16 = vld [vmem:[#allocation75_spill] sm:$0xff] }
 0x1bb   :  { %1559 = vmatprep.subr.mxu0 %v11053_v24  ;;  %1630 = vmatprep.subr.mxu1 %v11054_v63  ;;  %v11092_v24 = vld [vmem:[#allocation78_spill] sm:$0xff]  ;;  %v11093_v63 = vld [vmem:[#allocation77_spill] sm:$0xff] }
 0x1bc   :  { %1560 = vmatpush1.msra.mxu0 %v11055_v5  ;;  %1631 = vmatpush1.msra.mxu1 %v11056_v18  ;;  %v11094_v5 = vld [vmem:[#allocation80_spill] sm:$0xff]  ;;  %v11095_v18 = vld [vmem:[#allocation79_spill] sm:$0xff] }
 0x1bd   :  { %1561 = vmatprep.subr.mxu0 %v11057_v31  ;;  %1632 = vmatprep.subr.mxu1 %v11058_v30  ;;  %v11096_v31 = vld [vmem:[#allocation82_spill] sm:$0xff]  ;;  %v11097_v30 = vld [vmem:[#allocation81_spill] sm:$0xff] }
 0x1be   :  { %1562 = vmatpush1.msra.mxu0 %v11059_v19  ;;  %1633 = vmatpush1.msra.mxu1 %v11060_v29  ;;  %v11098_v19 = vld [vmem:[#allocation84_spill] sm:$0xff]  ;;  %v11099_v29 = vld [vmem:[#allocation83_spill] sm:$0xff] }
 0x1bf   :  { %1563 = vmatprep.subr.mxu0 %v11061_v23  ;;  %1634 = vmatprep.subr.mxu1 %v11062_v28  ;;  %v11100_v23 = vld [vmem:[#allocation85_spill] sm:$0xff]  ;;  %v11101_v28 = vld [vmem:[#allocation86_spill] sm:$0xff] }
 0x1c0   :  { %1564 = vmatpush1.msra.mxu0 %v11063_v27  ;;  %1635 = vmatpush1.msra.mxu1 %v11064_v15  ;;  %v11102_v27 = vld [vmem:[#allocation87_spill] sm:$0xff]  ;;  %v1058_v15 = vpop.f32.mrf.mxu0 }
 0x1c1   :  { %1565 = vmatprep.subr.mxu0 %v11065_v21  ;;  %1636 = vmatprep.subr.mxu1 %v11066_v37  ;;  %v777_v21 = vld [vmem:[%s10297_s12] sm:$0xf] }
 0x1c2   :  { %1566 = vmatpush1.msra.mxu0 %v11067_v39  ;;  %1637 = vmatpush1.msra.mxu1 %v11068_v41  ;;  %v1060_v37 = vpop.f32.mrf.mxu0  ;;  %v11103_v39 = vsub.s32 0, %v7366_v34 }
 0x1c3   :  { %1567 = vmatprep.subr.mxu0 %v11069_v42  ;;  %1638 = vmatprep.subr.mxu1 %v11070_v44  ;;  %v1129_v42 = vpop.f32.mrf.mxu1 }
 0x1c4   :  { %1568 = vmatpush1.msra.mxu0 %v11071_v45  ;;  %1639 = vmatpush1.msra.mxu1 %v11072_v47  ;;  %v7587_v41 = vrot.slane %v777_v21, %v11103_v39  ;;  %v11104_v45 = vsub.s32 1, %v7366_v34 }
 0x1c5   :  { %1569 = vmatprep.subr.mxu0 %v11073_v49  ;;  %1640 = vmatprep.subr.mxu1 %v11074_v51 }
 0x1c6   :  { %1570 = vmatpush1.msra.mxu0 %v11075_v55  ;;  %1641 = vmatpush1.msra.mxu1 %v11076_v58  ;;  %v7591_v47 = vrot.slane %v777_v21, %v11104_v45 }
 0x1c7   :  { %1571 = vmatprep.subr.mxu0 %v11077_v60  ;;  %1642 = vmatprep.subr.mxu1 %v11078_v62  ;;  %v1131_v60 = vpop.f32.mrf.mxu1 }
 0x1c8   :  { %1572 = vmatpush1.msra.mxu0 %v11079_v1  ;;  %1643 = vmatpush1.msra.mxu1 %v11080_v3 }
 0x1c9   :  { %1573 = vmatprep.subr.mxu0 %v11081_v4  ;;  %1644 = vmatprep.subr.mxu1 %v11082_v6  ;;  %v11105_v6 = vsub.s32 2, %v7366_v34 }
 0x1ca   :  { %1574 = vmatpush1.msra.mxu0 %v11083_v7  ;;  %1645 = vmatpush1.msra.mxu1 %v11084_v8 }
 0x1cb   :  { %1575 = vmatprep.subr.mxu0 %v11085_v9  ;;  %1646 = vmatprep.subr.mxu1 %v11086_v10  ;;  %v7597_v7 = vrot.slane %v777_v21, %v11105_v6 }
 0x1cc   :  { %1576 = vmatpush1.msra.mxu0 %v11087_v11  ;;  %1647 = vmatpush1.msra.mxu1 %v11088_v12  ;;  %v7602_v11 = vrot.slane %v777_v21, %v571_v33 }
 0x1cd   :  { %1577 = vmatprep.subr.mxu0 %v11089_v13  ;;  %1648 = vmatprep.subr.mxu1 %v11090_v14 }
 0x1ce   :  { %1578 = vmatpush1.msra.mxu0 %v11091_v16  ;;  %1649 = vmatpush1.msra.mxu1 %v11092_v24  ;;  %11106 = vst [vmem:[#allocation12_spill] sm:$0xff] %v7602_v11 }
 0x1cf   :  { %1579 = vmatprep.subr.mxu0 %v11093_v63  ;;  %1650 = vmatprep.subr.mxu1 %v11094_v5 }
 0x1d0   :  { %1580 = vmatpush1.msra.mxu0 %v11095_v18  ;;  %1651 = vmatpush1.msra.mxu1 %v11096_v31 }
 0x1d1   :  { %1581 = vmatprep.subr.mxu0 %v11097_v30  ;;  %1652 = vmatprep.subr.mxu1 %v11098_v19 }
 0x1d2   :  { %1582 = vmatpush1.msra.mxu0 %v11099_v29  ;;  %1615 = vmatprep.mubr.f32.mxu0 %v11035_v53  ;;  %v11107_v29 = vld [vmem:[#allocation150_spill] sm:$0xff] }
 0x1d3   :  { %1653 = vmatpush1.msra.mxu1 %v11100_v23  ;;  %1686 = vmatprep.mubr.f32.mxu1 %v11035_v53 }
 0x1d4   :  { %1698 = vmatprep.subr.mxu0 %v11101_v28  ;;  %1769 = vmatprep.subr.mxu1 %v11102_v27 }
 0x251   :  { %v1206_v44 = vpop.f32.mrf.mxu0  ;;  %v1277_v3 = vpop.f32.mrf.mxu1 }
 0x252   :  { %v1207_v49 = vadd.f32 %v1206_v44, %v1058_v15  ;;  %v1278_v8 = vadd.f32 %v1277_v3, %v1129_v42 }
 0x253   :  { %v1208_v51 = vpop.f32.mrf.mxu0  ;;  %v1279_v10 = vpop.f32.mrf.mxu1 }
 0x254   :  { %v1303_v55 = vadd.f32 %v7587_v41, %v1207_v49  ;;  %v1209_v58 = vadd.f32 %v1208_v51, %v1060_v37  ;;  %v1305_v9 = vadd.f32 %v7597_v7, %v1278_v8  ;;  %v1280_v12 = vadd.f32 %v1279_v10, %v1131_v60  ;;  %v11108_v37 = vld [vmem:[#allocation152_spill] sm:$0xff] }
 0x256   :  { %v5390_v62 = vmul.f32 -1.442695, %v1303_v55  ;;  %v1304_v1 = vadd.f32 %v7591_v47, %v1209_v58  ;;  %v5392_v13 = vmul.f32 -1.442695, %v1305_v9  ;;  %v1306_v16 = vadd.f32 %v7602_v11, %v1280_v12  ;;  %v11109_v55 = vld [vmem:[#allocation151_spill] sm:$0xff] }
 0x258   :  { %5588 = vpow2.f32 %v5390_v62  ;;  %v5391_v4 = vmul.f32 -1.442695, %v1304_v1 }
 0x25a   :  { %5590 = vpow2.f32 %v5391_v4 }
 0x25b   :  { %5592 = vpow2.f32 %v5392_v13 }
 0x265   :  { %v5589_v14 = vpop.eup %5588 }
 0x266   :  { %v1316_v24 = vadd.f32 1.0, %v5589_v14 }
 0x267   :  { %v5591_v63 = vpop.eup %5590 }
 0x268   :  { %5594 = vrcp.f32 %v1316_v24  ;;  %v1317_v5 = vadd.f32 1.0, %v5591_v63  ;;  %v5593_v31 = vpop.eup %5592 }
 0x269   :  { %5596 = vtanh.f32 %v1306_v16  ;;  %v1318_v15 = vadd.f32 1.0, %v5593_v31 }
 0x26a   :  { %5598 = vrcp.f32 %v1317_v5 }
 0x272   :  { %v1397_v18 = vpop.f32.mrf.mxu0  ;;  %v1468_v51 = vpop.f32.mrf.mxu1 }
 0x273   :  { %v1477_v30 = vrot.slane %v1397_v18, 7  ;;  %v1493_v19 = vadd.f32 %v1397_v18, %v7381_v17  ;;  %v1479_v3 = vrot.slane %v1468_v51, 7  ;;  %v1495_v4 = vadd.f32 %v1468_v51, %v7397_v22  ;;  %v11119_v51 = vld [vmem:[#allocation97_spill] sm:$0xff] }
 0x274   :  { %v1399_v34 = vpop.f32.mrf.mxu0  ;;  %v1470_v8 = vpop.f32.mrf.mxu1 }
 0x275   :  { %v5595_v33 = vpop.eup %5594  ;;  %v1489_v23 = vadd.f32 %v1477_v30, %v11107_v29  ;;  %v5396_v28 = vmul.f32 -1.442695, %v1493_v19  ;;  %v1478_v21 = vrot.slane %v1399_v34, 7  ;;  %v1494_v39 = vadd.f32 %v1399_v34, %v11108_v37 }
 0x276   :  { %v5597_v27 = vpop.eup %5596  ;;  %v1491_v6 = vadd.f32 %v1479_v3, %v7393_v26  ;;  %v5398_v9 = vmul.f32 -1.442695, %v1495_v4  ;;  %v1480_v13 = vrot.slane %v1470_v8, 7  ;;  %v1496_v14 = vadd.f32 %v1470_v8, %v7403_v20  ;;  %v11122_v3 = vld [vmem:[#allocation100_spill] sm:$0xff]  ;;  %v11123_v4 = vld [vmem:[#allocation101_spill] sm:$0xff]  ;;  %v11124_v8 = vld [vmem:[#allocation102_spill] sm:$0xff] }
 0x277   :  { %v5599_v42 = vpop.eup %5598  ;;  %v5393_v44 = vmul.f32 -1.442695, %v1489_v23  ;;  %5600 = vpow2.f32 %v5396_v28  ;;  %v1327_v49 = vmul.f32 %v5597_v27, %v5595_v33  ;;  %v1490_v58 = vadd.f32 %v1478_v21, %v11109_v55  ;;  %v11110_v28 = vld [vmem:[#allocation88_spill] sm:$0xff]  ;;  %v11111_v27 = vld [vmem:[#allocation89_spill] sm:$0xff]  ;;  %v11113_v21 = vld [vmem:[#allocation91_spill] sm:$0xff] }
 0x278   :  { %v1326_v45 = vmul.f32 0.0, %v5599_v42  ;;  %v5397_v60 = vmul.f32 -1.442695, %v1494_v39  ;;  %v5395_v10 = vmul.f32 -1.442695, %v1491_v6  ;;  %v1492_v31 = vadd.f32 %v1480_v13, %v7401_v61  ;;  %v11114_v39 = vld [vmem:[#allocation92_spill] sm:$0xff] }
 0x279   :  { %5602 = vpow2.f32 %v5393_v44  ;;  %v5394_v1 = vmul.f32 -1.442695, %v1490_v58  ;;  %v11115_v42 = vld [vmem:[#allocation93_spill] sm:$0xff]  ;;  %v11116_v44 = vld [vmem:[#allocation94_spill] sm:$0xff] }
 0x27a   :  { %5604 = vrcp.f32 %v1318_v15  ;;  %v7609_v62 = vadd.f32 %v1327_v49, %v1326_v45  ;;  %v11112_v15 = vld [vmem:[#allocation90_spill] sm:$0xff]  ;;  %v11117_v45 = vld [vmem:[#allocation95_spill] sm:$0xff]  ;;  %v11118_v49 = vld [vmem:[#allocation96_spill] sm:$0xff] }
 0x27b   :  { %5606 = vpow2.f32 %v5397_v60  ;;  %v11120_v58 = vld [vmem:[#allocation98_spill] sm:$0xff]  ;;  %v11121_v60 = vld [vmem:[#allocation99_spill] sm:$0xff]  ;;  %v11127_v13 = vld [vmem:[#allocation105_spill] sm:$0xff] }
 0x27c   :  { %5608 = vtanh.f32 %v7609_v62 }
 0x27d   :  { %5610 = vpow2.f32 %v5394_v1 }
 0x27e   :  { %5612 = vpow2.f32 %v5398_v9  ;;  %v11125_v9 = vld [vmem:[#allocation103_spill] sm:$0xff] }
 0x27f   :  { %5614 = vpow2.f32 %v5395_v10 }
 0x280   :  { %5616 = vtanh.f32 %v1496_v14 }
 0x284   :  { %v5601_v12 = vpop.eup %5600 }
 0x285   :  { %v1518_v16 = vadd.f32 1.0, %v5601_v12  ;;  %v11126_v12 = vld [vmem:[#allocation104_spill] sm:$0xff] }
 0x286   :  { %v5603_v24 = vpop.eup %5602 }
 0x287   :  { %v5605_v63 = vpop.eup %5604  ;;  %v1515_v5 = vadd.f32 1.0, %v5603_v24  ;;  %5618 = vrcp.f32 %v1518_v16  ;;  %v11128_v16 = vld [vmem:[#allocation106_spill] sm:$0xff]  ;;  %v11129_v24 = vld [vmem:[#allocation107_spill] sm:$0xff] }
 0x288   :  { %v5607_v18 = vpop.eup %5606 }
 0x289   :  { %v5609_v30 = vpop.eup %5608  ;;  %v1519_v19 = vadd.f32 1.0, %v5607_v18  ;;  %5620 = vrcp.f32 %v1515_v5  ;;  %v1538_v5 = vrot.slane %v7409_v57, 7  ;;  %v11130_v18 = vld [vmem:[#allocation108_spill] sm:$0xff] }
 0x28a   :  { %v5611_v34 = vpop.eup %5610  ;;  %v1330_v33 = vmul.f32 %v5609_v30, %v5605_v63 }
 0x28b   :  { %v1516_v23 = vadd.f32 1.0, %v5611_v34  ;;  %5622 = vrcp.f32 %v1519_v19  ;;  %v5613_v1 = vpop.eup %5612  ;;  %v11132_v19 = vld [vmem:[#allocation110_spill] sm:$0xff]  ;;  %v11133_v34 = vld [vmem:[#allocation111_spill] sm:$0xff] }
 0x28c   :  { %5624 = vtanh.f32 %v1492_v31  ;;  %1616 = vmatmul.mubr.f32.vlgmr.msra.gmra.mxu0 %v1330_v33  ;;  %1687 = vmatmul.mubr.f32.vlgmr.msra.gmra.mxu1 %v1330_v33  ;;  %v5615_v6 = vpop.eup %5614  ;;  %v11131_v31 = vld [vmem:[#allocation109_spill] sm:$0xff] }
 0x28d   :  { %5626 = vrcp.f32 %v1516_v23  ;;  %1699 = vmatpush1.msra.mxu0 %v11110_v28  ;;  %1770 = vmatpush1.msra.mxu1 %v11111_v27  ;;  %v5617_v10 = vpop.eup %5616  ;;  %v1537_v23 = vrot.slane %v7407_v35, 7  ;;  %v1517_v28 = vadd.f32 1.0, %v5615_v6  ;;  %v11140_v35 = vld [vmem:[#allocation118_spill] sm:$0xff] }
 0x28e   :  { %1700 = vmatprep.subr.mxu0 %v11112_v15  ;;  %1771 = vmatprep.subr.mxu1 %v11113_v21  ;;  %v11134_v21 = vld [vmem:[#allocation112_spill] sm:$0xff] }
 0x28f   :  { %1701 = vmatpush1.msra.mxu0 %v11114_v39  ;;  %1772 = vmatpush1.msra.mxu1 %v11115_v42  ;;  %v11135_v39 = vld [vmem:[#allocation113_spill] sm:$0xff]  ;;  %v11136_v42 = vld [vmem:[#allocation114_spill] sm:$0xff]  ;;  %5628 = vrcp.f32 %v1517_v28 }
 0x290   :  { %1702 = vmatprep.subr.mxu0 %v11116_v44  ;;  %1773 = vmatprep.subr.mxu1 %v11117_v45  ;;  %v11137_v44 = vld [vmem:[#allocation115_spill] sm:$0xff]  ;;  %v11160_v28 = vld [vmem:[#allocation138_spill] sm:$0xff] }
 0x291   :  { %1703 = vmatpush1.msra.mxu0 %v11118_v49  ;;  %1774 = vmatpush1.msra.mxu1 %v11119_v51 }
 0x292   :  { %1704 = vmatprep.subr.mxu0 %v11120_v58  ;;  %1775 = vmatprep.subr.mxu1 %v11121_v60  ;;  %v11138_v58 = vld [vmem:[#allocation116_spill] sm:$0xff]  ;;  %v11139_v60 = vld [vmem:[#allocation117_spill] sm:$0xff] }
 0x293   :  { %1705 = vmatpush1.msra.mxu0 %v11122_v3  ;;  %1776 = vmatpush1.msra.mxu1 %v11123_v4  ;;  %v11141_v3 = vld [vmem:[#allocation119_spill] sm:$0xff]  ;;  %v1520_v4 = vadd.f32 1.0, %v5613_v1  ;;  %v11148_v1 = vld [vmem:[#allocation126_spill] sm:$0xff] }
 0x294   :  { %1706 = vmatprep.subr.mxu0 %v11124_v8  ;;  %1777 = vmatprep.subr.mxu1 %v11125_v9  ;;  %v5619_v14 = vpop.eup %5618  ;;  %v11142_v8 = vld [vmem:[#allocation120_spill] sm:$0xff]  ;;  %v11143_v9 = vld [vmem:[#allocation121_spill] sm:$0xff] }
 0x295   :  { %1707 = vmatpush1.msra.mxu0 %v11126_v12  ;;  %1778 = vmatpush1.msra.mxu1 %v11127_v13  ;;  %v1544_v15 = vmul.f32 %v5619_v14, %v5617_v10  ;;  %v11144_v10 = vld [vmem:[#allocation122_spill] sm:$0xff]  ;;  %v11145_v12 = vld [vmem:[#allocation123_spill] sm:$0xff]  ;;  %v11146_v13 = vld [vmem:[#allocation124_spill] sm:$0xff] }
 0x296   :  { %1708 = vmatprep.subr.mxu0 %v11128_v16  ;;  %1779 = vmatprep.subr.mxu1 %v11129_v24  ;;  %v5621_v63 = vpop.eup %5620  ;;  %v11147_v14 = vld [vmem:[#allocation125_spill] sm:$0xff]  ;;  %v11149_v16 = vld [vmem:[#allocation127_spill] sm:$0xff]  ;;  %v11150_v24 = vld [vmem:[#allocation128_spill] sm:$0xff] }
 0x297   :  { %1709 = vmatpush1.msra.mxu0 %v11130_v18  ;;  %1780 = vmatpush1.msra.mxu1 %v11131_v31  ;;  %v11153_v18 = vld [vmem:[#allocation131_spill] sm:$0xff]  ;;  %v11154_v31 = vld [vmem:[#allocation132_spill] sm:$0xff] }
 0x298   :  { %v5623_v30 = vpop.eup %5622  ;;  %1710 = vmatprep.subr.mxu0 %v11132_v19  ;;  %1781 = vmatprep.subr.mxu1 %v11133_v34  ;;  %v11156_v19 = vld [vmem:[#allocation134_spill] sm:$0xff]  ;;  %v11157_v34 = vld [vmem:[#allocation135_spill] sm:$0xff] }
 0x299   :  { %v5625_v33 = vpop.eup %5624  ;;  %v1542_v27 = vmul.f32 %v5623_v30, %v1538_v5  ;;  %1711 = vmatpush1.msra.mxu0 %v11134_v21  ;;  %1782 = vmatpush1.msra.mxu1 %v11135_v39  ;;  %v11152_v5 = vld [vmem:[#allocation130_spill] sm:$0xff]  ;;  %v11155_v30 = vld [vmem:[#allocation133_spill] sm:$0xff] }
 0x29a   :  { %v5627_v57 = vpop.eup %5626  ;;  %1712 = vmatprep.subr.mxu0 %v11136_v42  ;;  %1783 = vmatprep.subr.mxu1 %v11137_v44  ;;  %v1543_v49 = vmul.f32 %v5625_v33, %v5621_v63  ;;  %v11151_v63 = vld [vmem:[#allocation129_spill] sm:$0xff]  ;;  %v11158_v33 = vld [vmem:[#allocation136_spill] sm:$0xff]  ;;  %v11164_v39 = vld [vmem:[#allocation142_spill] sm:$0xff] }
 0x29b   :  { %v1541_v45 = vmul.f32 %v5627_v57, %v1537_v23  ;;  %v7646_v51 = vadd.f32 %v1544_v15, %v1542_v27  ;;  %1713 = vmatpush1.msra.mxu0 %v11138_v58  ;;  %1784 = vmatpush1.msra.mxu1 %v11139_v60  ;;  %v11159_v23 = vld [vmem:[#allocation137_spill] sm:$0xff]  ;;  %v11161_v27 = vld [vmem:[#allocation139_spill] sm:$0xff]  ;;  %v11162_v15 = vld [vmem:[#allocation140_spill] sm:$0xff] }
 0x29c   :  { %1714 = vmatprep.subr.mxu0 %v11140_v35  ;;  %1785 = vmatprep.subr.mxu1 %v11141_v3  ;;  %v11163_v21 = vld [vmem:[#allocation141_spill] sm:$0xff]  ;;  %v11165_v57 = vld [vmem:[#allocation143_spill] sm:$0xff]  ;;  %v11166_v42 = vld [vmem:[#allocation144_spill] sm:$0xff] }
 0x29d   :  { %v7652_v6 = vadd.f32 %v1543_v49, %v1541_v45  ;;  %1715 = vmatpush1.msra.mxu0 %v11142_v8  ;;  %1786 = vmatpush1.msra.mxu1 %v11143_v9  ;;  %5630 = vtanh.f32 %v7646_v51  ;;  %v11167_v44 = vld [vmem:[#allocation145_spill] sm:$0xff]  ;;  %v5629_v45 = vpop.eup %5628  ;;  %v11168_v49 = vld [vmem:[#allocation146_spill] sm:$0xff]  ;;  %v11169_v58 = vld [vmem:[#allocation147_spill] sm:$0xff] }
 0x29e   :  { %1716 = vmatprep.subr.mxu0 %v11144_v10  ;;  %1787 = vmatprep.subr.mxu1 %v11145_v12  ;;  %v11170_v35 = vld [vmem:[#allocation148_spill] sm:$0xff]  ;;  %v11171_v3 = vld [vmem:[#allocation149_spill] sm:$0xff]  ;;  %v7691_v9 = vld [vmem:[#allocation2 + $0x1f8] sm:$0xff] }
 0x29f   :  { %5632 = vtanh.f32 %v7652_v6  ;;  %1717 = vmatpush1.msra.mxu0 %v11146_v13  ;;  %1788 = vmatpush1.msra.mxu1 %v11147_v14  ;;  %v7688_v8 = vld [vmem:[#allocation2 + $0x1e8] sm:$0xff] }
 0x2a0   :  { %1718 = vmatprep.subr.mxu0 %v11148_v1  ;;  %1789 = vmatprep.subr.mxu1 %v11149_v16  ;;  %5634 = vrcp.f32 %v1520_v4  ;;  %v7700_v16 = vld [vmem:[#allocation2 + $0x1f0] sm:$0xff] }
 0x2a1   :  { %1719 = vmatpush1.msra.mxu0 %v11150_v24  ;;  %1790 = vmatpush1.msra.mxu1 %v11151_v63  ;;  %v7704_v24 = vld [vmem:[#allocation2 + $0x1d8] sm:$0xff]  ;;  %v7708_v63 = vld [vmem:[#allocation2 + $0x1d0] sm:$0xff] }
 0x2a2   :  { %1720 = vmatprep.subr.mxu0 %v11152_v5  ;;  %1791 = vmatprep.subr.mxu1 %v11153_v18  ;;  %v7712_v5 = vld [vmem:[#allocation2 + $0x1b8] sm:$0xff]  ;;  %v7765_v18 = vld [vmem:[#allocation2 + $0xe0] sm:$0xff] }
 0x2a3   :  { %1721 = vmatpush1.msra.mxu0 %v11154_v31  ;;  %1792 = vmatpush1.msra.mxu1 %v11155_v30  ;;  %v7774_v31 = vld [vmem:[#allocation2 + $0xd8] sm:$0xff]  ;;  %v7777_v30 = vld [vmem:[#allocation2 + $0xc0] sm:$0xff] }
 0x2a4   :  { %1722 = vmatprep.subr.mxu0 %v11156_v19  ;;  %1793 = vmatprep.subr.mxu1 %v11157_v34  ;;  %v7780_v19 = vld [vmem:[#allocation2 + $0xd0] sm:$0xff]  ;;  %v7783_v34 = vld [vmem:[#allocation2 + $0xa8] sm:$0xff] }
 0x2a5   :  { %1723 = vmatpush1.msra.mxu0 %v11158_v33  ;;  %1794 = vmatpush1.msra.mxu1 %v11159_v23  ;;  %v7786_v33 = vld [vmem:[#allocation2 + $0xb8] sm:$0xff]  ;;  %v7789_v23 = vld [vmem:[#allocation2 + $0xa0] sm:$0xff] }
 0x2a6   :  { %1724 = vmatprep.subr.mxu0 %v11160_v28  ;;  %1795 = vmatprep.subr.mxu1 %v11161_v27  ;;  %v7792_v28 = vld [vmem:[#allocation2 + $0xb0] sm:$0xff]  ;;  %v7795_v27 = vld [vmem:[#allocation2 + $0x88] sm:$0xff] }
 0x2a7   :  { %1725 = vmatpush1.msra.mxu0 %v11162_v15  ;;  %1796 = vmatpush1.msra.mxu1 %v11163_v21  ;;  %11172 = vst [vmem:[#allocation17_spill] sm:$0xff] %v7795_v27  ;;  %v7798_v15 = vld [vmem:[#allocation2 + $0x98] sm:$0xff]  ;;  %v7801_v21 = vld [vmem:[#allocation2 + $0x80] sm:$0xff] }
 0x2a8   :  { %1726 = vmatprep.subr.mxu0 %v11164_v39  ;;  %1797 = vmatprep.subr.mxu1 %v11165_v57  ;;  %11173 = vst [vmem:[#allocation13_spill] sm:$0xff] %v7798_v15  ;;  %11174 = vst [vmem:[#allocation18_spill] sm:$0xff] %v7801_v21  ;;  %v7804_v39 = vld [vmem:[#allocation2 + $0x90] sm:$0xff]  ;;  %v7807_v57 = vld [vmem:[#allocation2 + $0x68] sm:$0xff] }
 0x2a9   :  { %1727 = vmatpush1.msra.mxu0 %v11166_v42  ;;  %1798 = vmatpush1.msra.mxu1 %v11167_v44  ;;  %11175 = vst [vmem:[#allocation14_spill] sm:$0xff] %v7804_v39  ;;  %11176 = vst [vmem:[#allocation19_spill] sm:$0xff] %v7807_v57  ;;  %v7810_v42 = vld [vmem:[#allocation2 + $0x78] sm:$0xff]  ;;  %v7813_v44 = vld [vmem:[#allocation2 + $0x60] sm:$0xff] }
 0x2aa   :  { %1728 = vmatprep.subr.mxu0 %v11168_v49  ;;  %1799 = vmatprep.subr.mxu1 %v11169_v58  ;;  %v5631_v60 = vpop.eup %5630  ;;  %11177 = vst [vmem:[#allocation15_spill] sm:$0xff] %v7810_v42  ;;  %11178 = vst [vmem:[#allocation20_spill] sm:$0xff] %v7813_v44  ;;  %v7819_v49 = vld [vmem:[#allocation2 + $0x48] sm:$0xff]  ;;  %v7822_v58 = vld [vmem:[#allocation2 + $0x58] sm:$0xff] }
 0x2ab   :  { %1729 = vmatpush1.msra.mxu0 %v11170_v35  ;;  %1800 = vmatpush1.msra.mxu1 %v11171_v3  ;;  %11180 = vst [vmem:[#allocation21_spill] sm:$0xff] %v7819_v49  ;;  %11181 = vst [vmem:[#allocation22_spill] sm:$0xff] %v7822_v58  ;;  %v7828_v35 = vld [vmem:[#allocation2 + $0x50] sm:$0xff]  ;;  %v7831_v3 = vld [vmem:[#allocation2 + $0x28] sm:$0xff] }
 0x2ac   :  { %v5633_v4 = vpop.eup %5632  ;;  %1762 = vmatprep.mubr.f32.mxu0 %v11035_v53  ;;  %1833 = vmatprep.mubr.f32.mxu1 %v11035_v53  ;;  %11183 = vst [vmem:[#allocation23_spill] sm:$0xff] %v7828_v35  ;;  %11184 = vst [vmem:[#allocation26_spill] sm:$0xff] %v7831_v3 }
 0x2ad   :  { %1868 = vmatprep.subr.mxu0 %v7688_v8  ;;  %1939 = vmatprep.subr.mxu1 %v7691_v9  ;;  %v1549_v10 = vmul.f32 %v5633_v4, %v5629_v45  ;;  %v5635_v12 = vpop.eup %5634  ;;  %v7816_v45 = vld [vmem:[#allocation2 + $0x70] sm:$0xff]  ;;  %v7834_v4 = vld [vmem:[#allocation2 + $0x38] sm:$0xff] }
 0x2ae   :  { %v1550_v13 = vmul.f32 %v5635_v12, %v5631_v60  ;;  %11179 = vst [vmem:[#allocation16_spill] sm:$0xff] %v7816_v45  ;;  %v7825_v60 = vld [vmem:[#allocation2 + $0x40] sm:$0xff]  ;;  %11185 = vst [vmem:[#allocation25_spill] sm:$0xff] %v7834_v4  ;;  %v7840_v12 = vld [vmem:[#allocation2 + $0x30] sm:$0xff] }
 0x2af   :  { %v1695_v14 = vrot.slane %v1549_v10, 1  ;;  %11182 = vst [vmem:[#allocation24_spill] sm:$0xff] %v7825_v60  ;;  %v7837_v10 = vld [vmem:[#allocation2 + $0x20] sm:$0xff]  ;;  %11187 = vst [vmem:[#allocation27_spill] sm:$0xff] %v7840_v12 }
 0x2b0   :  { %11186 = vst [vmem:[#allocation28_spill] sm:$0xff] %v7837_v10 }
 0x2b1   :  { %v7695_v1 = vsel %vm1137_vm4, %v1550_v13, %v1695_v14  ;;  %v7843_v13 = vld [vmem:[#allocation2 + $0x8] sm:$0xff]  ;;  %v7846_v14 = vld [vmem:[#allocation2 + $0x18] sm:$0xff] }
 0x2b2   :  { %1763 = vmatmul.mubr.f32.vlgmr.msra.gmra.mxu0 %v7695_v1  ;;  %1834 = vmatmul.mubr.f32.vlgmr.msra.gmra.mxu1 %v7695_v1  ;;  %11188 = vst [vmem:[#allocation30_spill] sm:$0xff] %v7843_v13  ;;  %11189 = vst [vmem:[#allocation29_spill] sm:$0xff] %v7846_v14 }
 0x2b3   :  { %1869 = vmatpush1.msra.mxu0 %v7418_v2  ;;  %1940 = vmatpush1.msra.mxu1 %v7700_v16  ;;  %v7716_v2 = vld [vmem:[#allocation2 + $0x1b0] sm:$0xff] }
 0x2b4   :  { %1870 = vmatprep.subr.mxu0 %v7422_v0  ;;  %1941 = vmatprep.subr.mxu1 %v7704_v24  ;;  %v7720_v0 = vld [vmem:[#allocation2 + $0x198] sm:$0xff] }
 0x2b5   :  { %1871 = vmatpush1.msra.mxu0 %v7426_v32  ;;  %1942 = vmatpush1.msra.mxu1 %v7708_v63  ;;  %v7724_v32 = vld [vmem:[#allocation2 + $0x190] sm:$0xff] }
 0x2b6   :  { %1872 = vmatprep.subr.mxu0 %v7430_v25  ;;  %1943 = vmatprep.subr.mxu1 %v7712_v5  ;;  %v7728_v25 = vld [vmem:[#allocation2 + $0x178] sm:$0xff] }
 0x2b7   :  { %1873 = vmatpush1.msra.mxu0 %v7434_v59  ;;  %1944 = vmatpush1.msra.mxu1 %v7716_v2  ;;  %v7732_v59 = vld [vmem:[#allocation2 + $0x170] sm:$0xff] }
 0x2b8   :  { %1874 = vmatprep.subr.mxu0 %v7438_v36  ;;  %1945 = vmatprep.subr.mxu1 %v7720_v0  ;;  %v7736_v36 = vld [vmem:[#allocation2 + $0x158] sm:$0xff] }
 0x2b9   :  { %1875 = vmatpush1.msra.mxu0 %v7442_v38  ;;  %1946 = vmatpush1.msra.mxu1 %v7724_v32  ;;  %v7740_v38 = vld [vmem:[#allocation2 + $0x150] sm:$0xff] }
 0x2ba   :  { %1876 = vmatprep.subr.mxu0 %v7446_v40  ;;  %1947 = vmatprep.subr.mxu1 %v7728_v25  ;;  %v7744_v40 = vld [vmem:[#allocation2 + $0x138] sm:$0xff] }
 0x2bb   :  { %1877 = vmatpush1.msra.mxu0 %v7450_v43  ;;  %1948 = vmatpush1.msra.mxu1 %v7732_v59  ;;  %v7748_v43 = vld [vmem:[#allocation2 + $0x130] sm:$0xff] }
 0x2bc   :  { %1878 = vmatprep.subr.mxu0 %v7454_v46  ;;  %1949 = vmatprep.subr.mxu1 %v7736_v36  ;;  %v7752_v46 = vld [vmem:[#allocation2 + $0x118] sm:$0xff] }
 0x2bd   :  { %1879 = vmatpush1.msra.mxu0 %v7458_v48  ;;  %1950 = vmatpush1.msra.mxu1 %v7740_v38  ;;  %v7756_v48 = vld [vmem:[#allocation2 + $0x110] sm:$0xff] }
 0x2be   :  { %1880 = vmatprep.subr.mxu0 %v7462_v50  ;;  %1951 = vmatprep.subr.mxu1 %v7744_v40  ;;  %v7759_v50 = vld [vmem:[#allocation2 + $0xe8] sm:$0xff] }
 0x2bf   :  { %1881 = vmatpush1.msra.mxu0 %v7466_v52  ;;  %1952 = vmatpush1.msra.mxu1 %v7748_v43  ;;  %v7762_v52 = vld [vmem:[#allocation2 + $0xf8] sm:$0xff] }
 0x2c0   :  { %1882 = vmatprep.subr.mxu0 %v7470_v54  ;;  %1953 = vmatprep.subr.mxu1 %v7752_v46  ;;  %v7768_v54 = vld [vmem:[#allocation2 + $0xf0] sm:$0xff] }
 0x2c1   :  { %1883 = vmatpush1.msra.mxu0 %v7474_v56  ;;  %1954 = vmatpush1.msra.mxu1 %v7756_v48  ;;  %v7771_v56 = vld [vmem:[#allocation2 + $0xc8] sm:$0xff] }
 0x2c2   :  { %1884 = vmatprep.subr.mxu0 %v7759_v50  ;;  %1955 = vmatprep.subr.mxu1 %v7762_v52 }
 0x2c3   :  { %1885 = vmatpush1.msra.mxu0 %v7765_v18  ;;  %1956 = vmatpush1.msra.mxu1 %v7768_v54 }
 0x2c4   :  { %1886 = vmatprep.subr.mxu0 %v7771_v56  ;;  %1957 = vmatprep.subr.mxu1 %v7774_v31 }
 0x2c5   :  { %1887 = vmatpush1.msra.mxu0 %v7777_v30  ;;  %1958 = vmatpush1.msra.mxu1 %v7780_v19 }
 0x2c6   :  { %1888 = vmatprep.subr.mxu0 %v7783_v34  ;;  %1959 = vmatprep.subr.mxu1 %v7786_v33 }
 0x2c7   :  { %1889 = vmatpush1.msra.mxu0 %v7789_v23  ;;  %1960 = vmatpush1.msra.mxu1 %v7792_v28 }
 0x2c8   :  { %1890 = vmatprep.subr.mxu0 %v7795_v27  ;;  %1961 = vmatprep.subr.mxu1 %v7798_v15 }
 0x2c9   :  { %1891 = vmatpush1.msra.mxu0 %v7801_v21  ;;  %1962 = vmatpush1.msra.mxu1 %v7804_v39 }
 0x2ca   :  { %1892 = vmatprep.subr.mxu0 %v7807_v57  ;;  %1963 = vmatprep.subr.mxu1 %v7810_v42 }
 0x2cb   :  { %1893 = vmatpush1.msra.mxu0 %v7813_v44  ;;  %1964 = vmatpush1.msra.mxu1 %v7816_v45 }
 0x2cc   :  { %1894 = vmatprep.subr.mxu0 %v7819_v49  ;;  %1965 = vmatprep.subr.mxu1 %v7822_v58 }
 0x2cd   :  { %1895 = vmatpush1.msra.mxu0 %v7825_v60  ;;  %1966 = vmatpush1.msra.mxu1 %v7828_v35 }
 0x2ce   :  { %1896 = vmatprep.subr.mxu0 %v7831_v3  ;;  %1967 = vmatprep.subr.mxu1 %v7834_v4  ;;  %v7849_v3 = vld [vmem:[#allocation2] sm:$0xff]  ;;  %v7853_v4 = vld [vmem:[#allocation2 + $0x10] sm:$0xff] }
 0x2cf   :  { %1897 = vmatpush1.msra.mxu0 %v7837_v10  ;;  %1968 = vmatpush1.msra.mxu1 %v7840_v12  ;;  %11190 = vst [vmem:[#allocation32_spill] sm:$0xff] %v7849_v3  ;;  %11191 = vst [vmem:[#allocation31_spill] sm:$0xff] %v7853_v4  ;;  %v7868_v12 = vld [vmem:[#allocation7 + $0x1f0] sm:$0xff] }
 0x2d0   :  { %1898 = vmatprep.subr.mxu0 %v7843_v13  ;;  %1969 = vmatprep.subr.mxu1 %v7846_v14  ;;  %v7859_v13 = vld [vmem:[#allocation7 + $0x1e8] sm:$0xff]  ;;  %v7862_v14 = vld [vmem:[#allocation7 + $0x1f8] sm:$0xff]  ;;  %11195 = vst [vmem:[#allocation35_spill] sm:$0xff] %v7868_v12 }
 0x2d1   :  { %1899 = vmatpush1.msra.mxu0 %v7849_v3  ;;  %1932 = vmatprep.mubr.f32.mxu0 %v11035_v53  ;;  %11192 = vst [vmem:[#allocation34_spill] sm:$0xff] %v7859_v13  ;;  %11193 = vst [vmem:[#allocation33_spill] sm:$0xff] %v7862_v14  ;;  %v7865_v3 = vld [vmem:[#allocation7 + $0x1e0] sm:$0xff] }
 0x2d2   :  { %1970 = vmatpush1.msra.mxu1 %v7853_v4  ;;  %2003 = vmatprep.mubr.f32.mxu1 %v11035_v53  ;;  %11194 = vst [vmem:[#allocation36_spill] sm:$0xff] %v7865_v3  ;;  %v7871_v4 = vld [vmem:[#allocation7 + $0x1c8] sm:$0xff] }
 0x2d3   :  { %1933 = vmatmul.mubr.f32.vlgmr.msra.gmra.mxu0 %v7695_v1  ;;  %2004 = vmatmul.mubr.f32.vlgmr.msra.gmra.mxu1 %v7695_v1  ;;  %11196 = vst [vmem:[#allocation38_spill] sm:$0xff] %v7871_v4  ;;  %v7874_v1 = vld [vmem:[#allocation7 + $0x1d8] sm:$0xff] }
 0x2d4   :  { %2092 = vmatprep.subr.mxu0 %v7859_v13  ;;  %2163 = vmatprep.subr.mxu1 %v7862_v14  ;;  %11197 = vst [vmem:[#allocation37_spill] sm:$0xff] %v7874_v1  ;;  %v7877_v13 = vld [vmem:[#allocation7 + $0x1c0] sm:$0xff]  ;;  %v7880_v14 = vld [vmem:[#allocation7 + $0x1d0] sm:$0xff] }
 0x2d5   :  { %2093 = vmatpush1.msra.mxu0 %v7865_v3  ;;  %2164 = vmatpush1.msra.mxu1 %v7868_v12  ;;  %11198 = vst [vmem:[#allocation40_spill] sm:$0xff] %v7877_v13  ;;  %11199 = vst [vmem:[#allocation39_spill] sm:$0xff] %v7880_v14  ;;  %v7883_v3 = vld [vmem:[#allocation7 + $0x1a8] sm:$0xff]  ;;  %v7886_v12 = vld [vmem:[#allocation7 + $0x1b8] sm:$0xff] }
 0x2d6   :  { %2094 = vmatprep.subr.mxu0 %v7871_v4  ;;  %2165 = vmatprep.subr.mxu1 %v7874_v1  ;;  %11200 = vst [vmem:[#allocation42_spill] sm:$0xff] %v7883_v3  ;;  %11201 = vst [vmem:[#allocation41_spill] sm:$0xff] %v7886_v12  ;;  %v7889_v4 = vld [vmem:[#allocation7 + $0x1a0] sm:$0xff]  ;;  %v7892_v1 = vld [vmem:[#allocation7 + $0x1b0] sm:$0xff] }
 0x2d7   :  { %2095 = vmatpush1.msra.mxu0 %v7877_v13  ;;  %2166 = vmatpush1.msra.mxu1 %v7880_v14  ;;  %11202 = vst [vmem:[#allocation44_spill] sm:$0xff] %v7889_v4  ;;  %11203 = vst [vmem:[#allocation43_spill] sm:$0xff] %v7892_v1  ;;  %v7895_v13 = vld [vmem:[#allocation7 + $0x188] sm:$0xff]  ;;  %v7898_v14 = vld [vmem:[#allocation7 + $0x198] sm:$0xff] }
 0x2d8   :  { %2096 = vmatprep.subr.mxu0 %v7883_v3  ;;  %2167 = vmatprep.subr.mxu1 %v7886_v12  ;;  %11204 = vst [vmem:[#allocation46_spill] sm:$0xff] %v7895_v13  ;;  %11205 = vst [vmem:[#allocation45_spill] sm:$0xff] %v7898_v14  ;;  %v7901_v3 = vld [vmem:[#allocation7 + $0x180] sm:$0xff]  ;;  %v7904_v12 = vld [vmem:[#allocation7 + $0x190] sm:$0xff] }
 0x2d9   :  { %2097 = vmatpush1.msra.mxu0 %v7889_v4  ;;  %2168 = vmatpush1.msra.mxu1 %v7892_v1  ;;  %11206 = vst [vmem:[#allocation48_spill] sm:$0xff] %v7901_v3  ;;  %11207 = vst [vmem:[#allocation47_spill] sm:$0xff] %v7904_v12  ;;  %v7907_v4 = vld [vmem:[#allocation7 + $0x168] sm:$0xff]  ;;  %v7910_v1 = vld [vmem:[#allocation7 + $0x178] sm:$0xff] }
 0x2da   :  { %2098 = vmatprep.subr.mxu0 %v7895_v13  ;;  %2169 = vmatprep.subr.mxu1 %v7898_v14  ;;  %11208 = vst [vmem:[#allocation50_spill] sm:$0xff] %v7907_v4  ;;  %11209 = vst [vmem:[#allocation49_spill] sm:$0xff] %v7910_v1  ;;  %v7913_v13 = vld [vmem:[#allocation7 + $0x160] sm:$0xff]  ;;  %v7916_v14 = vld [vmem:[#allocation7 + $0x170] sm:$0xff] }
 0x2db   :  { %2099 = vmatpush1.msra.mxu0 %v7901_v3  ;;  %2170 = vmatpush1.msra.mxu1 %v7904_v12  ;;  %11210 = vst [vmem:[#allocation52_spill] sm:$0xff] %v7913_v13  ;;  %11211 = vst [vmem:[#allocation51_spill] sm:$0xff] %v7916_v14  ;;  %v7919_v3 = vld [vmem:[#allocation7 + $0x148] sm:$0xff]  ;;  %v7922_v12 = vld [vmem:[#allocation7 + $0x158] sm:$0xff] }
 0x2dc   :  { %2100 = vmatprep.subr.mxu0 %v7907_v4  ;;  %2171 = vmatprep.subr.mxu1 %v7910_v1  ;;  %11212 = vst [vmem:[#allocation54_spill] sm:$0xff] %v7919_v3  ;;  %11213 = vst [vmem:[#allocation53_spill] sm:$0xff] %v7922_v12  ;;  %v7925_v4 = vld [vmem:[#allocation7 + $0x140] sm:$0xff]  ;;  %v7928_v1 = vld [vmem:[#allocation7 + $0x150] sm:$0xff] }
 0x2dd   :  { %2101 = vmatpush1.msra.mxu0 %v7913_v13  ;;  %2172 = vmatpush1.msra.mxu1 %v7916_v14  ;;  %11214 = vst [vmem:[#allocation56_spill] sm:$0xff] %v7925_v4  ;;  %11215 = vst [vmem:[#allocation55_spill] sm:$0xff] %v7928_v1  ;;  %v7931_v13 = vld [vmem:[#allocation7 + $0x128] sm:$0xff]  ;;  %v7934_v14 = vld [vmem:[#allocation7 + $0x138] sm:$0xff] }
 0x2de   :  { %2102 = vmatprep.subr.mxu0 %v7919_v3  ;;  %2173 = vmatprep.subr.mxu1 %v7922_v12  ;;  %11216 = vst [vmem:[#allocation58_spill] sm:$0xff] %v7931_v13  ;;  %11217 = vst [vmem:[#allocation57_spill] sm:$0xff] %v7934_v14  ;;  %v7937_v3 = vld [vmem:[#allocation7 + $0x120] sm:$0xff]  ;;  %v7940_v12 = vld [vmem:[#allocation7 + $0x130] sm:$0xff] }
 0x2df   :  { %2103 = vmatpush1.msra.mxu0 %v7925_v4  ;;  %2174 = vmatpush1.msra.mxu1 %v7928_v1  ;;  %11218 = vst [vmem:[#allocation60_spill] sm:$0xff] %v7937_v3  ;;  %11219 = vst [vmem:[#allocation59_spill] sm:$0xff] %v7940_v12  ;;  %v7943_v4 = vld [vmem:[#allocation7 + $0x108] sm:$0xff]  ;;  %v7946_v1 = vld [vmem:[#allocation7 + $0x118] sm:$0xff] }
 0x2e0   :  { %2104 = vmatprep.subr.mxu0 %v7931_v13  ;;  %2175 = vmatprep.subr.mxu1 %v7934_v14  ;;  %11220 = vst [vmem:[#allocation62_spill] sm:$0xff] %v7943_v4  ;;  %11221 = vst [vmem:[#allocation61_spill] sm:$0xff] %v7946_v1  ;;  %v7949_v13 = vld [vmem:[#allocation7 + $0x100] sm:$0xff]  ;;  %v7952_v14 = vld [vmem:[#allocation7 + $0x110] sm:$0xff] }
 0x2e1   :  { %2105 = vmatpush1.msra.mxu0 %v7937_v3  ;;  %2176 = vmatpush1.msra.mxu1 %v7940_v12  ;;  %11222 = vst [vmem:[#allocation64_spill] sm:$0xff] %v7949_v13  ;;  %11223 = vst [vmem:[#allocation63_spill] sm:$0xff] %v7952_v14  ;;  %v7955_v3 = vld [vmem:[#allocation7 + $0xe8] sm:$0xff]  ;;  %v7958_v12 = vld [vmem:[#allocation7 + $0xf8] sm:$0xff] }
 0x2e2   :  { %2106 = vmatprep.subr.mxu0 %v7943_v4  ;;  %2177 = vmatprep.subr.mxu1 %v7946_v1  ;;  %11224 = vst [vmem:[#allocation66_spill] sm:$0xff] %v7955_v3  ;;  %11225 = vst [vmem:[#allocation65_spill] sm:$0xff] %v7958_v12  ;;  %v7961_v4 = vld [vmem:[#allocation7 + $0xe0] sm:$0xff]  ;;  %v7964_v1 = vld [vmem:[#allocation7 + $0xf0] sm:$0xff] }
 0x2e3   :  { %2107 = vmatpush1.msra.mxu0 %v7949_v13  ;;  %2178 = vmatpush1.msra.mxu1 %v7952_v14  ;;  %11226 = vst [vmem:[#allocation68_spill] sm:$0xff] %v7961_v4  ;;  %11227 = vst [vmem:[#allocation67_spill] sm:$0xff] %v7964_v1  ;;  %v7967_v13 = vld [vmem:[#allocation7 + $0xc8] sm:$0xff]  ;;  %v7970_v14 = vld [vmem:[#allocation7 + $0xd8] sm:$0xff] }
 0x2e4   :  { %2108 = vmatprep.subr.mxu0 %v7955_v3  ;;  %2179 = vmatprep.subr.mxu1 %v7958_v12  ;;  %11228 = vst [vmem:[#allocation70_spill] sm:$0xff] %v7967_v13  ;;  %11229 = vst [vmem:[#allocation69_spill] sm:$0xff] %v7970_v14  ;;  %v7973_v3 = vld [vmem:[#allocation7 + $0xc0] sm:$0xff]  ;;  %v7976_v12 = vld [vmem:[#allocation7 + $0xd0] sm:$0xff] }
 0x2e5   :  { %2109 = vmatpush1.msra.mxu0 %v7961_v4  ;;  %2180 = vmatpush1.msra.mxu1 %v7964_v1  ;;  %11230 = vst [vmem:[#allocation72_spill] sm:$0xff] %v7973_v3  ;;  %11231 = vst [vmem:[#allocation71_spill] sm:$0xff] %v7976_v12  ;;  %v7979_v4 = vld [vmem:[#allocation7 + $0xa8] sm:$0xff]  ;;  %v7982_v1 = vld [vmem:[#allocation7 + $0xb8] sm:$0xff] }
 0x2e6   :  { %2110 = vmatprep.subr.mxu0 %v7967_v13  ;;  %2181 = vmatprep.subr.mxu1 %v7970_v14  ;;  %11232 = vst [vmem:[#allocation74_spill] sm:$0xff] %v7979_v4  ;;  %11233 = vst [vmem:[#allocation73_spill] sm:$0xff] %v7982_v1  ;;  %v7985_v13 = vld [vmem:[#allocation7 + $0xa0] sm:$0xff]  ;;  %v7988_v14 = vld [vmem:[#allocation7 + $0xb0] sm:$0xff] }
 0x2e7   :  { %2111 = vmatpush1.msra.mxu0 %v7973_v3  ;;  %2182 = vmatpush1.msra.mxu1 %v7976_v12  ;;  %11234 = vst [vmem:[#allocation76_spill] sm:$0xff] %v7985_v13  ;;  %11235 = vst [vmem:[#allocation75_spill] sm:$0xff] %v7988_v14  ;;  %v7991_v3 = vld [vmem:[#allocation7 + $0x88] sm:$0xff]  ;;  %v7994_v12 = vld [vmem:[#allocation7 + $0x98] sm:$0xff] }
 0x2e8   :  { %2112 = vmatprep.subr.mxu0 %v7979_v4  ;;  %2183 = vmatprep.subr.mxu1 %v7982_v1  ;;  %11236 = vst [vmem:[#allocation78_spill] sm:$0xff] %v7991_v3  ;;  %11237 = vst [vmem:[#allocation77_spill] sm:$0xff] %v7994_v12  ;;  %v7997_v4 = vld [vmem:[#allocation7 + $0x80] sm:$0xff]  ;;  %v8000_v1 = vld [vmem:[#allocation7 + $0x90] sm:$0xff] }
 0x2e9   :  { %2113 = vmatpush1.msra.mxu0 %v7985_v13  ;;  %2184 = vmatpush1.msra.mxu1 %v7988_v14  ;;  %11238 = vst [vmem:[#allocation80_spill] sm:$0xff] %v7997_v4  ;;  %11239 = vst [vmem:[#allocation79_spill] sm:$0xff] %v8000_v1  ;;  %v8003_v13 = vld [vmem:[#allocation7 + $0x68] sm:$0xff]  ;;  %v8006_v14 = vld [vmem:[#allocation7 + $0x78] sm:$0xff] }
 0x2ea   :  { %2114 = vmatprep.subr.mxu0 %v7991_v3  ;;  %2185 = vmatprep.subr.mxu1 %v7994_v12  ;;  %11240 = vst [vmem:[#allocation82_spill] sm:$0xff] %v8003_v13  ;;  %11241 = vst [vmem:[#allocation81_spill] sm:$0xff] %v8006_v14  ;;  %v8009_v3 = vld [vmem:[#allocation7 + $0x60] sm:$0xff]  ;;  %v8012_v12 = vld [vmem:[#allocation7 + $0x70] sm:$0xff] }
 0x2eb   :  { %2115 = vmatpush1.msra.mxu0 %v7997_v4  ;;  %2186 = vmatpush1.msra.mxu1 %v8000_v1  ;;  %11242 = vst [vmem:[#allocation84_spill] sm:$0xff] %v8009_v3  ;;  %11243 = vst [vmem:[#allocation83_spill] sm:$0xff] %v8012_v12  ;;  %v8015_v4 = vld [vmem:[#allocation7 + $0x48] sm:$0xff]  ;;  %v8018_v1 = vld [vmem:[#allocation7 + $0x58] sm:$0xff] }
 0x2ec   :  { %2116 = vmatprep.subr.mxu0 %v8003_v13  ;;  %2187 = vmatprep.subr.mxu1 %v8006_v14  ;;  %11244 = vst [vmem:[#allocation85_spill] sm:$0xff] %v8015_v4  ;;  %11245 = vst [vmem:[#allocation86_spill] sm:$0xff] %v8018_v1  ;;  %v8021_v13 = vld [vmem:[#allocation7 + $0x40] sm:$0xff]  ;;  %v8024_v14 = vld [vmem:[#allocation7 + $0x50] sm:$0xff] }
 0x2ed   :  { %2117 = vmatpush1.msra.mxu0 %v8009_v3  ;;  %2188 = vmatpush1.msra.mxu1 %v8012_v12  ;;  %11246 = vst [vmem:[#allocation87_spill] sm:$0xff] %v8021_v13  ;;  %11247 = vst [vmem:[#allocation150_spill] sm:$0xff] %v8024_v14  ;;  %v8027_v3 = vld [vmem:[#allocation7 + $0x28] sm:$0xff]  ;;  %v8030_v12 = vld [vmem:[#allocation7 + $0x38] sm:$0xff] }
 0x2ee   :  { %2118 = vmatprep.subr.mxu0 %v8015_v4  ;;  %2189 = vmatprep.subr.mxu1 %v8018_v1  ;;  %11248 = vst [vmem:[#allocation152_spill] sm:$0xff] %v8027_v3  ;;  %11249 = vst [vmem:[#allocation151_spill] sm:$0xff] %v8030_v12  ;;  %v8033_v4 = vld [vmem:[#allocation7 + $0x20] sm:$0xff]  ;;  %v8036_v1 = vld [vmem:[#allocation7 + $0x30] sm:$0xff] }
 0x2ef   :  { %2119 = vmatpush1.msra.mxu0 %v8021_v13  ;;  %2190 = vmatpush1.msra.mxu1 %v8024_v14  ;;  %11250 = vst [vmem:[#allocation88_spill] sm:$0xff] %v8033_v4  ;;  %11251 = vst [vmem:[#allocation89_spill] sm:$0xff] %v8036_v1  ;;  %v8039_v13 = vld [vmem:[#allocation7 + $0x8] sm:$0xff]  ;;  %v8042_v14 = vld [vmem:[#allocation7 + $0x18] sm:$0xff] }
 0x2f0   :  { %2120 = vmatprep.subr.mxu0 %v8027_v3  ;;  %2191 = vmatprep.subr.mxu1 %v8030_v12  ;;  %11252 = vst [vmem:[#allocation90_spill] sm:$0xff] %v8039_v13  ;;  %11253 = vst [vmem:[#allocation91_spill] sm:$0xff] %v8042_v14  ;;  %v8045_v3 = vld [vmem:[#allocation7] sm:$0xff]  ;;  %v8049_v12 = vld [vmem:[#allocation7 + $0x10] sm:$0xff] }
 0x2f1   :  { %2121 = vmatpush1.msra.mxu0 %v8033_v4  ;;  %2192 = vmatpush1.msra.mxu1 %v8036_v1  ;;  %11254 = vst [vmem:[#allocation92_spill] sm:$0xff] %v8045_v3  ;;  %11255 = vst [vmem:[#allocation93_spill] sm:$0xff] %v8049_v12  ;;  %v8053_v1 = vld [vmem:[#allocation5 + $0x1e8] sm:$0xff] }
 0x2f2   :  { %2122 = vmatprep.subr.mxu0 %v8039_v13  ;;  %2193 = vmatprep.subr.mxu1 %v8042_v14  ;;  %11256 = vst [vmem:[#allocation94_spill] sm:$0xff] %v8053_v1  ;;  %v8056_v13 = vld [vmem:[#allocation5 + $0x1f8] sm:$0xff] }
 0x2f3   :  { %2123 = vmatpush1.msra.mxu0 %v8045_v3  ;;  %2156 = vmatprep.mubr.f32.mxu0 %v11035_v53  ;;  %11257 = vst [vmem:[#allocation95_spill] sm:$0xff] %v8056_v13 }
 0x2f4   :  { %2194 = vmatpush1.msra.mxu1 %v8049_v12  ;;  %2227 = vmatprep.mubr.f32.mxu1 %v11035_v53 }
 0x2f5   :  { %2240 = vmatprep.subr.mxu0 %v8053_v1  ;;  %2311 = vmatprep.subr.mxu1 %v8056_v13 }
 0x34c   :  { %v1617_v14 = vpop.f32.mrf.mxu0  ;;  %v1688_v3 = vpop.f32.mrf.mxu1 }
 0x34e   :  { %v1619_v4 = vpop.f32.mrf.mxu0  ;;  %v1690_v12 = vpop.f32.mrf.mxu1 }
 0x372   :  { %v1764_v10 = vpop.f32.mrf.mxu0  ;;  %v1835_v42 = vpop.f32.mrf.mxu1 }
 0x373   :  { %v1765_v35 = vadd.f32 %v1764_v10, %v1617_v14  ;;  %v1836_v57 = vadd.f32 %v1835_v42, %v1688_v3 }
 0x374   :  { %v1766_v60 = vpop.f32.mrf.mxu0  ;;  %v1837_v39 = vpop.f32.mrf.mxu1 }
 0x375   :  { %v1840_v58 = vadd.f32 %v1765_v35, %v7587_v41  ;;  %v1767_v49 = vadd.f32 %v1766_v60, %v1619_v4  ;;  %v1842_v13 = vadd.f32 %v1836_v57, %v7597_v7  ;;  %v1838_v21 = vadd.f32 %v1837_v39, %v1690_v12 }
 0x377   :  { %v5399_v45 = vmul.f32 -1.442695, %v1840_v58  ;;  %v1841_v44 = vadd.f32 %v1767_v49, %v7591_v47  ;;  %v5401_v15 = vmul.f32 -1.442695, %v1842_v13  ;;  %v1843_v10 = vadd.f32 %v1838_v21, %v7602_v11 }
 0x379   :  { %5636 = vpow2.f32 %v5399_v45  ;;  %v5400_v1 = vmul.f32 -1.442695, %v1841_v44 }
 0x37b   :  { %5638 = vpow2.f32 %v5400_v1 }
 0x37c   :  { %5640 = vpow2.f32 %v5401_v15 }
 0x386   :  { %v5637_v27 = vpop.eup %5636 }
 0x387   :  { %v1853_v14 = vadd.f32 1.0, %v5637_v27 }
 0x388   :  { %v5639_v35 = vpop.eup %5638 }
 0x389   :  { %5642 = vrcp.f32 %v1853_v14  ;;  %v1854_v58 = vadd.f32 1.0, %v5639_v35  ;;  %v5641_v60 = vpop.eup %5640 }
 0x38a   :  { %5644 = vtanh.f32 %v1843_v10  ;;  %v1855_v13 = vadd.f32 1.0, %v5641_v60 }
 0x38b   :  { %5646 = vrcp.f32 %v1854_v58 }
 0x393   :  { %v1934_v45 = vpop.f32.mrf.mxu0 }
 0x394   :  { %v2014_v49 = vrot.slane %v1934_v45, 6  ;;  %v2018_v44 = vrot.slane %v1934_v45, 7  ;;  %v2005_v45 = vpop.f32.mrf.mxu1 }
 0x395   :  { %v1936_v42 = vpop.f32.mrf.mxu0  ;;  %v2016_v60 = vrot.slane %v2005_v45, 6 }
 0x396   :  { %v5643_v3 = vpop.eup %5642  ;;  %v2030_v57 = vadd.f32 %v2014_v49, %v11107_v29  ;;  %v2034_v39 = vadd.f32 %v2018_v44, %v7381_v17  ;;  %v2015_v12 = vrot.slane %v1936_v42, 6  ;;  %v2019_v21 = vrot.slane %v1936_v42, 7 }
 0x397   :  { %v5645_v4 = vpop.eup %5644  ;;  %v2020_v42 = vrot.slane %v2005_v45, 7 }
 0x398   :  { %v5647_v27 = vpop.eup %5646  ;;  %v5402_v15 = vmul.f32 -1.442695, %v2030_v57  ;;  %v5405_v1 = vmul.f32 -1.442695, %v2034_v39  ;;  %v1864_v14 = vmul.f32 %v5645_v4, %v5643_v3  ;;  %v2031_v35 = vadd.f32 %v2015_v12, %v11109_v55 }
 0x399   :  { %v1863_v10 = vmul.f32 %v5647_v27, %v7609_v62  ;;  %v2035_v58 = vadd.f32 %v2019_v21, %v11108_v37  ;;  %v2007_v62 = vpop.f32.mrf.mxu1  ;;  %v2032_v3 = vadd.f32 %v2016_v60, %v7393_v26  ;;  %v2036_v57 = vadd.f32 %v2020_v42, %v7397_v22 }
 0x39a   :  { %5648 = vpow2.f32 %v5402_v15  ;;  %v5403_v49 = vmul.f32 -1.442695, %v2031_v35  ;;  %v2017_v39 = vrot.slane %v2007_v62, 6  ;;  %v2021_v4 = vrot.slane %v2007_v62, 7  ;;  %v8075_v62 = vld [vmem:[#allocation5 + $0x1e0] sm:$0xff] }
 0x39b   :  { %v8068_v11 = vadd.f32 %v1864_v14, %v1863_v10  ;;  %5650 = vpow2.f32 %v5405_v1  ;;  %v5406_v44 = vmul.f32 -1.442695, %v2035_v58  ;;  %v5404_v12 = vmul.f32 -1.442695, %v2032_v3  ;;  %v8078_v3 = vld [vmem:[#allocation5 + $0x1f0] sm:$0xff] }
 0x39c   :  { %5652 = vrcp.f32 %v1855_v13  ;;  %v5407_v21 = vmul.f32 -1.442695, %v2036_v57  ;;  %v2033_v15 = vadd.f32 %v2017_v39, %v7401_v61  ;;  %v2037_v1 = vadd.f32 %v2021_v4, %v7403_v20  ;;  %v8081_v57 = vld [vmem:[#allocation5 + $0x1c8] sm:$0xff]  ;;  %v8084_v39 = vld [vmem:[#allocation5 + $0x1d8] sm:$0xff]  ;;  %v8087_v4 = vld [vmem:[#allocation5 + $0x1c0] sm:$0xff] }
 0x39d   :  { %5654 = vtanh.f32 %v8068_v11  ;;  %11258 = vst [vmem:[#allocation96_spill] sm:$0xff] %v8084_v39  ;;  %11259 = vst [vmem:[#allocation97_spill] sm:$0xff] %v8087_v4 }
 0x39e   :  { %5656 = vpow2.f32 %v5403_v49 }
 0x39f   :  { %5658 = vpow2.f32 %v5406_v44 }
 0x3a0   :  { %5660 = vpow2.f32 %v5404_v12  ;;  %v8090_v12 = vld [vmem:[#allocation5 + $0x1d0] sm:$0xff] }
 0x3a1   :  { %5662 = vpow2.f32 %v5407_v21  ;;  %11260 = vst [vmem:[#allocation98_spill] sm:$0xff] %v8090_v12  ;;  %v8093_v21 = vld [vmem:[#allocation5 + $0x1a8] sm:$0xff] }
 0x3a2   :  { %5664 = vtanh.f32 %v2033_v15  ;;  %11261 = vst [vmem:[#allocation99_spill] sm:$0xff] %v8093_v21  ;;  %v8099_v15 = vld [vmem:[#allocation5 + $0x1a0] sm:$0xff] }
 0x3a3   :  { %5666 = vtanh.f32 %v2037_v1  ;;  %11263 = vst [vmem:[#allocation101_spill] sm:$0xff] %v8099_v15  ;;  %v8105_v1 = vld [vmem:[#allocation5 + $0x188] sm:$0xff] }
 0x3a4   :  { %11265 = vst [vmem:[#allocation103_spill] sm:$0xff] %v8105_v1 }
 0x3a7   :  { %v5649_v27 = vpop.eup %5648 }
 0x3a8   :  { %v5651_v13 = vpop.eup %5650  ;;  %v2056_v14 = vadd.f32 1.0, %v5649_v27  ;;  %v8096_v27 = vld [vmem:[#allocation5 + $0x1b8] sm:$0xff] }
 0x3a9   :  { %v5653_v10 = vpop.eup %5652  ;;  %v2059_v58 = vadd.f32 1.0, %v5651_v13  ;;  %11262 = vst [vmem:[#allocation100_spill] sm:$0xff] %v8096_v27  ;;  %v8102_v13 = vld [vmem:[#allocation5 + $0x1b0] sm:$0xff] }
 0x3aa   :  { %v5655_v35 = vpop.eup %5654  ;;  %5668 = vrcp.f32 %v2056_v14  ;;  %11264 = vst [vmem:[#allocation102_spill] sm:$0xff] %v8102_v13  ;;  %v8111_v14 = vld [vmem:[#allocation5 + $0x180] sm:$0xff] }
 0x3ab   :  { %v1867_v45 = vmul.f32 %v5655_v35, %v5653_v10  ;;  %v5657_v49 = vpop.eup %5656  ;;  %5670 = vrcp.f32 %v2059_v58  ;;  %v8108_v10 = vld [vmem:[#allocation5 + $0x198] sm:$0xff]  ;;  %11267 = vst [vmem:[#allocation105_spill] sm:$0xff] %v8111_v14  ;;  %v8114_v35 = vld [vmem:[#allocation5 + $0x190] sm:$0xff]  ;;  %v8117_v58 = vld [vmem:[#allocation5 + $0x168] sm:$0xff] }
 0x3ac   :  { %v5659_v44 = vpop.eup %5658  ;;  %v2057_v60 = vadd.f32 1.0, %v5657_v49  ;;  %11266 = vst [vmem:[#allocation104_spill] sm:$0xff] %v8108_v10  ;;  %11268 = vst [vmem:[#allocation106_spill] sm:$0xff] %v8114_v35 }
 0x3ad   :  { %2157 = vmatmul.mubr.f32.vlgmr.msra.gmra.mxu0 %v1867_v45  ;;  %2228 = vmatmul.mubr.f32.vlgmr.msra.gmra.mxu1 %v1867_v45  ;;  %v2060_v42 = vadd.f32 1.0, %v5659_v44  ;;  %11269 = vst [vmem:[#allocation107_spill] sm:$0xff] %v8117_v58  ;;  %v8120_v45 = vld [vmem:[#allocation5 + $0x178] sm:$0xff]  ;;  %v5661_v49 = vpop.eup %5660  ;;  %v8123_v44 = vld [vmem:[#allocation5 + $0x160] sm:$0xff] }
 0x3ae   :  { %2241 = vmatpush1.msra.mxu0 %v8075_v62  ;;  %2312 = vmatpush1.msra.mxu1 %v8078_v3  ;;  %5672 = vrcp.f32 %v2057_v60  ;;  %11270 = vst [vmem:[#allocation108_spill] sm:$0xff] %v8120_v45  ;;  %11271 = vst [vmem:[#allocation109_spill] sm:$0xff] %v8123_v44  ;;  %v8126_v60 = vld [vmem:[#allocation5 + $0x170] sm:$0xff] }
 0x3af   :  { %2242 = vmatprep.subr.mxu0 %v8081_v57  ;;  %2313 = vmatprep.subr.mxu1 %v8084_v39  ;;  %5674 = vrcp.f32 %v2060_v42  ;;  %11272 = vst [vmem:[#allocation110_spill] sm:$0xff] %v8126_v60  ;;  %v5663_v42 = vpop.eup %5662  ;;  %v8173_v39 = vld [vmem:[#allocation5 + $0xe0] sm:$0xff] }
 0x3b0   :  { %2243 = vmatpush1.msra.mxu0 %v8087_v4  ;;  %2314 = vmatpush1.msra.mxu1 %v8090_v12  ;;  %v8161_v12 = vld [vmem:[#allocation5 + $0x100] sm:$0xff] }
 0x3b1   :  { %2244 = vmatprep.subr.mxu0 %v8093_v21  ;;  %2315 = vmatprep.subr.mxu1 %v8096_v27  ;;  %v8154_v27 = vld [vmem:[#allocation5 + $0x108] sm:$0xff]  ;;  %v2079_v21 = vrot.slane %v7646_v51, 7  ;;  %11283 = vst [vmem:[#allocation121_spill] sm:$0xff] %v8161_v12 }
 0x3b2   :  { %2245 = vmatpush1.msra.mxu0 %v8099_v15  ;;  %2316 = vmatpush1.msra.mxu1 %v8102_v13  ;;  %v8150_v13 = vld [vmem:[#allocation5 + $0x130] sm:$0xff]  ;;  %v2058_v15 = vadd.f32 1.0, %v5661_v49  ;;  %11281 = vst [vmem:[#allocation119_spill] sm:$0xff] %v8154_v27 }
 0x3b3   :  { %2246 = vmatprep.subr.mxu0 %v8105_v1  ;;  %2317 = vmatprep.subr.mxu1 %v8108_v10  ;;  %v8138_v10 = vld [vmem:[#allocation5 + $0x150] sm:$0xff]  ;;  %v8144_v1 = vld [vmem:[#allocation5 + $0x138] sm:$0xff]  ;;  %11280 = vst [vmem:[#allocation118_spill] sm:$0xff] %v8150_v13 }
 0x3b4   :  { %2247 = vmatpush1.msra.mxu0 %v8111_v14  ;;  %2318 = vmatpush1.msra.mxu1 %v8114_v35  ;;  %v8129_v14 = vld [vmem:[#allocation5 + $0x148] sm:$0xff]  ;;  %v8132_v35 = vld [vmem:[#allocation5 + $0x158] sm:$0xff]  ;;  %11276 = vst [vmem:[#allocation114_spill] sm:$0xff] %v8138_v10  ;;  %11278 = vst [vmem:[#allocation116_spill] sm:$0xff] %v8144_v1  ;;  %5676 = vrcp.f32 %v2058_v15 }
 0x3b5   :  { %2248 = vmatprep.subr.mxu0 %v8117_v58  ;;  %2319 = vmatprep.subr.mxu1 %v8120_v45  ;;  %11273 = vst [vmem:[#allocation111_spill] sm:$0xff] %v8129_v14  ;;  %11274 = vst [vmem:[#allocation112_spill] sm:$0xff] %v8132_v35  ;;  %v5665_v58 = vpop.eup %5664  ;;  %v8135_v45 = vld [vmem:[#allocation5 + $0x140] sm:$0xff]  ;;  %v8199_v15 = vld [vmem:[#allocation5 + $0xb8] sm:$0xff] }
 0x3b6   :  { %2249 = vmatpush1.msra.mxu0 %v8123_v44  ;;  %2320 = vmatpush1.msra.mxu1 %v8126_v60  ;;  %11275 = vst [vmem:[#allocation113_spill] sm:$0xff] %v8135_v45  ;;  %v5667_v44 = vpop.eup %5666  ;;  %v8141_v60 = vld [vmem:[#allocation5 + $0x128] sm:$0xff]  ;;  %11287 = vst [vmem:[#allocation125_spill] sm:$0xff] %v8199_v15 }
 0x3b7   :  { %2250 = vmatprep.subr.mxu0 %v8129_v14  ;;  %2321 = vmatprep.subr.mxu1 %v8132_v35  ;;  %11277 = vst [vmem:[#allocation115_spill] sm:$0xff] %v8141_v60  ;;  %v5669_v14 = vpop.eup %5668  ;;  %v8147_v35 = vld [vmem:[#allocation5 + $0x120] sm:$0xff] }
 0x3b8   :  { %2251 = vmatpush1.msra.mxu0 %v8135_v45  ;;  %2322 = vmatpush1.msra.mxu1 %v8138_v10  ;;  %11279 = vst [vmem:[#allocation117_spill] sm:$0xff] %v8147_v35  ;;  %v5671_v45 = vpop.eup %5670  ;;  %v2078_v10 = vrot.slane %v7652_v6, 7  ;;  %v2084_v4 = vmul.f32 %v5669_v14, %v5665_v58  ;;  %v8184_v14 = vld [vmem:[#allocation5 + $0xd8] sm:$0xff]  ;;  %v8189_v58 = vld [vmem:[#allocation5 + $0xc0] sm:$0xff] }
 0x3b9   :  { %2252 = vmatprep.subr.mxu0 %v8141_v60  ;;  %2323 = vmatprep.subr.mxu1 %v8144_v1  ;;  %v8157_v60 = vld [vmem:[#allocation5 + $0x118] sm:$0xff]  ;;  %11284 = vst [vmem:[#allocation122_spill] sm:$0xff] %v8189_v58 }
 0x3ba   :  { %2253 = vmatpush1.msra.mxu0 %v8147_v35  ;;  %2324 = vmatpush1.msra.mxu1 %v8150_v13  ;;  %11282 = vst [vmem:[#allocation120_spill] sm:$0xff] %v8157_v60  ;;  %v2061_v35 = vadd.f32 1.0, %v5663_v42  ;;  %v8164_v13 = vld [vmem:[#allocation5 + $0x110] sm:$0xff]  ;;  %v2085_v42 = vmul.f32 %v5671_v45, %v5667_v44 }
 0x3bb   :  { %2254 = vmatprep.subr.mxu0 %v8154_v27  ;;  %2325 = vmatprep.subr.mxu1 %v8157_v60  ;;  %v5673_v1 = vpop.eup %5672  ;;  %v8167_v27 = vld [vmem:[#allocation5 + $0xe8] sm:$0xff]  ;;  %v8170_v60 = vld [vmem:[#allocation5 + $0xf8] sm:$0xff]  ;;  %v8192_v45 = vld [vmem:[#allocation5 + $0xd0] sm:$0xff] }
 0x3bc   :  { %2255 = vmatpush1.msra.mxu0 %v8161_v12  ;;  %2326 = vmatpush1.msra.mxu1 %v8164_v13  ;;  %v5675_v6 = vpop.eup %5674  ;;  %v2082_v49 = vmul.f32 %v5673_v1, %v2078_v10  ;;  %v8176_v12 = vld [vmem:[#allocation5 + $0xf0] sm:$0xff]  ;;  %v8181_v10 = vld [vmem:[#allocation5 + $0xc8] sm:$0xff]  ;;  %5678 = vrcp.f32 %v2061_v35  ;;  %11285 = vst [vmem:[#allocation123_spill] sm:$0xff] %v8192_v45  ;;  %v8203_v35 = vld [vmem:[#allocation5 + $0xa0] sm:$0xff] }
 0x3bd   :  { %2256 = vmatprep.subr.mxu0 %v8167_v27  ;;  %2327 = vmatprep.subr.mxu1 %v8170_v60  ;;  %v2083_v51 = vmul.f32 %v5675_v6, %v2079_v21  ;;  %11288 = vst [vmem:[#allocation126_spill] sm:$0xff] %v8203_v35  ;;  %v8206_v44 = vld [vmem:[#allocation5 + $0xb0] sm:$0xff]  ;;  %v8209_v6 = vld [vmem:[#allocation5 + $0x88] sm:$0xff] }
 0x3be   :  { %2257 = vmatpush1.msra.mxu0 %v8173_v39  ;;  %2328 = vmatpush1.msra.mxu1 %v8176_v12  ;;  %v8179_v1 = vadd.f32 %v2084_v4, %v2082_v49  ;;  %v8196_v4 = vld [vmem:[#allocation5 + $0xa8] sm:$0xff]  ;;  %11289 = vst [vmem:[#allocation127_spill] sm:$0xff] %v8206_v44  ;;  %11290 = vst [vmem:[#allocation128_spill] sm:$0xff] %v8209_v6  ;;  %v8212_v49 = vld [vmem:[#allocation5 + $0x98] sm:$0xff] }
 0x3bf   :  { %2258 = vmatprep.subr.mxu0 %v8181_v10  ;;  %2329 = vmatprep.subr.mxu1 %v8184_v14  ;;  %v8187_v21 = vadd.f32 %v2085_v42, %v2083_v51  ;;  %11286 = vst [vmem:[#allocation124_spill] sm:$0xff] %v8196_v4  ;;  %11291 = vst [vmem:[#allocation129_spill] sm:$0xff] %v8212_v49  ;;  %v8215_v51 = vld [vmem:[#allocation5 + $0x80] sm:$0xff]  ;;  %v8218_v42 = vld [vmem:[#allocation5 + $0x90] sm:$0xff] }
 0x3c0   :  { %2259 = vmatpush1.msra.mxu0 %v8189_v58  ;;  %2330 = vmatpush1.msra.mxu1 %v8192_v45  ;;  %5680 = vtanh.f32 %v8179_v1  ;;  %11292 = vst [vmem:[#allocation130_spill] sm:$0xff] %v8215_v51  ;;  %11293 = vst [vmem:[#allocation131_spill] sm:$0xff] %v8218_v42 }
 0x3c1   :  { %2260 = vmatprep.subr.mxu0 %v8196_v4  ;;  %2331 = vmatprep.subr.mxu1 %v8199_v15  ;;  %5682 = vtanh.f32 %v8187_v21  ;;  %v8263_v15 = vld [vmem:[#allocation5] sm:$0xff] }
 0x3c2   :  { %2261 = vmatpush1.msra.mxu0 %v8203_v35  ;;  %2332 = vmatpush1.msra.mxu1 %v8206_v44  ;;  %v8221_v35 = vld [vmem:[#allocation5 + $0x68] sm:$0xff]  ;;  %v8224_v44 = vld [vmem:[#allocation5 + $0x78] sm:$0xff]  ;;  %11308 = vst [vmem:[#allocation146_spill] sm:$0xff] %v8263_v15 }
 0x3c3   :  { %2262 = vmatprep.subr.mxu0 %v8209_v6  ;;  %2333 = vmatprep.subr.mxu1 %v8212_v49  ;;  %11294 = vst [vmem:[#allocation132_spill] sm:$0xff] %v8221_v35  ;;  %11295 = vst [vmem:[#allocation133_spill] sm:$0xff] %v8224_v44  ;;  %v8227_v6 = vld [vmem:[#allocation5 + $0x60] sm:$0xff]  ;;  %v8230_v49 = vld [vmem:[#allocation5 + $0x70] sm:$0xff] }
 0x3c4   :  { %2263 = vmatpush1.msra.mxu0 %v8215_v51  ;;  %2334 = vmatpush1.msra.mxu1 %v8218_v42  ;;  %11296 = vst [vmem:[#allocation134_spill] sm:$0xff] %v8227_v6  ;;  %11297 = vst [vmem:[#allocation135_spill] sm:$0xff] %v8230_v49  ;;  %v8233_v51 = vld [vmem:[#allocation5 + $0x48] sm:$0xff]  ;;  %v8236_v42 = vld [vmem:[#allocation5 + $0x58] sm:$0xff] }
 0x3c5   :  { %2264 = vmatprep.subr.mxu0 %v8221_v35  ;;  %2335 = vmatprep.subr.mxu1 %v8224_v44  ;;  %11298 = vst [vmem:[#allocation136_spill] sm:$0xff] %v8233_v51  ;;  %11299 = vst [vmem:[#allocation137_spill] sm:$0xff] %v8236_v42  ;;  %v8239_v35 = vld [vmem:[#allocation5 + $0x40] sm:$0xff]  ;;  %v8242_v44 = vld [vmem:[#allocation5 + $0x50] sm:$0xff] }
 0x3c6   :  { %2265 = vmatpush1.msra.mxu0 %v8227_v6  ;;  %2336 = vmatpush1.msra.mxu1 %v8230_v49  ;;  %11300 = vst [vmem:[#allocation138_spill] sm:$0xff] %v8239_v35  ;;  %11301 = vst [vmem:[#allocation139_spill] sm:$0xff] %v8242_v44  ;;  %v8245_v6 = vld [vmem:[#allocation5 + $0x28] sm:$0xff]  ;;  %v8248_v49 = vld [vmem:[#allocation5 + $0x38] sm:$0xff] }
 0x3c7   :  { %2266 = vmatprep.subr.mxu0 %v8233_v51  ;;  %2337 = vmatprep.subr.mxu1 %v8236_v42  ;;  %11302 = vst [vmem:[#allocation140_spill] sm:$0xff] %v8245_v6  ;;  %11303 = vst [vmem:[#allocation141_spill] sm:$0xff] %v8248_v49  ;;  %v8251_v51 = vld [vmem:[#allocation5 + $0x20] sm:$0xff]  ;;  %v8254_v42 = vld [vmem:[#allocation5 + $0x30] sm:$0xff] }
 0x3c8   :  { %2267 = vmatpush1.msra.mxu0 %v8239_v35  ;;  %2338 = vmatpush1.msra.mxu1 %v8242_v44  ;;  %11304 = vst [vmem:[#allocation142_spill] sm:$0xff] %v8251_v51  ;;  %11305 = vst [vmem:[#allocation143_spill] sm:$0xff] %v8254_v42  ;;  %v8257_v35 = vld [vmem:[#allocation5 + $0x8] sm:$0xff]  ;;  %v8260_v44 = vld [vmem:[#allocation5 + $0x18] sm:$0xff] }
 0x3c9   :  { %2268 = vmatprep.subr.mxu0 %v8245_v6  ;;  %2339 = vmatprep.subr.mxu1 %v8248_v49  ;;  %11306 = vst [vmem:[#allocation144_spill] sm:$0xff] %v8257_v35  ;;  %11307 = vst [vmem:[#allocation145_spill] sm:$0xff] %v8260_v44  ;;  %v5677_v6 = vpop.eup %5676  ;;  %v8266_v49 = vld [vmem:[#allocation5 + $0x10] sm:$0xff] }
 0x3ca   :  { %2269 = vmatpush1.msra.mxu0 %v8251_v51  ;;  %2340 = vmatpush1.msra.mxu1 %v8254_v42  ;;  %11309 = vst [vmem:[#allocation147_spill] sm:$0xff] %v8266_v49  ;;  %v5679_v51 = vpop.eup %5678 }
 0x3cb   :  { %2270 = vmatprep.subr.mxu0 %v8257_v35  ;;  %2341 = vmatprep.subr.mxu1 %v8260_v44 }
 0x3cc   :  { %2271 = vmatpush1.msra.mxu0 %v8263_v15  ;;  %2342 = vmatpush1.msra.mxu1 %v8266_v49  ;;  %v8278_v49 = vld [vmem:[#allocation2 + $0x1e0] sm:$0xff] }
 0x3cd   :  { %2304 = vmatprep.mubr.f32.mxu0 %v11035_v53  ;;  %2375 = vmatprep.mubr.f32.mxu1 %v11035_v53  ;;  %v5681_v42 = vpop.eup %5680 }
 0x3ce   :  { %2410 = vmatprep.subr.mxu0 %v7688_v8  ;;  %2481 = vmatprep.subr.mxu1 %v7691_v9  ;;  %v5683_v44 = vpop.eup %5682  ;;  %v2090_v35 = vmul.f32 %v5681_v42, %v5677_v6  ;;  %v8282_v8 = vld [vmem:[#allocation2 + $0x1c8] sm:$0xff]  ;;  %v8286_v9 = vld [vmem:[#allocation2 + $0x1c0] sm:$0xff]  ;;  %v11330_v6 = vld [vmem:[#allocation34_spill] sm:$0xff] }
 0x3cf   :  { %v2091_v4 = vmul.f32 %v5683_v44, %v5679_v51  ;;  %v11329_v44 = vld [vmem:[#allocation31_spill] sm:$0xff]  ;;  %v11331_v51 = vld [vmem:[#allocation33_spill] sm:$0xff]  ;;  %v11332_v42 = vld [vmem:[#allocation36_spill] sm:$0xff] }
 0x3d0   :  { %v2236_v45 = vrot.slane %v2090_v35, 2  ;;  %v11328_v35 = vld [vmem:[#allocation32_spill] sm:$0xff] }
 0x3d1   :  { %v2237_v58 = vrot.slane %v2091_v4, 1  ;;  %v11327_v4 = vld [vmem:[#allocation29_spill] sm:$0xff] }
 0x3d3   :  { %v8274_v15 = vsel %vm1137_vm4, %v2237_v58, %v2236_v45  ;;  %v8290_v58 = vld [vmem:[#allocation2 + $0x1a8] sm:$0xff]  ;;  %v8294_v45 = vld [vmem:[#allocation2 + $0x1a0] sm:$0xff] }
 0x3d4   :  { %2305 = vmatmul.mubr.f32.vlgmr.msra.gmra.mxu0 %v8274_v15  ;;  %2376 = vmatmul.mubr.f32.vlgmr.msra.gmra.mxu1 %v8274_v15 }
 0x3d5   :  { %2411 = vmatpush1.msra.mxu0 %v8278_v49  ;;  %2482 = vmatpush1.msra.mxu1 %v7700_v16  ;;  %v8298_v16 = vld [vmem:[#allocation2 + $0x188] sm:$0xff] }
 0x3d6   :  { %2412 = vmatprep.subr.mxu0 %v8282_v8  ;;  %2483 = vmatprep.subr.mxu1 %v7704_v24  ;;  %v8302_v24 = vld [vmem:[#allocation2 + $0x180] sm:$0xff] }
 0x3d7   :  { %2413 = vmatpush1.msra.mxu0 %v8286_v9  ;;  %2484 = vmatpush1.msra.mxu1 %v7708_v63  ;;  %v8306_v63 = vld [vmem:[#allocation2 + $0x168] sm:$0xff] }
 0x3d8   :  { %2414 = vmatprep.subr.mxu0 %v8290_v58  ;;  %2485 = vmatprep.subr.mxu1 %v7712_v5  ;;  %v8310_v5 = vld [vmem:[#allocation2 + $0x160] sm:$0xff] }
 0x3d9   :  { %2415 = vmatpush1.msra.mxu0 %v8294_v45  ;;  %2486 = vmatpush1.msra.mxu1 %v7716_v2  ;;  %v8314_v2 = vld [vmem:[#allocation2 + $0x148] sm:$0xff] }
 0x3da   :  { %2416 = vmatprep.subr.mxu0 %v8298_v16  ;;  %2487 = vmatprep.subr.mxu1 %v7720_v0  ;;  %v8318_v0 = vld [vmem:[#allocation2 + $0x140] sm:$0xff] }
 0x3db   :  { %2417 = vmatpush1.msra.mxu0 %v8302_v24  ;;  %2488 = vmatpush1.msra.mxu1 %v7724_v32  ;;  %v8322_v32 = vld [vmem:[#allocation2 + $0x128] sm:$0xff] }
 0x3dc   :  { %2418 = vmatprep.subr.mxu0 %v8306_v63  ;;  %2489 = vmatprep.subr.mxu1 %v7728_v25  ;;  %v8326_v25 = vld [vmem:[#allocation2 + $0x120] sm:$0xff] }
 0x3dd   :  { %2419 = vmatpush1.msra.mxu0 %v8310_v5  ;;  %2490 = vmatpush1.msra.mxu1 %v7732_v59  ;;  %v8330_v59 = vld [vmem:[#allocation2 + $0x108] sm:$0xff] }
 0x3de   :  { %2420 = vmatprep.subr.mxu0 %v8314_v2  ;;  %2491 = vmatprep.subr.mxu1 %v7736_v36  ;;  %v8334_v36 = vld [vmem:[#allocation2 + $0x100] sm:$0xff] }
 0x3df   :  { %2421 = vmatpush1.msra.mxu0 %v8318_v0  ;;  %2492 = vmatpush1.msra.mxu1 %v7740_v38  ;;  %v11310_v38 = vld [vmem:[#allocation17_spill] sm:$0xff] }
 0x3e0   :  { %2422 = vmatprep.subr.mxu0 %v8322_v32  ;;  %2493 = vmatprep.subr.mxu1 %v7744_v40  ;;  %v11311_v40 = vld [vmem:[#allocation13_spill] sm:$0xff] }
 0x3e1   :  { %2423 = vmatpush1.msra.mxu0 %v8326_v25  ;;  %2494 = vmatpush1.msra.mxu1 %v7748_v43  ;;  %v11312_v43 = vld [vmem:[#allocation18_spill] sm:$0xff] }
 0x3e2   :  { %2424 = vmatprep.subr.mxu0 %v8330_v59  ;;  %2495 = vmatprep.subr.mxu1 %v7752_v46  ;;  %v11313_v46 = vld [vmem:[#allocation14_spill] sm:$0xff] }
 0x3e3   :  { %2425 = vmatpush1.msra.mxu0 %v8334_v36  ;;  %2496 = vmatpush1.msra.mxu1 %v7756_v48  ;;  %v11314_v48 = vld [vmem:[#allocation19_spill] sm:$0xff] }
 0x3e4   :  { %2426 = vmatprep.subr.mxu0 %v7759_v50  ;;  %2497 = vmatprep.subr.mxu1 %v7762_v52  ;;  %v11315_v50 = vld [vmem:[#allocation15_spill] sm:$0xff]  ;;  %v11316_v52 = vld [vmem:[#allocation20_spill] sm:$0xff] }
 0x3e5   :  { %2427 = vmatpush1.msra.mxu0 %v7765_v18  ;;  %2498 = vmatpush1.msra.mxu1 %v7768_v54  ;;  %v11317_v18 = vld [vmem:[#allocation16_spill] sm:$0xff]  ;;  %v11318_v54 = vld [vmem:[#allocation21_spill] sm:$0xff] }
 0x3e6   :  { %2428 = vmatprep.subr.mxu0 %v7771_v56  ;;  %2499 = vmatprep.subr.mxu1 %v7774_v31  ;;  %v11319_v56 = vld [vmem:[#allocation22_spill] sm:$0xff]  ;;  %v11320_v31 = vld [vmem:[#allocation24_spill] sm:$0xff] }
 0x3e7   :  { %2429 = vmatpush1.msra.mxu0 %v7777_v30  ;;  %2500 = vmatpush1.msra.mxu1 %v7780_v19  ;;  %v11321_v30 = vld [vmem:[#allocation23_spill] sm:$0xff]  ;;  %v11322_v19 = vld [vmem:[#allocation26_spill] sm:$0xff] }
 0x3e8   :  { %2430 = vmatprep.subr.mxu0 %v7783_v34  ;;  %2501 = vmatprep.subr.mxu1 %v7786_v33  ;;  %v11323_v34 = vld [vmem:[#allocation25_spill] sm:$0xff]  ;;  %v11324_v33 = vld [vmem:[#allocation28_spill] sm:$0xff] }
 0x3e9   :  { %2431 = vmatpush1.msra.mxu0 %v7789_v23  ;;  %2502 = vmatpush1.msra.mxu1 %v7792_v28  ;;  %v11325_v23 = vld [vmem:[#allocation27_spill] sm:$0xff]  ;;  %v11326_v28 = vld [vmem:[#allocation30_spill] sm:$0xff] }
 0x3ea   :  { %2432 = vmatprep.subr.mxu0 %v11310_v38  ;;  %2503 = vmatprep.subr.mxu1 %v11311_v40  ;;  %v11333_v38 = vld [vmem:[#allocation35_spill] sm:$0xff]  ;;  %v11334_v40 = vld [vmem:[#allocation38_spill] sm:$0xff] }
 0x3eb   :  { %2433 = vmatpush1.msra.mxu0 %v11312_v43  ;;  %2504 = vmatpush1.msra.mxu1 %v11313_v46  ;;  %v11335_v43 = vld [vmem:[#allocation37_spill] sm:$0xff]  ;;  %v11336_v46 = vld [vmem:[#allocation40_spill] sm:$0xff] }
 0x3ec   :  { %2434 = vmatprep.subr.mxu0 %v11314_v48  ;;  %2505 = vmatprep.subr.mxu1 %v11315_v50  ;;  %v11337_v48 = vld [vmem:[#allocation39_spill] sm:$0xff]  ;;  %v11338_v50 = vld [vmem:[#allocation42_spill] sm:$0xff] }
 0x3ed   :  { %2435 = vmatpush1.msra.mxu0 %v11316_v52  ;;  %2506 = vmatpush1.msra.mxu1 %v11317_v18  ;;  %v11339_v52 = vld [vmem:[#allocation41_spill] sm:$0xff]  ;;  %v11341_v18 = vld [vmem:[#allocation43_spill] sm:$0xff] }
 0x3ee   :  { %2436 = vmatprep.subr.mxu0 %v11318_v54  ;;  %2507 = vmatprep.subr.mxu1 %v11319_v56  ;;  %v11342_v54 = vld [vmem:[#allocation46_spill] sm:$0xff]  ;;  %v11343_v56 = vld [vmem:[#allocation45_spill] sm:$0xff] }
 0x3ef   :  { %2437 = vmatpush1.msra.mxu0 %v11320_v31  ;;  %2508 = vmatpush1.msra.mxu1 %v11321_v30  ;;  %v11344_v31 = vld [vmem:[#allocation48_spill] sm:$0xff]  ;;  %v11345_v30 = vld [vmem:[#allocation47_spill] sm:$0xff] }
 0x3f0   :  { %2438 = vmatprep.subr.mxu0 %v11322_v19  ;;  %2509 = vmatprep.subr.mxu1 %v11323_v34  ;;  %v11346_v19 = vld [vmem:[#allocation50_spill] sm:$0xff]  ;;  %v11347_v34 = vld [vmem:[#allocation49_spill] sm:$0xff] }
 0x3f1   :  { %2439 = vmatpush1.msra.mxu0 %v11324_v33  ;;  %2510 = vmatpush1.msra.mxu1 %v11325_v23  ;;  %v11348_v33 = vld [vmem:[#allocation52_spill] sm:$0xff]  ;;  %v11349_v23 = vld [vmem:[#allocation51_spill] sm:$0xff] }
 0x3f2   :  { %2440 = vmatprep.subr.mxu0 %v11326_v28  ;;  %2511 = vmatprep.subr.mxu1 %v11327_v4  ;;  %v11350_v28 = vld [vmem:[#allocation54_spill] sm:$0xff]  ;;  %v11351_v4 = vld [vmem:[#allocation53_spill] sm:$0xff] }
 0x3f3   :  { %2441 = vmatpush1.msra.mxu0 %v11328_v35  ;;  %2474 = vmatprep.mubr.f32.mxu0 %v11035_v53  ;;  %v11352_v35 = vld [vmem:[#allocation56_spill] sm:$0xff] }
 0x3f4   :  { %2512 = vmatpush1.msra.mxu1 %v11329_v44  ;;  %2545 = vmatprep.mubr.f32.mxu1 %v11035_v53  ;;  %v11353_v44 = vld [vmem:[#allocation55_spill] sm:$0xff] }
 0x3f5   :  { %2475 = vmatmul.mubr.f32.vlgmr.msra.gmra.mxu0 %v8274_v15  ;;  %2546 = vmatmul.mubr.f32.vlgmr.msra.gmra.mxu1 %v8274_v15  ;;  %v11340_v15 = vld [vmem:[#allocation44_spill] sm:$0xff] }
 0x3f6   :  { %2634 = vmatprep.subr.mxu0 %v11330_v6  ;;  %2705 = vmatprep.subr.mxu1 %v11331_v51  ;;  %v11354_v6 = vld [vmem:[#allocation58_spill] sm:$0xff]  ;;  %v11355_v51 = vld [vmem:[#allocation57_spill] sm:$0xff] }
 0x3f7   :  { %2635 = vmatpush1.msra.mxu0 %v11332_v42  ;;  %2706 = vmatpush1.msra.mxu1 %v11333_v38  ;;  %v11356_v42 = vld [vmem:[#allocation60_spill] sm:$0xff]  ;;  %v11357_v38 = vld [vmem:[#allocation59_spill] sm:$0xff] }
 0x3f8   :  { %2636 = vmatprep.subr.mxu0 %v11334_v40  ;;  %2707 = vmatprep.subr.mxu1 %v11335_v43  ;;  %v11358_v40 = vld [vmem:[#allocation62_spill] sm:$0xff]  ;;  %v11359_v43 = vld [vmem:[#allocation61_spill] sm:$0xff] }
 0x3f9   :  { %2637 = vmatpush1.msra.mxu0 %v11336_v46  ;;  %2708 = vmatpush1.msra.mxu1 %v11337_v48  ;;  %v11360_v46 = vld [vmem:[#allocation64_spill] sm:$0xff]  ;;  %v11361_v48 = vld [vmem:[#allocation63_spill] sm:$0xff] }
 0x3fa   :  { %2638 = vmatprep.subr.mxu0 %v11338_v50  ;;  %2709 = vmatprep.subr.mxu1 %v11339_v52  ;;  %v11362_v50 = vld [vmem:[#allocation66_spill] sm:$0xff]  ;;  %v11363_v52 = vld [vmem:[#allocation65_spill] sm:$0xff] }
 0x3fb   :  { %2639 = vmatpush1.msra.mxu0 %v11340_v15  ;;  %2710 = vmatpush1.msra.mxu1 %v11341_v18  ;;  %v11364_v15 = vld [vmem:[#allocation68_spill] sm:$0xff]  ;;  %v11365_v18 = vld [vmem:[#allocation67_spill] sm:$0xff] }
 0x3fc   :  { %2640 = vmatprep.subr.mxu0 %v11342_v54  ;;  %2711 = vmatprep.subr.mxu1 %v11343_v56  ;;  %v11366_v54 = vld [vmem:[#allocation70_spill] sm:$0xff]  ;;  %v11367_v56 = vld [vmem:[#allocation69_spill] sm:$0xff] }
 0x3fd   :  { %2641 = vmatpush1.msra.mxu0 %v11344_v31  ;;  %2712 = vmatpush1.msra.mxu1 %v11345_v30  ;;  %v11368_v31 = vld [vmem:[#allocation72_spill] sm:$0xff]  ;;  %v11369_v30 = vld [vmem:[#allocation71_spill] sm:$0xff] }
 0x3fe   :  { %2642 = vmatprep.subr.mxu0 %v11346_v19  ;;  %2713 = vmatprep.subr.mxu1 %v11347_v34  ;;  %v11370_v19 = vld [vmem:[#allocation74_spill] sm:$0xff]  ;;  %v11371_v34 = vld [vmem:[#allocation73_spill] sm:$0xff] }
 0x3ff   :  { %2643 = vmatpush1.msra.mxu0 %v11348_v33  ;;  %2714 = vmatpush1.msra.mxu1 %v11349_v23  ;;  %v11372_v33 = vld [vmem:[#allocation76_spill] sm:$0xff]  ;;  %v11373_v23 = vld [vmem:[#allocation75_spill] sm:$0xff] }
 0x400   :  { %2644 = vmatprep.subr.mxu0 %v11350_v28  ;;  %2715 = vmatprep.subr.mxu1 %v11351_v4  ;;  %v11374_v28 = vld [vmem:[#allocation78_spill] sm:$0xff]  ;;  %v11375_v4 = vld [vmem:[#allocation77_spill] sm:$0xff] }
 0x401   :  { %2645 = vmatpush1.msra.mxu0 %v11352_v35  ;;  %2716 = vmatpush1.msra.mxu1 %v11353_v44  ;;  %v11376_v35 = vld [vmem:[#allocation80_spill] sm:$0xff]  ;;  %v11377_v44 = vld [vmem:[#allocation79_spill] sm:$0xff] }
 0x402   :  { %2646 = vmatprep.subr.mxu0 %v11354_v6  ;;  %2717 = vmatprep.subr.mxu1 %v11355_v51  ;;  %v11378_v6 = vld [vmem:[#allocation82_spill] sm:$0xff]  ;;  %v11379_v51 = vld [vmem:[#allocation81_spill] sm:$0xff] }
 0x403   :  { %2647 = vmatpush1.msra.mxu0 %v11356_v42  ;;  %2718 = vmatpush1.msra.mxu1 %v11357_v38  ;;  %v11380_v42 = vld [vmem:[#allocation84_spill] sm:$0xff]  ;;  %v11381_v38 = vld [vmem:[#allocation83_spill] sm:$0xff] }
 0x404   :  { %2648 = vmatprep.subr.mxu0 %v11358_v40  ;;  %2719 = vmatprep.subr.mxu1 %v11359_v43  ;;  %v11382_v40 = vld [vmem:[#allocation85_spill] sm:$0xff]  ;;  %v11383_v43 = vld [vmem:[#allocation86_spill] sm:$0xff] }
 0x405   :  { %2649 = vmatpush1.msra.mxu0 %v11360_v46  ;;  %2720 = vmatpush1.msra.mxu1 %v11361_v48  ;;  %v11384_v46 = vld [vmem:[#allocation87_spill] sm:$0xff]  ;;  %v11385_v48 = vld [vmem:[#allocation150_spill] sm:$0xff] }
 0x406   :  { %2650 = vmatprep.subr.mxu0 %v11362_v50  ;;  %2721 = vmatprep.subr.mxu1 %v11363_v52  ;;  %v11386_v50 = vld [vmem:[#allocation152_spill] sm:$0xff]  ;;  %v11387_v52 = vld [vmem:[#allocation151_spill] sm:$0xff] }
 0x407   :  { %2651 = vmatpush1.msra.mxu0 %v11364_v15  ;;  %2722 = vmatpush1.msra.mxu1 %v11365_v18  ;;  %v11388_v15 = vld [vmem:[#allocation88_spill] sm:$0xff]  ;;  %v11389_v18 = vld [vmem:[#allocation89_spill] sm:$0xff] }
 0x408   :  { %2652 = vmatprep.subr.mxu0 %v11366_v54  ;;  %2723 = vmatprep.subr.mxu1 %v11367_v56  ;;  %v11390_v54 = vld [vmem:[#allocation90_spill] sm:$0xff]  ;;  %v11391_v56 = vld [vmem:[#allocation91_spill] sm:$0xff] }
 0x409   :  { %2653 = vmatpush1.msra.mxu0 %v11368_v31  ;;  %2724 = vmatpush1.msra.mxu1 %v11369_v30  ;;  %v11392_v31 = vld [vmem:[#allocation92_spill] sm:$0xff]  ;;  %v11393_v30 = vld [vmem:[#allocation93_spill] sm:$0xff] }
 0x40a   :  { %2654 = vmatprep.subr.mxu0 %v11370_v19  ;;  %2725 = vmatprep.subr.mxu1 %v11371_v34  ;;  %v11394_v19 = vld [vmem:[#allocation94_spill] sm:$0xff]  ;;  %v11395_v34 = vld [vmem:[#allocation95_spill] sm:$0xff] }
 0x40b   :  { %2655 = vmatpush1.msra.mxu0 %v11372_v33  ;;  %2726 = vmatpush1.msra.mxu1 %v11373_v23 }
 0x40c   :  { %2656 = vmatprep.subr.mxu0 %v11374_v28  ;;  %2727 = vmatprep.subr.mxu1 %v11375_v4 }
 0x40d   :  { %2657 = vmatpush1.msra.mxu0 %v11376_v35  ;;  %2728 = vmatpush1.msra.mxu1 %v11377_v44 }
 0x40e   :  { %2658 = vmatprep.subr.mxu0 %v11378_v6  ;;  %2729 = vmatprep.subr.mxu1 %v11379_v51 }
 0x40f   :  { %2659 = vmatpush1.msra.mxu0 %v11380_v42  ;;  %2730 = vmatpush1.msra.mxu1 %v11381_v38 }
 0x410   :  { %2660 = vmatprep.subr.mxu0 %v11382_v40  ;;  %2731 = vmatprep.subr.mxu1 %v11383_v43 }
 0x411   :  { %2661 = vmatpush1.msra.mxu0 %v11384_v46  ;;  %2732 = vmatpush1.msra.mxu1 %v11385_v48 }
 0x412   :  { %2662 = vmatprep.subr.mxu0 %v11386_v50  ;;  %2733 = vmatprep.subr.mxu1 %v11387_v52 }
 0x413   :  { %2663 = vmatpush1.msra.mxu0 %v11388_v15  ;;  %2734 = vmatpush1.msra.mxu1 %v11389_v18 }
 0x414   :  { %2664 = vmatprep.subr.mxu0 %v11390_v54  ;;  %2735 = vmatprep.subr.mxu1 %v11391_v56  ;;  %v11396_v56 = vld [vmem:[#allocation12_spill] sm:$0xff] }
 0x415   :  { %2665 = vmatpush1.msra.mxu0 %v11392_v31  ;;  %2698 = vmatprep.mubr.f32.mxu0 %v11035_v53 }
 0x416   :  { %2736 = vmatpush1.msra.mxu1 %v11393_v30  ;;  %2769 = vmatprep.mubr.f32.mxu1 %v11035_v53 }
 0x417   :  { %2782 = vmatprep.subr.mxu0 %v11394_v19  ;;  %2853 = vmatprep.subr.mxu1 %v11395_v34 }
 0x46d   :  { %v2158_v33 = vpop.f32.mrf.mxu0  ;;  %v2229_v4 = vpop.f32.mrf.mxu1 }
 0x46f   :  { %v2160_v23 = vpop.f32.mrf.mxu0  ;;  %v2231_v42 = vpop.f32.mrf.mxu1 }
 0x494   :  { %v2306_v28 = vpop.f32.mrf.mxu0  ;;  %v2377_v43 = vpop.f32.mrf.mxu1 }
 0x495   :  { %v2307_v35 = vadd.f32 %v2306_v28, %v2158_v33  ;;  %v2378_v48 = vadd.f32 %v2377_v43, %v2229_v4 }
 0x496   :  { %v2308_v44 = vpop.f32.mrf.mxu0  ;;  %v2379_v50 = vpop.f32.mrf.mxu1 }
 0x497   :  { %v2382_v6 = vadd.f32 %v2307_v35, %v7587_v41  ;;  %v2309_v51 = vadd.f32 %v2308_v44, %v2160_v23  ;;  %v2384_v52 = vadd.f32 %v2378_v48, %v7597_v7  ;;  %v2380_v15 = vadd.f32 %v2379_v50, %v2231_v42 }
 0x499   :  { %v5408_v38 = vmul.f32 -1.442695, %v2382_v6  ;;  %v2383_v40 = vadd.f32 %v2309_v51, %v7591_v47  ;;  %v5410_v18 = vmul.f32 -1.442695, %v2384_v52  ;;  %v2385_v31 = vadd.f32 %v2380_v15, %v11396_v56 }
 0x49b   :  { %5684 = vpow2.f32 %v5408_v38  ;;  %v5409_v46 = vmul.f32 -1.442695, %v2383_v40 }
 0x49d   :  { %5686 = vpow2.f32 %v5409_v46 }
 0x49e   :  { %5688 = vpow2.f32 %v5410_v18 }
 0x4a8   :  { %v5685_v54 = vpop.eup %5684 }
 0x4a9   :  { %v2395_v30 = vadd.f32 1.0, %v5685_v54 }
 0x4aa   :  { %v5687_v19 = vpop.eup %5686 }
 0x4ab   :  { %5690 = vrcp.f32 %v2395_v30  ;;  %v2396_v34 = vadd.f32 1.0, %v5687_v19  ;;  %v5689_v35 = vpop.eup %5688 }
 0x4ac   :  { %5692 = vtanh.f32 %v2385_v31  ;;  %v2397_v46 = vadd.f32 1.0, %v5689_v35 }
 0x4ad   :  { %5694 = vrcp.f32 %v2396_v34 }
 0x4b5   :  { %v2476_v33 = vpop.f32.mrf.mxu0  ;;  %v2547_v31 = vpop.f32.mrf.mxu1 }
 0x4b6   :  { %v2556_v23 = vrot.slane %v2476_v33, 5  ;;  %v2560_v28 = vrot.slane %v2476_v33, 6  ;;  %v2558_v33 = vrot.slane %v2547_v31, 5 }
 0x4b7   :  { %v2478_v4 = vpop.f32.mrf.mxu0 }
 0x4b8   :  { %v5691_v44 = vpop.eup %5690  ;;  %v2572_v6 = vadd.f32 %v2556_v23, %v11107_v29  ;;  %v2576_v51 = vadd.f32 %v2560_v28, %v7381_v17  ;;  %v2557_v38 = vrot.slane %v2478_v4, 5  ;;  %v2561_v40 = vrot.slane %v2478_v4, 6 }
 0x4b9   :  { %v5693_v42 = vpop.eup %5692  ;;  %v2562_v23 = vrot.slane %v2547_v31, 6  ;;  %v2574_v28 = vadd.f32 %v2558_v33, %v7393_v26  ;;  %v11398_v33 = vld [vmem:[#allocation97_spill] sm:$0xff] }
 0x4ba   :  { %v5695_v43 = vpop.eup %5694  ;;  %v5411_v48 = vmul.f32 -1.442695, %v2572_v6  ;;  %v5414_v50 = vmul.f32 -1.442695, %v2576_v51  ;;  %v2406_v15 = vmul.f32 %v5693_v42, %v5691_v44  ;;  %v2573_v18 = vadd.f32 %v2557_v38, %v11109_v55 }
 0x4bb   :  { %v2405_v52 = vmul.f32 %v5695_v43, %v8068_v11  ;;  %v2577_v54 = vadd.f32 %v2561_v40, %v11108_v37  ;;  %v2549_v11 = vpop.f32.mrf.mxu1  ;;  %v2578_v35 = vadd.f32 %v2562_v23, %v7397_v22  ;;  %v5413_v6 = vmul.f32 -1.442695, %v2574_v28  ;;  %v11399_v23 = vld [vmem:[#allocation98_spill] sm:$0xff]  ;;  %v11401_v28 = vld [vmem:[#allocation100_spill] sm:$0xff] }
 0x4bc   :  { %5696 = vpow2.f32 %v5411_v48  ;;  %v5412_v19 = vmul.f32 -1.442695, %v2573_v18  ;;  %v2559_v4 = vrot.slane %v2549_v11, 5  ;;  %v2563_v44 = vrot.slane %v2549_v11, 6  ;;  %v11400_v11 = vld [vmem:[#allocation99_spill] sm:$0xff] }
 0x4bd   :  { %v8451_v30 = vadd.f32 %v2406_v15, %v2405_v52  ;;  %5698 = vpow2.f32 %v5414_v50  ;;  %v5415_v34 = vmul.f32 -1.442695, %v2577_v54  ;;  %v5416_v51 = vmul.f32 -1.442695, %v2578_v35  ;;  %v11402_v35 = vld [vmem:[#allocation101_spill] sm:$0xff] }
 0x4be   :  { %5700 = vrcp.f32 %v2397_v46  ;;  %v2575_v38 = vadd.f32 %v2559_v4, %v7401_v61  ;;  %v2579_v43 = vadd.f32 %v2563_v44, %v7403_v20  ;;  %v11403_v4 = vld [vmem:[#allocation102_spill] sm:$0xff] }
 0x4bf   :  { %5702 = vtanh.f32 %v8451_v30  ;;  %v11407_v44 = vld [vmem:[#allocation106_spill] sm:$0xff] }
 0x4c0   :  { %5704 = vpow2.f32 %v5412_v19 }
 0x4c1   :  { %5706 = vpow2.f32 %v5415_v34  ;;  %v11397_v34 = vld [vmem:[#allocation96_spill] sm:$0xff] }
 0x4c2   :  { %5708 = vpow2.f32 %v5413_v6  ;;  %v11408_v6 = vld [vmem:[#allocation107_spill] sm:$0xff] }
 0x4c3   :  { %5710 = vpow2.f32 %v5416_v51  ;;  %v11409_v51 = vld [vmem:[#allocation108_spill] sm:$0xff] }
 0x4c4   :  { %5712 = vtanh.f32 %v2575_v38  ;;  %v11410_v38 = vld [vmem:[#allocation109_spill] sm:$0xff] }
 0x4c5   :  { %5714 = vtanh.f32 %v2579_v43 }
 0x4c9   :  { %v5697_v42 = vpop.eup %5696 }
 0x4ca   :  { %v5699_v40 = vpop.eup %5698  ;;  %v2598_v48 = vadd.f32 1.0, %v5697_v42 }
 0x4cb   :  { %v5701_v46 = vpop.eup %5700  ;;  %v2601_v52 = vadd.f32 1.0, %v5699_v40  ;;  %v11411_v40 = vld [vmem:[#allocation110_spill] sm:$0xff] }
 0x4cc   :  { %v5703_v50 = vpop.eup %5702  ;;  %5716 = vrcp.f32 %v2598_v48  ;;  %v11413_v48 = vld [vmem:[#allocation112_spill] sm:$0xff] }
 0x4cd   :  { %v2409_v15 = vmul.f32 %v5703_v50, %v5701_v46  ;;  %v5705_v18 = vpop.eup %5704  ;;  %5718 = vrcp.f32 %v2601_v52  ;;  %v11412_v46 = vld [vmem:[#allocation111_spill] sm:$0xff]  ;;  %v11414_v52 = vld [vmem:[#allocation113_spill] sm:$0xff] }
 0x4ce   :  { %v5707_v54 = vpop.eup %5706  ;;  %v2599_v31 = vadd.f32 1.0, %v5705_v18 }
 0x4cf   :  { %2699 = vmatmul.mubr.f32.vlgmr.msra.gmra.mxu0 %v2409_v15  ;;  %2770 = vmatmul.mubr.f32.vlgmr.msra.gmra.mxu1 %v2409_v15  ;;  %v2602_v19 = vadd.f32 1.0, %v5707_v54  ;;  %v5709_v42 = vpop.eup %5708  ;;  %v11415_v15 = vld [vmem:[#allocation114_spill] sm:$0xff]  ;;  %v11416_v54 = vld [vmem:[#allocation115_spill] sm:$0xff] }
 0x4d0   :  { %2783 = vmatpush1.msra.mxu0 %v8075_v62  ;;  %2854 = vmatpush1.msra.mxu1 %v8078_v3  ;;  %5720 = vrcp.f32 %v2599_v31  ;;  %v11404_v62 = vld [vmem:[#allocation103_spill] sm:$0xff]  ;;  %v11405_v3 = vld [vmem:[#allocation104_spill] sm:$0xff]  ;;  %v5711_v43 = vpop.eup %5710 }
 0x4d1   :  { %2784 = vmatprep.subr.mxu0 %v8081_v57  ;;  %2855 = vmatprep.subr.mxu1 %v11397_v34  ;;  %5722 = vrcp.f32 %v2602_v19  ;;  %v11406_v57 = vld [vmem:[#allocation105_spill] sm:$0xff]  ;;  %v5713_v50 = vpop.eup %5712  ;;  %v11417_v31 = vld [vmem:[#allocation116_spill] sm:$0xff] }
 0x4d2   :  { %2785 = vmatpush1.msra.mxu0 %v11398_v33  ;;  %2856 = vmatpush1.msra.mxu1 %v11399_v23  ;;  %v5715_v18 = vpop.eup %5714  ;;  %v11418_v34 = vld [vmem:[#allocation117_spill] sm:$0xff]  ;;  %v11419_v33 = vld [vmem:[#allocation118_spill] sm:$0xff] }
 0x4d3   :  { %2786 = vmatprep.subr.mxu0 %v11400_v11  ;;  %2857 = vmatprep.subr.mxu1 %v11401_v28  ;;  %v2620_v11 = vrot.slane %v8179_v1, 7  ;;  %v2600_v28 = vadd.f32 1.0, %v5709_v42 }
 0x4d4   :  { %2787 = vmatpush1.msra.mxu0 %v11402_v35  ;;  %2858 = vmatpush1.msra.mxu1 %v11403_v4  ;;  %v11420_v35 = vld [vmem:[#allocation119_spill] sm:$0xff]  ;;  %v11421_v4 = vld [vmem:[#allocation120_spill] sm:$0xff] }
 0x4d5   :  { %2788 = vmatprep.subr.mxu0 %v11404_v62  ;;  %2859 = vmatprep.subr.mxu1 %v11405_v3  ;;  %v2621_v3 = vrot.slane %v8187_v21, 7  ;;  %5724 = vrcp.f32 %v2600_v28  ;;  %v11444_v28 = vld [vmem:[#allocation143_spill] sm:$0xff] }
 0x4d6   :  { %2789 = vmatpush1.msra.mxu0 %v11406_v57  ;;  %2860 = vmatpush1.msra.mxu1 %v11407_v44  ;;  %v2603_v57 = vadd.f32 1.0, %v5711_v43  ;;  %v11422_v44 = vld [vmem:[#allocation121_spill] sm:$0xff] }
 0x4d7   :  { %2790 = vmatprep.subr.mxu0 %v11408_v6  ;;  %2861 = vmatprep.subr.mxu1 %v11409_v51  ;;  %v11430_v43 = vld [vmem:[#allocation129_spill] sm:$0xff] }
 0x4d8   :  { %2791 = vmatpush1.msra.mxu0 %v11410_v38  ;;  %2862 = vmatpush1.msra.mxu1 %v11411_v40  ;;  %5726 = vrcp.f32 %v2603_v57  ;;  %v11423_v40 = vld [vmem:[#allocation122_spill] sm:$0xff]  ;;  %v11448_v57 = vld [vmem:[#allocation147_spill] sm:$0xff] }
 0x4d9   :  { %2792 = vmatprep.subr.mxu0 %v11412_v46  ;;  %2863 = vmatprep.subr.mxu1 %v11413_v48  ;;  %v5717_v19 = vpop.eup %5716  ;;  %v11431_v46 = vld [vmem:[#allocation130_spill] sm:$0xff]  ;;  %v11432_v48 = vld [vmem:[#allocation131_spill] sm:$0xff] }
 0x4da   :  { %2793 = vmatpush1.msra.mxu0 %v11414_v52  ;;  %2864 = vmatpush1.msra.mxu1 %v11415_v15  ;;  %v5719_v23 = vpop.eup %5718  ;;  %v2626_v38 = vmul.f32 %v5717_v19, %v5713_v50  ;;  %v11433_v50 = vld [vmem:[#allocation132_spill] sm:$0xff]  ;;  %v11434_v52 = vld [vmem:[#allocation133_spill] sm:$0xff]  ;;  %v11435_v15 = vld [vmem:[#allocation134_spill] sm:$0xff] }
 0x4db   :  { %2794 = vmatprep.subr.mxu0 %v11416_v54  ;;  %2865 = vmatprep.subr.mxu1 %v11417_v31  ;;  %v2627_v42 = vmul.f32 %v5719_v23, %v5715_v18  ;;  %v11436_v18 = vld [vmem:[#allocation135_spill] sm:$0xff]  ;;  %v11437_v54 = vld [vmem:[#allocation136_spill] sm:$0xff]  ;;  %v11438_v31 = vld [vmem:[#allocation137_spill] sm:$0xff] }
 0x4dc   :  { %2795 = vmatpush1.msra.mxu0 %v11418_v34  ;;  %2866 = vmatpush1.msra.mxu1 %v11419_v33  ;;  %v11439_v19 = vld [vmem:[#allocation138_spill] sm:$0xff]  ;;  %v11440_v34 = vld [vmem:[#allocation139_spill] sm:$0xff]  ;;  %v11441_v33 = vld [vmem:[#allocation140_spill] sm:$0xff] }
 0x4dd   :  { %2796 = vmatprep.subr.mxu0 %v11420_v35  ;;  %2867 = vmatprep.subr.mxu1 %v11421_v4  ;;  %v5721_v62 = vpop.eup %5720  ;;  %v11442_v23 = vld [vmem:[#allocation141_spill] sm:$0xff]  ;;  %v11445_v35 = vld [vmem:[#allocation144_spill] sm:$0xff] }
 0x4de   :  { %2797 = vmatpush1.msra.mxu0 %v11422_v44  ;;  %2868 = vmatpush1.msra.mxu1 %v8164_v13  ;;  %v5723_v6 = vpop.eup %5722  ;;  %v2624_v51 = vmul.f32 %v5721_v62, %v2620_v11  ;;  %v11443_v11 = vld [vmem:[#allocation142_spill] sm:$0xff]  ;;  %v11446_v4 = vld [vmem:[#allocation145_spill] sm:$0xff] }
 0x4df   :  { %2798 = vmatprep.subr.mxu0 %v8167_v27  ;;  %2869 = vmatprep.subr.mxu1 %v8170_v60  ;;  %v2625_v1 = vmul.f32 %v5723_v6, %v2621_v3  ;;  %v11424_v27 = vld [vmem:[#allocation123_spill] sm:$0xff]  ;;  %v11425_v60 = vld [vmem:[#allocation124_spill] sm:$0xff]  ;;  %v11447_v3 = vld [vmem:[#allocation146_spill] sm:$0xff] }
 0x4e0   :  { %2799 = vmatpush1.msra.mxu0 %v8173_v39  ;;  %2870 = vmatpush1.msra.mxu1 %v8176_v12  ;;  %v8494_v21 = vadd.f32 %v2626_v38, %v2624_v51  ;;  %v11426_v39 = vld [vmem:[#allocation125_spill] sm:$0xff]  ;;  %v11427_v12 = vld [vmem:[#allocation126_spill] sm:$0xff] }
 0x4e1   :  { %2800 = vmatprep.subr.mxu0 %v8181_v10  ;;  %2871 = vmatprep.subr.mxu1 %v8184_v14  ;;  %v8498_v13 = vadd.f32 %v2627_v42, %v2625_v1  ;;  %v11428_v10 = vld [vmem:[#allocation127_spill] sm:$0xff]  ;;  %v11429_v14 = vld [vmem:[#allocation128_spill] sm:$0xff] }
 0x4e2   :  { %2801 = vmatpush1.msra.mxu0 %v11423_v40  ;;  %2872 = vmatpush1.msra.mxu1 %v11424_v27  ;;  %5728 = vtanh.f32 %v8494_v21  ;;  %v5725_v62 = vpop.eup %5724  ;;  %v8530_v51 = vld [vmem:[#allocation2 + $0x1e8] sm:$0xff]  ;;  %v8533_v38 = vld [vmem:[#allocation2 + $0x1f8] sm:$0xff] }
 0x4e3   :  { %2802 = vmatprep.subr.mxu0 %v11425_v60  ;;  %2873 = vmatprep.subr.mxu1 %v11426_v39  ;;  %5730 = vtanh.f32 %v8498_v13 }
 0x4e4   :  { %2803 = vmatpush1.msra.mxu0 %v11427_v12  ;;  %2874 = vmatpush1.msra.mxu1 %v11428_v10  ;;  %v8542_v12 = vld [vmem:[#allocation2 + $0x1f0] sm:$0xff]  ;;  %v8546_v10 = vld [vmem:[#allocation2 + $0x1d8] sm:$0xff] }
 0x4e5   :  { %2804 = vmatprep.subr.mxu0 %v11429_v14  ;;  %2875 = vmatprep.subr.mxu1 %v11430_v43  ;;  %v5727_v44 = vpop.eup %5726  ;;  %v8550_v14 = vld [vmem:[#allocation2 + $0x1d0] sm:$0xff]  ;;  %v8554_v43 = vld [vmem:[#allocation2 + $0x1b8] sm:$0xff] }
 0x4e6   :  { %2805 = vmatpush1.msra.mxu0 %v11431_v46  ;;  %2876 = vmatpush1.msra.mxu1 %v11432_v48  ;;  %v8607_v46 = vld [vmem:[#allocation2 + $0xe0] sm:$0xff]  ;;  %v8616_v48 = vld [vmem:[#allocation2 + $0xd8] sm:$0xff] }
 0x4e7   :  { %2806 = vmatprep.subr.mxu0 %v11433_v50  ;;  %2877 = vmatprep.subr.mxu1 %v11434_v52  ;;  %v8619_v50 = vld [vmem:[#allocation2 + $0xc0] sm:$0xff]  ;;  %v8622_v52 = vld [vmem:[#allocation2 + $0xd0] sm:$0xff] }
 0x4e8   :  { %2807 = vmatpush1.msra.mxu0 %v11435_v15  ;;  %2878 = vmatpush1.msra.mxu1 %v11436_v18  ;;  %v8625_v15 = vld [vmem:[#allocation2 + $0xa8] sm:$0xff]  ;;  %v8628_v18 = vld [vmem:[#allocation2 + $0xb8] sm:$0xff] }
 0x4e9   :  { %2808 = vmatprep.subr.mxu0 %v11437_v54  ;;  %2879 = vmatprep.subr.mxu1 %v11438_v31  ;;  %v8631_v54 = vld [vmem:[#allocation2 + $0xa0] sm:$0xff]  ;;  %v8634_v31 = vld [vmem:[#allocation2 + $0xb0] sm:$0xff] }
 0x4ea   :  { %2809 = vmatpush1.msra.mxu0 %v11439_v19  ;;  %2880 = vmatpush1.msra.mxu1 %v11440_v34  ;;  %v8637_v19 = vld [vmem:[#allocation2 + $0x88] sm:$0xff]  ;;  %v8640_v34 = vld [vmem:[#allocation2 + $0x98] sm:$0xff] }
 0x4eb   :  { %2810 = vmatprep.subr.mxu0 %v11441_v33  ;;  %2881 = vmatprep.subr.mxu1 %v11442_v23  ;;  %11449 = vst [vmem:[#allocation148_spill] sm:$0xff] %v8637_v19  ;;  %11450 = vst [vmem:[#allocation149_spill] sm:$0xff] %v8640_v34  ;;  %v8643_v33 = vld [vmem:[#allocation2 + $0x80] sm:$0xff]  ;;  %v8646_v23 = vld [vmem:[#allocation2 + $0x90] sm:$0xff] }
 0x4ec   :  { %2811 = vmatpush1.msra.mxu0 %v11443_v11  ;;  %2882 = vmatpush1.msra.mxu1 %v11444_v28  ;;  %11451 = vst [vmem:[#allocation17_spill] sm:$0xff] %v8643_v33  ;;  %11452 = vst [vmem:[#allocation13_spill] sm:$0xff] %v8646_v23  ;;  %v8649_v11 = vld [vmem:[#allocation2 + $0x68] sm:$0xff]  ;;  %v8652_v28 = vld [vmem:[#allocation2 + $0x78] sm:$0xff] }
 0x4ed   :  { %2812 = vmatprep.subr.mxu0 %v11445_v35  ;;  %2883 = vmatprep.subr.mxu1 %v11446_v4  ;;  %11453 = vst [vmem:[#allocation18_spill] sm:$0xff] %v8649_v11  ;;  %11454 = vst [vmem:[#allocation14_spill] sm:$0xff] %v8652_v28  ;;  %v8655_v35 = vld [vmem:[#allocation2 + $0x60] sm:$0xff]  ;;  %v8658_v4 = vld [vmem:[#allocation2 + $0x70] sm:$0xff] }
 0x4ee   :  { %2813 = vmatpush1.msra.mxu0 %v11447_v3  ;;  %2884 = vmatpush1.msra.mxu1 %v11448_v57  ;;  %11455 = vst [vmem:[#allocation19_spill] sm:$0xff] %v8655_v35  ;;  %11456 = vst [vmem:[#allocation15_spill] sm:$0xff] %v8658_v4  ;;  %v8664_v3 = vld [vmem:[#allocation2 + $0x58] sm:$0xff]  ;;  %v8667_v57 = vld [vmem:[#allocation2 + $0x40] sm:$0xff] }
 0x4ef   :  { %2846 = vmatprep.mubr.f32.mxu0 %v11035_v53  ;;  %2917 = vmatprep.mubr.f32.mxu1 %v11035_v53  ;;  %v5729_v6 = vpop.eup %5728  ;;  %11458 = vst [vmem:[#allocation16_spill] sm:$0xff] %v8664_v3  ;;  %11459 = vst [vmem:[#allocation21_spill] sm:$0xff] %v8667_v57 }
 0x4f0   :  { %2952 = vmatprep.subr.mxu0 %v8530_v51  ;;  %3023 = vmatprep.subr.mxu1 %v8533_v38  ;;  %v5731_v1 = vpop.eup %5730  ;;  %v2632_v42 = vmul.f32 %v5729_v6, %v5725_v62  ;;  %v8661_v62 = vld [vmem:[#allocation2 + $0x48] sm:$0xff] }
 0x4f1   :  { %v2633_v40 = vmul.f32 %v5731_v1, %v5727_v44  ;;  %11457 = vst [vmem:[#allocation20_spill] sm:$0xff] %v8661_v62  ;;  %v8670_v44 = vld [vmem:[#allocation2 + $0x50] sm:$0xff]  ;;  %v8673_v6 = vld [vmem:[#allocation2 + $0x28] sm:$0xff]  ;;  %v8676_v1 = vld [vmem:[#allocation2 + $0x38] sm:$0xff] }
 0x4f2   :  { %v2778_v27 = vrot.slane %v2632_v42, 3  ;;  %11460 = vst [vmem:[#allocation22_spill] sm:$0xff] %v8670_v44  ;;  %11461 = vst [vmem:[#allocation24_spill] sm:$0xff] %v8673_v6  ;;  %v8679_v42 = vld [vmem:[#allocation2 + $0x20] sm:$0xff] }
 0x4f3   :  { %v2779_v60 = vrot.slane %v2633_v40, 2  ;;  %11462 = vst [vmem:[#allocation23_spill] sm:$0xff] %v8676_v1  ;;  %11463 = vst [vmem:[#allocation26_spill] sm:$0xff] %v8679_v42  ;;  %v8682_v40 = vld [vmem:[#allocation2 + $0x30] sm:$0xff] }
 0x4f4   :  { %11464 = vst [vmem:[#allocation25_spill] sm:$0xff] %v8682_v40 }
 0x4f5   :  { %v8537_v39 = vsel %vm1137_vm4, %v2779_v60, %v2778_v27  ;;  %v8685_v27 = vld [vmem:[#allocation2 + $0x8] sm:$0xff]  ;;  %v8688_v60 = vld [vmem:[#allocation2 + $0x18] sm:$0xff] }
 0x4f6   :  { %2847 = vmatmul.mubr.f32.vlgmr.msra.gmra.mxu0 %v8537_v39  ;;  %2918 = vmatmul.mubr.f32.vlgmr.msra.gmra.mxu1 %v8537_v39  ;;  %11465 = vst [vmem:[#allocation28_spill] sm:$0xff] %v8685_v27  ;;  %11466 = vst [vmem:[#allocation27_spill] sm:$0xff] %v8688_v60 }
 0x4f7   :  { %2953 = vmatpush1.msra.mxu0 %v8278_v49  ;;  %3024 = vmatpush1.msra.mxu1 %v8542_v12  ;;  %v8558_v49 = vld [vmem:[#allocation2 + $0x1b0] sm:$0xff] }
 0x4f8   :  { %2954 = vmatprep.subr.mxu0 %v8282_v8  ;;  %3025 = vmatprep.subr.mxu1 %v8546_v10  ;;  %v8562_v8 = vld [vmem:[#allocation2 + $0x198] sm:$0xff] }
 0x4f9   :  { %2955 = vmatpush1.msra.mxu0 %v8286_v9  ;;  %3026 = vmatpush1.msra.mxu1 %v8550_v14  ;;  %v8566_v9 = vld [vmem:[#allocation2 + $0x190] sm:$0xff] }
 0x4fa   :  { %2956 = vmatprep.subr.mxu0 %v8290_v58  ;;  %3027 = vmatprep.subr.mxu1 %v8554_v43  ;;  %v8570_v58 = vld [vmem:[#allocation2 + $0x178] sm:$0xff] }
 0x4fb   :  { %2957 = vmatpush1.msra.mxu0 %v8294_v45  ;;  %3028 = vmatpush1.msra.mxu1 %v8558_v49  ;;  %v8574_v45 = vld [vmem:[#allocation2 + $0x170] sm:$0xff] }
 0x4fc   :  { %2958 = vmatprep.subr.mxu0 %v8298_v16  ;;  %3029 = vmatprep.subr.mxu1 %v8562_v8  ;;  %v8578_v16 = vld [vmem:[#allocation2 + $0x158] sm:$0xff] }
 0x4fd   :  { %2959 = vmatpush1.msra.mxu0 %v8302_v24  ;;  %3030 = vmatpush1.msra.mxu1 %v8566_v9  ;;  %v8582_v24 = vld [vmem:[#allocation2 + $0x150] sm:$0xff] }
 0x4fe   :  { %2960 = vmatprep.subr.mxu0 %v8306_v63  ;;  %3031 = vmatprep.subr.mxu1 %v8570_v58  ;;  %v8586_v63 = vld [vmem:[#allocation2 + $0x138] sm:$0xff] }
 0x4ff   :  { %2961 = vmatpush1.msra.mxu0 %v8310_v5  ;;  %3032 = vmatpush1.msra.mxu1 %v8574_v45  ;;  %v8590_v5 = vld [vmem:[#allocation2 + $0x130] sm:$0xff] }
 0x500   :  { %2962 = vmatprep.subr.mxu0 %v8314_v2  ;;  %3033 = vmatprep.subr.mxu1 %v8578_v16  ;;  %v8594_v2 = vld [vmem:[#allocation2 + $0x118] sm:$0xff] }
 0x501   :  { %2963 = vmatpush1.msra.mxu0 %v8318_v0  ;;  %3034 = vmatpush1.msra.mxu1 %v8582_v24  ;;  %v8598_v0 = vld [vmem:[#allocation2 + $0x110] sm:$0xff] }
 0x502   :  { %2964 = vmatprep.subr.mxu0 %v8322_v32  ;;  %3035 = vmatprep.subr.mxu1 %v8586_v63  ;;  %v8601_v32 = vld [vmem:[#allocation2 + $0xe8] sm:$0xff] }
 0x503   :  { %2965 = vmatpush1.msra.mxu0 %v8326_v25  ;;  %3036 = vmatpush1.msra.mxu1 %v8590_v5  ;;  %v8604_v25 = vld [vmem:[#allocation2 + $0xf8] sm:$0xff] }
 0x504   :  { %2966 = vmatprep.subr.mxu0 %v8330_v59  ;;  %3037 = vmatprep.subr.mxu1 %v8594_v2  ;;  %v8610_v59 = vld [vmem:[#allocation2 + $0xf0] sm:$0xff] }
 0x505   :  { %2967 = vmatpush1.msra.mxu0 %v8334_v36  ;;  %3038 = vmatpush1.msra.mxu1 %v8598_v0  ;;  %v8613_v36 = vld [vmem:[#allocation2 + $0xc8] sm:$0xff] }
 0x506   :  { %2968 = vmatprep.subr.mxu0 %v8601_v32  ;;  %3039 = vmatprep.subr.mxu1 %v8604_v25 }
 0x507   :  { %2969 = vmatpush1.msra.mxu0 %v8607_v46  ;;  %3040 = vmatpush1.msra.mxu1 %v8610_v59 }
 0x508   :  { %2970 = vmatprep.subr.mxu0 %v8613_v36  ;;  %3041 = vmatprep.subr.mxu1 %v8616_v48 }
 0x509   :  { %2971 = vmatpush1.msra.mxu0 %v8619_v50  ;;  %3042 = vmatpush1.msra.mxu1 %v8622_v52 }
 0x50a   :  { %2972 = vmatprep.subr.mxu0 %v8625_v15  ;;  %3043 = vmatprep.subr.mxu1 %v8628_v18 }
 0x50b   :  { %2973 = vmatpush1.msra.mxu0 %v8631_v54  ;;  %3044 = vmatpush1.msra.mxu1 %v8634_v31 }
 0x50c   :  { %2974 = vmatprep.subr.mxu0 %v8637_v19  ;;  %3045 = vmatprep.subr.mxu1 %v8640_v34 }
 0x50d   :  { %2975 = vmatpush1.msra.mxu0 %v8643_v33  ;;  %3046 = vmatpush1.msra.mxu1 %v8646_v23 }
 0x50e   :  { %2976 = vmatprep.subr.mxu0 %v8649_v11  ;;  %3047 = vmatprep.subr.mxu1 %v8652_v28 }
 0x50f   :  { %2977 = vmatpush1.msra.mxu0 %v8655_v35  ;;  %3048 = vmatpush1.msra.mxu1 %v8658_v4 }
 0x510   :  { %2978 = vmatprep.subr.mxu0 %v8661_v62  ;;  %3049 = vmatprep.subr.mxu1 %v8664_v3 }
 0x511   :  { %2979 = vmatpush1.msra.mxu0 %v8667_v57  ;;  %3050 = vmatpush1.msra.mxu1 %v8670_v44 }
 0x512   :  { %2980 = vmatprep.subr.mxu0 %v8673_v6  ;;  %3051 = vmatprep.subr.mxu1 %v8676_v1  ;;  %v8691_v6 = vld [vmem:[#allocation2] sm:$0xff]  ;;  %v8695_v1 = vld [vmem:[#allocation2 + $0x10] sm:$0xff] }
 0x513   :  { %2981 = vmatpush1.msra.mxu0 %v8679_v42  ;;  %3052 = vmatpush1.msra.mxu1 %v8682_v40  ;;  %11467 = vst [vmem:[#allocation30_spill] sm:$0xff] %v8691_v6  ;;  %11468 = vst [vmem:[#allocation29_spill] sm:$0xff] %v8695_v1  ;;  %v8710_v40 = vld [vmem:[#allocation7 + $0x1f0] sm:$0xff] }
 0x514   :  { %2982 = vmatprep.subr.mxu0 %v8685_v27  ;;  %3053 = vmatprep.subr.mxu1 %v8688_v60  ;;  %v8701_v27 = vld [vmem:[#allocation7 + $0x1e8] sm:$0xff]  ;;  %v8704_v60 = vld [vmem:[#allocation7 + $0x1f8] sm:$0xff]  ;;  %11472 = vst [vmem:[#allocation33_spill] sm:$0xff] %v8710_v40 }
 0x515   :  { %2983 = vmatpush1.msra.mxu0 %v8691_v6  ;;  %3016 = vmatprep.mubr.f32.mxu0 %v11035_v53  ;;  %11469 = vst [vmem:[#allocation32_spill] sm:$0xff] %v8701_v27  ;;  %11470 = vst [vmem:[#allocation31_spill] sm:$0xff] %v8704_v60  ;;  %v8707_v6 = vld [vmem:[#allocation7 + $0x1e0] sm:$0xff] }
 0x516   :  { %3054 = vmatpush1.msra.mxu1 %v8695_v1  ;;  %3087 = vmatprep.mubr.f32.mxu1 %v11035_v53  ;;  %11471 = vst [vmem:[#allocation34_spill] sm:$0xff] %v8707_v6  ;;  %v8713_v1 = vld [vmem:[#allocation7 + $0x1c8] sm:$0xff] }
 0x517   :  { %3017 = vmatmul.mubr.f32.vlgmr.msra.gmra.mxu0 %v8537_v39  ;;  %3088 = vmatmul.mubr.f32.vlgmr.msra.gmra.mxu1 %v8537_v39  ;;  %11473 = vst [vmem:[#allocation36_spill] sm:$0xff] %v8713_v1  ;;  %v8716_v39 = vld [vmem:[#allocation7 + $0x1d8] sm:$0xff] }
 0x518   :  { %3176 = vmatprep.subr.mxu0 %v8701_v27  ;;  %3247 = vmatprep.subr.mxu1 %v8704_v60  ;;  %11474 = vst [vmem:[#allocation35_spill] sm:$0xff] %v8716_v39  ;;  %v8719_v27 = vld [vmem:[#allocation7 + $0x1c0] sm:$0xff]  ;;  %v8722_v60 = vld [vmem:[#allocation7 + $0x1d0] sm:$0xff] }
 0x519   :  { %3177 = vmatpush1.msra.mxu0 %v8707_v6  ;;  %3248 = vmatpush1.msra.mxu1 %v8710_v40  ;;  %11475 = vst [vmem:[#allocation38_spill] sm:$0xff] %v8719_v27  ;;  %11476 = vst [vmem:[#allocation37_spill] sm:$0xff] %v8722_v60  ;;  %v8725_v6 = vld [vmem:[#allocation7 + $0x1a8] sm:$0xff]  ;;  %v8728_v40 = vld [vmem:[#allocation7 + $0x1b8] sm:$0xff] }
 0x51a   :  { %3178 = vmatprep.subr.mxu0 %v8713_v1  ;;  %3249 = vmatprep.subr.mxu1 %v8716_v39  ;;  %11477 = vst [vmem:[#allocation40_spill] sm:$0xff] %v8725_v6  ;;  %11478 = vst [vmem:[#allocation39_spill] sm:$0xff] %v8728_v40  ;;  %v8731_v1 = vld [vmem:[#allocation7 + $0x1a0] sm:$0xff]  ;;  %v8734_v39 = vld [vmem:[#allocation7 + $0x1b0] sm:$0xff] }
 0x51b   :  { %3179 = vmatpush1.msra.mxu0 %v8719_v27  ;;  %3250 = vmatpush1.msra.mxu1 %v8722_v60  ;;  %11479 = vst [vmem:[#allocation42_spill] sm:$0xff] %v8731_v1  ;;  %11480 = vst [vmem:[#allocation41_spill] sm:$0xff] %v8734_v39  ;;  %v8737_v27 = vld [vmem:[#allocation7 + $0x188] sm:$0xff]  ;;  %v8740_v60 = vld [vmem:[#allocation7 + $0x198] sm:$0xff] }
 0x51c   :  { %3180 = vmatprep.subr.mxu0 %v8725_v6  ;;  %3251 = vmatprep.subr.mxu1 %v8728_v40  ;;  %11481 = vst [vmem:[#allocation44_spill] sm:$0xff] %v8737_v27  ;;  %11482 = vst [vmem:[#allocation43_spill] sm:$0xff] %v8740_v60  ;;  %v8743_v6 = vld [vmem:[#allocation7 + $0x180] sm:$0xff]  ;;  %v8746_v40 = vld [vmem:[#allocation7 + $0x190] sm:$0xff] }
 0x51d   :  { %3181 = vmatpush1.msra.mxu0 %v8731_v1  ;;  %3252 = vmatpush1.msra.mxu1 %v8734_v39  ;;  %11483 = vst [vmem:[#allocation46_spill] sm:$0xff] %v8743_v6  ;;  %11484 = vst [vmem:[#allocation45_spill] sm:$0xff] %v8746_v40  ;;  %v8749_v1 = vld [vmem:[#allocation7 + $0x168] sm:$0xff]  ;;  %v8752_v39 = vld [vmem:[#allocation7 + $0x178] sm:$0xff] }
 0x51e   :  { %3182 = vmatprep.subr.mxu0 %v8737_v27  ;;  %3253 = vmatprep.subr.mxu1 %v8740_v60  ;;  %11485 = vst [vmem:[#allocation48_spill] sm:$0xff] %v8749_v1  ;;  %11486 = vst [vmem:[#allocation47_spill] sm:$0xff] %v8752_v39  ;;  %v8755_v27 = vld [vmem:[#allocation7 + $0x160] sm:$0xff]  ;;  %v8758_v60 = vld [vmem:[#allocation7 + $0x170] sm:$0xff] }
 0x51f   :  { %3183 = vmatpush1.msra.mxu0 %v8743_v6  ;;  %3254 = vmatpush1.msra.mxu1 %v8746_v40  ;;  %11487 = vst [vmem:[#allocation50_spill] sm:$0xff] %v8755_v27  ;;  %11488 = vst [vmem:[#allocation49_spill] sm:$0xff] %v8758_v60  ;;  %v8761_v6 = vld [vmem:[#allocation7 + $0x148] sm:$0xff]  ;;  %v8764_v40 = vld [vmem:[#allocation7 + $0x158] sm:$0xff] }
 0x520   :  { %3184 = vmatprep.subr.mxu0 %v8749_v1  ;;  %3255 = vmatprep.subr.mxu1 %v8752_v39  ;;  %11489 = vst [vmem:[#allocation52_spill] sm:$0xff] %v8761_v6  ;;  %11490 = vst [vmem:[#allocation51_spill] sm:$0xff] %v8764_v40  ;;  %v8767_v1 = vld [vmem:[#allocation7 + $0x140] sm:$0xff]  ;;  %v8770_v39 = vld [vmem:[#allocation7 + $0x150] sm:$0xff] }
 0x521   :  { %3185 = vmatpush1.msra.mxu0 %v8755_v27  ;;  %3256 = vmatpush1.msra.mxu1 %v8758_v60  ;;  %11491 = vst [vmem:[#allocation54_spill] sm:$0xff] %v8767_v1  ;;  %11492 = vst [vmem:[#allocation53_spill] sm:$0xff] %v8770_v39  ;;  %v8773_v27 = vld [vmem:[#allocation7 + $0x128] sm:$0xff]  ;;  %v8776_v60 = vld [vmem:[#allocation7 + $0x138] sm:$0xff] }
 0x522   :  { %3186 = vmatprep.subr.mxu0 %v8761_v6  ;;  %3257 = vmatprep.subr.mxu1 %v8764_v40  ;;  %11493 = vst [vmem:[#allocation56_spill] sm:$0xff] %v8773_v27  ;;  %11494 = vst [vmem:[#allocation55_spill] sm:$0xff] %v8776_v60  ;;  %v8779_v6 = vld [vmem:[#allocation7 + $0x120] sm:$0xff]  ;;  %v8782_v40 = vld [vmem:[#allocation7 + $0x130] sm:$0xff] }
 0x523   :  { %3187 = vmatpush1.msra.mxu0 %v8767_v1  ;;  %3258 = vmatpush1.msra.mxu1 %v8770_v39  ;;  %11495 = vst [vmem:[#allocation58_spill] sm:$0xff] %v8779_v6  ;;  %11496 = vst [vmem:[#allocation57_spill] sm:$0xff] %v8782_v40  ;;  %v8785_v1 = vld [vmem:[#allocation7 + $0x108] sm:$0xff]  ;;  %v8788_v39 = vld [vmem:[#allocation7 + $0x118] sm:$0xff] }
 0x524   :  { %3188 = vmatprep.subr.mxu0 %v8773_v27  ;;  %3259 = vmatprep.subr.mxu1 %v8776_v60  ;;  %11497 = vst [vmem:[#allocation60_spill] sm:$0xff] %v8785_v1  ;;  %11498 = vst [vmem:[#allocation59_spill] sm:$0xff] %v8788_v39  ;;  %v8791_v27 = vld [vmem:[#allocation7 + $0x100] sm:$0xff]  ;;  %v8794_v60 = vld [vmem:[#allocation7 + $0x110] sm:$0xff] }
 0x525   :  { %3189 = vmatpush1.msra.mxu0 %v8779_v6  ;;  %3260 = vmatpush1.msra.mxu1 %v8782_v40  ;;  %11499 = vst [vmem:[#allocation62_spill] sm:$0xff] %v8791_v27  ;;  %11500 = vst [vmem:[#allocation61_spill] sm:$0xff] %v8794_v60  ;;  %v8797_v6 = vld [vmem:[#allocation7 + $0xe8] sm:$0xff]  ;;  %v8800_v40 = vld [vmem:[#allocation7 + $0xf8] sm:$0xff] }
 0x526   :  { %3190 = vmatprep.subr.mxu0 %v8785_v1  ;;  %3261 = vmatprep.subr.mxu1 %v8788_v39  ;;  %11501 = vst [vmem:[#allocation64_spill] sm:$0xff] %v8797_v6  ;;  %11502 = vst [vmem:[#allocation63_spill] sm:$0xff] %v8800_v40  ;;  %v8803_v1 = vld [vmem:[#allocation7 + $0xe0] sm:$0xff]  ;;  %v8806_v39 = vld [vmem:[#allocation7 + $0xf0] sm:$0xff] }
 0x527   :  { %3191 = vmatpush1.msra.mxu0 %v8791_v27  ;;  %3262 = vmatpush1.msra.mxu1 %v8794_v60  ;;  %11503 = vst [vmem:[#allocation66_spill] sm:$0xff] %v8803_v1  ;;  %11504 = vst [vmem:[#allocation65_spill] sm:$0xff] %v8806_v39  ;;  %v8809_v27 = vld [vmem:[#allocation7 + $0xc8] sm:$0xff]  ;;  %v8812_v60 = vld [vmem:[#allocation7 + $0xd8] sm:$0xff] }
 0x528   :  { %3192 = vmatprep.subr.mxu0 %v8797_v6  ;;  %3263 = vmatprep.subr.mxu1 %v8800_v40  ;;  %11505 = vst [vmem:[#allocation68_spill] sm:$0xff] %v8809_v27  ;;  %11506 = vst [vmem:[#allocation67_spill] sm:$0xff] %v8812_v60  ;;  %v8815_v6 = vld [vmem:[#allocation7 + $0xc0] sm:$0xff]  ;;  %v8818_v40 = vld [vmem:[#allocation7 + $0xd0] sm:$0xff] }
 0x529   :  { %3193 = vmatpush1.msra.mxu0 %v8803_v1  ;;  %3264 = vmatpush1.msra.mxu1 %v8806_v39  ;;  %11507 = vst [vmem:[#allocation70_spill] sm:$0xff] %v8815_v6  ;;  %11508 = vst [vmem:[#allocation69_spill] sm:$0xff] %v8818_v40  ;;  %v8821_v1 = vld [vmem:[#allocation7 + $0xa8] sm:$0xff]  ;;  %v8824_v39 = vld [vmem:[#allocation7 + $0xb8] sm:$0xff] }
 0x52a   :  { %3194 = vmatprep.subr.mxu0 %v8809_v27  ;;  %3265 = vmatprep.subr.mxu1 %v8812_v60  ;;  %11509 = vst [vmem:[#allocation72_spill] sm:$0xff] %v8821_v1  ;;  %11510 = vst [vmem:[#allocation71_spill] sm:$0xff] %v8824_v39  ;;  %v8827_v27 = vld [vmem:[#allocation7 + $0xa0] sm:$0xff]  ;;  %v8830_v60 = vld [vmem:[#allocation7 + $0xb0] sm:$0xff] }
 0x52b   :  { %3195 = vmatpush1.msra.mxu0 %v8815_v6  ;;  %3266 = vmatpush1.msra.mxu1 %v8818_v40  ;;  %11511 = vst [vmem:[#allocation74_spill] sm:$0xff] %v8827_v27  ;;  %11512 = vst [vmem:[#allocation73_spill] sm:$0xff] %v8830_v60  ;;  %v8833_v6 = vld [vmem:[#allocation7 + $0x88] sm:$0xff]  ;;  %v8836_v40 = vld [vmem:[#allocation7 + $0x98] sm:$0xff] }
 0x52c   :  { %3196 = vmatprep.subr.mxu0 %v8821_v1  ;;  %3267 = vmatprep.subr.mxu1 %v8824_v39  ;;  %11513 = vst [vmem:[#allocation76_spill] sm:$0xff] %v8833_v6  ;;  %11514 = vst [vmem:[#allocation75_spill] sm:$0xff] %v8836_v40  ;;  %v8839_v1 = vld [vmem:[#allocation7 + $0x80] sm:$0xff]  ;;  %v8842_v39 = vld [vmem:[#allocation7 + $0x90] sm:$0xff] }
 0x52d   :  { %3197 = vmatpush1.msra.mxu0 %v8827_v27  ;;  %3268 = vmatpush1.msra.mxu1 %v8830_v60  ;;  %11515 = vst [vmem:[#allocation78_spill] sm:$0xff] %v8839_v1  ;;  %11516 = vst [vmem:[#allocation77_spill] sm:$0xff] %v8842_v39  ;;  %v8845_v27 = vld [vmem:[#allocation7 + $0x68] sm:$0xff]  ;;  %v8848_v60 = vld [vmem:[#allocation7 + $0x78] sm:$0xff] }
 0x52e   :  { %3198 = vmatprep.subr.mxu0 %v8833_v6  ;;  %3269 = vmatprep.subr.mxu1 %v8836_v40  ;;  %11517 = vst [vmem:[#allocation80_spill] sm:$0xff] %v8845_v27  ;;  %11518 = vst [vmem:[#allocation79_spill] sm:$0xff] %v8848_v60  ;;  %v8851_v6 = vld [vmem:[#allocation7 + $0x60] sm:$0xff]  ;;  %v8854_v40 = vld [vmem:[#allocation7 + $0x70] sm:$0xff] }
 0x52f   :  { %3199 = vmatpush1.msra.mxu0 %v8839_v1  ;;  %3270 = vmatpush1.msra.mxu1 %v8842_v39  ;;  %11519 = vst [vmem:[#allocation82_spill] sm:$0xff] %v8851_v6  ;;  %11520 = vst [vmem:[#allocation81_spill] sm:$0xff] %v8854_v40  ;;  %v8857_v1 = vld [vmem:[#allocation7 + $0x48] sm:$0xff]  ;;  %v8860_v39 = vld [vmem:[#allocation7 + $0x58] sm:$0xff] }
 0x530   :  { %3200 = vmatprep.subr.mxu0 %v8845_v27  ;;  %3271 = vmatprep.subr.mxu1 %v8848_v60  ;;  %11521 = vst [vmem:[#allocation84_spill] sm:$0xff] %v8857_v1  ;;  %11522 = vst [vmem:[#allocation83_spill] sm:$0xff] %v8860_v39  ;;  %v8863_v27 = vld [vmem:[#allocation7 + $0x40] sm:$0xff]  ;;  %v8866_v60 = vld [vmem:[#allocation7 + $0x50] sm:$0xff] }
 0x531   :  { %3201 = vmatpush1.msra.mxu0 %v8851_v6  ;;  %3272 = vmatpush1.msra.mxu1 %v8854_v40  ;;  %11523 = vst [vmem:[#allocation85_spill] sm:$0xff] %v8863_v27  ;;  %11524 = vst [vmem:[#allocation86_spill] sm:$0xff] %v8866_v60  ;;  %v8869_v6 = vld [vmem:[#allocation7 + $0x28] sm:$0xff]  ;;  %v8872_v40 = vld [vmem:[#allocation7 + $0x38] sm:$0xff] }
 0x532   :  { %3202 = vmatprep.subr.mxu0 %v8857_v1  ;;  %3273 = vmatprep.subr.mxu1 %v8860_v39  ;;  %11525 = vst [vmem:[#allocation87_spill] sm:$0xff] %v8869_v6  ;;  %11526 = vst [vmem:[#allocation150_spill] sm:$0xff] %v8872_v40  ;;  %v8875_v1 = vld [vmem:[#allocation7 + $0x20] sm:$0xff]  ;;  %v8878_v39 = vld [vmem:[#allocation7 + $0x30] sm:$0xff] }
 0x533   :  { %3203 = vmatpush1.msra.mxu0 %v8863_v27  ;;  %3274 = vmatpush1.msra.mxu1 %v8866_v60  ;;  %11527 = vst [vmem:[#allocation152_spill] sm:$0xff] %v8875_v1  ;;  %11528 = vst [vmem:[#allocation151_spill] sm:$0xff] %v8878_v39  ;;  %v8881_v27 = vld [vmem:[#allocation7 + $0x8] sm:$0xff]  ;;  %v8884_v60 = vld [vmem:[#allocation7 + $0x18] sm:$0xff] }
 0x534   :  { %3204 = vmatprep.subr.mxu0 %v8869_v6  ;;  %3275 = vmatprep.subr.mxu1 %v8872_v40  ;;  %11529 = vst [vmem:[#allocation88_spill] sm:$0xff] %v8881_v27  ;;  %11530 = vst [vmem:[#allocation89_spill] sm:$0xff] %v8884_v60  ;;  %v8887_v6 = vld [vmem:[#allocation7] sm:$0xff]  ;;  %v8891_v40 = vld [vmem:[#allocation7 + $0x10] sm:$0xff] }
 0x535   :  { %3205 = vmatpush1.msra.mxu0 %v8875_v1  ;;  %3276 = vmatpush1.msra.mxu1 %v8878_v39  ;;  %11531 = vst [vmem:[#allocation90_spill] sm:$0xff] %v8887_v6  ;;  %11532 = vst [vmem:[#allocation91_spill] sm:$0xff] %v8891_v40  ;;  %v8895_v39 = vld [vmem:[#allocation5 + $0x1e8] sm:$0xff] }
 0x536   :  { %3206 = vmatprep.subr.mxu0 %v8881_v27  ;;  %3277 = vmatprep.subr.mxu1 %v8884_v60  ;;  %11533 = vst [vmem:[#allocation92_spill] sm:$0xff] %v8895_v39  ;;  %v8898_v27 = vld [vmem:[#allocation5 + $0x1f8] sm:$0xff] }
 0x537   :  { %3207 = vmatpush1.msra.mxu0 %v8887_v6  ;;  %3240 = vmatprep.mubr.f32.mxu0 %v11035_v53  ;;  %11534 = vst [vmem:[#allocation93_spill] sm:$0xff] %v8898_v27 }
 0x538   :  { %3278 = vmatpush1.msra.mxu1 %v8891_v40  ;;  %3311 = vmatprep.mubr.f32.mxu1 %v11035_v53 }
 0x539   :  { %3324 = vmatprep.subr.mxu0 %v8895_v39  ;;  %3395 = vmatprep.subr.mxu1 %v8898_v27 }
 0x58f   :  { %v2700_v60 = vpop.f32.mrf.mxu0  ;;  %v2771_v6 = vpop.f32.mrf.mxu1 }
 0x591   :  { %v2702_v1 = vpop.f32.mrf.mxu0  ;;  %v2773_v40 = vpop.f32.mrf.mxu1 }
 0x5b6   :  { %v2848_v42 = vpop.f32.mrf.mxu0  ;;  %v2919_v28 = vpop.f32.mrf.mxu1 }
 0x5b7   :  { %v2849_v44 = vadd.f32 %v2848_v42, %v2700_v60  ;;  %v2920_v11 = vadd.f32 %v2919_v28, %v2771_v6 }
 0x5b8   :  { %v2850_v57 = vpop.f32.mrf.mxu0  ;;  %v2921_v23 = vpop.f32.mrf.mxu1 }
 0x5b9   :  { %v2924_v3 = vadd.f32 %v2849_v44, %v7587_v41  ;;  %v2851_v62 = vadd.f32 %v2850_v57, %v2702_v1  ;;  %v2926_v27 = vadd.f32 %v2920_v11, %v7597_v7  ;;  %v2922_v33 = vadd.f32 %v2921_v23, %v2773_v40 }
 0x5bb   :  { %v5417_v4 = vmul.f32 -1.442695, %v2924_v3  ;;  %v2925_v35 = vadd.f32 %v2851_v62, %v7591_v47  ;;  %v5419_v34 = vmul.f32 -1.442695, %v2926_v27  ;;  %v2927_v42 = vadd.f32 %v2922_v33, %v11396_v56 }
 0x5bd   :  { %5732 = vpow2.f32 %v5417_v4  ;;  %v5418_v39 = vmul.f32 -1.442695, %v2925_v35 }
 0x5bf   :  { %5734 = vpow2.f32 %v5418_v39 }
 0x5c0   :  { %5736 = vpow2.f32 %v5419_v34 }
 0x5ca   :  { %v5733_v19 = vpop.eup %5732 }
 0x5cb   :  { %v2937_v60 = vadd.f32 1.0, %v5733_v19 }
 0x5cc   :  { %v5735_v44 = vpop.eup %5734 }
 0x5cd   :  { %5738 = vrcp.f32 %v2937_v60  ;;  %v2938_v3 = vadd.f32 1.0, %v5735_v44  ;;  %v5737_v57 = vpop.eup %5736 }
 0x5ce   :  { %5740 = vtanh.f32 %v2927_v42  ;;  %v2939_v27 = vadd.f32 1.0, %v5737_v57 }
 0x5cf   :  { %5742 = vrcp.f32 %v2938_v3 }
 0x5d7   :  { %v3018_v4 = vpop.f32.mrf.mxu0 }
 0x5d8   :  { %v3098_v62 = vrot.slane %v3018_v4, 4  ;;  %v3102_v35 = vrot.slane %v3018_v4, 5  ;;  %v3089_v4 = vpop.f32.mrf.mxu1 }
 0x5d9   :  { %v3020_v28 = vpop.f32.mrf.mxu0  ;;  %v3100_v57 = vrot.slane %v3089_v4, 4 }
 0x5da   :  { %v5739_v6 = vpop.eup %5738  ;;  %v3114_v11 = vadd.f32 %v3098_v62, %v11107_v29  ;;  %v3118_v23 = vadd.f32 %v3102_v35, %v7381_v17  ;;  %v3099_v40 = vrot.slane %v3020_v28, 4  ;;  %v3103_v33 = vrot.slane %v3020_v28, 5 }
 0x5db   :  { %v5741_v1 = vpop.eup %5740  ;;  %v3104_v28 = vrot.slane %v3089_v4, 5 }
 0x5dc   :  { %v5743_v19 = vpop.eup %5742  ;;  %v5420_v34 = vmul.f32 -1.442695, %v3114_v11  ;;  %v5423_v39 = vmul.f32 -1.442695, %v3118_v23  ;;  %v2948_v60 = vmul.f32 %v5741_v1, %v5739_v6  ;;  %v3115_v44 = vadd.f32 %v3099_v40, %v11109_v55 }
 0x5dd   :  { %v2947_v42 = vmul.f32 %v5743_v19, %v8451_v30  ;;  %v3119_v3 = vadd.f32 %v3103_v33, %v11108_v37  ;;  %v3091_v30 = vpop.f32.mrf.mxu1  ;;  %v3116_v6 = vadd.f32 %v3100_v57, %v7393_v26  ;;  %v3120_v11 = vadd.f32 %v3104_v28, %v7397_v22 }
 0x5de   :  { %5744 = vpow2.f32 %v5420_v34  ;;  %v5421_v62 = vmul.f32 -1.442695, %v3115_v44  ;;  %v3101_v23 = vrot.slane %v3091_v30, 4  ;;  %v3105_v1 = vrot.slane %v3091_v30, 5  ;;  %v8917_v30 = vld [vmem:[#allocation5 + $0x1e0] sm:$0xff] }
 0x5df   :  { %v8910_v56 = vadd.f32 %v2948_v60, %v2947_v42  ;;  %5746 = vpow2.f32 %v5423_v39  ;;  %v5424_v35 = vmul.f32 -1.442695, %v3119_v3  ;;  %v5422_v40 = vmul.f32 -1.442695, %v3116_v6  ;;  %v8920_v6 = vld [vmem:[#allocation5 + $0x1f0] sm:$0xff] }
 0x5e0   :  { %5748 = vrcp.f32 %v2939_v27  ;;  %v5425_v33 = vmul.f32 -1.442695, %v3120_v11  ;;  %v3117_v34 = vadd.f32 %v3101_v23, %v7401_v61  ;;  %v3121_v39 = vadd.f32 %v3105_v1, %v7403_v20  ;;  %v8923_v11 = vld [vmem:[#allocation5 + $0x1c8] sm:$0xff]  ;;  %v8926_v23 = vld [vmem:[#allocation5 + $0x1d8] sm:$0xff]  ;;  %v8929_v1 = vld [vmem:[#allocation5 + $0x1c0] sm:$0xff] }
 0x5e1   :  { %5750 = vtanh.f32 %v8910_v56  ;;  %11535 = vst [vmem:[#allocation94_spill] sm:$0xff] %v8926_v23  ;;  %11536 = vst [vmem:[#allocation95_spill] sm:$0xff] %v8929_v1 }
 0x5e2   :  { %5752 = vpow2.f32 %v5421_v62 }
 0x5e3   :  { %5754 = vpow2.f32 %v5424_v35 }
 0x5e4   :  { %5756 = vpow2.f32 %v5422_v40  ;;  %v8932_v40 = vld [vmem:[#allocation5 + $0x1d0] sm:$0xff] }
 0x5e5   :  { %5758 = vpow2.f32 %v5425_v33  ;;  %11537 = vst [vmem:[#allocation96_spill] sm:$0xff] %v8932_v40  ;;  %v8935_v33 = vld [vmem:[#allocation5 + $0x1a8] sm:$0xff] }
 0x5e6   :  { %5760 = vtanh.f32 %v3117_v34  ;;  %11538 = vst [vmem:[#allocation97_spill] sm:$0xff] %v8935_v33  ;;  %v8941_v34 = vld [vmem:[#allocation5 + $0x1a0] sm:$0xff] }
 0x5e7   :  { %5762 = vtanh.f32 %v3121_v39  ;;  %11540 = vst [vmem:[#allocation99_spill] sm:$0xff] %v8941_v34  ;;  %v8947_v39 = vld [vmem:[#allocation5 + $0x188] sm:$0xff] }
 0x5e8   :  { %11542 = vst [vmem:[#allocation101_spill] sm:$0xff] %v8947_v39 }
 0x5eb   :  { %v5745_v19 = vpop.eup %5744 }
 0x5ec   :  { %v5747_v27 = vpop.eup %5746  ;;  %v3140_v60 = vadd.f32 1.0, %v5745_v19  ;;  %v8938_v19 = vld [vmem:[#allocation5 + $0x1b8] sm:$0xff] }
 0x5ed   :  { %v5749_v42 = vpop.eup %5748  ;;  %v3143_v3 = vadd.f32 1.0, %v5747_v27  ;;  %11539 = vst [vmem:[#allocation98_spill] sm:$0xff] %v8938_v19  ;;  %v8944_v27 = vld [vmem:[#allocation5 + $0x1b0] sm:$0xff] }
 0x5ee   :  { %v5751_v44 = vpop.eup %5750  ;;  %5764 = vrcp.f32 %v3140_v60  ;;  %11541 = vst [vmem:[#allocation100_spill] sm:$0xff] %v8944_v27  ;;  %v8953_v60 = vld [vmem:[#allocation5 + $0x180] sm:$0xff] }
 0x5ef   :  { %v2951_v4 = vmul.f32 %v5751_v44, %v5749_v42  ;;  %v5753_v62 = vpop.eup %5752  ;;  %5766 = vrcp.f32 %v3143_v3  ;;  %v8950_v42 = vld [vmem:[#allocation5 + $0x198] sm:$0xff]  ;;  %11544 = vst [vmem:[#allocation103_spill] sm:$0xff] %v8953_v60  ;;  %v8956_v44 = vld [vmem:[#allocation5 + $0x190] sm:$0xff]  ;;  %v8959_v3 = vld [vmem:[#allocation5 + $0x168] sm:$0xff] }
 0x5f0   :  { %v5755_v35 = vpop.eup %5754  ;;  %v3141_v57 = vadd.f32 1.0, %v5753_v62  ;;  %11543 = vst [vmem:[#allocation102_spill] sm:$0xff] %v8950_v42  ;;  %11545 = vst [vmem:[#allocation104_spill] sm:$0xff] %v8956_v44 }
 0x5f1   :  { %3241 = vmatmul.mubr.f32.vlgmr.msra.gmra.mxu0 %v2951_v4  ;;  %3312 = vmatmul.mubr.f32.vlgmr.msra.gmra.mxu1 %v2951_v4  ;;  %v3144_v28 = vadd.f32 1.0, %v5755_v35  ;;  %11546 = vst [vmem:[#allocation105_spill] sm:$0xff] %v8959_v3  ;;  %v8962_v4 = vld [vmem:[#allocation5 + $0x178] sm:$0xff]  ;;  %v5757_v62 = vpop.eup %5756  ;;  %v8965_v35 = vld [vmem:[#allocation5 + $0x160] sm:$0xff] }
 0x5f2   :  { %3325 = vmatpush1.msra.mxu0 %v8917_v30  ;;  %3396 = vmatpush1.msra.mxu1 %v8920_v6  ;;  %5768 = vrcp.f32 %v3141_v57  ;;  %11547 = vst [vmem:[#allocation106_spill] sm:$0xff] %v8962_v4  ;;  %11548 = vst [vmem:[#allocation107_spill] sm:$0xff] %v8965_v35  ;;  %v8968_v57 = vld [vmem:[#allocation5 + $0x170] sm:$0xff] }
 0x5f3   :  { %3326 = vmatprep.subr.mxu0 %v8923_v11  ;;  %3397 = vmatprep.subr.mxu1 %v8926_v23  ;;  %5770 = vrcp.f32 %v3144_v28  ;;  %11549 = vst [vmem:[#allocation108_spill] sm:$0xff] %v8968_v57  ;;  %v5759_v28 = vpop.eup %5758  ;;  %v9015_v23 = vld [vmem:[#allocation5 + $0xe0] sm:$0xff] }
 0x5f4   :  { %3327 = vmatpush1.msra.mxu0 %v8929_v1  ;;  %3398 = vmatpush1.msra.mxu1 %v8932_v40  ;;  %v9003_v40 = vld [vmem:[#allocation5 + $0x100] sm:$0xff] }
 0x5f5   :  { %3328 = vmatprep.subr.mxu0 %v8935_v33  ;;  %3399 = vmatprep.subr.mxu1 %v8938_v19  ;;  %v8996_v19 = vld [vmem:[#allocation5 + $0x108] sm:$0xff]  ;;  %v3163_v33 = vrot.slane %v8498_v13, 7  ;;  %11560 = vst [vmem:[#allocation119_spill] sm:$0xff] %v9003_v40 }
 0x5f6   :  { %3329 = vmatpush1.msra.mxu0 %v8941_v34  ;;  %3400 = vmatpush1.msra.mxu1 %v8944_v27  ;;  %v8992_v27 = vld [vmem:[#allocation5 + $0x130] sm:$0xff]  ;;  %v3142_v34 = vadd.f32 1.0, %v5757_v62  ;;  %11558 = vst [vmem:[#allocation117_spill] sm:$0xff] %v8996_v19 }
 0x5f7   :  { %3330 = vmatprep.subr.mxu0 %v8947_v39  ;;  %3401 = vmatprep.subr.mxu1 %v8950_v42  ;;  %v8980_v42 = vld [vmem:[#allocation5 + $0x150] sm:$0xff]  ;;  %v8986_v39 = vld [vmem:[#allocation5 + $0x138] sm:$0xff]  ;;  %11557 = vst [vmem:[#allocation116_spill] sm:$0xff] %v8992_v27 }
 0x5f8   :  { %3331 = vmatpush1.msra.mxu0 %v8953_v60  ;;  %3402 = vmatpush1.msra.mxu1 %v8956_v44  ;;  %v8971_v60 = vld [vmem:[#allocation5 + $0x148] sm:$0xff]  ;;  %v8974_v44 = vld [vmem:[#allocation5 + $0x158] sm:$0xff]  ;;  %11553 = vst [vmem:[#allocation112_spill] sm:$0xff] %v8980_v42  ;;  %11555 = vst [vmem:[#allocation114_spill] sm:$0xff] %v8986_v39  ;;  %5772 = vrcp.f32 %v3142_v34 }
 0x5f9   :  { %3332 = vmatprep.subr.mxu0 %v8959_v3  ;;  %3403 = vmatprep.subr.mxu1 %v8962_v4  ;;  %11550 = vst [vmem:[#allocation109_spill] sm:$0xff] %v8971_v60  ;;  %11551 = vst [vmem:[#allocation110_spill] sm:$0xff] %v8974_v44  ;;  %v5761_v3 = vpop.eup %5760  ;;  %v8977_v4 = vld [vmem:[#allocation5 + $0x140] sm:$0xff]  ;;  %v9041_v34 = vld [vmem:[#allocation5 + $0xb8] sm:$0xff] }
 0x5fa   :  { %3333 = vmatpush1.msra.mxu0 %v8965_v35  ;;  %3404 = vmatpush1.msra.mxu1 %v8968_v57  ;;  %11552 = vst [vmem:[#allocation111_spill] sm:$0xff] %v8977_v4  ;;  %v5763_v35 = vpop.eup %5762  ;;  %v8983_v57 = vld [vmem:[#allocation5 + $0x128] sm:$0xff]  ;;  %11564 = vst [vmem:[#allocation123_spill] sm:$0xff] %v9041_v34 }
 0x5fb   :  { %3334 = vmatprep.subr.mxu0 %v8971_v60  ;;  %3405 = vmatprep.subr.mxu1 %v8974_v44  ;;  %11554 = vst [vmem:[#allocation113_spill] sm:$0xff] %v8983_v57  ;;  %v5765_v60 = vpop.eup %5764  ;;  %v8989_v44 = vld [vmem:[#allocation5 + $0x120] sm:$0xff] }
 0x5fc   :  { %3335 = vmatpush1.msra.mxu0 %v8977_v4  ;;  %3406 = vmatpush1.msra.mxu1 %v8980_v42  ;;  %11556 = vst [vmem:[#allocation115_spill] sm:$0xff] %v8989_v44  ;;  %v5767_v4 = vpop.eup %5766  ;;  %v3162_v42 = vrot.slane %v8494_v21, 7  ;;  %v3168_v1 = vmul.f32 %v5765_v60, %v5761_v3  ;;  %v9026_v60 = vld [vmem:[#allocation5 + $0xd8] sm:$0xff]  ;;  %v9031_v3 = vld [vmem:[#allocation5 + $0xc0] sm:$0xff] }
 0x5fd   :  { %3336 = vmatprep.subr.mxu0 %v8983_v57  ;;  %3407 = vmatprep.subr.mxu1 %v8986_v39  ;;  %v8999_v57 = vld [vmem:[#allocation5 + $0x118] sm:$0xff]  ;;  %11561 = vst [vmem:[#allocation120_spill] sm:$0xff] %v9031_v3 }
 0x5fe   :  { %3337 = vmatpush1.msra.mxu0 %v8989_v44  ;;  %3408 = vmatpush1.msra.mxu1 %v8992_v27  ;;  %11559 = vst [vmem:[#allocation118_spill] sm:$0xff] %v8999_v57  ;;  %v3145_v44 = vadd.f32 1.0, %v5759_v28  ;;  %v9006_v27 = vld [vmem:[#allocation5 + $0x110] sm:$0xff]  ;;  %v3169_v28 = vmul.f32 %v5767_v4, %v5763_v35 }
 0x5ff   :  { %3338 = vmatprep.subr.mxu0 %v8996_v19  ;;  %3409 = vmatprep.subr.mxu1 %v8999_v57  ;;  %v5769_v39 = vpop.eup %5768  ;;  %v9009_v19 = vld [vmem:[#allocation5 + $0xe8] sm:$0xff]  ;;  %v9012_v57 = vld [vmem:[#allocation5 + $0xf8] sm:$0xff]  ;;  %v9034_v4 = vld [vmem:[#allocation5 + $0xd0] sm:$0xff] }
 0x600   :  { %3339 = vmatpush1.msra.mxu0 %v9003_v40  ;;  %3410 = vmatpush1.msra.mxu1 %v9006_v27  ;;  %v5771_v21 = vpop.eup %5770  ;;  %v3166_v62 = vmul.f32 %v5769_v39, %v3162_v42  ;;  %v9018_v40 = vld [vmem:[#allocation5 + $0xf0] sm:$0xff]  ;;  %v9023_v42 = vld [vmem:[#allocation5 + $0xc8] sm:$0xff]  ;;  %5774 = vrcp.f32 %v3145_v44  ;;  %11562 = vst [vmem:[#allocation121_spill] sm:$0xff] %v9034_v4  ;;  %v9045_v44 = vld [vmem:[#allocation5 + $0xa0] sm:$0xff] }
 0x601   :  { %3340 = vmatprep.subr.mxu0 %v9009_v19  ;;  %3411 = vmatprep.subr.mxu1 %v9012_v57  ;;  %v3167_v13 = vmul.f32 %v5771_v21, %v3163_v33  ;;  %11565 = vst [vmem:[#allocation124_spill] sm:$0xff] %v9045_v44  ;;  %v9048_v35 = vld [vmem:[#allocation5 + $0xb0] sm:$0xff]  ;;  %v9051_v21 = vld [vmem:[#allocation5 + $0x88] sm:$0xff] }
 0x602   :  { %3341 = vmatpush1.msra.mxu0 %v9015_v23  ;;  %3412 = vmatpush1.msra.mxu1 %v9018_v40  ;;  %v9021_v39 = vadd.f32 %v3168_v1, %v3166_v62  ;;  %v9038_v1 = vld [vmem:[#allocation5 + $0xa8] sm:$0xff]  ;;  %11566 = vst [vmem:[#allocation125_spill] sm:$0xff] %v9048_v35  ;;  %11567 = vst [vmem:[#allocation126_spill] sm:$0xff] %v9051_v21  ;;  %v9054_v62 = vld [vmem:[#allocation5 + $0x98] sm:$0xff] }
 0x603   :  { %3342 = vmatprep.subr.mxu0 %v9023_v42  ;;  %3413 = vmatprep.subr.mxu1 %v9026_v60  ;;  %v9029_v33 = vadd.f32 %v3169_v28, %v3167_v13  ;;  %11563 = vst [vmem:[#allocation122_spill] sm:$0xff] %v9038_v1  ;;  %11568 = vst [vmem:[#allocation127_spill] sm:$0xff] %v9054_v62  ;;  %v9057_v13 = vld [vmem:[#allocation5 + $0x80] sm:$0xff]  ;;  %v9060_v28 = vld [vmem:[#allocation5 + $0x90] sm:$0xff] }
 0x604   :  { %3343 = vmatpush1.msra.mxu0 %v9031_v3  ;;  %3414 = vmatpush1.msra.mxu1 %v9034_v4  ;;  %5776 = vtanh.f32 %v9021_v39  ;;  %11569 = vst [vmem:[#allocation128_spill] sm:$0xff] %v9057_v13  ;;  %11570 = vst [vmem:[#allocation129_spill] sm:$0xff] %v9060_v28 }
 0x605   :  { %3344 = vmatprep.subr.mxu0 %v9038_v1  ;;  %3415 = vmatprep.subr.mxu1 %v9041_v34  ;;  %5778 = vtanh.f32 %v9029_v33  ;;  %v9105_v34 = vld [vmem:[#allocation5] sm:$0xff] }
 0x606   :  { %3345 = vmatpush1.msra.mxu0 %v9045_v44  ;;  %3416 = vmatpush1.msra.mxu1 %v9048_v35  ;;  %v9063_v44 = vld [vmem:[#allocation5 + $0x68] sm:$0xff]  ;;  %v9066_v35 = vld [vmem:[#allocation5 + $0x78] sm:$0xff]  ;;  %11585 = vst [vmem:[#allocation144_spill] sm:$0xff] %v9105_v34 }
 0x607   :  { %3346 = vmatprep.subr.mxu0 %v9051_v21  ;;  %3417 = vmatprep.subr.mxu1 %v9054_v62  ;;  %11571 = vst [vmem:[#allocation130_spill] sm:$0xff] %v9063_v44  ;;  %11572 = vst [vmem:[#allocation131_spill] sm:$0xff] %v9066_v35  ;;  %v9069_v21 = vld [vmem:[#allocation5 + $0x60] sm:$0xff]  ;;  %v9072_v62 = vld [vmem:[#allocation5 + $0x70] sm:$0xff] }
 0x608   :  { %3347 = vmatpush1.msra.mxu0 %v9057_v13  ;;  %3418 = vmatpush1.msra.mxu1 %v9060_v28  ;;  %11573 = vst [vmem:[#allocation132_spill] sm:$0xff] %v9069_v21  ;;  %11574 = vst [vmem:[#allocation133_spill] sm:$0xff] %v9072_v62  ;;  %v9075_v13 = vld [vmem:[#allocation5 + $0x48] sm:$0xff]  ;;  %v9078_v28 = vld [vmem:[#allocation5 + $0x58] sm:$0xff] }
 0x609   :  { %3348 = vmatprep.subr.mxu0 %v9063_v44  ;;  %3419 = vmatprep.subr.mxu1 %v9066_v35  ;;  %11575 = vst [vmem:[#allocation134_spill] sm:$0xff] %v9075_v13  ;;  %11576 = vst [vmem:[#allocation135_spill] sm:$0xff] %v9078_v28  ;;  %v9081_v44 = vld [vmem:[#allocation5 + $0x40] sm:$0xff]  ;;  %v9084_v35 = vld [vmem:[#allocation5 + $0x50] sm:$0xff] }
 0x60a   :  { %3349 = vmatpush1.msra.mxu0 %v9069_v21  ;;  %3420 = vmatpush1.msra.mxu1 %v9072_v62  ;;  %11577 = vst [vmem:[#allocation136_spill] sm:$0xff] %v9081_v44  ;;  %11578 = vst [vmem:[#allocation137_spill] sm:$0xff] %v9084_v35  ;;  %v9087_v21 = vld [vmem:[#allocation5 + $0x28] sm:$0xff]  ;;  %v9090_v62 = vld [vmem:[#allocation5 + $0x38] sm:$0xff] }
 0x60b   :  { %3350 = vmatprep.subr.mxu0 %v9075_v13  ;;  %3421 = vmatprep.subr.mxu1 %v9078_v28  ;;  %11579 = vst [vmem:[#allocation138_spill] sm:$0xff] %v9087_v21  ;;  %11580 = vst [vmem:[#allocation139_spill] sm:$0xff] %v9090_v62  ;;  %v9093_v13 = vld [vmem:[#allocation5 + $0x20] sm:$0xff]  ;;  %v9096_v28 = vld [vmem:[#allocation5 + $0x30] sm:$0xff] }
 0x60c   :  { %3351 = vmatpush1.msra.mxu0 %v9081_v44  ;;  %3422 = vmatpush1.msra.mxu1 %v9084_v35  ;;  %11581 = vst [vmem:[#allocation140_spill] sm:$0xff] %v9093_v13  ;;  %11582 = vst [vmem:[#allocation141_spill] sm:$0xff] %v9096_v28  ;;  %v9099_v44 = vld [vmem:[#allocation5 + $0x8] sm:$0xff]  ;;  %v9102_v35 = vld [vmem:[#allocation5 + $0x18] sm:$0xff] }
 0x60d   :  { %3352 = vmatprep.subr.mxu0 %v9087_v21  ;;  %3423 = vmatprep.subr.mxu1 %v9090_v62  ;;  %11583 = vst [vmem:[#allocation142_spill] sm:$0xff] %v9099_v44  ;;  %11584 = vst [vmem:[#allocation143_spill] sm:$0xff] %v9102_v35  ;;  %v5773_v21 = vpop.eup %5772  ;;  %v9108_v62 = vld [vmem:[#allocation5 + $0x10] sm:$0xff] }
 0x60e   :  { %3353 = vmatpush1.msra.mxu0 %v9093_v13  ;;  %3424 = vmatpush1.msra.mxu1 %v9096_v28  ;;  %11586 = vst [vmem:[#allocation145_spill] sm:$0xff] %v9108_v62  ;;  %v5775_v13 = vpop.eup %5774 }
 0x60f   :  { %3354 = vmatprep.subr.mxu0 %v9099_v44  ;;  %3425 = vmatprep.subr.mxu1 %v9102_v35 }
 0x610   :  { %3355 = vmatpush1.msra.mxu0 %v9105_v34  ;;  %3426 = vmatpush1.msra.mxu1 %v9108_v62  ;;  %v9120_v62 = vld [vmem:[#allocation2 + $0x1e0] sm:$0xff] }
 0x611   :  { %3388 = vmatprep.mubr.f32.mxu0 %v11035_v53  ;;  %3459 = vmatprep.mubr.f32.mxu1 %v11035_v53  ;;  %v5777_v28 = vpop.eup %5776 }
 0x612   :  { %3494 = vmatprep.subr.mxu0 %v8530_v51  ;;  %3565 = vmatprep.subr.mxu1 %v8533_v38  ;;  %v5779_v35 = vpop.eup %5778  ;;  %v3174_v44 = vmul.f32 %v5777_v28, %v5773_v21  ;;  %v9124_v51 = vld [vmem:[#allocation2 + $0x1c8] sm:$0xff]  ;;  %v9128_v38 = vld [vmem:[#allocation2 + $0x1c0] sm:$0xff]  ;;  %v11609_v28 = vld [vmem:[#allocation34_spill] sm:$0xff] }
 0x613   :  { %v3175_v1 = vmul.f32 %v5779_v35, %v5775_v13  ;;  %v11606_v35 = vld [vmem:[#allocation29_spill] sm:$0xff]  ;;  %v11607_v21 = vld [vmem:[#allocation32_spill] sm:$0xff]  ;;  %v11608_v13 = vld [vmem:[#allocation31_spill] sm:$0xff] }
 0x614   :  { %v3320_v4 = vrot.slane %v3174_v44, 4  ;;  %v11605_v44 = vld [vmem:[#allocation30_spill] sm:$0xff] }
 0x615   :  { %v3321_v3 = vrot.slane %v3175_v1, 3  ;;  %v11604_v1 = vld [vmem:[#allocation27_spill] sm:$0xff] }
 0x617   :  { %v9116_v34 = vsel %vm1137_vm4, %v3321_v3, %v3320_v4  ;;  %v9132_v3 = vld [vmem:[#allocation2 + $0x1a8] sm:$0xff]  ;;  %v9136_v4 = vld [vmem:[#allocation2 + $0x1a0] sm:$0xff] }
 0x618   :  { %3389 = vmatmul.mubr.f32.vlgmr.msra.gmra.mxu0 %v9116_v34  ;;  %3460 = vmatmul.mubr.f32.vlgmr.msra.gmra.mxu1 %v9116_v34 }
 0x619   :  { %3495 = vmatpush1.msra.mxu0 %v9120_v62  ;;  %3566 = vmatpush1.msra.mxu1 %v8542_v12  ;;  %v9140_v12 = vld [vmem:[#allocation2 + $0x188] sm:$0xff] }
 0x61a   :  { %3496 = vmatprep.subr.mxu0 %v9124_v51  ;;  %3567 = vmatprep.subr.mxu1 %v8546_v10  ;;  %v9144_v10 = vld [vmem:[#allocation2 + $0x180] sm:$0xff] }
 0x61b   :  { %3497 = vmatpush1.msra.mxu0 %v9128_v38  ;;  %3568 = vmatpush1.msra.mxu1 %v8550_v14  ;;  %v9148_v14 = vld [vmem:[#allocation2 + $0x168] sm:$0xff] }
 0x61c   :  { %3498 = vmatprep.subr.mxu0 %v9132_v3  ;;  %3569 = vmatprep.subr.mxu1 %v8554_v43  ;;  %v9152_v43 = vld [vmem:[#allocation2 + $0x160] sm:$0xff] }
 0x61d   :  { %3499 = vmatpush1.msra.mxu0 %v9136_v4  ;;  %3570 = vmatpush1.msra.mxu1 %v8558_v49  ;;  %v9156_v49 = vld [vmem:[#allocation2 + $0x148] sm:$0xff] }
 0x61e   :  { %3500 = vmatprep.subr.mxu0 %v9140_v12  ;;  %3571 = vmatprep.subr.mxu1 %v8562_v8  ;;  %v9160_v8 = vld [vmem:[#allocation2 + $0x140] sm:$0xff] }
 0x61f   :  { %3501 = vmatpush1.msra.mxu0 %v9144_v10  ;;  %3572 = vmatpush1.msra.mxu1 %v8566_v9  ;;  %v9164_v9 = vld [vmem:[#allocation2 + $0x128] sm:$0xff] }
 0x620   :  { %3502 = vmatprep.subr.mxu0 %v9148_v14  ;;  %3573 = vmatprep.subr.mxu1 %v8570_v58  ;;  %v9168_v58 = vld [vmem:[#allocation2 + $0x120] sm:$0xff] }
 0x621   :  { %3503 = vmatpush1.msra.mxu0 %v9152_v43  ;;  %3574 = vmatpush1.msra.mxu1 %v8574_v45  ;;  %v9172_v45 = vld [vmem:[#allocation2 + $0x108] sm:$0xff] }
 0x622   :  { %3504 = vmatprep.subr.mxu0 %v9156_v49  ;;  %3575 = vmatprep.subr.mxu1 %v8578_v16  ;;  %v9176_v16 = vld [vmem:[#allocation2 + $0x100] sm:$0xff] }
 0x623   :  { %3505 = vmatpush1.msra.mxu0 %v9160_v8  ;;  %3576 = vmatpush1.msra.mxu1 %v8582_v24  ;;  %v11587_v24 = vld [vmem:[#allocation148_spill] sm:$0xff] }
 0x624   :  { %3506 = vmatprep.subr.mxu0 %v9164_v9  ;;  %3577 = vmatprep.subr.mxu1 %v8586_v63  ;;  %v11588_v63 = vld [vmem:[#allocation149_spill] sm:$0xff] }
 0x625   :  { %3507 = vmatpush1.msra.mxu0 %v9168_v58  ;;  %3578 = vmatpush1.msra.mxu1 %v8590_v5  ;;  %v11589_v5 = vld [vmem:[#allocation17_spill] sm:$0xff] }
 0x626   :  { %3508 = vmatprep.subr.mxu0 %v9172_v45  ;;  %3579 = vmatprep.subr.mxu1 %v8594_v2  ;;  %v11590_v2 = vld [vmem:[#allocation13_spill] sm:$0xff] }
 0x627   :  { %3509 = vmatpush1.msra.mxu0 %v9176_v16  ;;  %3580 = vmatpush1.msra.mxu1 %v8598_v0  ;;  %v11591_v0 = vld [vmem:[#allocation18_spill] sm:$0xff] }
 0x628   :  { %3510 = vmatprep.subr.mxu0 %v8601_v32  ;;  %3581 = vmatprep.subr.mxu1 %v8604_v25  ;;  %v11592_v32 = vld [vmem:[#allocation14_spill] sm:$0xff]  ;;  %v11593_v25 = vld [vmem:[#allocation19_spill] sm:$0xff] }
 0x629   :  { %3511 = vmatpush1.msra.mxu0 %v8607_v46  ;;  %3582 = vmatpush1.msra.mxu1 %v8610_v59  ;;  %v11594_v46 = vld [vmem:[#allocation15_spill] sm:$0xff]  ;;  %v11595_v59 = vld [vmem:[#allocation20_spill] sm:$0xff] }
 0x62a   :  { %3512 = vmatprep.subr.mxu0 %v8613_v36  ;;  %3583 = vmatprep.subr.mxu1 %v8616_v48  ;;  %v11596_v36 = vld [vmem:[#allocation16_spill] sm:$0xff]  ;;  %v11597_v48 = vld [vmem:[#allocation21_spill] sm:$0xff] }
 0x62b   :  { %3513 = vmatpush1.msra.mxu0 %v8619_v50  ;;  %3584 = vmatpush1.msra.mxu1 %v8622_v52  ;;  %v11598_v50 = vld [vmem:[#allocation22_spill] sm:$0xff]  ;;  %v11599_v52 = vld [vmem:[#allocation24_spill] sm:$0xff] }
 0x62c   :  { %3514 = vmatprep.subr.mxu0 %v8625_v15  ;;  %3585 = vmatprep.subr.mxu1 %v8628_v18  ;;  %v11600_v15 = vld [vmem:[#allocation23_spill] sm:$0xff]  ;;  %v11601_v18 = vld [vmem:[#allocation26_spill] sm:$0xff] }
 0x62d   :  { %3515 = vmatpush1.msra.mxu0 %v8631_v54  ;;  %3586 = vmatpush1.msra.mxu1 %v8634_v31  ;;  %v11602_v54 = vld [vmem:[#allocation25_spill] sm:$0xff]  ;;  %v11603_v31 = vld [vmem:[#allocation28_spill] sm:$0xff] }
 0x62e   :  { %3516 = vmatprep.subr.mxu0 %v11587_v24  ;;  %3587 = vmatprep.subr.mxu1 %v11588_v63  ;;  %v11610_v24 = vld [vmem:[#allocation33_spill] sm:$0xff]  ;;  %v11611_v63 = vld [vmem:[#allocation36_spill] sm:$0xff] }
 0x62f   :  { %3517 = vmatpush1.msra.mxu0 %v11589_v5  ;;  %3588 = vmatpush1.msra.mxu1 %v11590_v2  ;;  %v11612_v5 = vld [vmem:[#allocation35_spill] sm:$0xff]  ;;  %v11613_v2 = vld [vmem:[#allocation38_spill] sm:$0xff] }
 0x630   :  { %3518 = vmatprep.subr.mxu0 %v11591_v0  ;;  %3589 = vmatprep.subr.mxu1 %v11592_v32  ;;  %v11614_v0 = vld [vmem:[#allocation37_spill] sm:$0xff]  ;;  %v11615_v32 = vld [vmem:[#allocation40_spill] sm:$0xff] }
 0x631   :  { %3519 = vmatpush1.msra.mxu0 %v11593_v25  ;;  %3590 = vmatpush1.msra.mxu1 %v11594_v46  ;;  %v11616_v25 = vld [vmem:[#allocation39_spill] sm:$0xff]  ;;  %v11618_v46 = vld [vmem:[#allocation41_spill] sm:$0xff] }
 0x632   :  { %3520 = vmatprep.subr.mxu0 %v11595_v59  ;;  %3591 = vmatprep.subr.mxu1 %v11596_v36  ;;  %v11619_v59 = vld [vmem:[#allocation44_spill] sm:$0xff]  ;;  %v11620_v36 = vld [vmem:[#allocation43_spill] sm:$0xff] }
 0x633   :  { %3521 = vmatpush1.msra.mxu0 %v11597_v48  ;;  %3592 = vmatpush1.msra.mxu1 %v11598_v50  ;;  %v11621_v48 = vld [vmem:[#allocation46_spill] sm:$0xff]  ;;  %v11622_v50 = vld [vmem:[#allocation45_spill] sm:$0xff] }
 0x634   :  { %3522 = vmatprep.subr.mxu0 %v11599_v52  ;;  %3593 = vmatprep.subr.mxu1 %v11600_v15  ;;  %v11623_v52 = vld [vmem:[#allocation48_spill] sm:$0xff]  ;;  %v11624_v15 = vld [vmem:[#allocation47_spill] sm:$0xff] }
 0x635   :  { %3523 = vmatpush1.msra.mxu0 %v11601_v18  ;;  %3594 = vmatpush1.msra.mxu1 %v11602_v54  ;;  %v11625_v18 = vld [vmem:[#allocation50_spill] sm:$0xff]  ;;  %v11626_v54 = vld [vmem:[#allocation49_spill] sm:$0xff] }
 0x636   :  { %3524 = vmatprep.subr.mxu0 %v11603_v31  ;;  %3595 = vmatprep.subr.mxu1 %v11604_v1  ;;  %v11627_v31 = vld [vmem:[#allocation52_spill] sm:$0xff]  ;;  %v11628_v1 = vld [vmem:[#allocation51_spill] sm:$0xff] }
 0x637   :  { %3525 = vmatpush1.msra.mxu0 %v11605_v44  ;;  %3558 = vmatprep.mubr.f32.mxu0 %v11035_v53  ;;  %v11629_v44 = vld [vmem:[#allocation54_spill] sm:$0xff] }
 0x638   :  { %3596 = vmatpush1.msra.mxu1 %v11606_v35  ;;  %3629 = vmatprep.mubr.f32.mxu1 %v11035_v53  ;;  %v11630_v35 = vld [vmem:[#allocation53_spill] sm:$0xff] }
 0x639   :  { %3559 = vmatmul.mubr.f32.vlgmr.msra.gmra.mxu0 %v9116_v34  ;;  %3630 = vmatmul.mubr.f32.vlgmr.msra.gmra.mxu1 %v9116_v34  ;;  %v11617_v34 = vld [vmem:[#allocation42_spill] sm:$0xff] }
 0x63a   :  { %3718 = vmatprep.subr.mxu0 %v11607_v21  ;;  %3789 = vmatprep.subr.mxu1 %v11608_v13  ;;  %v11631_v21 = vld [vmem:[#allocation56_spill] sm:$0xff]  ;;  %v11632_v13 = vld [vmem:[#allocation55_spill] sm:$0xff] }
 0x63b   :  { %3719 = vmatpush1.msra.mxu0 %v11609_v28  ;;  %3790 = vmatpush1.msra.mxu1 %v11610_v24  ;;  %v11633_v28 = vld [vmem:[#allocation58_spill] sm:$0xff]  ;;  %v11634_v24 = vld [vmem:[#allocation57_spill] sm:$0xff] }
 0x63c   :  { %3720 = vmatprep.subr.mxu0 %v11611_v63  ;;  %3791 = vmatprep.subr.mxu1 %v11612_v5  ;;  %v11635_v63 = vld [vmem:[#allocation60_spill] sm:$0xff]  ;;  %v11636_v5 = vld [vmem:[#allocation59_spill] sm:$0xff] }
 0x63d   :  { %3721 = vmatpush1.msra.mxu0 %v11613_v2  ;;  %3792 = vmatpush1.msra.mxu1 %v11614_v0  ;;  %v11637_v2 = vld [vmem:[#allocation62_spill] sm:$0xff]  ;;  %v11638_v0 = vld [vmem:[#allocation61_spill] sm:$0xff] }
 0x63e   :  { %3722 = vmatprep.subr.mxu0 %v11615_v32  ;;  %3793 = vmatprep.subr.mxu1 %v11616_v25  ;;  %v11639_v32 = vld [vmem:[#allocation64_spill] sm:$0xff]  ;;  %v11640_v25 = vld [vmem:[#allocation63_spill] sm:$0xff] }
 0x63f   :  { %3723 = vmatpush1.msra.mxu0 %v11617_v34  ;;  %3794 = vmatpush1.msra.mxu1 %v11618_v46  ;;  %v11641_v34 = vld [vmem:[#allocation66_spill] sm:$0xff]  ;;  %v11642_v46 = vld [vmem:[#allocation65_spill] sm:$0xff] }
 0x640   :  { %3724 = vmatprep.subr.mxu0 %v11619_v59  ;;  %3795 = vmatprep.subr.mxu1 %v11620_v36  ;;  %v11643_v59 = vld [vmem:[#allocation68_spill] sm:$0xff]  ;;  %v11644_v36 = vld [vmem:[#allocation67_spill] sm:$0xff] }
 0x641   :  { %3725 = vmatpush1.msra.mxu0 %v11621_v48  ;;  %3796 = vmatpush1.msra.mxu1 %v11622_v50  ;;  %v11645_v48 = vld [vmem:[#allocation70_spill] sm:$0xff]  ;;  %v11646_v50 = vld [vmem:[#allocation69_spill] sm:$0xff] }
 0x642   :  { %3726 = vmatprep.subr.mxu0 %v11623_v52  ;;  %3797 = vmatprep.subr.mxu1 %v11624_v15  ;;  %v11647_v52 = vld [vmem:[#allocation72_spill] sm:$0xff]  ;;  %v11648_v15 = vld [vmem:[#allocation71_spill] sm:$0xff] }
 0x643   :  { %3727 = vmatpush1.msra.mxu0 %v11625_v18  ;;  %3798 = vmatpush1.msra.mxu1 %v11626_v54  ;;  %v11649_v18 = vld [vmem:[#allocation74_spill] sm:$0xff]  ;;  %v11650_v54 = vld [vmem:[#allocation73_spill] sm:$0xff] }
 0x644   :  { %3728 = vmatprep.subr.mxu0 %v11627_v31  ;;  %3799 = vmatprep.subr.mxu1 %v11628_v1  ;;  %v11651_v31 = vld [vmem:[#allocation76_spill] sm:$0xff]  ;;  %v11652_v1 = vld [vmem:[#allocation75_spill] sm:$0xff] }
 0x645   :  { %3729 = vmatpush1.msra.mxu0 %v11629_v44  ;;  %3800 = vmatpush1.msra.mxu1 %v11630_v35  ;;  %v11653_v44 = vld [vmem:[#allocation78_spill] sm:$0xff]  ;;  %v11654_v35 = vld [vmem:[#allocation77_spill] sm:$0xff] }
 0x646   :  { %3730 = vmatprep.subr.mxu0 %v11631_v21  ;;  %3801 = vmatprep.subr.mxu1 %v11632_v13  ;;  %v11655_v21 = vld [vmem:[#allocation80_spill] sm:$0xff]  ;;  %v11656_v13 = vld [vmem:[#allocation79_spill] sm:$0xff] }
 0x647   :  { %3731 = vmatpush1.msra.mxu0 %v11633_v28  ;;  %3802 = vmatpush1.msra.mxu1 %v11634_v24  ;;  %v11657_v28 = vld [vmem:[#allocation82_spill] sm:$0xff]  ;;  %v11658_v24 = vld [vmem:[#allocation81_spill] sm:$0xff] }
 0x648   :  { %3732 = vmatprep.subr.mxu0 %v11635_v63  ;;  %3803 = vmatprep.subr.mxu1 %v11636_v5  ;;  %v11659_v63 = vld [vmem:[#allocation84_spill] sm:$0xff]  ;;  %v11660_v5 = vld [vmem:[#allocation83_spill] sm:$0xff] }
 0x649   :  { %3733 = vmatpush1.msra.mxu0 %v11637_v2  ;;  %3804 = vmatpush1.msra.mxu1 %v11638_v0  ;;  %v11661_v2 = vld [vmem:[#allocation85_spill] sm:$0xff]  ;;  %v11662_v0 = vld [vmem:[#allocation86_spill] sm:$0xff] }
 0x64a   :  { %3734 = vmatprep.subr.mxu0 %v11639_v32  ;;  %3805 = vmatprep.subr.mxu1 %v11640_v25  ;;  %v11663_v32 = vld [vmem:[#allocation87_spill] sm:$0xff]  ;;  %v11664_v25 = vld [vmem:[#allocation150_spill] sm:$0xff] }
 0x64b   :  { %3735 = vmatpush1.msra.mxu0 %v11641_v34  ;;  %3806 = vmatpush1.msra.mxu1 %v11642_v46  ;;  %v11665_v34 = vld [vmem:[#allocation152_spill] sm:$0xff]  ;;  %v11666_v46 = vld [vmem:[#allocation151_spill] sm:$0xff] }
 0x64c   :  { %3736 = vmatprep.subr.mxu0 %v11643_v59  ;;  %3807 = vmatprep.subr.mxu1 %v11644_v36  ;;  %v11667_v59 = vld [vmem:[#allocation88_spill] sm:$0xff]  ;;  %v11668_v36 = vld [vmem:[#allocation89_spill] sm:$0xff] }
 0x64d   :  { %3737 = vmatpush1.msra.mxu0 %v11645_v48  ;;  %3808 = vmatpush1.msra.mxu1 %v11646_v50  ;;  %v11669_v48 = vld [vmem:[#allocation90_spill] sm:$0xff]  ;;  %v11670_v50 = vld [vmem:[#allocation91_spill] sm:$0xff] }
 0x64e   :  { %3738 = vmatprep.subr.mxu0 %v11647_v52  ;;  %3809 = vmatprep.subr.mxu1 %v11648_v15  ;;  %v11671_v52 = vld [vmem:[#allocation92_spill] sm:$0xff]  ;;  %v11672_v15 = vld [vmem:[#allocation93_spill] sm:$0xff] }
 0x64f   :  { %3739 = vmatpush1.msra.mxu0 %v11649_v18  ;;  %3810 = vmatpush1.msra.mxu1 %v11650_v54 }
 0x650   :  { %3740 = vmatprep.subr.mxu0 %v11651_v31  ;;  %3811 = vmatprep.subr.mxu1 %v11652_v1 }
 0x651   :  { %3741 = vmatpush1.msra.mxu0 %v11653_v44  ;;  %3812 = vmatpush1.msra.mxu1 %v11654_v35 }
 0x652   :  { %3742 = vmatprep.subr.mxu0 %v11655_v21  ;;  %3813 = vmatprep.subr.mxu1 %v11656_v13 }
 0x653   :  { %3743 = vmatpush1.msra.mxu0 %v11657_v28  ;;  %3814 = vmatpush1.msra.mxu1 %v11658_v24 }
 0x654   :  { %3744 = vmatprep.subr.mxu0 %v11659_v63  ;;  %3815 = vmatprep.subr.mxu1 %v11660_v5 }
 0x655   :  { %3745 = vmatpush1.msra.mxu0 %v11661_v2  ;;  %3816 = vmatpush1.msra.mxu1 %v11662_v0 }
 0x656   :  { %3746 = vmatprep.subr.mxu0 %v11663_v32  ;;  %3817 = vmatprep.subr.mxu1 %v11664_v25 }
 0x657   :  { %3747 = vmatpush1.msra.mxu0 %v11665_v34  ;;  %3818 = vmatpush1.msra.mxu1 %v11666_v46 }
 0x658   :  { %3748 = vmatprep.subr.mxu0 %v11667_v59  ;;  %3819 = vmatprep.subr.mxu1 %v11668_v36  ;;  %v11673_v36 = vld [vmem:[#allocation12_spill] sm:$0xff] }
 0x659   :  { %3749 = vmatpush1.msra.mxu0 %v11669_v48  ;;  %3782 = vmatprep.mubr.f32.mxu0 %v11035_v53 }
 0x65a   :  { %3820 = vmatpush1.msra.mxu1 %v11670_v50  ;;  %3853 = vmatprep.mubr.f32.mxu1 %v11035_v53 }
 0x65b   :  { %3866 = vmatprep.subr.mxu0 %v11671_v52  ;;  %3937 = vmatprep.subr.mxu1 %v11672_v15 }
 0x6b1   :  { %v3242_v18 = vpop.f32.mrf.mxu0  ;;  %v3313_v1 = vpop.f32.mrf.mxu1 }
 0x6b3   :  { %v3244_v54 = vpop.f32.mrf.mxu0  ;;  %v3315_v28 = vpop.f32.mrf.mxu1 }
 0x6d8   :  { %v3390_v31 = vpop.f32.mrf.mxu0  ;;  %v3461_v5 = vpop.f32.mrf.mxu1 }
 0x6d9   :  { %v3391_v44 = vadd.f32 %v3390_v31, %v3242_v18  ;;  %v3462_v0 = vadd.f32 %v3461_v5, %v3313_v1 }
 0x6da   :  { %v3392_v35 = vpop.f32.mrf.mxu0  ;;  %v3463_v32 = vpop.f32.mrf.mxu1 }
 0x6db   :  { %v3466_v21 = vadd.f32 %v3391_v44, %v7587_v41  ;;  %v3393_v13 = vadd.f32 %v3392_v35, %v3244_v54  ;;  %v3468_v25 = vadd.f32 %v3462_v0, %v7597_v7  ;;  %v3464_v34 = vadd.f32 %v3463_v32, %v3315_v28 }
 0x6dd   :  { %v5426_v24 = vmul.f32 -1.442695, %v3466_v21  ;;  %v3467_v63 = vadd.f32 %v3393_v13, %v7591_v47  ;;  %v5428_v46 = vmul.f32 -1.442695, %v3468_v25  ;;  %v3469_v48 = vadd.f32 %v3464_v34, %v11673_v36 }
 0x6df   :  { %5780 = vpow2.f32 %v5426_v24  ;;  %v5427_v2 = vmul.f32 -1.442695, %v3467_v63 }
 0x6e1   :  { %5782 = vpow2.f32 %v5427_v2 }
 0x6e2   :  { %5784 = vpow2.f32 %v5428_v46 }
 0x6ec   :  { %v5781_v59 = vpop.eup %5780 }
 0x6ed   :  { %v3479_v50 = vadd.f32 1.0, %v5781_v59 }
 0x6ee   :  { %v5783_v52 = vpop.eup %5782 }
 0x6ef   :  { %5786 = vrcp.f32 %v3479_v50  ;;  %v3480_v15 = vadd.f32 1.0, %v5783_v52  ;;  %v5785_v44 = vpop.eup %5784 }
 0x6f0   :  { %5788 = vtanh.f32 %v3469_v48  ;;  %v3481_v2 = vadd.f32 1.0, %v5785_v44 }
 0x6f1   :  { %5790 = vrcp.f32 %v3480_v15 }
 0x6f9   :  { %v3560_v18 = vpop.f32.mrf.mxu0  ;;  %v3631_v48 = vpop.f32.mrf.mxu1 }
 0x6fa   :  { %v3640_v54 = vrot.slane %v3560_v18, 3  ;;  %v3644_v31 = vrot.slane %v3560_v18, 4  ;;  %v3642_v18 = vrot.slane %v3631_v48, 3 }
 0x6fb   :  { %v3562_v1 = vpop.f32.mrf.mxu0 }
 0x6fc   :  { %v5787_v35 = vpop.eup %5786  ;;  %v3656_v21 = vadd.f32 %v3640_v54, %v11107_v29  ;;  %v3660_v13 = vadd.f32 %v3644_v31, %v7381_v17  ;;  %v3641_v24 = vrot.slane %v3562_v1, 3  ;;  %v3645_v63 = vrot.slane %v3562_v1, 4 }
 0x6fd   :  { %v5789_v28 = vpop.eup %5788  ;;  %v3646_v54 = vrot.slane %v3631_v48, 4  ;;  %v3658_v31 = vadd.f32 %v3642_v18, %v7393_v26  ;;  %v11675_v18 = vld [vmem:[#allocation95_spill] sm:$0xff] }
 0x6fe   :  { %v5791_v5 = vpop.eup %5790  ;;  %v5429_v0 = vmul.f32 -1.442695, %v3656_v21  ;;  %v5432_v32 = vmul.f32 -1.442695, %v3660_v13  ;;  %v3490_v34 = vmul.f32 %v5789_v28, %v5787_v35  ;;  %v3657_v46 = vadd.f32 %v3641_v24, %v11109_v55 }
 0x6ff   :  { %v3489_v25 = vmul.f32 %v5791_v5, %v8910_v56  ;;  %v3661_v59 = vadd.f32 %v3645_v63, %v11108_v37  ;;  %v3633_v56 = vpop.f32.mrf.mxu1  ;;  %v3662_v44 = vadd.f32 %v3646_v54, %v7397_v22  ;;  %v5431_v21 = vmul.f32 -1.442695, %v3658_v31  ;;  %v11676_v54 = vld [vmem:[#allocation96_spill] sm:$0xff]  ;;  %v11678_v31 = vld [vmem:[#allocation98_spill] sm:$0xff] }
 0x700   :  { %5792 = vpow2.f32 %v5429_v0  ;;  %v5430_v52 = vmul.f32 -1.442695, %v3657_v46  ;;  %v3643_v1 = vrot.slane %v3633_v56, 3  ;;  %v3647_v35 = vrot.slane %v3633_v56, 4  ;;  %v11677_v56 = vld [vmem:[#allocation97_spill] sm:$0xff] }
 0x701   :  { %v9293_v50 = vadd.f32 %v3490_v34, %v3489_v25  ;;  %5794 = vpow2.f32 %v5432_v32  ;;  %v5433_v15 = vmul.f32 -1.442695, %v3661_v59  ;;  %v5434_v13 = vmul.f32 -1.442695, %v3662_v44  ;;  %v11679_v44 = vld [vmem:[#allocation99_spill] sm:$0xff] }
 0x702   :  { %5796 = vrcp.f32 %v3481_v2  ;;  %v3659_v24 = vadd.f32 %v3643_v1, %v7401_v61  ;;  %v3663_v5 = vadd.f32 %v3647_v35, %v7403_v20  ;;  %v11680_v1 = vld [vmem:[#allocation100_spill] sm:$0xff] }
 0x703   :  { %5798 = vtanh.f32 %v9293_v50  ;;  %v11684_v35 = vld [vmem:[#allocation104_spill] sm:$0xff] }
 0x704   :  { %5800 = vpow2.f32 %v5430_v52 }
 0x705   :  { %5802 = vpow2.f32 %v5433_v15  ;;  %v11674_v15 = vld [vmem:[#allocation94_spill] sm:$0xff] }
 0x706   :  { %5804 = vpow2.f32 %v5431_v21  ;;  %v11685_v21 = vld [vmem:[#allocation105_spill] sm:$0xff] }
 0x707   :  { %5806 = vpow2.f32 %v5434_v13  ;;  %v11686_v13 = vld [vmem:[#allocation106_spill] sm:$0xff] }
 0x708   :  { %5808 = vtanh.f32 %v3659_v24  ;;  %v11687_v24 = vld [vmem:[#allocation107_spill] sm:$0xff] }
 0x709   :  { %5810 = vtanh.f32 %v3663_v5 }
 0x70d   :  { %v5793_v28 = vpop.eup %5792 }
 0x70e   :  { %v5795_v63 = vpop.eup %5794  ;;  %v3682_v0 = vadd.f32 1.0, %v5793_v28 }
 0x70f   :  { %v5797_v2 = vpop.eup %5796  ;;  %v3685_v25 = vadd.f32 1.0, %v5795_v63  ;;  %v11688_v63 = vld [vmem:[#allocation108_spill] sm:$0xff] }
 0x710   :  { %v5799_v32 = vpop.eup %5798  ;;  %5812 = vrcp.f32 %v3682_v0  ;;  %v11690_v0 = vld [vmem:[#allocation110_spill] sm:$0xff] }
 0x711   :  { %v3493_v34 = vmul.f32 %v5799_v32, %v5797_v2  ;;  %v5801_v46 = vpop.eup %5800  ;;  %5814 = vrcp.f32 %v3685_v25  ;;  %v11689_v2 = vld [vmem:[#allocation109_spill] sm:$0xff]  ;;  %v11691_v25 = vld [vmem:[#allocation111_spill] sm:$0xff] }
 0x712   :  { %v5803_v59 = vpop.eup %5802  ;;  %v3683_v48 = vadd.f32 1.0, %v5801_v46 }
 0x713   :  { %3783 = vmatmul.mubr.f32.vlgmr.msra.gmra.mxu0 %v3493_v34  ;;  %3854 = vmatmul.mubr.f32.vlgmr.msra.gmra.mxu1 %v3493_v34  ;;  %v3686_v52 = vadd.f32 1.0, %v5803_v59  ;;  %v5805_v28 = vpop.eup %5804  ;;  %v11692_v34 = vld [vmem:[#allocation112_spill] sm:$0xff]  ;;  %v11693_v59 = vld [vmem:[#allocation113_spill] sm:$0xff] }
 0x714   :  { %3867 = vmatpush1.msra.mxu0 %v8917_v30  ;;  %3938 = vmatpush1.msra.mxu1 %v8920_v6  ;;  %5816 = vrcp.f32 %v3683_v48  ;;  %v11681_v30 = vld [vmem:[#allocation101_spill] sm:$0xff]  ;;  %v11682_v6 = vld [vmem:[#allocation102_spill] sm:$0xff]  ;;  %v5807_v5 = vpop.eup %5806 }
 0x715   :  { %3868 = vmatprep.subr.mxu0 %v8923_v11  ;;  %3939 = vmatprep.subr.mxu1 %v11674_v15  ;;  %5818 = vrcp.f32 %v3686_v52  ;;  %v11683_v11 = vld [vmem:[#allocation103_spill] sm:$0xff]  ;;  %v5809_v32 = vpop.eup %5808  ;;  %v11694_v48 = vld [vmem:[#allocation114_spill] sm:$0xff] }
 0x716   :  { %3869 = vmatpush1.msra.mxu0 %v11675_v18  ;;  %3940 = vmatpush1.msra.mxu1 %v11676_v54  ;;  %v5811_v46 = vpop.eup %5810  ;;  %v11695_v15 = vld [vmem:[#allocation115_spill] sm:$0xff]  ;;  %v11696_v18 = vld [vmem:[#allocation116_spill] sm:$0xff] }
 0x717   :  { %3870 = vmatprep.subr.mxu0 %v11677_v56  ;;  %3941 = vmatprep.subr.mxu1 %v11678_v31  ;;  %v3704_v56 = vrot.slane %v9021_v39, 7  ;;  %v3684_v31 = vadd.f32 1.0, %v5805_v28 }
 0x718   :  { %3871 = vmatpush1.msra.mxu0 %v11679_v44  ;;  %3942 = vmatpush1.msra.mxu1 %v11680_v1  ;;  %v11697_v44 = vld [vmem:[#allocation117_spill] sm:$0xff]  ;;  %v11698_v1 = vld [vmem:[#allocation118_spill] sm:$0xff] }
 0x719   :  { %3872 = vmatprep.subr.mxu0 %v11681_v30  ;;  %3943 = vmatprep.subr.mxu1 %v11682_v6  ;;  %v3705_v6 = vrot.slane %v9029_v33, 7  ;;  %5820 = vrcp.f32 %v3684_v31  ;;  %v11721_v31 = vld [vmem:[#allocation141_spill] sm:$0xff] }
 0x71a   :  { %3873 = vmatpush1.msra.mxu0 %v11683_v11  ;;  %3944 = vmatpush1.msra.mxu1 %v11684_v35  ;;  %v3687_v11 = vadd.f32 1.0, %v5807_v5  ;;  %v11699_v35 = vld [vmem:[#allocation119_spill] sm:$0xff] }
 0x71b   :  { %3874 = vmatprep.subr.mxu0 %v11685_v21  ;;  %3945 = vmatprep.subr.mxu1 %v11686_v13  ;;  %v11707_v5 = vld [vmem:[#allocation127_spill] sm:$0xff] }
 0x71c   :  { %3875 = vmatpush1.msra.mxu0 %v11687_v24  ;;  %3946 = vmatpush1.msra.mxu1 %v11688_v63  ;;  %5822 = vrcp.f32 %v3687_v11  ;;  %v11700_v63 = vld [vmem:[#allocation120_spill] sm:$0xff]  ;;  %v11725_v11 = vld [vmem:[#allocation145_spill] sm:$0xff] }
 0x71d   :  { %3876 = vmatprep.subr.mxu0 %v11689_v2  ;;  %3947 = vmatprep.subr.mxu1 %v11690_v0  ;;  %v5813_v52 = vpop.eup %5812  ;;  %v11708_v2 = vld [vmem:[#allocation128_spill] sm:$0xff]  ;;  %v11709_v0 = vld [vmem:[#allocation129_spill] sm:$0xff] }
 0x71e   :  { %3877 = vmatpush1.msra.mxu0 %v11691_v25  ;;  %3948 = vmatpush1.msra.mxu1 %v11692_v34  ;;  %v5815_v54 = vpop.eup %5814  ;;  %v3710_v24 = vmul.f32 %v5813_v52, %v5809_v32  ;;  %v11710_v32 = vld [vmem:[#allocation130_spill] sm:$0xff]  ;;  %v11711_v25 = vld [vmem:[#allocation131_spill] sm:$0xff]  ;;  %v11712_v34 = vld [vmem:[#allocation132_spill] sm:$0xff] }
 0x71f   :  { %3878 = vmatprep.subr.mxu0 %v11693_v59  ;;  %3949 = vmatprep.subr.mxu1 %v11694_v48  ;;  %v3711_v28 = vmul.f32 %v5815_v54, %v5811_v46  ;;  %v11713_v46 = vld [vmem:[#allocation133_spill] sm:$0xff]  ;;  %v11714_v59 = vld [vmem:[#allocation134_spill] sm:$0xff]  ;;  %v11715_v48 = vld [vmem:[#allocation135_spill] sm:$0xff] }
 0x720   :  { %3879 = vmatpush1.msra.mxu0 %v11695_v15  ;;  %3950 = vmatpush1.msra.mxu1 %v11696_v18  ;;  %v11716_v52 = vld [vmem:[#allocation136_spill] sm:$0xff]  ;;  %v11717_v15 = vld [vmem:[#allocation137_spill] sm:$0xff]  ;;  %v11718_v18 = vld [vmem:[#allocation138_spill] sm:$0xff] }
 0x721   :  { %3880 = vmatprep.subr.mxu0 %v11697_v44  ;;  %3951 = vmatprep.subr.mxu1 %v11698_v1  ;;  %v5817_v30 = vpop.eup %5816  ;;  %v11719_v54 = vld [vmem:[#allocation139_spill] sm:$0xff]  ;;  %v11722_v44 = vld [vmem:[#allocation142_spill] sm:$0xff] }
 0x722   :  { %3881 = vmatpush1.msra.mxu0 %v11699_v35  ;;  %3952 = vmatpush1.msra.mxu1 %v9006_v27  ;;  %v5819_v21 = vpop.eup %5818  ;;  %v3708_v13 = vmul.f32 %v5817_v30, %v3704_v56  ;;  %v11720_v56 = vld [vmem:[#allocation140_spill] sm:$0xff]  ;;  %v11723_v1 = vld [vmem:[#allocation143_spill] sm:$0xff] }
 0x723   :  { %3882 = vmatprep.subr.mxu0 %v9009_v19  ;;  %3953 = vmatprep.subr.mxu1 %v9012_v57  ;;  %v3709_v39 = vmul.f32 %v5819_v21, %v3705_v6  ;;  %v11701_v19 = vld [vmem:[#allocation121_spill] sm:$0xff]  ;;  %v11702_v57 = vld [vmem:[#allocation122_spill] sm:$0xff]  ;;  %v11724_v6 = vld [vmem:[#allocation144_spill] sm:$0xff] }
 0x724   :  { %3883 = vmatpush1.msra.mxu0 %v9015_v23  ;;  %3954 = vmatpush1.msra.mxu1 %v9018_v40  ;;  %v9336_v33 = vadd.f32 %v3710_v24, %v3708_v13  ;;  %v11703_v23 = vld [vmem:[#allocation123_spill] sm:$0xff]  ;;  %v11704_v40 = vld [vmem:[#allocation124_spill] sm:$0xff] }
 0x725   :  { %3884 = vmatprep.subr.mxu0 %v9023_v42  ;;  %3955 = vmatprep.subr.mxu1 %v9026_v60  ;;  %v9340_v27 = vadd.f32 %v3711_v28, %v3709_v39  ;;  %v11705_v42 = vld [vmem:[#allocation125_spill] sm:$0xff]  ;;  %v11706_v60 = vld [vmem:[#allocation126_spill] sm:$0xff] }
 0x726   :  { %3885 = vmatpush1.msra.mxu0 %v11700_v63  ;;  %3956 = vmatpush1.msra.mxu1 %v11701_v19  ;;  %5824 = vtanh.f32 %v9336_v33  ;;  %v5821_v30 = vpop.eup %5820  ;;  %v9372_v13 = vld [vmem:[#allocation2 + $0x1e8] sm:$0xff]  ;;  %v9375_v24 = vld [vmem:[#allocation2 + $0x1f8] sm:$0xff] }
 0x727   :  { %3886 = vmatprep.subr.mxu0 %v11702_v57  ;;  %3957 = vmatprep.subr.mxu1 %v11703_v23  ;;  %5826 = vtanh.f32 %v9340_v27 }
 0x728   :  { %3887 = vmatpush1.msra.mxu0 %v11704_v40  ;;  %3958 = vmatpush1.msra.mxu1 %v11705_v42  ;;  %v9384_v40 = vld [vmem:[#allocation2 + $0x1f0] sm:$0xff]  ;;  %v9388_v42 = vld [vmem:[#allocation2 + $0x1d8] sm:$0xff] }
 0x729   :  { %3888 = vmatprep.subr.mxu0 %v11706_v60  ;;  %3959 = vmatprep.subr.mxu1 %v11707_v5  ;;  %v5823_v35 = vpop.eup %5822  ;;  %v9392_v60 = vld [vmem:[#allocation2 + $0x1d0] sm:$0xff]  ;;  %v9396_v5 = vld [vmem:[#allocation2 + $0x1b8] sm:$0xff] }
 0x72a   :  { %3889 = vmatpush1.msra.mxu0 %v11708_v2  ;;  %3960 = vmatpush1.msra.mxu1 %v11709_v0  ;;  %v9449_v2 = vld [vmem:[#allocation2 + $0xe0] sm:$0xff]  ;;  %v9458_v0 = vld [vmem:[#allocation2 + $0xd8] sm:$0xff] }
 0x72b   :  { %3890 = vmatprep.subr.mxu0 %v11710_v32  ;;  %3961 = vmatprep.subr.mxu1 %v11711_v25  ;;  %v9461_v32 = vld [vmem:[#allocation2 + $0xc0] sm:$0xff]  ;;  %v9464_v25 = vld [vmem:[#allocation2 + $0xd0] sm:$0xff] }
 0x72c   :  { %3891 = vmatpush1.msra.mxu0 %v11712_v34  ;;  %3962 = vmatpush1.msra.mxu1 %v11713_v46  ;;  %v9467_v34 = vld [vmem:[#allocation2 + $0xa8] sm:$0xff]  ;;  %v9470_v46 = vld [vmem:[#allocation2 + $0xb8] sm:$0xff] }
 0x72d   :  { %3892 = vmatprep.subr.mxu0 %v11714_v59  ;;  %3963 = vmatprep.subr.mxu1 %v11715_v48  ;;  %v9473_v59 = vld [vmem:[#allocation2 + $0xa0] sm:$0xff]  ;;  %v9476_v48 = vld [vmem:[#allocation2 + $0xb0] sm:$0xff] }
 0x72e   :  { %3893 = vmatpush1.msra.mxu0 %v11716_v52  ;;  %3964 = vmatpush1.msra.mxu1 %v11717_v15  ;;  %v9479_v52 = vld [vmem:[#allocation2 + $0x88] sm:$0xff]  ;;  %v9482_v15 = vld [vmem:[#allocation2 + $0x98] sm:$0xff] }
 0x72f   :  { %3894 = vmatprep.subr.mxu0 %v11718_v18  ;;  %3965 = vmatprep.subr.mxu1 %v11719_v54  ;;  %11726 = vst [vmem:[#allocation146_spill] sm:$0xff] %v9479_v52  ;;  %11727 = vst [vmem:[#allocation147_spill] sm:$0xff] %v9482_v15  ;;  %v9485_v18 = vld [vmem:[#allocation2 + $0x80] sm:$0xff]  ;;  %v9488_v54 = vld [vmem:[#allocation2 + $0x90] sm:$0xff] }
 0x730   :  { %3895 = vmatpush1.msra.mxu0 %v11720_v56  ;;  %3966 = vmatpush1.msra.mxu1 %v11721_v31  ;;  %11728 = vst [vmem:[#allocation148_spill] sm:$0xff] %v9485_v18  ;;  %11729 = vst [vmem:[#allocation149_spill] sm:$0xff] %v9488_v54  ;;  %v9491_v56 = vld [vmem:[#allocation2 + $0x68] sm:$0xff]  ;;  %v9494_v31 = vld [vmem:[#allocation2 + $0x78] sm:$0xff] }
 0x731   :  { %3896 = vmatprep.subr.mxu0 %v11722_v44  ;;  %3967 = vmatprep.subr.mxu1 %v11723_v1  ;;  %11730 = vst [vmem:[#allocation17_spill] sm:$0xff] %v9491_v56  ;;  %11731 = vst [vmem:[#allocation13_spill] sm:$0xff] %v9494_v31  ;;  %v9497_v44 = vld [vmem:[#allocation2 + $0x60] sm:$0xff]  ;;  %v9500_v1 = vld [vmem:[#allocation2 + $0x70] sm:$0xff] }
 0x732   :  { %3897 = vmatpush1.msra.mxu0 %v11724_v6  ;;  %3968 = vmatpush1.msra.mxu1 %v11725_v11  ;;  %11732 = vst [vmem:[#allocation18_spill] sm:$0xff] %v9497_v44  ;;  %11733 = vst [vmem:[#allocation14_spill] sm:$0xff] %v9500_v1  ;;  %v9506_v6 = vld [vmem:[#allocation2 + $0x58] sm:$0xff]  ;;  %v9509_v11 = vld [vmem:[#allocation2 + $0x40] sm:$0xff] }
 0x733   :  { %3930 = vmatprep.mubr.f32.mxu0 %v11035_v53  ;;  %4001 = vmatprep.mubr.f32.mxu1 %v11035_v53  ;;  %v5825_v21 = vpop.eup %5824  ;;  %11735 = vst [vmem:[#allocation15_spill] sm:$0xff] %v9506_v6  ;;  %11736 = vst [vmem:[#allocation20_spill] sm:$0xff] %v9509_v11 }
 0x734   :  { %4036 = vmatprep.subr.mxu0 %v9372_v13  ;;  %4107 = vmatprep.subr.mxu1 %v9375_v24  ;;  %v5827_v39 = vpop.eup %5826  ;;  %v3716_v28 = vmul.f32 %v5825_v21, %v5821_v30  ;;  %v9503_v30 = vld [vmem:[#allocation2 + $0x48] sm:$0xff] }
 0x735   :  { %v3717_v63 = vmul.f32 %v5827_v39, %v5823_v35  ;;  %11734 = vst [vmem:[#allocation19_spill] sm:$0xff] %v9503_v30  ;;  %v9512_v35 = vld [vmem:[#allocation2 + $0x50] sm:$0xff]  ;;  %v9515_v21 = vld [vmem:[#allocation2 + $0x28] sm:$0xff]  ;;  %v9518_v39 = vld [vmem:[#allocation2 + $0x38] sm:$0xff] }
 0x736   :  { %v3862_v19 = vrot.slane %v3716_v28, 5  ;;  %11737 = vst [vmem:[#allocation16_spill] sm:$0xff] %v9512_v35  ;;  %11738 = vst [vmem:[#allocation21_spill] sm:$0xff] %v9515_v21  ;;  %v9521_v28 = vld [vmem:[#allocation2 + $0x20] sm:$0xff] }
 0x737   :  { %v3863_v57 = vrot.slane %v3717_v63, 4  ;;  %11739 = vst [vmem:[#allocation22_spill] sm:$0xff] %v9518_v39  ;;  %11740 = vst [vmem:[#allocation24_spill] sm:$0xff] %v9521_v28  ;;  %v9524_v63 = vld [vmem:[#allocation2 + $0x30] sm:$0xff] }
 0x738   :  { %11741 = vst [vmem:[#allocation23_spill] sm:$0xff] %v9524_v63 }
 0x739   :  { %v9379_v23 = vsel %vm1137_vm4, %v3863_v57, %v3862_v19  ;;  %v9527_v19 = vld [vmem:[#allocation2 + $0x8] sm:$0xff]  ;;  %v9530_v57 = vld [vmem:[#allocation2 + $0x18] sm:$0xff] }
 0x73a   :  { %3931 = vmatmul.mubr.f32.vlgmr.msra.gmra.mxu0 %v9379_v23  ;;  %4002 = vmatmul.mubr.f32.vlgmr.msra.gmra.mxu1 %v9379_v23  ;;  %11742 = vst [vmem:[#allocation26_spill] sm:$0xff] %v9527_v19  ;;  %11743 = vst [vmem:[#allocation25_spill] sm:$0xff] %v9530_v57 }
 0x73b   :  { %4037 = vmatpush1.msra.mxu0 %v9120_v62  ;;  %4108 = vmatpush1.msra.mxu1 %v9384_v40  ;;  %v9400_v62 = vld [vmem:[#allocation2 + $0x1b0] sm:$0xff] }
 0x73c   :  { %4038 = vmatprep.subr.mxu0 %v9124_v51  ;;  %4109 = vmatprep.subr.mxu1 %v9388_v42  ;;  %v9404_v51 = vld [vmem:[#allocation2 + $0x198] sm:$0xff] }
 0x73d   :  { %4039 = vmatpush1.msra.mxu0 %v9128_v38  ;;  %4110 = vmatpush1.msra.mxu1 %v9392_v60  ;;  %v9408_v38 = vld [vmem:[#allocation2 + $0x190] sm:$0xff] }
 0x73e   :  { %4040 = vmatprep.subr.mxu0 %v9132_v3  ;;  %4111 = vmatprep.subr.mxu1 %v9396_v5  ;;  %v9412_v3 = vld [vmem:[#allocation2 + $0x178] sm:$0xff] }
 0x73f   :  { %4041 = vmatpush1.msra.mxu0 %v9136_v4  ;;  %4112 = vmatpush1.msra.mxu1 %v9400_v62  ;;  %v9416_v4 = vld [vmem:[#allocation2 + $0x170] sm:$0xff] }
 0x740   :  { %4042 = vmatprep.subr.mxu0 %v9140_v12  ;;  %4113 = vmatprep.subr.mxu1 %v9404_v51  ;;  %v9420_v12 = vld [vmem:[#allocation2 + $0x158] sm:$0xff] }
 0x741   :  { %4043 = vmatpush1.msra.mxu0 %v9144_v10  ;;  %4114 = vmatpush1.msra.mxu1 %v9408_v38  ;;  %v9424_v10 = vld [vmem:[#allocation2 + $0x150] sm:$0xff] }
 0x742   :  { %4044 = vmatprep.subr.mxu0 %v9148_v14  ;;  %4115 = vmatprep.subr.mxu1 %v9412_v3  ;;  %v9428_v14 = vld [vmem:[#allocation2 + $0x138] sm:$0xff] }
 0x743   :  { %4045 = vmatpush1.msra.mxu0 %v9152_v43  ;;  %4116 = vmatpush1.msra.mxu1 %v9416_v4  ;;  %v9432_v43 = vld [vmem:[#allocation2 + $0x130] sm:$0xff] }
 0x744   :  { %4046 = vmatprep.subr.mxu0 %v9156_v49  ;;  %4117 = vmatprep.subr.mxu1 %v9420_v12  ;;  %v9436_v49 = vld [vmem:[#allocation2 + $0x118] sm:$0xff] }
 0x745   :  { %4047 = vmatpush1.msra.mxu0 %v9160_v8  ;;  %4118 = vmatpush1.msra.mxu1 %v9424_v10  ;;  %v9440_v8 = vld [vmem:[#allocation2 + $0x110] sm:$0xff] }
 0x746   :  { %4048 = vmatprep.subr.mxu0 %v9164_v9  ;;  %4119 = vmatprep.subr.mxu1 %v9428_v14  ;;  %v9443_v9 = vld [vmem:[#allocation2 + $0xe8] sm:$0xff] }
 0x747   :  { %4049 = vmatpush1.msra.mxu0 %v9168_v58  ;;  %4120 = vmatpush1.msra.mxu1 %v9432_v43  ;;  %v9446_v58 = vld [vmem:[#allocation2 + $0xf8] sm:$0xff] }
 0x748   :  { %4050 = vmatprep.subr.mxu0 %v9172_v45  ;;  %4121 = vmatprep.subr.mxu1 %v9436_v49  ;;  %v9452_v45 = vld [vmem:[#allocation2 + $0xf0] sm:$0xff] }
 0x749   :  { %4051 = vmatpush1.msra.mxu0 %v9176_v16  ;;  %4122 = vmatpush1.msra.mxu1 %v9440_v8  ;;  %v9455_v16 = vld [vmem:[#allocation2 + $0xc8] sm:$0xff] }
 0x74a   :  { %4052 = vmatprep.subr.mxu0 %v9443_v9  ;;  %4123 = vmatprep.subr.mxu1 %v9446_v58 }
 0x74b   :  { %4053 = vmatpush1.msra.mxu0 %v9449_v2  ;;  %4124 = vmatpush1.msra.mxu1 %v9452_v45 }
 0x74c   :  { %4054 = vmatprep.subr.mxu0 %v9455_v16  ;;  %4125 = vmatprep.subr.mxu1 %v9458_v0 }
 0x74d   :  { %4055 = vmatpush1.msra.mxu0 %v9461_v32  ;;  %4126 = vmatpush1.msra.mxu1 %v9464_v25 }
 0x74e   :  { %4056 = vmatprep.subr.mxu0 %v9467_v34  ;;  %4127 = vmatprep.subr.mxu1 %v9470_v46 }
 0x74f   :  { %4057 = vmatpush1.msra.mxu0 %v9473_v59  ;;  %4128 = vmatpush1.msra.mxu1 %v9476_v48 }
 0x750   :  { %4058 = vmatprep.subr.mxu0 %v9479_v52  ;;  %4129 = vmatprep.subr.mxu1 %v9482_v15 }
 0x751   :  { %4059 = vmatpush1.msra.mxu0 %v9485_v18  ;;  %4130 = vmatpush1.msra.mxu1 %v9488_v54 }
 0x752   :  { %4060 = vmatprep.subr.mxu0 %v9491_v56  ;;  %4131 = vmatprep.subr.mxu1 %v9494_v31 }
 0x753   :  { %4061 = vmatpush1.msra.mxu0 %v9497_v44  ;;  %4132 = vmatpush1.msra.mxu1 %v9500_v1 }
 0x754   :  { %4062 = vmatprep.subr.mxu0 %v9503_v30  ;;  %4133 = vmatprep.subr.mxu1 %v9506_v6 }
 0x755   :  { %4063 = vmatpush1.msra.mxu0 %v9509_v11  ;;  %4134 = vmatpush1.msra.mxu1 %v9512_v35 }
 0x756   :  { %4064 = vmatprep.subr.mxu0 %v9515_v21  ;;  %4135 = vmatprep.subr.mxu1 %v9518_v39  ;;  %v9533_v21 = vld [vmem:[#allocation2] sm:$0xff]  ;;  %v9537_v39 = vld [vmem:[#allocation2 + $0x10] sm:$0xff] }
 0x757   :  { %4065 = vmatpush1.msra.mxu0 %v9521_v28  ;;  %4136 = vmatpush1.msra.mxu1 %v9524_v63  ;;  %11744 = vst [vmem:[#allocation28_spill] sm:$0xff] %v9533_v21  ;;  %11745 = vst [vmem:[#allocation27_spill] sm:$0xff] %v9537_v39  ;;  %v9552_v63 = vld [vmem:[#allocation7 + $0x1f0] sm:$0xff] }
 0x758   :  { %4066 = vmatprep.subr.mxu0 %v9527_v19  ;;  %4137 = vmatprep.subr.mxu1 %v9530_v57  ;;  %v9543_v19 = vld [vmem:[#allocation7 + $0x1e8] sm:$0xff]  ;;  %v9546_v57 = vld [vmem:[#allocation7 + $0x1f8] sm:$0xff]  ;;  %11749 = vst [vmem:[#allocation31_spill] sm:$0xff] %v9552_v63 }
 0x759   :  { %4067 = vmatpush1.msra.mxu0 %v9533_v21  ;;  %4100 = vmatprep.mubr.f32.mxu0 %v11035_v53  ;;  %11746 = vst [vmem:[#allocation30_spill] sm:$0xff] %v9543_v19  ;;  %11747 = vst [vmem:[#allocation29_spill] sm:$0xff] %v9546_v57  ;;  %v9549_v21 = vld [vmem:[#allocation7 + $0x1e0] sm:$0xff] }
 0x75a   :  { %4138 = vmatpush1.msra.mxu1 %v9537_v39  ;;  %4171 = vmatprep.mubr.f32.mxu1 %v11035_v53  ;;  %11748 = vst [vmem:[#allocation32_spill] sm:$0xff] %v9549_v21  ;;  %v9555_v39 = vld [vmem:[#allocation7 + $0x1c8] sm:$0xff] }
 0x75b   :  { %4101 = vmatmul.mubr.f32.vlgmr.msra.gmra.mxu0 %v9379_v23  ;;  %4172 = vmatmul.mubr.f32.vlgmr.msra.gmra.mxu1 %v9379_v23  ;;  %11750 = vst [vmem:[#allocation34_spill] sm:$0xff] %v9555_v39  ;;  %v9558_v23 = vld [vmem:[#allocation7 + $0x1d8] sm:$0xff] }
 0x75c   :  { %4260 = vmatprep.subr.mxu0 %v9543_v19  ;;  %4331 = vmatprep.subr.mxu1 %v9546_v57  ;;  %11751 = vst [vmem:[#allocation33_spill] sm:$0xff] %v9558_v23  ;;  %v9561_v19 = vld [vmem:[#allocation7 + $0x1c0] sm:$0xff]  ;;  %v9564_v57 = vld [vmem:[#allocation7 + $0x1d0] sm:$0xff] }
 0x75d   :  { %4261 = vmatpush1.msra.mxu0 %v9549_v21  ;;  %4332 = vmatpush1.msra.mxu1 %v9552_v63  ;;  %11752 = vst [vmem:[#allocation36_spill] sm:$0xff] %v9561_v19  ;;  %11753 = vst [vmem:[#allocation35_spill] sm:$0xff] %v9564_v57  ;;  %v9567_v21 = vld [vmem:[#allocation7 + $0x1a8] sm:$0xff]  ;;  %v9570_v63 = vld [vmem:[#allocation7 + $0x1b8] sm:$0xff] }
 0x75e   :  { %4262 = vmatprep.subr.mxu0 %v9555_v39  ;;  %4333 = vmatprep.subr.mxu1 %v9558_v23  ;;  %11754 = vst [vmem:[#allocation38_spill] sm:$0xff] %v9567_v21  ;;  %11755 = vst [vmem:[#allocation37_spill] sm:$0xff] %v9570_v63  ;;  %v9573_v39 = vld [vmem:[#allocation7 + $0x1a0] sm:$0xff]  ;;  %v9576_v23 = vld [vmem:[#allocation7 + $0x1b0] sm:$0xff] }
 0x75f   :  { %4263 = vmatpush1.msra.mxu0 %v9561_v19  ;;  %4334 = vmatpush1.msra.mxu1 %v9564_v57  ;;  %11756 = vst [vmem:[#allocation40_spill] sm:$0xff] %v9573_v39  ;;  %11757 = vst [vmem:[#allocation39_spill] sm:$0xff] %v9576_v23  ;;  %v9579_v19 = vld [vmem:[#allocation7 + $0x188] sm:$0xff]  ;;  %v9582_v57 = vld [vmem:[#allocation7 + $0x198] sm:$0xff] }
 0x760   :  { %4264 = vmatprep.subr.mxu0 %v9567_v21  ;;  %4335 = vmatprep.subr.mxu1 %v9570_v63  ;;  %11758 = vst [vmem:[#allocation42_spill] sm:$0xff] %v9579_v19  ;;  %11759 = vst [vmem:[#allocation41_spill] sm:$0xff] %v9582_v57  ;;  %v9585_v21 = vld [vmem:[#allocation7 + $0x180] sm:$0xff]  ;;  %v9588_v63 = vld [vmem:[#allocation7 + $0x190] sm:$0xff] }
 0x761   :  { %4265 = vmatpush1.msra.mxu0 %v9573_v39  ;;  %4336 = vmatpush1.msra.mxu1 %v9576_v23  ;;  %11760 = vst [vmem:[#allocation44_spill] sm:$0xff] %v9585_v21  ;;  %11761 = vst [vmem:[#allocation43_spill] sm:$0xff] %v9588_v63  ;;  %v9591_v39 = vld [vmem:[#allocation7 + $0x168] sm:$0xff]  ;;  %v9594_v23 = vld [vmem:[#allocation7 + $0x178] sm:$0xff] }
 0x762   :  { %4266 = vmatprep.subr.mxu0 %v9579_v19  ;;  %4337 = vmatprep.subr.mxu1 %v9582_v57  ;;  %11762 = vst [vmem:[#allocation46_spill] sm:$0xff] %v9591_v39  ;;  %11763 = vst [vmem:[#allocation45_spill] sm:$0xff] %v9594_v23  ;;  %v9597_v19 = vld [vmem:[#allocation7 + $0x160] sm:$0xff]  ;;  %v9600_v57 = vld [vmem:[#allocation7 + $0x170] sm:$0xff] }
 0x763   :  { %4267 = vmatpush1.msra.mxu0 %v9585_v21  ;;  %4338 = vmatpush1.msra.mxu1 %v9588_v63  ;;  %11764 = vst [vmem:[#allocation48_spill] sm:$0xff] %v9597_v19  ;;  %11765 = vst [vmem:[#allocation47_spill] sm:$0xff] %v9600_v57  ;;  %v9603_v21 = vld [vmem:[#allocation7 + $0x148] sm:$0xff]  ;;  %v9606_v63 = vld [vmem:[#allocation7 + $0x158] sm:$0xff] }
 0x764   :  { %4268 = vmatprep.subr.mxu0 %v9591_v39  ;;  %4339 = vmatprep.subr.mxu1 %v9594_v23  ;;  %11766 = vst [vmem:[#allocation50_spill] sm:$0xff] %v9603_v21  ;;  %11767 = vst [vmem:[#allocation49_spill] sm:$0xff] %v9606_v63  ;;  %v9609_v39 = vld [vmem:[#allocation7 + $0x140] sm:$0xff]  ;;  %v9612_v23 = vld [vmem:[#allocation7 + $0x150] sm:$0xff] }
 0x765   :  { %4269 = vmatpush1.msra.mxu0 %v9597_v19  ;;  %4340 = vmatpush1.msra.mxu1 %v9600_v57  ;;  %11768 = vst [vmem:[#allocation52_spill] sm:$0xff] %v9609_v39  ;;  %11769 = vst [vmem:[#allocation51_spill] sm:$0xff] %v9612_v23  ;;  %v9615_v19 = vld [vmem:[#allocation7 + $0x128] sm:$0xff]  ;;  %v9618_v57 = vld [vmem:[#allocation7 + $0x138] sm:$0xff] }
 0x766   :  { %4270 = vmatprep.subr.mxu0 %v9603_v21  ;;  %4341 = vmatprep.subr.mxu1 %v9606_v63  ;;  %11770 = vst [vmem:[#allocation54_spill] sm:$0xff] %v9615_v19  ;;  %11771 = vst [vmem:[#allocation53_spill] sm:$0xff] %v9618_v57  ;;  %v9621_v21 = vld [vmem:[#allocation7 + $0x120] sm:$0xff]  ;;  %v9624_v63 = vld [vmem:[#allocation7 + $0x130] sm:$0xff] }
 0x767   :  { %4271 = vmatpush1.msra.mxu0 %v9609_v39  ;;  %4342 = vmatpush1.msra.mxu1 %v9612_v23  ;;  %11772 = vst [vmem:[#allocation56_spill] sm:$0xff] %v9621_v21  ;;  %11773 = vst [vmem:[#allocation55_spill] sm:$0xff] %v9624_v63  ;;  %v9627_v39 = vld [vmem:[#allocation7 + $0x108] sm:$0xff]  ;;  %v9630_v23 = vld [vmem:[#allocation7 + $0x118] sm:$0xff] }
 0x768   :  { %4272 = vmatprep.subr.mxu0 %v9615_v19  ;;  %4343 = vmatprep.subr.mxu1 %v9618_v57  ;;  %11774 = vst [vmem:[#allocation58_spill] sm:$0xff] %v9627_v39  ;;  %11775 = vst [vmem:[#allocation57_spill] sm:$0xff] %v9630_v23  ;;  %v9633_v19 = vld [vmem:[#allocation7 + $0x100] sm:$0xff]  ;;  %v9636_v57 = vld [vmem:[#allocation7 + $0x110] sm:$0xff] }
 0x769   :  { %4273 = vmatpush1.msra.mxu0 %v9621_v21  ;;  %4344 = vmatpush1.msra.mxu1 %v9624_v63  ;;  %11776 = vst [vmem:[#allocation60_spill] sm:$0xff] %v9633_v19  ;;  %11777 = vst [vmem:[#allocation59_spill] sm:$0xff] %v9636_v57  ;;  %v9639_v21 = vld [vmem:[#allocation7 + $0xe8] sm:$0xff]  ;;  %v9642_v63 = vld [vmem:[#allocation7 + $0xf8] sm:$0xff] }
 0x76a   :  { %4274 = vmatprep.subr.mxu0 %v9627_v39  ;;  %4345 = vmatprep.subr.mxu1 %v9630_v23  ;;  %11778 = vst [vmem:[#allocation62_spill] sm:$0xff] %v9639_v21  ;;  %11779 = vst [vmem:[#allocation61_spill] sm:$0xff] %v9642_v63  ;;  %v9645_v39 = vld [vmem:[#allocation7 + $0xe0] sm:$0xff]  ;;  %v9648_v23 = vld [vmem:[#allocation7 + $0xf0] sm:$0xff] }
 0x76b   :  { %4275 = vmatpush1.msra.mxu0 %v9633_v19  ;;  %4346 = vmatpush1.msra.mxu1 %v9636_v57  ;;  %11780 = vst [vmem:[#allocation64_spill] sm:$0xff] %v9645_v39  ;;  %11781 = vst [vmem:[#allocation63_spill] sm:$0xff] %v9648_v23  ;;  %v9651_v19 = vld [vmem:[#allocation7 + $0xc8] sm:$0xff]  ;;  %v9654_v57 = vld [vmem:[#allocation7 + $0xd8] sm:$0xff] }
 0x76c   :  { %4276 = vmatprep.subr.mxu0 %v9639_v21  ;;  %4347 = vmatprep.subr.mxu1 %v9642_v63  ;;  %11782 = vst [vmem:[#allocation66_spill] sm:$0xff] %v9651_v19  ;;  %11783 = vst [vmem:[#allocation65_spill] sm:$0xff] %v9654_v57  ;;  %v9657_v21 = vld [vmem:[#allocation7 + $0xc0] sm:$0xff]  ;;  %v9660_v63 = vld [vmem:[#allocation7 + $0xd0] sm:$0xff] }
 0x76d   :  { %4277 = vmatpush1.msra.mxu0 %v9645_v39  ;;  %4348 = vmatpush1.msra.mxu1 %v9648_v23  ;;  %11784 = vst [vmem:[#allocation68_spill] sm:$0xff] %v9657_v21  ;;  %11785 = vst [vmem:[#allocation67_spill] sm:$0xff] %v9660_v63  ;;  %v9663_v39 = vld [vmem:[#allocation7 + $0xa8] sm:$0xff]  ;;  %v9666_v23 = vld [vmem:[#allocation7 + $0xb8] sm:$0xff] }
 0x76e   :  { %4278 = vmatprep.subr.mxu0 %v9651_v19  ;;  %4349 = vmatprep.subr.mxu1 %v9654_v57  ;;  %11786 = vst [vmem:[#allocation70_spill] sm:$0xff] %v9663_v39  ;;  %11787 = vst [vmem:[#allocation69_spill] sm:$0xff] %v9666_v23  ;;  %v9669_v19 = vld [vmem:[#allocation7 + $0xa0] sm:$0xff]  ;;  %v9672_v57 = vld [vmem:[#allocation7 + $0xb0] sm:$0xff] }
 0x76f   :  { %4279 = vmatpush1.msra.mxu0 %v9657_v21  ;;  %4350 = vmatpush1.msra.mxu1 %v9660_v63  ;;  %11788 = vst [vmem:[#allocation72_spill] sm:$0xff] %v9669_v19  ;;  %11789 = vst [vmem:[#allocation71_spill] sm:$0xff] %v9672_v57  ;;  %v9675_v21 = vld [vmem:[#allocation7 + $0x88] sm:$0xff]  ;;  %v9678_v63 = vld [vmem:[#allocation7 + $0x98] sm:$0xff] }
 0x770   :  { %4280 = vmatprep.subr.mxu0 %v9663_v39  ;;  %4351 = vmatprep.subr.mxu1 %v9666_v23  ;;  %11790 = vst [vmem:[#allocation74_spill] sm:$0xff] %v9675_v21  ;;  %11791 = vst [vmem:[#allocation73_spill] sm:$0xff] %v9678_v63  ;;  %v9681_v39 = vld [vmem:[#allocation7 + $0x80] sm:$0xff]  ;;  %v9684_v23 = vld [vmem:[#allocation7 + $0x90] sm:$0xff] }
 0x771   :  { %4281 = vmatpush1.msra.mxu0 %v9669_v19  ;;  %4352 = vmatpush1.msra.mxu1 %v9672_v57  ;;  %11792 = vst [vmem:[#allocation76_spill] sm:$0xff] %v9681_v39  ;;  %11793 = vst [vmem:[#allocation75_spill] sm:$0xff] %v9684_v23  ;;  %v9687_v19 = vld [vmem:[#allocation7 + $0x68] sm:$0xff]  ;;  %v9690_v57 = vld [vmem:[#allocation7 + $0x78] sm:$0xff] }
 0x772   :  { %4282 = vmatprep.subr.mxu0 %v9675_v21  ;;  %4353 = vmatprep.subr.mxu1 %v9678_v63  ;;  %11794 = vst [vmem:[#allocation78_spill] sm:$0xff] %v9687_v19  ;;  %11795 = vst [vmem:[#allocation77_spill] sm:$0xff] %v9690_v57  ;;  %v9693_v21 = vld [vmem:[#allocation7 + $0x60] sm:$0xff]  ;;  %v9696_v63 = vld [vmem:[#allocation7 + $0x70] sm:$0xff] }
 0x773   :  { %4283 = vmatpush1.msra.mxu0 %v9681_v39  ;;  %4354 = vmatpush1.msra.mxu1 %v9684_v23  ;;  %11796 = vst [vmem:[#allocation80_spill] sm:$0xff] %v9693_v21  ;;  %11797 = vst [vmem:[#allocation79_spill] sm:$0xff] %v9696_v63  ;;  %v9699_v39 = vld [vmem:[#allocation7 + $0x48] sm:$0xff]  ;;  %v9702_v23 = vld [vmem:[#allocation7 + $0x58] sm:$0xff] }
 0x774   :  { %4284 = vmatprep.subr.mxu0 %v9687_v19  ;;  %4355 = vmatprep.subr.mxu1 %v9690_v57  ;;  %11798 = vst [vmem:[#allocation82_spill] sm:$0xff] %v9699_v39  ;;  %11799 = vst [vmem:[#allocation81_spill] sm:$0xff] %v9702_v23  ;;  %v9705_v19 = vld [vmem:[#allocation7 + $0x40] sm:$0xff]  ;;  %v9708_v57 = vld [vmem:[#allocation7 + $0x50] sm:$0xff] }
 0x775   :  { %4285 = vmatpush1.msra.mxu0 %v9693_v21  ;;  %4356 = vmatpush1.msra.mxu1 %v9696_v63  ;;  %11800 = vst [vmem:[#allocation84_spill] sm:$0xff] %v9705_v19  ;;  %11801 = vst [vmem:[#allocation83_spill] sm:$0xff] %v9708_v57  ;;  %v9711_v21 = vld [vmem:[#allocation7 + $0x28] sm:$0xff]  ;;  %v9714_v63 = vld [vmem:[#allocation7 + $0x38] sm:$0xff] }
 0x776   :  { %4286 = vmatprep.subr.mxu0 %v9699_v39  ;;  %4357 = vmatprep.subr.mxu1 %v9702_v23  ;;  %11802 = vst [vmem:[#allocation85_spill] sm:$0xff] %v9711_v21  ;;  %11803 = vst [vmem:[#allocation86_spill] sm:$0xff] %v9714_v63  ;;  %v9717_v39 = vld [vmem:[#allocation7 + $0x20] sm:$0xff]  ;;  %v9720_v23 = vld [vmem:[#allocation7 + $0x30] sm:$0xff] }
 0x777   :  { %4287 = vmatpush1.msra.mxu0 %v9705_v19  ;;  %4358 = vmatpush1.msra.mxu1 %v9708_v57  ;;  %11804 = vst [vmem:[#allocation87_spill] sm:$0xff] %v9717_v39  ;;  %11805 = vst [vmem:[#allocation150_spill] sm:$0xff] %v9720_v23  ;;  %v9723_v19 = vld [vmem:[#allocation7 + $0x8] sm:$0xff]  ;;  %v9726_v57 = vld [vmem:[#allocation7 + $0x18] sm:$0xff] }
 0x778   :  { %4288 = vmatprep.subr.mxu0 %v9711_v21  ;;  %4359 = vmatprep.subr.mxu1 %v9714_v63  ;;  %11806 = vst [vmem:[#allocation152_spill] sm:$0xff] %v9723_v19  ;;  %11807 = vst [vmem:[#allocation151_spill] sm:$0xff] %v9726_v57  ;;  %v9729_v21 = vld [vmem:[#allocation7] sm:$0xff]  ;;  %v9733_v63 = vld [vmem:[#allocation7 + $0x10] sm:$0xff] }
 0x779   :  { %4289 = vmatpush1.msra.mxu0 %v9717_v39  ;;  %4360 = vmatpush1.msra.mxu1 %v9720_v23  ;;  %11808 = vst [vmem:[#allocation88_spill] sm:$0xff] %v9729_v21  ;;  %11809 = vst [vmem:[#allocation89_spill] sm:$0xff] %v9733_v63  ;;  %v9737_v23 = vld [vmem:[#allocation5 + $0x1e8] sm:$0xff] }
 0x77a   :  { %4290 = vmatprep.subr.mxu0 %v9723_v19  ;;  %4361 = vmatprep.subr.mxu1 %v9726_v57  ;;  %11810 = vst [vmem:[#allocation90_spill] sm:$0xff] %v9737_v23  ;;  %v9740_v19 = vld [vmem:[#allocation5 + $0x1f8] sm:$0xff] }
 0x77b   :  { %4291 = vmatpush1.msra.mxu0 %v9729_v21  ;;  %4324 = vmatprep.mubr.f32.mxu0 %v11035_v53  ;;  %11811 = vst [vmem:[#allocation91_spill] sm:$0xff] %v9740_v19 }
 0x77c   :  { %4362 = vmatpush1.msra.mxu1 %v9733_v63  ;;  %4395 = vmatprep.mubr.f32.mxu1 %v11035_v53 }
 0x77d   :  { %4408 = vmatprep.subr.mxu0 %v9737_v23  ;;  %4479 = vmatprep.subr.mxu1 %v9740_v19 }
 0x7d3   :  { %v3784_v57 = vpop.f32.mrf.mxu0  ;;  %v3855_v21 = vpop.f32.mrf.mxu1 }
 0x7d5   :  { %v3786_v39 = vpop.f32.mrf.mxu0  ;;  %v3857_v63 = vpop.f32.mrf.mxu1 }
 0x7fa   :  { %v3932_v28 = vpop.f32.mrf.mxu0  ;;  %v4003_v31 = vpop.f32.mrf.mxu1 }
 0x7fb   :  { %v3933_v35 = vadd.f32 %v3932_v28, %v3784_v57  ;;  %v4004_v56 = vadd.f32 %v4003_v31, %v3855_v21 }
 0x7fc   :  { %v3934_v11 = vpop.f32.mrf.mxu0  ;;  %v4005_v54 = vpop.f32.mrf.mxu1 }
 0x7fd   :  { %v4008_v6 = vadd.f32 %v3933_v35, %v7587_v41  ;;  %v3935_v30 = vadd.f32 %v3934_v11, %v3786_v39  ;;  %v4010_v19 = vadd.f32 %v4004_v56, %v7597_v7  ;;  %v4006_v18 = vadd.f32 %v4005_v54, %v3857_v63 }
 0x7ff   :  { %v5435_v1 = vmul.f32 -1.442695, %v4008_v6  ;;  %v4009_v44 = vadd.f32 %v3935_v30, %v7591_v47  ;;  %v5437_v15 = vmul.f32 -1.442695, %v4010_v19  ;;  %v4011_v28 = vadd.f32 %v4006_v18, %v11673_v36 }
 0x801   :  { %5828 = vpow2.f32 %v5435_v1  ;;  %v5436_v23 = vmul.f32 -1.442695, %v4009_v44 }
 0x803   :  { %5830 = vpow2.f32 %v5436_v23 }
 0x804   :  { %5832 = vpow2.f32 %v5437_v15 }
 0x80e   :  { %v5829_v52 = vpop.eup %5828 }
 0x80f   :  { %v4021_v57 = vadd.f32 1.0, %v5829_v52 }
 0x810   :  { %v5831_v35 = vpop.eup %5830 }
 0x811   :  { %5834 = vrcp.f32 %v4021_v57  ;;  %v4022_v6 = vadd.f32 1.0, %v5831_v35  ;;  %v5833_v11 = vpop.eup %5832 }
 0x812   :  { %5836 = vtanh.f32 %v4011_v28  ;;  %v4023_v19 = vadd.f32 1.0, %v5833_v11 }
 0x813   :  { %5838 = vrcp.f32 %v4022_v6 }
 0x81b   :  { %v4102_v1 = vpop.f32.mrf.mxu0 }
 0x81c   :  { %v4182_v30 = vrot.slane %v4102_v1, 2  ;;  %v4186_v44 = vrot.slane %v4102_v1, 3  ;;  %v4173_v1 = vpop.f32.mrf.mxu1 }
 0x81d   :  { %v4104_v31 = vpop.f32.mrf.mxu0  ;;  %v4184_v11 = vrot.slane %v4173_v1, 2 }
 0x81e   :  { %v5835_v21 = vpop.eup %5834  ;;  %v4198_v56 = vadd.f32 %v4182_v30, %v11107_v29  ;;  %v4202_v54 = vadd.f32 %v4186_v44, %v7381_v17  ;;  %v4183_v63 = vrot.slane %v4104_v31, 2  ;;  %v4187_v18 = vrot.slane %v4104_v31, 3 }
 0x81f   :  { %v5837_v39 = vpop.eup %5836  ;;  %v4188_v31 = vrot.slane %v4173_v1, 3 }
 0x820   :  { %v5839_v52 = vpop.eup %5838  ;;  %v5438_v15 = vmul.f32 -1.442695, %v4198_v56  ;;  %v5441_v23 = vmul.f32 -1.442695, %v4202_v54  ;;  %v4032_v57 = vmul.f32 %v5837_v39, %v5835_v21  ;;  %v4199_v35 = vadd.f32 %v4183_v63, %v11109_v55 }
 0x821   :  { %v4031_v28 = vmul.f32 %v5839_v52, %v9293_v50  ;;  %v4203_v6 = vadd.f32 %v4187_v18, %v11108_v37  ;;  %v4175_v50 = vpop.f32.mrf.mxu1  ;;  %v4200_v21 = vadd.f32 %v4184_v11, %v7393_v26  ;;  %v4204_v56 = vadd.f32 %v4188_v31, %v7397_v22 }
 0x822   :  { %5840 = vpow2.f32 %v5438_v15  ;;  %v5439_v30 = vmul.f32 -1.442695, %v4199_v35  ;;  %v4185_v54 = vrot.slane %v4175_v50, 2  ;;  %v4189_v39 = vrot.slane %v4175_v50, 3  ;;  %v9759_v50 = vld [vmem:[#allocation5 + $0x1e0] sm:$0xff] }
 0x823   :  { %v9752_v36 = vadd.f32 %v4032_v57, %v4031_v28  ;;  %5842 = vpow2.f32 %v5441_v23  ;;  %v5442_v44 = vmul.f32 -1.442695, %v4203_v6  ;;  %v5440_v63 = vmul.f32 -1.442695, %v4200_v21  ;;  %v9762_v21 = vld [vmem:[#allocation5 + $0x1f0] sm:$0xff] }
 0x824   :  { %5844 = vrcp.f32 %v4023_v19  ;;  %v5443_v18 = vmul.f32 -1.442695, %v4204_v56  ;;  %v4201_v15 = vadd.f32 %v4185_v54, %v7401_v61  ;;  %v4205_v23 = vadd.f32 %v4189_v39, %v7403_v20  ;;  %v9765_v56 = vld [vmem:[#allocation5 + $0x1c8] sm:$0xff]  ;;  %v9768_v54 = vld [vmem:[#allocation5 + $0x1d8] sm:$0xff]  ;;  %v9771_v39 = vld [vmem:[#allocation5 + $0x1c0] sm:$0xff] }
 0x825   :  { %5846 = vtanh.f32 %v9752_v36  ;;  %11812 = vst [vmem:[#allocation92_spill] sm:$0xff] %v9768_v54  ;;  %11813 = vst [vmem:[#allocation93_spill] sm:$0xff] %v9771_v39 }
 0x826   :  { %5848 = vpow2.f32 %v5439_v30 }
 0x827   :  { %5850 = vpow2.f32 %v5442_v44 }
 0x828   :  { %5852 = vpow2.f32 %v5440_v63  ;;  %v9774_v63 = vld [vmem:[#allocation5 + $0x1d0] sm:$0xff] }
 0x829   :  { %5854 = vpow2.f32 %v5443_v18  ;;  %11814 = vst [vmem:[#allocation94_spill] sm:$0xff] %v9774_v63  ;;  %v9777_v18 = vld [vmem:[#allocation5 + $0x1a8] sm:$0xff] }
 0x82a   :  { %5856 = vtanh.f32 %v4201_v15  ;;  %11815 = vst [vmem:[#allocation95_spill] sm:$0xff] %v9777_v18  ;;  %v9783_v15 = vld [vmem:[#allocation5 + $0x1a0] sm:$0xff] }
 0x82b   :  { %5858 = vtanh.f32 %v4205_v23  ;;  %11817 = vst [vmem:[#allocation97_spill] sm:$0xff] %v9783_v15  ;;  %v9789_v23 = vld [vmem:[#allocation5 + $0x188] sm:$0xff] }
 0x82c   :  { %11819 = vst [vmem:[#allocation99_spill] sm:$0xff] %v9789_v23 }
 0x82f   :  { %v5841_v52 = vpop.eup %5840 }
 0x830   :  { %v5843_v19 = vpop.eup %5842  ;;  %v4224_v57 = vadd.f32 1.0, %v5841_v52  ;;  %v9780_v52 = vld [vmem:[#allocation5 + $0x1b8] sm:$0xff] }
 0x831   :  { %v5845_v28 = vpop.eup %5844  ;;  %v4227_v6 = vadd.f32 1.0, %v5843_v19  ;;  %11816 = vst [vmem:[#allocation96_spill] sm:$0xff] %v9780_v52  ;;  %v9786_v19 = vld [vmem:[#allocation5 + $0x1b0] sm:$0xff] }
 0x832   :  { %v5847_v35 = vpop.eup %5846  ;;  %5860 = vrcp.f32 %v4224_v57  ;;  %11818 = vst [vmem:[#allocation98_spill] sm:$0xff] %v9786_v19  ;;  %v9795_v57 = vld [vmem:[#allocation5 + $0x180] sm:$0xff] }
 0x833   :  { %v4035_v1 = vmul.f32 %v5847_v35, %v5845_v28  ;;  %v5849_v30 = vpop.eup %5848  ;;  %5862 = vrcp.f32 %v4227_v6  ;;  %v9792_v28 = vld [vmem:[#allocation5 + $0x198] sm:$0xff]  ;;  %11821 = vst [vmem:[#allocation101_spill] sm:$0xff] %v9795_v57  ;;  %v9798_v35 = vld [vmem:[#allocation5 + $0x190] sm:$0xff]  ;;  %v9801_v6 = vld [vmem:[#allocation5 + $0x168] sm:$0xff] }
 0x834   :  { %v5851_v44 = vpop.eup %5850  ;;  %v4225_v11 = vadd.f32 1.0, %v5849_v30  ;;  %11820 = vst [vmem:[#allocation100_spill] sm:$0xff] %v9792_v28  ;;  %11822 = vst [vmem:[#allocation102_spill] sm:$0xff] %v9798_v35 }
 0x835   :  { %4325 = vmatmul.mubr.f32.vlgmr.msra.gmra.mxu0 %v4035_v1  ;;  %4396 = vmatmul.mubr.f32.vlgmr.msra.gmra.mxu1 %v4035_v1  ;;  %v4228_v31 = vadd.f32 1.0, %v5851_v44  ;;  %11823 = vst [vmem:[#allocation103_spill] sm:$0xff] %v9801_v6  ;;  %v9804_v1 = vld [vmem:[#allocation5 + $0x178] sm:$0xff]  ;;  %v5853_v30 = vpop.eup %5852  ;;  %v9807_v44 = vld [vmem:[#allocation5 + $0x160] sm:$0xff] }
 0x836   :  { %4409 = vmatpush1.msra.mxu0 %v9759_v50  ;;  %4480 = vmatpush1.msra.mxu1 %v9762_v21  ;;  %5864 = vrcp.f32 %v4225_v11  ;;  %11824 = vst [vmem:[#allocation104_spill] sm:$0xff] %v9804_v1  ;;  %11825 = vst [vmem:[#allocation105_spill] sm:$0xff] %v9807_v44  ;;  %v9810_v11 = vld [vmem:[#allocation5 + $0x170] sm:$0xff] }
 0x837   :  { %4410 = vmatprep.subr.mxu0 %v9765_v56  ;;  %4481 = vmatprep.subr.mxu1 %v9768_v54  ;;  %5866 = vrcp.f32 %v4228_v31  ;;  %11826 = vst [vmem:[#allocation106_spill] sm:$0xff] %v9810_v11  ;;  %v5855_v31 = vpop.eup %5854  ;;  %v9857_v54 = vld [vmem:[#allocation5 + $0xe0] sm:$0xff] }
 0x838   :  { %4411 = vmatpush1.msra.mxu0 %v9771_v39  ;;  %4482 = vmatpush1.msra.mxu1 %v9774_v63  ;;  %v9845_v63 = vld [vmem:[#allocation5 + $0x100] sm:$0xff] }
 0x839   :  { %4412 = vmatprep.subr.mxu0 %v9777_v18  ;;  %4483 = vmatprep.subr.mxu1 %v9780_v52  ;;  %v9838_v52 = vld [vmem:[#allocation5 + $0x108] sm:$0xff]  ;;  %v4247_v18 = vrot.slane %v9340_v27, 7  ;;  %11837 = vst [vmem:[#allocation117_spill] sm:$0xff] %v9845_v63 }
 0x83a   :  { %4413 = vmatpush1.msra.mxu0 %v9783_v15  ;;  %4484 = vmatpush1.msra.mxu1 %v9786_v19  ;;  %v9834_v19 = vld [vmem:[#allocation5 + $0x130] sm:$0xff]  ;;  %v4226_v15 = vadd.f32 1.0, %v5853_v30  ;;  %11835 = vst [vmem:[#allocation115_spill] sm:$0xff] %v9838_v52 }
 0x83b   :  { %4414 = vmatprep.subr.mxu0 %v9789_v23  ;;  %4485 = vmatprep.subr.mxu1 %v9792_v28  ;;  %v9822_v28 = vld [vmem:[#allocation5 + $0x150] sm:$0xff]  ;;  %v9828_v23 = vld [vmem:[#allocation5 + $0x138] sm:$0xff]  ;;  %11834 = vst [vmem:[#allocation114_spill] sm:$0xff] %v9834_v19 }
 0x83c   :  { %4415 = vmatpush1.msra.mxu0 %v9795_v57  ;;  %4486 = vmatpush1.msra.mxu1 %v9798_v35  ;;  %v9813_v57 = vld [vmem:[#allocation5 + $0x148] sm:$0xff]  ;;  %v9816_v35 = vld [vmem:[#allocation5 + $0x158] sm:$0xff]  ;;  %11830 = vst [vmem:[#allocation110_spill] sm:$0xff] %v9822_v28  ;;  %11832 = vst [vmem:[#allocation112_spill] sm:$0xff] %v9828_v23  ;;  %5868 = vrcp.f32 %v4226_v15 }
 0x83d   :  { %4416 = vmatprep.subr.mxu0 %v9801_v6  ;;  %4487 = vmatprep.subr.mxu1 %v9804_v1  ;;  %11827 = vst [vmem:[#allocation107_spill] sm:$0xff] %v9813_v57  ;;  %11828 = vst [vmem:[#allocation108_spill] sm:$0xff] %v9816_v35  ;;  %v5857_v6 = vpop.eup %5856  ;;  %v9819_v1 = vld [vmem:[#allocation5 + $0x140] sm:$0xff]  ;;  %v9883_v15 = vld [vmem:[#allocation5 + $0xb8] sm:$0xff] }
 0x83e   :  { %4417 = vmatpush1.msra.mxu0 %v9807_v44  ;;  %4488 = vmatpush1.msra.mxu1 %v9810_v11  ;;  %11829 = vst [vmem:[#allocation109_spill] sm:$0xff] %v9819_v1  ;;  %v5859_v44 = vpop.eup %5858  ;;  %v9825_v11 = vld [vmem:[#allocation5 + $0x128] sm:$0xff]  ;;  %11842 = vst [vmem:[#allocation122_spill] sm:$0xff] %v9883_v15 }
 0x83f   :  { %4418 = vmatprep.subr.mxu0 %v9813_v57  ;;  %4489 = vmatprep.subr.mxu1 %v9816_v35  ;;  %11831 = vst [vmem:[#allocation111_spill] sm:$0xff] %v9825_v11  ;;  %v5861_v57 = vpop.eup %5860  ;;  %v9831_v35 = vld [vmem:[#allocation5 + $0x120] sm:$0xff] }
 0x840   :  { %4419 = vmatpush1.msra.mxu0 %v9819_v1  ;;  %4490 = vmatpush1.msra.mxu1 %v9822_v28  ;;  %11833 = vst [vmem:[#allocation113_spill] sm:$0xff] %v9831_v35  ;;  %v5863_v1 = vpop.eup %5862  ;;  %v4246_v28 = vrot.slane %v9336_v33, 7  ;;  %v4252_v39 = vmul.f32 %v5861_v57, %v5857_v6  ;;  %v9868_v57 = vld [vmem:[#allocation5 + $0xd8] sm:$0xff]  ;;  %v9873_v6 = vld [vmem:[#allocation5 + $0xc0] sm:$0xff] }
 0x841   :  { %4420 = vmatprep.subr.mxu0 %v9825_v11  ;;  %4491 = vmatprep.subr.mxu1 %v9828_v23  ;;  %v9841_v11 = vld [vmem:[#allocation5 + $0x118] sm:$0xff]  ;;  %11838 = vst [vmem:[#allocation118_spill] sm:$0xff] %v9868_v57  ;;  %11839 = vst [vmem:[#allocation119_spill] sm:$0xff] %v9873_v6 }
 0x842   :  { %4421 = vmatpush1.msra.mxu0 %v9831_v35  ;;  %4492 = vmatpush1.msra.mxu1 %v9834_v19  ;;  %11836 = vst [vmem:[#allocation116_spill] sm:$0xff] %v9841_v11  ;;  %v4229_v35 = vadd.f32 1.0, %v5855_v31  ;;  %v9848_v19 = vld [vmem:[#allocation5 + $0x110] sm:$0xff]  ;;  %v4253_v31 = vmul.f32 %v5863_v1, %v5859_v44 }
 0x843   :  { %4422 = vmatprep.subr.mxu0 %v9838_v52  ;;  %4493 = vmatprep.subr.mxu1 %v9841_v11  ;;  %v5865_v23 = vpop.eup %5864  ;;  %v9851_v52 = vld [vmem:[#allocation5 + $0xe8] sm:$0xff]  ;;  %v9854_v11 = vld [vmem:[#allocation5 + $0xf8] sm:$0xff]  ;;  %v9876_v1 = vld [vmem:[#allocation5 + $0xd0] sm:$0xff] }
 0x844   :  { %4423 = vmatpush1.msra.mxu0 %v9845_v63  ;;  %4494 = vmatpush1.msra.mxu1 %v9848_v19  ;;  %v5867_v33 = vpop.eup %5866  ;;  %v4250_v30 = vmul.f32 %v5865_v23, %v4246_v28  ;;  %v9860_v63 = vld [vmem:[#allocation5 + $0xf0] sm:$0xff]  ;;  %v9865_v28 = vld [vmem:[#allocation5 + $0xc8] sm:$0xff]  ;;  %5870 = vrcp.f32 %v4229_v35  ;;  %11840 = vst [vmem:[#allocation120_spill] sm:$0xff] %v9876_v1  ;;  %v9887_v35 = vld [vmem:[#allocation5 + $0xa0] sm:$0xff] }
 0x845   :  { %4424 = vmatprep.subr.mxu0 %v9851_v52  ;;  %4495 = vmatprep.subr.mxu1 %v9854_v11  ;;  %v4251_v27 = vmul.f32 %v5867_v33, %v4247_v18  ;;  %11843 = vst [vmem:[#allocation123_spill] sm:$0xff] %v9887_v35  ;;  %v9890_v44 = vld [vmem:[#allocation5 + $0xb0] sm:$0xff]  ;;  %v9893_v33 = vld [vmem:[#allocation5 + $0x88] sm:$0xff] }
 0x846   :  { %4425 = vmatpush1.msra.mxu0 %v9857_v54  ;;  %4496 = vmatpush1.msra.mxu1 %v9860_v63  ;;  %v9863_v23 = vadd.f32 %v4252_v39, %v4250_v30  ;;  %v9880_v39 = vld [vmem:[#allocation5 + $0xa8] sm:$0xff]  ;;  %11844 = vst [vmem:[#allocation124_spill] sm:$0xff] %v9890_v44  ;;  %11845 = vst [vmem:[#allocation125_spill] sm:$0xff] %v9893_v33  ;;  %v9896_v30 = vld [vmem:[#allocation5 + $0x98] sm:$0xff] }
 0x847   :  { %4426 = vmatprep.subr.mxu0 %v9865_v28  ;;  %4497 = vmatprep.subr.mxu1 %v9868_v57  ;;  %v9871_v18 = vadd.f32 %v4253_v31, %v4251_v27  ;;  %11841 = vst [vmem:[#allocation121_spill] sm:$0xff] %v9880_v39  ;;  %11846 = vst [vmem:[#allocation126_spill] sm:$0xff] %v9896_v30  ;;  %v9899_v27 = vld [vmem:[#allocation5 + $0x80] sm:$0xff]  ;;  %v9902_v31 = vld [vmem:[#allocation5 + $0x90] sm:$0xff] }
 0x848   :  { %4427 = vmatpush1.msra.mxu0 %v9873_v6  ;;  %4498 = vmatpush1.msra.mxu1 %v9876_v1  ;;  %5872 = vtanh.f32 %v9863_v23  ;;  %11847 = vst [vmem:[#allocation127_spill] sm:$0xff] %v9899_v27  ;;  %11848 = vst [vmem:[#allocation128_spill] sm:$0xff] %v9902_v31  ;;  %v6523_v57 = vld [vmem:[#allocation2 + $0x1c8] sm:$0xff] }
 0x849   :  { %4428 = vmatprep.subr.mxu0 %v9880_v39  ;;  %4499 = vmatprep.subr.mxu1 %v9883_v15  ;;  %5874 = vtanh.f32 %v9871_v18  ;;  %v9947_v15 = vld [vmem:[#allocation5] sm:$0xff] }
 0x84a   :  { %4429 = vmatpush1.msra.mxu0 %v9887_v35  ;;  %4500 = vmatpush1.msra.mxu1 %v9890_v44  ;;  %v9905_v35 = vld [vmem:[#allocation5 + $0x68] sm:$0xff]  ;;  %v9908_v44 = vld [vmem:[#allocation5 + $0x78] sm:$0xff]  ;;  %11863 = vst [vmem:[#allocation143_spill] sm:$0xff] %v9947_v15 }
 0x84b   :  { %4430 = vmatprep.subr.mxu0 %v9893_v33  ;;  %4501 = vmatprep.subr.mxu1 %v9896_v30  ;;  %11849 = vst [vmem:[#allocation129_spill] sm:$0xff] %v9905_v35  ;;  %11850 = vst [vmem:[#allocation130_spill] sm:$0xff] %v9908_v44  ;;  %v9911_v33 = vld [vmem:[#allocation5 + $0x60] sm:$0xff]  ;;  %v9914_v30 = vld [vmem:[#allocation5 + $0x70] sm:$0xff] }
 0x84c   :  { %4431 = vmatpush1.msra.mxu0 %v9899_v27  ;;  %4502 = vmatpush1.msra.mxu1 %v9902_v31  ;;  %11851 = vst [vmem:[#allocation131_spill] sm:$0xff] %v9911_v33  ;;  %11852 = vst [vmem:[#allocation132_spill] sm:$0xff] %v9914_v30  ;;  %v9917_v27 = vld [vmem:[#allocation5 + $0x48] sm:$0xff]  ;;  %v9920_v31 = vld [vmem:[#allocation5 + $0x58] sm:$0xff] }
 0x84d   :  { %4432 = vmatprep.subr.mxu0 %v9905_v35  ;;  %4503 = vmatprep.subr.mxu1 %v9908_v44  ;;  %11853 = vst [vmem:[#allocation133_spill] sm:$0xff] %v9917_v27  ;;  %11854 = vst [vmem:[#allocation134_spill] sm:$0xff] %v9920_v31  ;;  %v9923_v35 = vld [vmem:[#allocation5 + $0x40] sm:$0xff]  ;;  %v9926_v44 = vld [vmem:[#allocation5 + $0x50] sm:$0xff] }
 0x84e   :  { %4433 = vmatpush1.msra.mxu0 %v9911_v33  ;;  %4504 = vmatpush1.msra.mxu1 %v9914_v30  ;;  %11855 = vst [vmem:[#allocation135_spill] sm:$0xff] %v9923_v35  ;;  %11856 = vst [vmem:[#allocation136_spill] sm:$0xff] %v9926_v44  ;;  %v9929_v33 = vld [vmem:[#allocation5 + $0x28] sm:$0xff]  ;;  %v9932_v30 = vld [vmem:[#allocation5 + $0x38] sm:$0xff] }
 0x84f   :  { %4434 = vmatprep.subr.mxu0 %v9917_v27  ;;  %4505 = vmatprep.subr.mxu1 %v9920_v31  ;;  %11857 = vst [vmem:[#allocation137_spill] sm:$0xff] %v9929_v33  ;;  %11858 = vst [vmem:[#allocation138_spill] sm:$0xff] %v9932_v30  ;;  %v9935_v27 = vld [vmem:[#allocation5 + $0x20] sm:$0xff]  ;;  %v9938_v31 = vld [vmem:[#allocation5 + $0x30] sm:$0xff] }
 0x850   :  { %4435 = vmatpush1.msra.mxu0 %v9923_v35  ;;  %4506 = vmatpush1.msra.mxu1 %v9926_v44  ;;  %11859 = vst [vmem:[#allocation139_spill] sm:$0xff] %v9935_v27  ;;  %11860 = vst [vmem:[#allocation140_spill] sm:$0xff] %v9938_v31  ;;  %v9941_v35 = vld [vmem:[#allocation5 + $0x8] sm:$0xff]  ;;  %v9944_v44 = vld [vmem:[#allocation5 + $0x18] sm:$0xff] }
 0x851   :  { %4436 = vmatprep.subr.mxu0 %v9929_v33  ;;  %4507 = vmatprep.subr.mxu1 %v9932_v30  ;;  %11861 = vst [vmem:[#allocation141_spill] sm:$0xff] %v9941_v35  ;;  %11862 = vst [vmem:[#allocation142_spill] sm:$0xff] %v9944_v44  ;;  %v5869_v33 = vpop.eup %5868  ;;  %v9950_v30 = vld [vmem:[#allocation5 + $0x10] sm:$0xff] }
 0x852   :  { %4437 = vmatpush1.msra.mxu0 %v9935_v27  ;;  %4508 = vmatpush1.msra.mxu1 %v9938_v31  ;;  %11864 = vst [vmem:[#allocation144_spill] sm:$0xff] %v9950_v30  ;;  %v5871_v27 = vpop.eup %5870 }
 0x853   :  { %4438 = vmatprep.subr.mxu0 %v9941_v35  ;;  %4509 = vmatprep.subr.mxu1 %v9944_v44 }
 0x854   :  { %4439 = vmatpush1.msra.mxu0 %v9947_v15  ;;  %4510 = vmatpush1.msra.mxu1 %v9950_v30  ;;  %v6522_v30 = vld [vmem:[#allocation2 + $0x1e0] sm:$0xff] }
 0x855   :  { %4472 = vmatprep.mubr.f32.mxu0 %v11035_v53  ;;  %4543 = vmatprep.mubr.f32.mxu1 %v11035_v53  ;;  %v5873_v31 = vpop.eup %5872 }
 0x856   :  { %4578 = vmatprep.subr.mxu0 %v9372_v13  ;;  %4649 = vmatprep.subr.mxu1 %v9375_v24  ;;  %v5875_v44 = vpop.eup %5874  ;;  %v4258_v35 = vmul.f32 %v5873_v31, %v5869_v33  ;;  %v6524_v13 = vld [vmem:[#allocation2 + $0x1c0] sm:$0xff]  ;;  %v6525_v24 = vld [vmem:[#allocation2 + $0x1a8] sm:$0xff] }
 0x857   :  { %v4259_v39 = vmul.f32 %v5875_v44, %v5871_v27  ;;  %v11886_v44 = vld [vmem:[#allocation29_spill] sm:$0xff]  ;;  %v11887_v33 = vld [vmem:[#allocation32_spill] sm:$0xff]  ;;  %v11889_v27 = vld [vmem:[#allocation34_spill] sm:$0xff] }
 0x858   :  { %v4404_v1 = vrot.slane %v4258_v35, 6  ;;  %v11885_v35 = vld [vmem:[#allocation30_spill] sm:$0xff]  ;;  %v11890_v31 = vld [vmem:[#allocation33_spill] sm:$0xff] }
 0x859   :  { %v4405_v6 = vrot.slane %v4259_v39, 5  ;;  %v11884_v39 = vld [vmem:[#allocation27_spill] sm:$0xff] }
 0x85b   :  { %v9958_v15 = vsel %vm1137_vm4, %v4405_v6, %v4404_v1  ;;  %v6526_v6 = vld [vmem:[#allocation2 + $0x1a0] sm:$0xff]  ;;  %v6527_v1 = vld [vmem:[#allocation2 + $0x188] sm:$0xff] }
 0x85c   :  { %4473 = vmatmul.mubr.f32.vlgmr.msra.gmra.mxu0 %v9958_v15  ;;  %4544 = vmatmul.mubr.f32.vlgmr.msra.gmra.mxu1 %v9958_v15 }
 0x85d   :  { %4579 = vmatpush1.msra.mxu0 %v6522_v30  ;;  %4650 = vmatpush1.msra.mxu1 %v9384_v40  ;;  %v6528_v40 = vld [vmem:[#allocation2 + $0x180] sm:$0xff] }
 0x85e   :  { %4580 = vmatprep.subr.mxu0 %v6523_v57  ;;  %4651 = vmatprep.subr.mxu1 %v9388_v42  ;;  %v6529_v42 = vld [vmem:[#allocation2 + $0x168] sm:$0xff]  ;;  %v11888_v30 = vld [vmem:[#allocation31_spill] sm:$0xff] }
 0x85f   :  { %4581 = vmatpush1.msra.mxu0 %v6524_v13  ;;  %4652 = vmatpush1.msra.mxu1 %v9392_v60  ;;  %v6530_v60 = vld [vmem:[#allocation2 + $0x160] sm:$0xff] }
 0x860   :  { %4582 = vmatprep.subr.mxu0 %v6525_v24  ;;  %4653 = vmatprep.subr.mxu1 %v9396_v5  ;;  %v6531_v5 = vld [vmem:[#allocation2 + $0x148] sm:$0xff]  ;;  %v11892_v24 = vld [vmem:[#allocation35_spill] sm:$0xff] }
 0x861   :  { %4583 = vmatpush1.msra.mxu0 %v6526_v6  ;;  %4654 = vmatpush1.msra.mxu1 %v9400_v62  ;;  %v6532_v62 = vld [vmem:[#allocation2 + $0x140] sm:$0xff]  ;;  %v11893_v6 = vld [vmem:[#allocation38_spill] sm:$0xff] }
 0x862   :  { %4584 = vmatprep.subr.mxu0 %v6527_v1  ;;  %4655 = vmatprep.subr.mxu1 %v9404_v51  ;;  %v6533_v51 = vld [vmem:[#allocation2 + $0x128] sm:$0xff] }
 0x863   :  { %4585 = vmatpush1.msra.mxu0 %v6528_v40  ;;  %4656 = vmatpush1.msra.mxu1 %v9408_v38  ;;  %v6534_v38 = vld [vmem:[#allocation2 + $0x120] sm:$0xff]  ;;  %v11894_v1 = vld [vmem:[#allocation37_spill] sm:$0xff] }
 0x864   :  { %4586 = vmatprep.subr.mxu0 %v6529_v42  ;;  %4657 = vmatprep.subr.mxu1 %v9412_v3  ;;  %v6535_v3 = vld [vmem:[#allocation2 + $0x108] sm:$0xff]  ;;  %v11896_v40 = vld [vmem:[#allocation39_spill] sm:$0xff]  ;;  %v11897_v42 = vld [vmem:[#allocation42_spill] sm:$0xff] }
 0x865   :  { %4587 = vmatpush1.msra.mxu0 %v6530_v60  ;;  %4658 = vmatpush1.msra.mxu1 %v9416_v4  ;;  %v6536_v4 = vld [vmem:[#allocation2 + $0x100] sm:$0xff]  ;;  %v11898_v60 = vld [vmem:[#allocation41_spill] sm:$0xff] }
 0x866   :  { %4588 = vmatprep.subr.mxu0 %v6531_v5  ;;  %4659 = vmatprep.subr.mxu1 %v9420_v12  ;;  %v11865_v12 = vld [vmem:[#allocation146_spill] sm:$0xff]  ;;  %v11883_v57 = vld [vmem:[#allocation28_spill] sm:$0xff] }
 0x867   :  { %4589 = vmatpush1.msra.mxu0 %v6532_v62  ;;  %4660 = vmatpush1.msra.mxu1 %v9424_v10  ;;  %v11866_v10 = vld [vmem:[#allocation147_spill] sm:$0xff]  ;;  %v11891_v13 = vld [vmem:[#allocation36_spill] sm:$0xff] }
 0x868   :  { %4590 = vmatprep.subr.mxu0 %v6533_v51  ;;  %4661 = vmatprep.subr.mxu1 %v9428_v14  ;;  %v11867_v14 = vld [vmem:[#allocation148_spill] sm:$0xff]  ;;  %v11900_v62 = vld [vmem:[#allocation43_spill] sm:$0xff]  ;;  %v11901_v51 = vld [vmem:[#allocation46_spill] sm:$0xff] }
 0x869   :  { %4591 = vmatpush1.msra.mxu0 %v6534_v38  ;;  %4662 = vmatpush1.msra.mxu1 %v9432_v43  ;;  %v11868_v43 = vld [vmem:[#allocation149_spill] sm:$0xff]  ;;  %v11899_v5 = vld [vmem:[#allocation44_spill] sm:$0xff] }
 0x86a   :  { %4592 = vmatprep.subr.mxu0 %v6535_v3  ;;  %4663 = vmatprep.subr.mxu1 %v9436_v49  ;;  %v11869_v49 = vld [vmem:[#allocation17_spill] sm:$0xff]  ;;  %v11903_v3 = vld [vmem:[#allocation48_spill] sm:$0xff] }
 0x86b   :  { %4593 = vmatpush1.msra.mxu0 %v6536_v4  ;;  %4664 = vmatpush1.msra.mxu1 %v9440_v8  ;;  %v11870_v8 = vld [vmem:[#allocation13_spill] sm:$0xff]  ;;  %v11904_v4 = vld [vmem:[#allocation47_spill] sm:$0xff] }
 0x86c   :  { %4594 = vmatprep.subr.mxu0 %v9443_v9  ;;  %4665 = vmatprep.subr.mxu1 %v9446_v58  ;;  %v11871_v9 = vld [vmem:[#allocation18_spill] sm:$0xff]  ;;  %v11902_v38 = vld [vmem:[#allocation45_spill] sm:$0xff] }
 0x86d   :  { %4595 = vmatpush1.msra.mxu0 %v9449_v2  ;;  %4666 = vmatpush1.msra.mxu1 %v9452_v45  ;;  %v11872_v58 = vld [vmem:[#allocation14_spill] sm:$0xff]  ;;  %v11873_v2 = vld [vmem:[#allocation19_spill] sm:$0xff] }
 0x86e   :  { %4596 = vmatprep.subr.mxu0 %v9455_v16  ;;  %4667 = vmatprep.subr.mxu1 %v9458_v0  ;;  %v11874_v45 = vld [vmem:[#allocation15_spill] sm:$0xff]  ;;  %v11875_v16 = vld [vmem:[#allocation20_spill] sm:$0xff] }
 0x86f   :  { %4597 = vmatpush1.msra.mxu0 %v9461_v32  ;;  %4668 = vmatpush1.msra.mxu1 %v9464_v25  ;;  %v11876_v0 = vld [vmem:[#allocation16_spill] sm:$0xff]  ;;  %v11877_v32 = vld [vmem:[#allocation21_spill] sm:$0xff]  ;;  %v11878_v25 = vld [vmem:[#allocation22_spill] sm:$0xff] }
 0x870   :  { %4598 = vmatprep.subr.mxu0 %v9467_v34  ;;  %4669 = vmatprep.subr.mxu1 %v9470_v46  ;;  %v11879_v34 = vld [vmem:[#allocation24_spill] sm:$0xff]  ;;  %v11880_v46 = vld [vmem:[#allocation23_spill] sm:$0xff] }
 0x871   :  { %4599 = vmatpush1.msra.mxu0 %v9473_v59  ;;  %4670 = vmatpush1.msra.mxu1 %v9476_v48  ;;  %v11881_v59 = vld [vmem:[#allocation26_spill] sm:$0xff]  ;;  %v11882_v48 = vld [vmem:[#allocation25_spill] sm:$0xff] }
 0x872   :  { %4600 = vmatprep.subr.mxu0 %v11865_v12  ;;  %4671 = vmatprep.subr.mxu1 %v11866_v10  ;;  %v11905_v12 = vld [vmem:[#allocation50_spill] sm:$0xff]  ;;  %v11906_v10 = vld [vmem:[#allocation49_spill] sm:$0xff] }
 0x873   :  { %4601 = vmatpush1.msra.mxu0 %v11867_v14  ;;  %4672 = vmatpush1.msra.mxu1 %v11868_v43  ;;  %v11907_v14 = vld [vmem:[#allocation52_spill] sm:$0xff]  ;;  %v11908_v43 = vld [vmem:[#allocation51_spill] sm:$0xff] }
 0x874   :  { %4602 = vmatprep.subr.mxu0 %v11869_v49  ;;  %4673 = vmatprep.subr.mxu1 %v11870_v8  ;;  %v11909_v49 = vld [vmem:[#allocation54_spill] sm:$0xff]  ;;  %v11910_v8 = vld [vmem:[#allocation53_spill] sm:$0xff] }
 0x875   :  { %4603 = vmatpush1.msra.mxu0 %v11871_v9  ;;  %4674 = vmatpush1.msra.mxu1 %v11872_v58  ;;  %v11911_v9 = vld [vmem:[#allocation56_spill] sm:$0xff]  ;;  %v11912_v58 = vld [vmem:[#allocation55_spill] sm:$0xff] }
 0x876   :  { %4604 = vmatprep.subr.mxu0 %v11873_v2  ;;  %4675 = vmatprep.subr.mxu1 %v11874_v45  ;;  %v11913_v2 = vld [vmem:[#allocation58_spill] sm:$0xff]  ;;  %v11914_v45 = vld [vmem:[#allocation57_spill] sm:$0xff] }
 0x877   :  { %4605 = vmatpush1.msra.mxu0 %v11875_v16  ;;  %4676 = vmatpush1.msra.mxu1 %v11876_v0  ;;  %v11915_v16 = vld [vmem:[#allocation60_spill] sm:$0xff]  ;;  %v11916_v0 = vld [vmem:[#allocation59_spill] sm:$0xff] }
 0x878   :  { %4606 = vmatprep.subr.mxu0 %v11877_v32  ;;  %4677 = vmatprep.subr.mxu1 %v11878_v25  ;;  %v11917_v32 = vld [vmem:[#allocation62_spill] sm:$0xff]  ;;  %v11918_v25 = vld [vmem:[#allocation61_spill] sm:$0xff] }
 0x879   :  { %4607 = vmatpush1.msra.mxu0 %v11879_v34  ;;  %4678 = vmatpush1.msra.mxu1 %v11880_v46  ;;  %v11919_v34 = vld [vmem:[#allocation64_spill] sm:$0xff]  ;;  %v11920_v46 = vld [vmem:[#allocation63_spill] sm:$0xff] }
 0x87a   :  { %4608 = vmatprep.subr.mxu0 %v11881_v59  ;;  %4679 = vmatprep.subr.mxu1 %v11882_v48  ;;  %v11921_v59 = vld [vmem:[#allocation66_spill] sm:$0xff]  ;;  %v11922_v48 = vld [vmem:[#allocation65_spill] sm:$0xff] }
 0x87b   :  { %4609 = vmatpush1.msra.mxu0 %v11883_v57  ;;  %4642 = vmatprep.mubr.f32.mxu0 %v11035_v53  ;;  %v11923_v57 = vld [vmem:[#allocation68_spill] sm:$0xff] }
 0x87c   :  { %4680 = vmatpush1.msra.mxu1 %v11884_v39  ;;  %4713 = vmatprep.mubr.f32.mxu1 %v11035_v53  ;;  %v11924_v39 = vld [vmem:[#allocation67_spill] sm:$0xff] }
 0x87d   :  { %4643 = vmatmul.mubr.f32.vlgmr.msra.gmra.mxu0 %v9958_v15  ;;  %4714 = vmatmul.mubr.f32.vlgmr.msra.gmra.mxu1 %v9958_v15  ;;  %v11895_v15 = vld [vmem:[#allocation40_spill] sm:$0xff] }
 0x87e   :  { %4802 = vmatprep.subr.mxu0 %v11885_v35  ;;  %4873 = vmatprep.subr.mxu1 %v11886_v44  ;;  %v11925_v35 = vld [vmem:[#allocation70_spill] sm:$0xff]  ;;  %v11926_v44 = vld [vmem:[#allocation69_spill] sm:$0xff] }
 0x87f   :  { %4803 = vmatpush1.msra.mxu0 %v11887_v33  ;;  %4874 = vmatpush1.msra.mxu1 %v11888_v30  ;;  %v11927_v33 = vld [vmem:[#allocation72_spill] sm:$0xff]  ;;  %v11928_v30 = vld [vmem:[#allocation71_spill] sm:$0xff] }
 0x880   :  { %4804 = vmatprep.subr.mxu0 %v11889_v27  ;;  %4875 = vmatprep.subr.mxu1 %v11890_v31  ;;  %v11929_v27 = vld [vmem:[#allocation74_spill] sm:$0xff]  ;;  %v11930_v31 = vld [vmem:[#allocation73_spill] sm:$0xff] }
 0x881   :  { %4805 = vmatpush1.msra.mxu0 %v11891_v13  ;;  %4876 = vmatpush1.msra.mxu1 %v11892_v24  ;;  %v11931_v13 = vld [vmem:[#allocation76_spill] sm:$0xff]  ;;  %v11932_v24 = vld [vmem:[#allocation75_spill] sm:$0xff] }
 0x882   :  { %4806 = vmatprep.subr.mxu0 %v11893_v6  ;;  %4877 = vmatprep.subr.mxu1 %v11894_v1  ;;  %v11933_v6 = vld [vmem:[#allocation78_spill] sm:$0xff]  ;;  %v11934_v1 = vld [vmem:[#allocation77_spill] sm:$0xff] }
 0x883   :  { %4807 = vmatpush1.msra.mxu0 %v11895_v15  ;;  %4878 = vmatpush1.msra.mxu1 %v11896_v40  ;;  %v11935_v15 = vld [vmem:[#allocation80_spill] sm:$0xff]  ;;  %v11936_v40 = vld [vmem:[#allocation79_spill] sm:$0xff] }
 0x884   :  { %4808 = vmatprep.subr.mxu0 %v11897_v42  ;;  %4879 = vmatprep.subr.mxu1 %v11898_v60  ;;  %v11937_v42 = vld [vmem:[#allocation82_spill] sm:$0xff]  ;;  %v11938_v60 = vld [vmem:[#allocation81_spill] sm:$0xff] }
 0x885   :  { %4809 = vmatpush1.msra.mxu0 %v11899_v5  ;;  %4880 = vmatpush1.msra.mxu1 %v11900_v62  ;;  %v11939_v5 = vld [vmem:[#allocation84_spill] sm:$0xff]  ;;  %v11940_v62 = vld [vmem:[#allocation83_spill] sm:$0xff] }
 0x886   :  { %4810 = vmatprep.subr.mxu0 %v11901_v51  ;;  %4881 = vmatprep.subr.mxu1 %v11902_v38  ;;  %v11941_v51 = vld [vmem:[#allocation85_spill] sm:$0xff]  ;;  %v11942_v38 = vld [vmem:[#allocation86_spill] sm:$0xff] }
 0x887   :  { %4811 = vmatpush1.msra.mxu0 %v11903_v3  ;;  %4882 = vmatpush1.msra.mxu1 %v11904_v4  ;;  %v11943_v3 = vld [vmem:[#allocation87_spill] sm:$0xff]  ;;  %v11944_v4 = vld [vmem:[#allocation150_spill] sm:$0xff] }
 0x888   :  { %4812 = vmatprep.subr.mxu0 %v11905_v12  ;;  %4883 = vmatprep.subr.mxu1 %v11906_v10  ;;  %v11945_v12 = vld [vmem:[#allocation152_spill] sm:$0xff]  ;;  %v11946_v10 = vld [vmem:[#allocation151_spill] sm:$0xff] }
 0x889   :  { %4813 = vmatpush1.msra.mxu0 %v11907_v14  ;;  %4884 = vmatpush1.msra.mxu1 %v11908_v43  ;;  %v11947_v14 = vld [vmem:[#allocation88_spill] sm:$0xff]  ;;  %v11948_v43 = vld [vmem:[#allocation89_spill] sm:$0xff] }
 0x88a   :  { %4814 = vmatprep.subr.mxu0 %v11909_v49  ;;  %4885 = vmatprep.subr.mxu1 %v11910_v8  ;;  %v11949_v49 = vld [vmem:[#allocation90_spill] sm:$0xff]  ;;  %v11950_v8 = vld [vmem:[#allocation91_spill] sm:$0xff] }
 0x88b   :  { %4815 = vmatpush1.msra.mxu0 %v11911_v9  ;;  %4886 = vmatpush1.msra.mxu1 %v11912_v58 }
 0x88c   :  { %4816 = vmatprep.subr.mxu0 %v11913_v2  ;;  %4887 = vmatprep.subr.mxu1 %v11914_v45 }
 0x88d   :  { %4817 = vmatpush1.msra.mxu0 %v11915_v16  ;;  %4888 = vmatpush1.msra.mxu1 %v11916_v0 }
 0x88e   :  { %4818 = vmatprep.subr.mxu0 %v11917_v32  ;;  %4889 = vmatprep.subr.mxu1 %v11918_v25 }
 0x88f   :  { %4819 = vmatpush1.msra.mxu0 %v11919_v34  ;;  %4890 = vmatpush1.msra.mxu1 %v11920_v46 }
 0x890   :  { %4820 = vmatprep.subr.mxu0 %v11921_v59  ;;  %4891 = vmatprep.subr.mxu1 %v11922_v48 }
 0x891   :  { %4821 = vmatpush1.msra.mxu0 %v11923_v57  ;;  %4892 = vmatpush1.msra.mxu1 %v11924_v39 }
 0x892   :  { %4822 = vmatprep.subr.mxu0 %v11925_v35  ;;  %4893 = vmatprep.subr.mxu1 %v11926_v44 }
 0x893   :  { %4823 = vmatpush1.msra.mxu0 %v11927_v33  ;;  %4894 = vmatpush1.msra.mxu1 %v11928_v30 }
 0x894   :  { %4824 = vmatprep.subr.mxu0 %v11929_v27  ;;  %4895 = vmatprep.subr.mxu1 %v11930_v31  ;;  %v11951_v31 = vld [vmem:[#allocation12_spill] sm:$0xff] }
 0x895   :  { %4825 = vmatpush1.msra.mxu0 %v11931_v13  ;;  %4896 = vmatpush1.msra.mxu1 %v11932_v24 }
 0x896   :  { %4826 = vmatprep.subr.mxu0 %v11933_v6  ;;  %4897 = vmatprep.subr.mxu1 %v11934_v1 }
 0x897   :  { %4827 = vmatpush1.msra.mxu0 %v11935_v15  ;;  %4898 = vmatpush1.msra.mxu1 %v11936_v40 }
 0x898   :  { %4828 = vmatprep.subr.mxu0 %v11937_v42  ;;  %4899 = vmatprep.subr.mxu1 %v11938_v60 }
 0x899   :  { %4829 = vmatpush1.msra.mxu0 %v11939_v5  ;;  %4900 = vmatpush1.msra.mxu1 %v11940_v62 }
 0x89a   :  { %4830 = vmatprep.subr.mxu0 %v11941_v51  ;;  %4901 = vmatprep.subr.mxu1 %v11942_v38 }
 0x89b   :  { %4831 = vmatpush1.msra.mxu0 %v11943_v3  ;;  %4902 = vmatpush1.msra.mxu1 %v11944_v4 }
 0x89c   :  { %4832 = vmatprep.subr.mxu0 %v11945_v12  ;;  %4903 = vmatprep.subr.mxu1 %v11946_v10 }
 0x89d   :  { %4833 = vmatpush1.msra.mxu0 %v11947_v14  ;;  %4866 = vmatprep.mubr.f32.mxu0 %v11035_v53 }
 0x89e   :  { %4904 = vmatpush1.msra.mxu1 %v11948_v43  ;;  %4937 = vmatprep.mubr.f32.mxu1 %v11035_v53 }
 0x89f   :  { %4950 = vmatprep.subr.mxu0 %v11949_v49  ;;  %5021 = vmatprep.subr.mxu1 %v11950_v8 }
 0x8f5   :  { %v4326_v9 = vpop.f32.mrf.mxu0  ;;  %v4397_v45 = vpop.f32.mrf.mxu1 }
 0x8f7   :  { %v4328_v58 = vpop.f32.mrf.mxu0  ;;  %v4399_v34 = vpop.f32.mrf.mxu1 }
 0x91c   :  { %v4474_v2 = vpop.f32.mrf.mxu0  ;;  %v4545_v48 = vpop.f32.mrf.mxu1 }
 0x91d   :  { %v4475_v16 = vadd.f32 %v4474_v2, %v4326_v9  ;;  %v4546_v39 = vadd.f32 %v4545_v48, %v4397_v45 }
 0x91e   :  { %v4476_v0 = vpop.f32.mrf.mxu0  ;;  %v4547_v35 = vpop.f32.mrf.mxu1 }
 0x91f   :  { %v4550_v32 = vadd.f32 %v4475_v16, %v7587_v41  ;;  %v4477_v25 = vadd.f32 %v4476_v0, %v4328_v58  ;;  %v4552_v44 = vadd.f32 %v4546_v39, %v7597_v7  ;;  %v4548_v33 = vadd.f32 %v4547_v35, %v4399_v34 }
 0x921   :  { %v5444_v46 = vmul.f32 -1.442695, %v4550_v32  ;;  %v4551_v59 = vadd.f32 %v4477_v25, %v7591_v47  ;;  %v5446_v30 = vmul.f32 -1.442695, %v4552_v44  ;;  %v4553_v13 = vadd.f32 %v4548_v33, %v11951_v31 }
 0x923   :  { %5876 = vpow2.f32 %v5444_v46  ;;  %v5445_v57 = vmul.f32 -1.442695, %v4551_v59 }
 0x925   :  { %5878 = vpow2.f32 %v5445_v57 }
 0x926   :  { %5880 = vpow2.f32 %v5446_v30 }
 0x930   :  { %v5877_v27 = vpop.eup %5876 }
 0x931   :  { %v4563_v24 = vadd.f32 1.0, %v5877_v27 }
 0x932   :  { %v5879_v6 = vpop.eup %5878 }
 0x933   :  { %5882 = vrcp.f32 %v4563_v24  ;;  %v4564_v1 = vadd.f32 1.0, %v5879_v6  ;;  %v5881_v60 = vpop.eup %5880  ;;  %v11953_v6 = vld [vmem:[#allocation93_spill] sm:$0xff] }
 0x934   :  { %5884 = vtanh.f32 %v4553_v13  ;;  %v4565_v14 = vadd.f32 1.0, %v5881_v60  ;;  %v11958_v60 = vld [vmem:[#allocation98_spill] sm:$0xff] }
 0x935   :  { %5886 = vrcp.f32 %v4564_v1  ;;  %v11954_v1 = vld [vmem:[#allocation94_spill] sm:$0xff] }
 0x93d   :  { %v4644_v15 = vpop.f32.mrf.mxu0  ;;  %v4715_v45 = vpop.f32.mrf.mxu1 }
 0x93e   :  { %v4724_v40 = vrot.slane %v4644_v15, 1  ;;  %v4728_v42 = vrot.slane %v4644_v15, 2  ;;  %v4726_v0 = vrot.slane %v4715_v45, 1  ;;  %v4730_v32 = vrot.slane %v4715_v45, 2  ;;  %v11955_v15 = vld [vmem:[#allocation95_spill] sm:$0xff] }
 0x93f   :  { %v4646_v5 = vpop.f32.mrf.mxu0 }
 0x940   :  { %v5883_v62 = vpop.eup %5882  ;;  %v4740_v51 = vadd.f32 %v4724_v40, %v11107_v29  ;;  %v4744_v38 = vadd.f32 %v4728_v42, %v7381_v17  ;;  %v4725_v4 = vrot.slane %v4646_v5, 1  ;;  %v4729_v12 = vrot.slane %v4646_v5, 2  ;;  %v11956_v40 = vld [vmem:[#allocation96_spill] sm:$0xff]  ;;  %v11957_v42 = vld [vmem:[#allocation97_spill] sm:$0xff]  ;;  %v11962_v5 = vld [vmem:[#allocation102_spill] sm:$0xff] }
 0x941   :  { %v5885_v3 = vpop.eup %5884  ;;  %v4742_v25 = vadd.f32 %v4726_v0, %v7393_v26 }
 0x942   :  { %v5887_v10 = vpop.eup %5886  ;;  %v5447_v43 = vmul.f32 -1.442695, %v4740_v51  ;;  %v5450_v49 = vmul.f32 -1.442695, %v4744_v38  ;;  %v4574_v9 = vmul.f32 %v5885_v3, %v5883_v62  ;;  %v4741_v58 = vadd.f32 %v4725_v4, %v11109_v55  ;;  %v11963_v62 = vld [vmem:[#allocation103_spill] sm:$0xff]  ;;  %v11964_v51 = vld [vmem:[#allocation104_spill] sm:$0xff] }
 0x943   :  { %v4573_v8 = vmul.f32 %v5887_v10, %v9752_v36  ;;  %v4745_v2 = vadd.f32 %v4729_v12, %v11108_v37  ;;  %v4717_v36 = vpop.f32.mrf.mxu1  ;;  %v4746_v55 = vadd.f32 %v4730_v32, %v7397_v22  ;;  %v5449_v46 = vmul.f32 -1.442695, %v4742_v25  ;;  %v11965_v3 = vld [vmem:[#allocation105_spill] sm:$0xff]  ;;  %v11966_v4 = vld [vmem:[#allocation106_spill] sm:$0xff]  ;;  %v11967_v10 = vld [vmem:[#allocation107_spill] sm:$0xff] }
 0x944   :  { %5888 = vpow2.f32 %v5447_v43  ;;  %v5448_v17 = vmul.f32 -1.442695, %v4741_v58  ;;  %v4727_v37 = vrot.slane %v4717_v36, 1  ;;  %v4731_v34 = vrot.slane %v4717_v36, 2  ;;  %v11971_v58 = vld [vmem:[#allocation111_spill] sm:$0xff] }
 0x945   :  { %v10090_v16 = vadd.f32 %v4574_v9, %v4573_v8  ;;  %5890 = vpow2.f32 %v5450_v49  ;;  %v5451_v29 = vmul.f32 -1.442695, %v4745_v2  ;;  %v5452_v59 = vmul.f32 -1.442695, %v4746_v55  ;;  %v11969_v49 = vld [vmem:[#allocation109_spill] sm:$0xff]  ;;  %v11970_v8 = vld [vmem:[#allocation110_spill] sm:$0xff] }
 0x946   :  { %5892 = vrcp.f32 %v4565_v14  ;;  %v4743_v57 = vadd.f32 %v4727_v37, %v7401_v61  ;;  %v4747_v35 = vadd.f32 %v4731_v34, %v7403_v20  ;;  %v11952_v20 = vld [vmem:[#allocation92_spill] sm:$0xff]  ;;  %v4788_v32 = vrot.slane %v9863_v23, 7  ;;  %v11975_v25 = vld [vmem:[#allocation115_spill] sm:$0xff] }
 0x947   :  { %5894 = vtanh.f32 %v10090_v16  ;;  %v11968_v14 = vld [vmem:[#allocation108_spill] sm:$0xff]  ;;  %v4789_v34 = vrot.slane %v9871_v18, 7 }
 0x948   :  { %5896 = vpow2.f32 %v5448_v17  ;;  %v11972_v2 = vld [vmem:[#allocation112_spill] sm:$0xff]  ;;  %v11973_v17 = vld [vmem:[#allocation113_spill] sm:$0xff] }
 0x949   :  { %5898 = vpow2.f32 %v5451_v29  ;;  %v11974_v29 = vld [vmem:[#allocation114_spill] sm:$0xff]  ;;  %v11976_v55 = vld [vmem:[#allocation116_spill] sm:$0xff] }
 0x94a   :  { %5900 = vpow2.f32 %v5449_v46 }
 0x94b   :  { %5902 = vpow2.f32 %v5452_v59  ;;  %v11977_v59 = vld [vmem:[#allocation117_spill] sm:$0xff] }
 0x94c   :  { %5904 = vtanh.f32 %v4743_v57 }
 0x94d   :  { %5906 = vtanh.f32 %v4747_v35 }
 0x951   :  { %v5889_v48 = vpop.eup %5888 }
 0x952   :  { %v5891_v39 = vpop.eup %5890  ;;  %v4766_v33 = vadd.f32 1.0, %v5889_v48 }
 0x953   :  { %v5893_v44 = vpop.eup %5892  ;;  %v4769_v27 = vadd.f32 1.0, %v5891_v39 }
 0x954   :  { %v5895_v30 = vpop.eup %5894  ;;  %5908 = vrcp.f32 %v4766_v33  ;;  %v11979_v33 = vld [vmem:[#allocation119_spill] sm:$0xff] }
 0x955   :  { %v4577_v26 = vmul.f32 %v5895_v30, %v5893_v44  ;;  %v5897_v13 = vpop.eup %5896  ;;  %5910 = vrcp.f32 %v4769_v27  ;;  %v11978_v44 = vld [vmem:[#allocation118_spill] sm:$0xff]  ;;  %v11980_v30 = vld [vmem:[#allocation120_spill] sm:$0xff]  ;;  %v11985_v27 = vld [vmem:[#allocation125_spill] sm:$0xff] }
 0x956   :  { %v5899_v22 = vpop.eup %5898  ;;  %v4767_v24 = vadd.f32 1.0, %v5897_v13  ;;  %v11988_v13 = vld [vmem:[#allocation128_spill] sm:$0xff] }
 0x957   :  { %4867 = vmatmul.mubr.f32.vlgmr.msra.gmra.mxu0 %v4577_v26  ;;  %4938 = vmatmul.mubr.f32.vlgmr.msra.gmra.mxu1 %v4577_v26  ;;  %v4770_v61 = vadd.f32 1.0, %v5899_v22  ;;  %v5901_v38 = vpop.eup %5900  ;;  %v11987_v26 = vld [vmem:[#allocation127_spill] sm:$0xff]  ;;  %v11989_v22 = vld [vmem:[#allocation129_spill] sm:$0xff] }
 0x958   :  { %4951 = vmatpush1.msra.mxu0 %v9759_v50  ;;  %5022 = vmatpush1.msra.mxu1 %v9762_v21  ;;  %5912 = vrcp.f32 %v4767_v24  ;;  %v11959_v50 = vld [vmem:[#allocation99_spill] sm:$0xff]  ;;  %v11960_v21 = vld [vmem:[#allocation100_spill] sm:$0xff]  ;;  %v5903_v12 = vpop.eup %5902  ;;  %v4768_v36 = vadd.f32 1.0, %v5901_v38  ;;  %v11990_v24 = vld [vmem:[#allocation130_spill] sm:$0xff] }
 0x959   :  { %4952 = vmatprep.subr.mxu0 %v9765_v56  ;;  %5023 = vmatprep.subr.mxu1 %v11952_v20  ;;  %5914 = vrcp.f32 %v4770_v61  ;;  %v11961_v56 = vld [vmem:[#allocation101_spill] sm:$0xff]  ;;  %v5905_v43 = vpop.eup %5904  ;;  %v4771_v46 = vadd.f32 1.0, %v5903_v12  ;;  %v11991_v61 = vld [vmem:[#allocation131_spill] sm:$0xff]  ;;  %v11992_v20 = vld [vmem:[#allocation132_spill] sm:$0xff] }
 0x95a   :  { %4953 = vmatpush1.msra.mxu0 %v11953_v6  ;;  %5024 = vmatpush1.msra.mxu1 %v11954_v1  ;;  %v5907_v9 = vpop.eup %5906  ;;  %5916 = vrcp.f32 %v4768_v36  ;;  %v11993_v6 = vld [vmem:[#allocation133_spill] sm:$0xff]  ;;  %v11994_v1 = vld [vmem:[#allocation134_spill] sm:$0xff] }
 0x95b   :  { %4954 = vmatprep.subr.mxu0 %v11955_v15  ;;  %5025 = vmatprep.subr.mxu1 %v11956_v40  ;;  %5918 = vrcp.f32 %v4771_v46  ;;  %v11995_v15 = vld [vmem:[#allocation135_spill] sm:$0xff]  ;;  %v11996_v40 = vld [vmem:[#allocation136_spill] sm:$0xff]  ;;  %v5122_v46 = vld [vmem:[%s10298_s13 + $0x10] sm:$0xff] }
 0x95c   :  { %4955 = vmatpush1.msra.mxu0 %v11957_v42  ;;  %5026 = vmatpush1.msra.mxu1 %v11958_v60  ;;  %v11997_v42 = vld [vmem:[#allocation137_spill] sm:$0xff]  ;;  %v11998_v60 = vld [vmem:[#allocation138_spill] sm:$0xff] }
 0x95d   :  { %4956 = vmatprep.subr.mxu0 %v11959_v50  ;;  %5027 = vmatprep.subr.mxu1 %v11960_v21  ;;  %v11999_v50 = vld [vmem:[#allocation139_spill] sm:$0xff]  ;;  %v12000_v21 = vld [vmem:[#allocation140_spill] sm:$0xff] }
 0x95e   :  { %4957 = vmatpush1.msra.mxu0 %v11961_v56  ;;  %5028 = vmatpush1.msra.mxu1 %v11962_v5  ;;  %v12001_v56 = vld [vmem:[#allocation141_spill] sm:$0xff]  ;;  %v12002_v5 = vld [vmem:[#allocation142_spill] sm:$0xff] }
 0x95f   :  { %4958 = vmatprep.subr.mxu0 %v11963_v62  ;;  %5029 = vmatprep.subr.mxu1 %v11964_v51  ;;  %v12003_v51 = vld [vmem:[#allocation143_spill] sm:$0xff] }
 0x960   :  { %4959 = vmatpush1.msra.mxu0 %v11965_v3  ;;  %5030 = vmatpush1.msra.mxu1 %v11966_v4  ;;  %v12004_v3 = vld [vmem:[#allocation144_spill] sm:$0xff]  ;;  %v5127_v36 = vld [vmem:[%s10298_s13 + $0x38] sm:$0xff] }
 0x961   :  { %4960 = vmatprep.subr.mxu0 %v11967_v10  ;;  %5031 = vmatprep.subr.mxu1 %v11968_v14  ;;  %v5909_v45 = vpop.eup %5908 }
 0x962   :  { %4961 = vmatpush1.msra.mxu0 %v11969_v49  ;;  %5032 = vmatpush1.msra.mxu1 %v11970_v8  ;;  %v5911_v0 = vpop.eup %5910  ;;  %v4794_v39 = vmul.f32 %v5909_v45, %v5905_v43  ;;  %v5132_v45 = vld [vmem:[%s10298_s13 + $0x60] sm:$0xff] }
 0x963   :  { %4962 = vmatprep.subr.mxu0 %v11971_v58  ;;  %5033 = vmatprep.subr.mxu1 %v11972_v2  ;;  %v4795_v35 = vmul.f32 %v5911_v0, %v5907_v9  ;;  %v5135_v9 = vld [vmem:[%s10298_s13 + $0x78] sm:$0xff]  ;;  %v5134_v58 = vld [vmem:[%s10298_s13 + $0x70] sm:$0xff]  ;;  %v5133_v2 = vld [vmem:[%s10298_s13 + $0x68] sm:$0xff] }
 0x964   :  { %4963 = vmatpush1.msra.mxu0 %v11973_v17  ;;  %5034 = vmatpush1.msra.mxu1 %v11974_v29  ;;  %v5131_v17 = vld [vmem:[%s10298_s13 + $0x58] sm:$0xff]  ;;  %v5130_v29 = vld [vmem:[%s10298_s13 + $0x50] sm:$0xff]  ;;  %v5129_v0 = vld [vmem:[%s10298_s13 + $0x48] sm:$0xff] }
 0x965   :  { %4964 = vmatprep.subr.mxu0 %v11975_v25  ;;  %5035 = vmatprep.subr.mxu1 %v11976_v55  ;;  %v5913_v37 = vpop.eup %5912  ;;  %v5126_v25 = vld [vmem:[%s10298_s13 + $0x30] sm:$0xff]  ;;  %v5125_v55 = vld [vmem:[%s10298_s13 + $0x28] sm:$0xff] }
 0x966   :  { %4965 = vmatpush1.msra.mxu0 %v11977_v59  ;;  %5036 = vmatpush1.msra.mxu1 %v9848_v19  ;;  %v5915_v48 = vpop.eup %5914  ;;  %v4792_v57 = vmul.f32 %v5913_v37, %v4788_v32  ;;  %v5128_v32 = vld [vmem:[%s10298_s13 + $0x40] sm:$0xff]  ;;  %v5121_v59 = vld [vmem:[%s10298_s13 + $0x8] sm:$0xff] }
 0x967   :  { %4966 = vmatprep.subr.mxu0 %v9851_v52  ;;  %5037 = vmatprep.subr.mxu1 %v9854_v11  ;;  %v4793_v23 = vmul.f32 %v5915_v48, %v4789_v34  ;;  %v11981_v52 = vld [vmem:[#allocation121_spill] sm:$0xff]  ;;  %v11982_v11 = vld [vmem:[#allocation122_spill] sm:$0xff]  ;;  %v5917_v62 = vpop.eup %5916  ;;  %v5124_v37 = vld [vmem:[%s10298_s13 + $0x20] sm:$0xff] }
 0x968   :  { %4967 = vmatpush1.msra.mxu0 %v9857_v54  ;;  %5038 = vmatpush1.msra.mxu1 %v9860_v63  ;;  %v4796_v18 = vadd.f32 %v4794_v39, %v4792_v57  ;;  %v11983_v54 = vld [vmem:[#allocation123_spill] sm:$0xff]  ;;  %v11984_v63 = vld [vmem:[#allocation124_spill] sm:$0xff]  ;;  %v5919_v38 = vpop.eup %5918  ;;  %v5219_v39 = vld [vmem:[%s10300_s15 + $0x30] sm:$0xff] }
 0x969   :  { %4968 = vmatprep.subr.mxu0 %v9865_v28  ;;  %5039 = vmatprep.subr.mxu1 %v11978_v44  ;;  %v4797_v19 = vadd.f32 %v4795_v35, %v4793_v23  ;;  %v11986_v28 = vld [vmem:[#allocation126_spill] sm:$0xff]  ;;  %v5120_v48 = vld [vmem:[%s10298_s13] sm:$0xff]  ;;  %v5218_v23 = vld [vmem:[%s10300_s15 + $0x28] sm:$0xff] }
 0x96a   :  { %4969 = vmatpush1.msra.mxu0 %v11979_v33  ;;  %5040 = vmatpush1.msra.mxu1 %v11980_v30  ;;  %5920 = vtanh.f32 %v4796_v18  ;;  %v5123_v34 = vld [vmem:[%s10298_s13 + $0x18] sm:$0xff]  ;;  %v5217_v35 = vld [vmem:[%s10300_s15 + $0x20] sm:$0xff]  ;;  %v5215_v44 = vld [vmem:[%s10300_s15 + $0x10] sm:$0xff] }
 0x96b   :  { %4970 = vmatprep.subr.mxu0 %v11981_v52  ;;  %5041 = vmatprep.subr.mxu1 %v11982_v11  ;;  %5922 = vtanh.f32 %v4797_v19  ;;  %v5220_v57 = vld [vmem:[%s10300_s15 + $0x38] sm:$0xff] }
 0x96c   :  { %4971 = vmatpush1.msra.mxu0 %v11983_v54  ;;  %5042 = vmatpush1.msra.mxu1 %v11984_v63  ;;  %v5216_v18 = vld [vmem:[%s10300_s15 + $0x18] sm:$0xff] }
 0x96d   :  { %4972 = vmatprep.subr.mxu0 %v11985_v27  ;;  %5043 = vmatprep.subr.mxu1 %v11986_v28 }
 0x96e   :  { %4973 = vmatpush1.msra.mxu0 %v11987_v26  ;;  %5044 = vmatpush1.msra.mxu1 %v11988_v13 }
 0x96f   :  { %4974 = vmatprep.subr.mxu0 %v11989_v22  ;;  %5045 = vmatprep.subr.mxu1 %v11990_v24 }
 0x970   :  { %4975 = vmatpush1.msra.mxu0 %v11991_v61  ;;  %5046 = vmatpush1.msra.mxu1 %v11992_v20 }
 0x971   :  { %4976 = vmatprep.subr.mxu0 %v11993_v6  ;;  %5047 = vmatprep.subr.mxu1 %v11994_v1 }
 0x972   :  { %4977 = vmatpush1.msra.mxu0 %v11995_v15  ;;  %5048 = vmatpush1.msra.mxu1 %v11996_v40 }
 0x973   :  { %4978 = vmatprep.subr.mxu0 %v11997_v42  ;;  %5049 = vmatprep.subr.mxu1 %v11998_v60 }
 0x974   :  { %4979 = vmatpush1.msra.mxu0 %v11999_v50  ;;  %5050 = vmatpush1.msra.mxu1 %v12000_v21 }
 0x975   :  { %4980 = vmatprep.subr.mxu0 %v12001_v56  ;;  %5051 = vmatprep.subr.mxu1 %v12002_v5 }
 0x976   :  { %4981 = vmatpush1.msra.mxu0 %v12003_v51  ;;  %5014 = vmatprep.mubr.f32.mxu0 %v11035_v53 }
 0x977   :  { %5052 = vmatpush1.msra.mxu1 %v12004_v3  ;;  %5085 = vmatprep.mubr.f32.mxu1 %v11035_v53  ;;  %v5921_v4 = vpop.eup %5920 }
 0x978   :  { %5488 = vmatprep.subr.mxu0 %v11035_v53  ;;  %5523 = vmatprep.subr.mxu1 %v11035_v53  ;;  %v5923_v12 = vpop.eup %5922  ;;  %v4800_v10 = vmul.f32 %v5921_v4, %v5917_v62 }
 0x979   :  { %v4801_v14 = vmul.f32 %v5923_v12, %v5919_v38  ;;  %v5214_v12 = vld [vmem:[%s10300_s15 + $0x8] sm:$0xff] }
 0x97a   :  { %v4946_v43 = vrot.slane %v4800_v10, 7  ;;  %v5213_v10 = vld [vmem:[%s10300_s15] sm:$0xff] }
 0x97b   :  { %v4947_v49 = vrot.slane %v4801_v14, 6 }
 0x97d   :  { %v4948_v8 = vsel %vm1137_vm4, %v4947_v49, %v4946_v43 }
 0x97e   :  { %5015 = vmatmul.mubr.f32.vlgmr.msra.gmra.mxu0 %v4948_v8  ;;  %5086 = vmatmul.mubr.f32.vlgmr.msra.gmra.mxu1 %v4948_v8  ;;  %v5457_v8 = vld [vmem:[%s10301_s16] ss:$0 sm:$0xff] }
 0x97f   :  { %5489 = vmatpush3.msra.mxu0 %v5135_v9  ;;  %5520 = vmatprep.mubr.msk.f32.mxu0 %vm6629_vm5, %v11035_v53 }
 0x980   :  { %5490 = vmatprep.subr.mxu0 %v11035_v53  ;;  %5539 = vmatprep.mubr.msk.f32.mxu1 %vm6629_vm5, %v11035_v53 }
 0x981   :  { %5491 = vmatpush3.msra.mxu0 %v5134_v58  ;;  %5524 = vmatpush3.msra.mxu1 %v5220_v57 }
 0x982   :  { %5492 = vmatprep.subr.mxu0 %v11035_v53  ;;  %5525 = vmatprep.subr.mxu1 %v11035_v53 }
 0x983   :  { %5493 = vmatpush3.msra.mxu0 %v5133_v2  ;;  %5526 = vmatpush3.msra.mxu1 %v5219_v39 }
 0x984   :  { %5494 = vmatprep.subr.mxu0 %v11035_v53  ;;  %5527 = vmatprep.subr.mxu1 %v11035_v53 }
 0x985   :  { %5495 = vmatpush3.msra.mxu0 %v5132_v45  ;;  %5528 = vmatpush3.msra.mxu1 %v5218_v23 }
 0x986   :  { %5496 = vmatprep.subr.mxu0 %v11035_v53  ;;  %5529 = vmatprep.subr.mxu1 %v11035_v53 }
 0x987   :  { %5497 = vmatpush3.msra.mxu0 %v5131_v17  ;;  %5530 = vmatpush3.msra.mxu1 %v5217_v35 }
 0x988   :  { %5498 = vmatprep.subr.mxu0 %v11035_v53  ;;  %5531 = vmatprep.subr.mxu1 %v11035_v53 }
 0x989   :  { %5499 = vmatpush3.msra.mxu0 %v5130_v29  ;;  %5532 = vmatpush3.msra.mxu1 %v5216_v18 }
 0x98a   :  { %5500 = vmatprep.subr.mxu0 %v11035_v53  ;;  %5533 = vmatprep.subr.mxu1 %v11035_v53 }
 0x98b   :  { %5501 = vmatpush3.msra.mxu0 %v5129_v0  ;;  %5534 = vmatpush3.msra.mxu1 %v5215_v44 }
 0x98c   :  { %5502 = vmatprep.subr.mxu0 %v11035_v53  ;;  %5535 = vmatprep.subr.mxu1 %v11035_v53 }
 0x98d   :  { %5503 = vmatpush3.msra.mxu0 %v5128_v32  ;;  %5536 = vmatpush3.msra.mxu1 %v5214_v12 }
 0x98e   :  { %5504 = vmatprep.subr.mxu0 %v11035_v53  ;;  %5537 = vmatprep.subr.mxu1 %v11035_v53 }
 0x98f   :  { %5505 = vmatpush3.msra.mxu0 %v5127_v36  ;;  %5538 = vmatpush3.msra.mxu1 %v5213_v10 }
 0x990   :  { %5506 = vmatprep.subr.mxu0 %v11035_v53 }
 0x991   :  { %5507 = vmatpush3.msra.mxu0 %v5126_v25 }
 0x992   :  { %5508 = vmatprep.subr.mxu0 %v11035_v53 }
 0x993   :  { %5509 = vmatpush3.msra.mxu0 %v5125_v55 }
 0x994   :  { %5510 = vmatprep.subr.mxu0 %v11035_v53 }
 0x995   :  { %5511 = vmatpush3.msra.mxu0 %v5124_v37 }
 0x996   :  { %5512 = vmatprep.subr.mxu0 %v11035_v53 }
 0x997   :  { %5513 = vmatpush3.msra.mxu0 %v5123_v34 }
 0x998   :  { %5514 = vmatprep.subr.mxu0 %v11035_v53 }
 0x999   :  { %5515 = vmatpush3.msra.mxu0 %v5122_v46 }
 0x99a   :  { %5516 = vmatprep.subr.mxu0 %v11035_v53 }
 0x99b   :  { %5517 = vmatpush3.msra.mxu0 %v5121_v59 }
 0x99c   :  { %5518 = vmatprep.subr.mxu0 %v11035_v53 }
 0x99d   :  { %5519 = vmatpush3.msra.mxu0 %v5120_v48 }
 0xa17   :  { %v4868_v19 = vpop.f32.mrf.mxu0  ;;  %v4939_v52 = vpop.f32.mrf.mxu1 }
 0xa19   :  { %v4870_v33 = vpop.f32.mrf.mxu0  ;;  %v4941_v28 = vpop.f32.mrf.mxu1 }
 0xa3e   :  { %v5016_v30 = vpop.f32.mrf.mxu0  ;;  %v5087_v22 = vpop.f32.mrf.mxu1 }
 0xa3f   :  { %v5017_v11 = vadd.f32 %v5016_v30, %v4868_v19  ;;  %v5088_v61 = vadd.f32 %v5087_v22, %v4939_v52  ;;  %v5459_v19 = vld [vmem:[%s10302_s17] ss:$0 sm:$0xff] }
 0xa40   :  { %v5018_v54 = vpop.f32.mrf.mxu0  ;;  %v5089_v20 = vpop.f32.mrf.mxu1  ;;  %v5460_v30 = vld [vmem:[%s10303_s18] ss:$0 sm:$0xff] }
 0xa41   :  { %v5092_v63 = vadd.f32 %v5017_v11, %v7587_v41  ;;  %v5019_v27 = vadd.f32 %v5018_v54, %v4870_v33  ;;  %v5094_v6 = vadd.f32 %v5088_v61, %v7597_v7  ;;  %v5090_v1 = vadd.f32 %v5089_v20, %v4941_v28 }
 0xa43   :  { %v5453_v26 = vmul.f32 -1.442695, %v5092_v63  ;;  %v5093_v13 = vadd.f32 %v5019_v27, %v7591_v47  ;;  %v5455_v15 = vmul.f32 -1.442695, %v5094_v6  ;;  %v5095_v42 = vadd.f32 %v5090_v1, %v11951_v31 }
 0xa45   :  { %5924 = vpow2.f32 %v5453_v26  ;;  %v5454_v24 = vmul.f32 -1.442695, %v5093_v13 }
 0xa47   :  { %5926 = vpow2.f32 %v5454_v24 }
 0xa48   :  { %5928 = vpow2.f32 %v5455_v15 }
 0xa52   :  { %v5925_v40 = vpop.eup %5924 }
 0xa53   :  { %v5105_v60 = vadd.f32 1.0, %v5925_v40 }
 0xa54   :  { %v5927_v41 = vpop.eup %5926 }
 0xa55   :  { %5930 = vrcp.f32 %v5105_v60  ;;  %v5106_v50 = vadd.f32 1.0, %v5927_v41  ;;  %v5929_v47 = vpop.eup %5928 }
 0xa56   :  { %5932 = vtanh.f32 %v5095_v42  ;;  %v5107_v62 = vadd.f32 1.0, %v5929_v47 }
 0xa57   :  { %5934 = vrcp.f32 %v5106_v50 }
 0xa58   :  { %5936 = vrcp.f32 %v5107_v62 }
 0xa62   :  { %v5931_v21 = vpop.eup %5930 }
 0xa63   :  { %v5933_v56 = vpop.eup %5932 }
 0xa64   :  { %v5935_v5 = vpop.eup %5934  ;;  %v5116_v7 = vmul.f32 %v5933_v56, %v5931_v21 }
 0xa65   :  { %v5115_v51 = vmul.f32 %v5935_v5, %v10090_v16  ;;  %v5937_v3 = vpop.eup %5936  ;;  %v5456_v16 = vld [vmem:[%s10299_s14] ss:$0 sm:$0xff] }
 0xa67   :  { %v5117_v38 = vadd.f32 %v5116_v7, %v5115_v51 }
 0xa69   :  { %5938 = vtanh.f32 %v5117_v38 }
 0xa76   :  { %v5939_v31 = vpop.eup %5938 }
 0xa77   :  { %v5119_v4 = vmul.f32 %v5939_v31, %v5937_v3 }
 0xa79   :  { %5521 = vmatmul.mubr.f32.vlgmr.msra.gmra.mxu0 %v5119_v4 }
 0xb39   :  { %v5209_v14 = vpop.f32.mrf.mxu0 }
 0xb3a   :  { %v5210_v43 = vadd.f32 %v5456_v16, %v5209_v14 }
 0xb3b   :  { %v5522_v49 = vpop.f32.mrf.mxu0 }
 0xb3c   :  { %5540 = vmatmul.mubr.msk.f32.vlgmr.msra.gmra.mxu1 %vm5228_vm6, %v5210_v43 }
 0xbfc   :  { %v5298_v9 = vpop.f32.mrf.mxu1 }
 0xbfd   :  { %v5299_v58 = vadd.f32 %v5457_v8, %v5298_v9 }
 0xbfe   :  { %v5541_v2 = vpop.f32.mrf.mxu1 }
 0xbff   :  { %v5303_v53 = vsel %vm5302_vm7, %v5299_v58, 0.0 }
 0xc00   :  { %v5304_v45 = vrot.slane %v5303_v53, 4 }
 0xc02   :  { %v5305_v17 = vadd.f32 %v5304_v45, %v5303_v53 }
 0xc04   :  { %v5306_v29 = vrot.slane %v5305_v17, 2 }
 0xc06   :  { %v5307_v0 = vadd.f32 %v5306_v29, %v5305_v17 }
 0xc08   :  { %v5308_v32 = vrot.slane %v5307_v0, 1 }
 0xc0a   :  { %v5309_v36 = vadd.f32 %v5308_v32, %v5307_v0 }
 0xc0c   :  { %v5311_v25 = vmul.f32 0.5, %v5309_v36 }
 0xc0e   :  { %v5312_v55 = vsub.f32 %v5299_v58, %v5311_v25 }
 0xc10   :  { %v5313_v37 = vmul.f32 %v5312_v55, %v5312_v55 }
 0xc12   :  { %v5314_v34 = vsel %vm5302_vm7, %v5313_v37, 0.0 }
 0xc13   :  { %v5315_v46 = vrot.slane %v5314_v34, 4 }
 0xc15   :  { %v5316_v59 = vadd.f32 %v5315_v46, %v5314_v34 }
 0xc17   :  { %v5317_v48 = vrot.slane %v5316_v59, 2 }
 0xc19   :  { %v5318_v57 = vadd.f32 %v5317_v48, %v5316_v59 }
 0xc1b   :  { %v5319_v39 = vrot.slane %v5318_v57, 1 }
 0xc1d   :  { %v5320_v23 = vadd.f32 %v5319_v39, %v5318_v57 }
 0xc1f   :  { %v5321_v35 = vmul.f32 0.5, %v5320_v23 }
 0xc21   :  { %v5322_v18 = vadd.f32 1e-05, %v5321_v35 }
 0xc23   :  { %5940 = vrsqrt.f32 %v5322_v18 }
 0xc30   :  { %v5941_v44 = vpop.eup %5940 }
 0xc31   :  { %v5324_v33 = vmul.f32 %v5941_v44, %v5312_v55 }
 0xc33   :  { %v5332_v52 = vmul.f32 %v5459_v19, %v5324_v33 }
 0xc35   :  { %v5340_v11 = vadd.f32 %v5460_v30, %v5332_v52 }
 0xc37   :  { %v5461_v54 = vmul.f32 -1.442695, %v5340_v11 }
 0xc39   :  { %5942 = vpow2.f32 %v5461_v54 }
 0xc46   :  { %v5943_v63 = vpop.eup %5942 }
 0xc47   :  { %v5344_v27 = vadd.f32 1.0, %v5943_v63 }
 0xc49   :  { %5944 = vrcp.f32 %v5344_v27 }
 0xc56   :  { %v5945_v28 = vpop.eup %5944 }
 0xc57   :  { %5347 = vst.msk [vmem:[#allocation8] sm:$0x3] %vm5302_vm7, %v5945_v28 }
 0xc58   :  { %6608 = shalt.err (!%p6605_p5)
}
 0xc59   :  { %5357 = dma.vmem_to_hbm [thread:$0]  %s5355_s0, 32, %s10304_s19, [#allocation4]  }
 0xc5a   :  { %6621 = dma.done.wait [#allocation4], 32  }
 0xc5b   :  { %6622 = vsyncadd [#allocation4], 4294967264 }
 0xc5c   :  { %5361 = vsyncpa [#allocation3], 1 }
 0xc5d   :  { %5362 = vsyncpa [#allocation6], 1 }
 0xc5e   :  { %5363 = vsyncpa [#allocation4], 1 }

</bundles_post_ra>
